<compile_context>
chip_gen: v6e
topology: v6e:2x2x1
jax: 0.10.0
libtpu: 0.0.40
codegen_flags: <defaults>
</compile_context>

<pallas_src>
import functools
from itertools import combinations

import jax
import jax.numpy as jnp
import numpy as np
from jax import lax
from jax.experimental import pallas as pl
from jax.experimental.pallas import tpu as pltpu

_UNROLL = 8  # groups per in-kernel loop step (and per batched feats store)


# ---------------------------------------------------------------------------
# Pallas kernel
# ---------------------------------------------------------------------------
def _na2m_kernel(num_mid, num_blocks, unroll, *refs):
    """Grid = (batch_tiles,).  One step = ALL C_pad sub-networks on one tile.

    refs = (x_groups,                       # (C_pad, 2, tb)   per batch tile
            w0t, bw0,                       # (C_pad, H0, 2), (C_pad, H0, 1)
            [wt_l, bw_l] * num_mid,         # (C_pad, h_out, h_in) bf16, (C_pad, h_out, 1) f32
            w_last,                         # (C_pad, h_last, 1)
            feats_out, out_sum)             # (C_pad, tb), (1, tb)
    Layout: batch on the lane axis everywhere (activations are (hidden, tb)).
    """
    x_ref = refs[0]
    w0_ref, bw0_ref = refs[1], refs[2]
    k = 3
    mids = []
    for _ in range(num_mid):
        mids.append((refs[k], refs[k + 1]))
        k += 2
    wl_ref = refs[k]
    feats_ref, out_ref = refs[k + 1], refs[k + 2]

    tb = x_ref.shape[-1]

    def one_group(c):
        # --- first LinReLU: K in {1,2} would waste the MXU -> two VPU
        #     broadcast multiply-adds, bias already folded post-matmul. ---
        xc = x_ref[c]                                        # (2, tb) f32
        w0 = w0_ref[c]                                       # (H0, 2) f32
        h = (w0[:, 0:1] * xc[0:1, :] + w0[:, 1:2] * xc[1:2, :]
             + bw0_ref[c])                                   # (H0, tb)
        h = jnp.maximum(h, 0.0)
        # --- hidden LinReLU layers: bf16 MXU matmuls, f32 accumulation,
        #     folded bias fused into the relu epilogue. ---
        for wt_ref, bw_ref in mids:
            h = jnp.dot(wt_ref[c], h.astype(jnp.bfloat16),
                        preferred_element_type=jnp.float32) + bw_ref[c]
            h = jnp.maximum(h, 0.0)                          # (h_out, tb)
        # --- final Linear(h_last -> 1, bias=False): VPU multiply + sublane
        #     reduce (an N=1 MXU matmul would be wasted). ---
        return jnp.sum(h * wl_ref[c], axis=0, keepdims=True)  # (1, tb) f32

    def block_body(blk, acc):
        base = pl.multiple_of(blk * unroll, unroll)
        rows = jnp.concatenate([one_group(base + u) for u in range(unroll)],
                               axis=0)                       # (unroll, tb)
        # one unmasked (8, tb) store instead of 8 masked single-row stores
        feats_ref[pl.ds(base, unroll), :] = rows
        return acc + jnp.sum(rows, axis=0, keepdims=True)

    acc0 = jnp.zeros((1, tb), jnp.float32)
    acc = lax.fori_loop(0, num_blocks, block_body, acc0)
    out_ref[...] = acc


# ---------------------------------------------------------------------------
# Wrapper
# ---------------------------------------------------------------------------
def _pick_tile(B, row_tile):
    """Largest multiple-of-128 divisor of B <= row_tile, preferring >=2 tiles
    (keeps the 'parallel' batch axis shardable across v7x's two TCs)."""
    if B % 128 != 0:
        return B  # fallback: masked partial stores (pad B for best perf)
    cands = [t for t in range(128, B + 1, 128)
             if B % t == 0 and t <= max(row_tile, 128)]
    if not cands:
        return B
    two_tile = [t for t in cands if B // t >= 2]
    return max(two_tile) if two_tile else max(cands)


def na2m_forward(x, params, group_indices, *, row_tile=256):
    """x: (B, num_inputs) f32.  Returns (out (B,), conc_out (B, C)) — matches
    NA2M.forward (eval mode: dropout = identity)."""
    B, _ = x.shape
    idx = np.asarray(group_indices, dtype=np.int32)               # (C, 2)
    C = int(idx.shape[0])
    C_pad = ((C + _UNROLL - 1) // _UNROLL) * _UNROLL
    num_blocks = C_pad // _UNROLL

    tb = _pick_tile(B, row_tile)
    num_tiles = B // tb

    def padC(a):
        pad = [(0, C_pad - C)] + [(0, 0)] * (a.ndim - 1)
        return jnp.pad(a, pad)

    # ---- glue (not hot path): gather n-ary feature slices, transposed so
    #      batch is the last (lane) axis.  Zero-padded groups contribute 0. ----
    # TODO(synk): for very wide tabular models replace this host gather with
    #             scalar-prefetched indices + an in-kernel gather from a
    #             resident (num_inputs, tb) x^T tile.
    x_groups = padC(jnp.transpose(x)[jnp.asarray(idx)])           # (C_pad, 2, B)

    w0 = padC(params["w0"])                                       # (C_pad, 2, H0)
    b0 = padC(params["b0"])                                       # (C_pad, 2)
    H0 = int(w0.shape[-1])
    w0t = jnp.transpose(w0, (0, 2, 1))                            # (C_pad, H0, 2)
    bw0 = -jnp.einsum("ck,ckh->ch", b0, w0)[:, :, None]           # (C_pad, H0, 1)

    kernel_inputs = [x_groups, w0t, bw0]
    in_specs = [
        pl.BlockSpec((C_pad, 2, tb), lambda i: (0, 0, i)),        # per batch tile
        pl.BlockSpec((C_pad, H0, 2), lambda i: (0, 0, 0)),        # resident
        pl.BlockSpec((C_pad, H0, 1), lambda i: (0, 0, 0)),        # resident
    ]

    per_row_flops = 4 * H0
    for (w, b) in params["mid"]:                                  # (C,h_in,h_out),(C,h_in)
        w = padC(w)
        b = padC(b)
        h_in, h_out = int(w.shape[1]), int(w.shape[2])
        wt = jnp.transpose(w, (0, 2, 1)).astype(jnp.bfloat16)     # (C_pad, h_out, h_in)
        bw = -jnp.einsum("ck,ckh->ch", b, w)[:, :, None]          # (C_pad, h_out, 1) f32
        kernel_inputs += [wt, bw]
        in_specs += [
            pl.BlockSpec((C_pad, h_out, h_in), lambda i: (0, 0, 0)),
            pl.BlockSpec((C_pad, h_out, 1), lambda i: (0, 0, 0)),
        ]
        per_row_flops += 2 * h_in * h_out

    w_last = padC(params["w_last"])                               # (C_pad, h_last)
    h_last = int(w_last.shape[-1])
    kernel_inputs.append(w_last[:, :, None])                      # (C_pad, h_last, 1)
    in_specs.append(pl.BlockSpec((C_pad, h_last, 1), lambda i: (0, 0, 0)))
    per_row_flops += 2 * h_last

    flops = int(B) * int(C_pad) * int(per_row_flops)
    bytes_accessed = int(sum(int(a.size) * a.dtype.itemsize for a in kernel_inputs)
                         + (C_pad * B + B) * 4)

    kernel = functools.partial(_na2m_kernel, len(params["mid"]), num_blocks,
                               _UNROLL)

    feats_t, out_sum = pl.pallas_call(
        kernel,
        grid=(num_tiles,),
        in_specs=in_specs,
        out_specs=(
            # feats transposed (C_pad, B): batch on lanes -> lane-dense stores.
            pl.BlockSpec((C_pad, tb), lambda i: (0, i)),
            # additive sum (1, B): each grid step writes a DISJOINT slice.
            pl.BlockSpec((1, tb), lambda i: (0, i)),
        ),
        out_shape=(
            jax.ShapeDtypeStruct((C_pad, B), jnp.float32),
            jax.ShapeDtypeStruct((1, B), jnp.float32),
        ),
        compiler_params=pltpu.CompilerParams(
            dimension_semantics=("parallel",),
            vmem_limit_bytes=32 * 1024 * 1024),
        cost_estimate=pl.CostEstimate(
            flops=flops, transcendentals=0, bytes_accessed=bytes_accessed),
    )(*kernel_inputs)

    conc_out = jnp.transpose(feats_t[:C, :])                      # (B, C)
    out = out_sum[0] + params["bias"]                             # + self._bias
    return out, conc_out


# ---------------------------------------------------------------------------
# Pure-JAX reference (mirrors the PyTorch NA2M forward exactly, f32)
# ---------------------------------------------------------------------------
def na2m_forward_ref(x, params, group_indices):
    idx = np.asarray(group_indices)
    feats = []
    for c in range(idx.shape[0]):
        h = x[:, idx[c]]                                          # (B, 2)
        h = jnp.maximum((h - params["b0"][c]) @ params["w0"][c], 0.0)
        for (w, b) in params["mid"]:
            h = jnp.maximum((h - b[c]) @ w[c], 0.0)
        feats.append(h @ params["w_last"][c])                     # (B,)
    conc_out = jnp.stack(feats, axis=-1)                          # (B, C)
    out = jnp.sum(conc_out, axis=-1) + params["bias"]
    return out, conc_out


# ---------------------------------------------------------------------------
# Deterministic parameter construction (shapes follow NA2M / LinReLU / Linear)
# ---------------------------------------------------------------------------
def init_params(key, num_inputs, num_pairs, hidden_sizes, num_units=64):
    C = num_inputs + num_pairs
    dims = [num_units] + list(hidden_sizes)     # LinReLU chain after layer 0
    keys = jax.random.split(key, 3 + 2 * (len(dims) - 1))
    it = iter(keys)

    w0 = 0.3 * jax.random.normal(next(it), (C, 2, num_units), jnp.float32)
    b0 = 0.3 * jax.random.normal(next(it), (C, 2), jnp.float32)
    # Unary FeatureNNs (first num_inputs groups) have in_features == 1:
    # zero the padded second-input weight row / bias entry (exact padding).
    unary = jnp.arange(C) < num_inputs                            # (C,)
    second = jnp.arange(2) == 1                                   # (2,)
    w0 = jnp.where(unary[:, None, None] & second[None, :, None], 0.0, w0)
    b0 = jnp.where(unary[:, None] & second[None, :], 0.0, b0)

    mid = []
    for d_in, d_out in zip(dims, dims[1:]):
        w = (0.8 / np.sqrt(d_in)) * jax.random.normal(
            next(it), (C, d_in, d_out), jnp.float32)
        b = 0.3 * jax.random.normal(next(it), (C, d_in), jnp.float32)
        mid.append((w, b))

    w_last = (0.8 / np.sqrt(dims[-1])) * jax.random.normal(
        next(it), (C, dims[-1]), jnp.float32)

    return {"w0": w0, "b0": b0, "mid": mid, "w_last": w_last,
            "bias": jnp.zeros((1,), jnp.float32)}                 # self._bias


if __name__ == "__main__":
    # Small NA2M config: 6 tabular inputs, all 15 pairwise interactions.
    num_inputs = 6
    hidden_sizes = [64, 32]      # FeatureNN/InteractionNN hidden_sizes
    B = 512                      # 2 batch tiles of 256 (keeps both v7x TCs busy)

    pairs = list(combinations(range(num_inputs), 2))              # 15 pairs
    # unary nets padded to order-2 (second input duplicated, zero weight row)
    group_indices = [(i, i) for i in range(num_inputs)] + pairs   # C = 21

    key = jax.random.PRNGKey(0)
    key, kx = jax.random.split(key)
    x = jax.random.normal(kx, (B, num_inputs), jnp.float32)

    params = init_params(key, num_inputs, len(pairs), hidden_sizes)

    out, conc_out = na2m_forward(x, params, group_indices, row_tile=256)
    out = jax.block_until_ready(out)
    conc_out = jax.block_until_ready(conc_out)

    out_exp, conc_exp = na2m_forward_ref(x, params, group_indices)
    assert out.shape == (B,) and conc_out.shape == (B, len(group_indices))
    # bf16 MXU operands (f32 accumulation) -> slightly looser tolerance
    assert jnp.allclose(out, out_exp, atol=1e-2, rtol=1e-2)
    assert jnp.allclose(conc_out, conc_exp, atol=1e-2, rtol=1e-2)

    print("KERNEL_OK")
</pallas_src>

<mosaic_0001>
module attributes {stable_mosaic.version = 11 : i64} {
  func.func @_na2m_kernel(%arg0: i32, %arg1: memref<24x2x256xf32, #tpu.memory_space<vmem>>, %arg2: memref<24x64x2xf32, #tpu.memory_space<vmem>>, %arg3: memref<24x64x1xf32, #tpu.memory_space<vmem>>, %arg4: memref<24x64x64xbf16, #tpu.memory_space<vmem>>, %arg5: memref<24x64x1xf32, #tpu.memory_space<vmem>>, %arg6: memref<24x32x64xbf16, #tpu.memory_space<vmem>>, %arg7: memref<24x32x1xf32, #tpu.memory_space<vmem>>, %arg8: memref<24x32x1xf32, #tpu.memory_space<vmem>>, %arg9: memref<24x256xf32, #tpu.memory_space<vmem>>, %arg10: memref<1x256xf32, #tpu.memory_space<vmem>>) attributes {dimension_semantics = [#tpu.dimension_semantics<parallel>], iteration_bounds = array<i64: 2>, scalar_prefetch = 0 : i64, scratch_operands = 0 : i64, tpu.core_type = #tpu.core_type<tc>, window_params = [{transform_indices = @transform_0, window_bounds = array<i64: 24, 2, 256>}, {pipeline_mode = #tpu.pipeline_mode<synchronous>, transform_indices = @transform_1, window_bounds = array<i64: 24, 64, 2>}, {pipeline_mode = #tpu.pipeline_mode<synchronous>, transform_indices = @transform_2, window_bounds = array<i64: 24, 64, 1>}, {pipeline_mode = #tpu.pipeline_mode<synchronous>, transform_indices = @transform_3, window_bounds = array<i64: 24, 64, 64>}, {pipeline_mode = #tpu.pipeline_mode<synchronous>, transform_indices = @transform_4, window_bounds = array<i64: 24, 64, 1>}, {pipeline_mode = #tpu.pipeline_mode<synchronous>, transform_indices = @transform_5, window_bounds = array<i64: 24, 32, 64>}, {pipeline_mode = #tpu.pipeline_mode<synchronous>, transform_indices = @transform_6, window_bounds = array<i64: 24, 32, 1>}, {pipeline_mode = #tpu.pipeline_mode<synchronous>, transform_indices = @transform_7, window_bounds = array<i64: 24, 32, 1>}, {transform_indices = @transform_8, window_bounds = array<i64: 24, 256>}, {transform_indices = @transform_9, window_bounds = array<i64: 1, 256>}]} {
    %cst = arith.constant 0.000000e+00 : f32
    %0 = vector.broadcast %cst : f32 to vector<1x256xf32>
    %c0_i32 = arith.constant 0 : i32
    %c3_i32 = arith.constant 3 : i32
    %1 = arith.addi %c0_i32, %c3_i32 : i32
    %c1_i32 = arith.constant 1 : i32
    %2 = scf.for %arg11 = %c0_i32 to %1 step %c1_i32 iter_args(%arg12 = %0) -> (vector<1x256xf32>)  : i32 {
      %c8_i32 = arith.constant 8 : i32
      %4 = arith.muli %arg11, %c8_i32 : i32
      %5 = tpu.assume_multiple %4, 8 : i32
      %c0_i32_2 = arith.constant 0 : i32
      %6 = arith.addi %5, %c0_i32_2 : i32
      %7 = arith.index_cast %6 : i32 to index
      %c0_3 = arith.constant 0 : index
      %c0_4 = arith.constant 0 : index
      %8 = vector.load %arg1[%7, %c0_3, %c0_4] : memref<24x2x256xf32, #tpu.memory_space<vmem>>, vector<1x2x256xf32>
      %9 = vector.shape_cast %8 : vector<1x2x256xf32> to vector<2x256xf32>
      %10 = arith.index_cast %6 : i32 to index
      %c0_5 = arith.constant 0 : index
      %c0_6 = arith.constant 0 : index
      %11 = vector.load %arg2[%10, %c0_5, %c0_6] : memref<24x64x2xf32, #tpu.memory_space<vmem>>, vector<1x64x2xf32>
      %12 = vector.shape_cast %11 : vector<1x64x2xf32> to vector<64x2xf32>
      %13 = vector.extract_strided_slice %12 {offsets = [0, 0], sizes = [64, 1], strides = [1, 1]} : vector<64x2xf32> to vector<64x1xf32>
      %14 = vector.extract_strided_slice %9 {offsets = [0, 0], sizes = [1, 256], strides = [1, 1]} : vector<2x256xf32> to vector<1x256xf32>
      %15 = vector.broadcast %13 : vector<64x1xf32> to vector<64x256xf32>
      %16 = vector.broadcast %14 : vector<1x256xf32> to vector<64x256xf32>
      %17 = arith.mulf %15, %16 : vector<64x256xf32>
      %18 = vector.extract_strided_slice %12 {offsets = [0, 1], sizes = [64, 1], strides = [1, 1]} : vector<64x2xf32> to vector<64x1xf32>
      %19 = vector.extract_strided_slice %9 {offsets = [1, 0], sizes = [1, 256], strides = [1, 1]} : vector<2x256xf32> to vector<1x256xf32>
      %20 = vector.broadcast %18 : vector<64x1xf32> to vector<64x256xf32>
      %21 = vector.broadcast %19 : vector<1x256xf32> to vector<64x256xf32>
      %22 = arith.mulf %20, %21 : vector<64x256xf32>
      %23 = arith.addf %17, %22 : vector<64x256xf32>
      %24 = arith.index_cast %6 : i32 to index
      %c0_7 = arith.constant 0 : index
      %c0_8 = arith.constant 0 : index
      %25 = vector.load %arg3[%24, %c0_7, %c0_8] : memref<24x64x1xf32, #tpu.memory_space<vmem>>, vector<1x64x1xf32>
      %26 = vector.shape_cast %25 : vector<1x64x1xf32> to vector<64x1xf32>
      %27 = vector.broadcast %26 : vector<64x1xf32> to vector<64x256xf32>
      %28 = arith.addf %23, %27 : vector<64x256xf32>
      %cst_9 = arith.constant 0.000000e+00 : f32
      %29 = vector.broadcast %cst_9 : f32 to vector<64x256xf32>
      %30 = arith.maximumf %28, %29 : vector<64x256xf32>
      %31 = arith.index_cast %6 : i32 to index
      %c0_10 = arith.constant 0 : index
      %c0_11 = arith.constant 0 : index
      %32 = vector.load %arg4[%31, %c0_10, %c0_11] : memref<24x64x64xbf16, #tpu.memory_space<vmem>>, vector<1x64x64xbf16>
      %33 = vector.shape_cast %32 : vector<1x64x64xbf16> to vector<64x64xbf16>
      %34 = arith.truncf %30 : vector<64x256xf32> to vector<64x256xbf16>
      %cst_12 = arith.constant dense<0.000000e+00> : vector<64x256xf32>
      %35 = tpu.matmul %33, %34, %cst_12 {dimension_numbers = #tpu.dot_dimension_numbers<[1], [0], [0], [1], [0, 0, 1, 1], [], []>} : vector<64x64xbf16>, vector<64x256xbf16>, vector<64x256xf32> -> vector<64x256xf32>
      %36 = arith.index_cast %6 : i32 to index
      %c0_13 = arith.constant 0 : index
      %c0_14 = arith.constant 0 : index
      %37 = vector.load %arg5[%36, %c0_13, %c0_14] : memref<24x64x1xf32, #tpu.memory_space<vmem>>, vector<1x64x1xf32>
      %38 = vector.shape_cast %37 : vector<1x64x1xf32> to vector<64x1xf32>
      %39 = vector.broadcast %38 : vector<64x1xf32> to vector<64x256xf32>
      %40 = arith.addf %35, %39 : vector<64x256xf32>
      %cst_15 = arith.constant 0.000000e+00 : f32
      %41 = vector.broadcast %cst_15 : f32 to vector<64x256xf32>
      %42 = arith.maximumf %40, %41 : vector<64x256xf32>
      %43 = arith.index_cast %6 : i32 to index
      %c0_16 = arith.constant 0 : index
      %c0_17 = arith.constant 0 : index
      %44 = vector.load %arg6[%43, %c0_16, %c0_17] : memref<24x32x64xbf16, #tpu.memory_space<vmem>>, vector<1x32x64xbf16>
      %45 = vector.shape_cast %44 : vector<1x32x64xbf16> to vector<32x64xbf16>
      %46 = arith.truncf %42 : vector<64x256xf32> to vector<64x256xbf16>
      %cst_18 = arith.constant dense<0.000000e+00> : vector<32x256xf32>
      %47 = tpu.matmul %45, %46, %cst_18 {dimension_numbers = #tpu.dot_dimension_numbers<[1], [0], [0], [1], [0, 0, 1, 1], [], []>} : vector<32x64xbf16>, vector<64x256xbf16>, vector<32x256xf32> -> vector<32x256xf32>
      %48 = arith.index_cast %6 : i32 to index
      %c0_19 = arith.constant 0 : index
      %c0_20 = arith.constant 0 : index
      %49 = vector.load %arg7[%48, %c0_19, %c0_20] : memref<24x32x1xf32, #tpu.memory_space<vmem>>, vector<1x32x1xf32>
      %50 = vector.shape_cast %49 : vector<1x32x1xf32> to vector<32x1xf32>
      %51 = vector.broadcast %50 : vector<32x1xf32> to vector<32x256xf32>
      %52 = arith.addf %47, %51 : vector<32x256xf32>
      %cst_21 = arith.constant 0.000000e+00 : f32
      %53 = vector.broadcast %cst_21 : f32 to vector<32x256xf32>
      %54 = arith.maximumf %52, %53 : vector<32x256xf32>
      %55 = arith.index_cast %6 : i32 to index
      %c0_22 = arith.constant 0 : index
      %c0_23 = arith.constant 0 : index
      %56 = vector.load %arg8[%55, %c0_22, %c0_23] : memref<24x32x1xf32, #tpu.memory_space<vmem>>, vector<1x32x1xf32>
      %57 = vector.shape_cast %56 : vector<1x32x1xf32> to vector<32x1xf32>
      %58 = vector.broadcast %57 : vector<32x1xf32> to vector<32x256xf32>
      %59 = arith.mulf %54, %58 : vector<32x256xf32>
      %cst_24 = arith.constant dense<0.000000e+00> : vector<256xf32>
      %60 = vector.multi_reduction <add>, %59, %cst_24 [0] : vector<32x256xf32> to vector<256xf32>
      %61 = vector.shape_cast %60 : vector<256xf32> to vector<1x256xf32>
      %c1_i32_25 = arith.constant 1 : i32
      %62 = arith.addi %5, %c1_i32_25 : i32
      %63 = arith.index_cast %62 : i32 to index
      %c0_26 = arith.constant 0 : index
      %c0_27 = arith.constant 0 : index
      %64 = vector.load %arg1[%63, %c0_26, %c0_27] : memref<24x2x256xf32, #tpu.memory_space<vmem>>, vector<1x2x256xf32>
      %65 = vector.shape_cast %64 : vector<1x2x256xf32> to vector<2x256xf32>
      %66 = arith.index_cast %62 : i32 to index
      %c0_28 = arith.constant 0 : index
      %c0_29 = arith.constant 0 : index
      %67 = vector.load %arg2[%66, %c0_28, %c0_29] : memref<24x64x2xf32, #tpu.memory_space<vmem>>, vector<1x64x2xf32>
      %68 = vector.shape_cast %67 : vector<1x64x2xf32> to vector<64x2xf32>
      %69 = vector.extract_strided_slice %68 {offsets = [0, 0], sizes = [64, 1], strides = [1, 1]} : vector<64x2xf32> to vector<64x1xf32>
      %70 = vector.extract_strided_slice %65 {offsets = [0, 0], sizes = [1, 256], strides = [1, 1]} : vector<2x256xf32> to vector<1x256xf32>
      %71 = vector.broadcast %69 : vector<64x1xf32> to vector<64x256xf32>
      %72 = vector.broadcast %70 : vector<1x256xf32> to vector<64x256xf32>
      %73 = arith.mulf %71, %72 : vector<64x256xf32>
      %74 = vector.extract_strided_slice %68 {offsets = [0, 1], sizes = [64, 1], strides = [1, 1]} : vector<64x2xf32> to vector<64x1xf32>
      %75 = vector.extract_strided_slice %65 {offsets = [1, 0], sizes = [1, 256], strides = [1, 1]} : vector<2x256xf32> to vector<1x256xf32>
      %76 = vector.broadcast %74 : vector<64x1xf32> to vector<64x256xf32>
      %77 = vector.broadcast %75 : vector<1x256xf32> to vector<64x256xf32>
      %78 = arith.mulf %76, %77 : vector<64x256xf32>
      %79 = arith.addf %73, %78 : vector<64x256xf32>
      %80 = arith.index_cast %62 : i32 to index
      %c0_30 = arith.constant 0 : index
      %c0_31 = arith.constant 0 : index
      %81 = vector.load %arg3[%80, %c0_30, %c0_31] : memref<24x64x1xf32, #tpu.memory_space<vmem>>, vector<1x64x1xf32>
      %82 = vector.shape_cast %81 : vector<1x64x1xf32> to vector<64x1xf32>
      %83 = vector.broadcast %82 : vector<64x1xf32> to vector<64x256xf32>
      %84 = arith.addf %79, %83 : vector<64x256xf32>
      %cst_32 = arith.constant 0.000000e+00 : f32
      %85 = vector.broadcast %cst_32 : f32 to vector<64x256xf32>
      %86 = arith.maximumf %84, %85 : vector<64x256xf32>
      %87 = arith.index_cast %62 : i32 to index
      %c0_33 = arith.constant 0 : index
      %c0_34 = arith.constant 0 : index
      %88 = vector.load %arg4[%87, %c0_33, %c0_34] : memref<24x64x64xbf16, #tpu.memory_space<vmem>>, vector<1x64x64xbf16>
      %89 = vector.shape_cast %88 : vector<1x64x64xbf16> to vector<64x64xbf16>
      %90 = arith.truncf %86 : vector<64x256xf32> to vector<64x256xbf16>
      %cst_35 = arith.constant dense<0.000000e+00> : vector<64x256xf32>
      %91 = tpu.matmul %89, %90, %cst_35 {dimension_numbers = #tpu.dot_dimension_numbers<[1], [0], [0], [1], [0, 0, 1, 1], [], []>} : vector<64x64xbf16>, vector<64x256xbf16>, vector<64x256xf32> -> vector<64x256xf32>
      %92 = arith.index_cast %62 : i32 to index
      %c0_36 = arith.constant 0 : index
      %c0_37 = arith.constant 0 : index
      %93 = vector.load %arg5[%92, %c0_36, %c0_37] : memref<24x64x1xf32, #tpu.memory_space<vmem>>, vector<1x64x1xf32>
      %94 = vector.shape_cast %93 : vector<1x64x1xf32> to vector<64x1xf32>
      %95 = vector.broadcast %94 : vector<64x1xf32> to vector<64x256xf32>
      %96 = arith.addf %91, %95 : vector<64x256xf32>
      %cst_38 = arith.constant 0.000000e+00 : f32
      %97 = vector.broadcast %cst_38 : f32 to vector<64x256xf32>
      %98 = arith.maximumf %96, %97 : vector<64x256xf32>
      %99 = arith.index_cast %62 : i32 to index
      %c0_39 = arith.constant 0 : index
      %c0_40 = arith.constant 0 : index
      %100 = vector.load %arg6[%99, %c0_39, %c0_40] : memref<24x32x64xbf16, #tpu.memory_space<vmem>>, vector<1x32x64xbf16>
      %101 = vector.shape_cast %100 : vector<1x32x64xbf16> to vector<32x64xbf16>
      %102 = arith.truncf %98 : vector<64x256xf32> to vector<64x256xbf16>
      %cst_41 = arith.constant dense<0.000000e+00> : vector<32x256xf32>
      %103 = tpu.matmul %101, %102, %cst_41 {dimension_numbers = #tpu.dot_dimension_numbers<[1], [0], [0], [1], [0, 0, 1, 1], [], []>} : vector<32x64xbf16>, vector<64x256xbf16>, vector<32x256xf32> -> vector<32x256xf32>
      %104 = arith.index_cast %62 : i32 to index
      %c0_42 = arith.constant 0 : index
      %c0_43 = arith.constant 0 : index
      %105 = vector.load %arg7[%104, %c0_42, %c0_43] : memref<24x32x1xf32, #tpu.memory_space<vmem>>, vector<1x32x1xf32>
      %106 = vector.shape_cast %105 : vector<1x32x1xf32> to vector<32x1xf32>
      %107 = vector.broadcast %106 : vector<32x1xf32> to vector<32x256xf32>
      %108 = arith.addf %103, %107 : vector<32x256xf32>
      %cst_44 = arith.constant 0.000000e+00 : f32
      %109 = vector.broadcast %cst_44 : f32 to vector<32x256xf32>
      %110 = arith.maximumf %108, %109 : vector<32x256xf32>
      %111 = arith.index_cast %62 : i32 to index
      %c0_45 = arith.constant 0 : index
      %c0_46 = arith.constant 0 : index
      %112 = vector.load %arg8[%111, %c0_45, %c0_46] : memref<24x32x1xf32, #tpu.memory_space<vmem>>, vector<1x32x1xf32>
      %113 = vector.shape_cast %112 : vector<1x32x1xf32> to vector<32x1xf32>
      %114 = vector.broadcast %113 : vector<32x1xf32> to vector<32x256xf32>
      %115 = arith.mulf %110, %114 : vector<32x256xf32>
      %cst_47 = arith.constant dense<0.000000e+00> : vector<256xf32>
      %116 = vector.multi_reduction <add>, %115, %cst_47 [0] : vector<32x256xf32> to vector<256xf32>
      %117 = vector.shape_cast %116 : vector<256xf32> to vector<1x256xf32>
      %c2_i32 = arith.constant 2 : i32
      %118 = arith.addi %5, %c2_i32 : i32
      %119 = arith.index_cast %118 : i32 to index
      %c0_48 = arith.constant 0 : index
      %c0_49 = arith.constant 0 : index
      %120 = vector.load %arg1[%119, %c0_48, %c0_49] : memref<24x2x256xf32, #tpu.memory_space<vmem>>, vector<1x2x256xf32>
      %121 = vector.shape_cast %120 : vector<1x2x256xf32> to vector<2x256xf32>
      %122 = arith.index_cast %118 : i32 to index
      %c0_50 = arith.constant 0 : index
      %c0_51 = arith.constant 0 : index
      %123 = vector.load %arg2[%122, %c0_50, %c0_51] : memref<24x64x2xf32, #tpu.memory_space<vmem>>, vector<1x64x2xf32>
      %124 = vector.shape_cast %123 : vector<1x64x2xf32> to vector<64x2xf32>
      %125 = vector.extract_strided_slice %124 {offsets = [0, 0], sizes = [64, 1], strides = [1, 1]} : vector<64x2xf32> to vector<64x1xf32>
      %126 = vector.extract_strided_slice %121 {offsets = [0, 0], sizes = [1, 256], strides = [1, 1]} : vector<2x256xf32> to vector<1x256xf32>
      %127 = vector.broadcast %125 : vector<64x1xf32> to vector<64x256xf32>
      %128 = vector.broadcast %126 : vector<1x256xf32> to vector<64x256xf32>
      %129 = arith.mulf %127, %128 : vector<64x256xf32>
      %130 = vector.extract_strided_slice %124 {offsets = [0, 1], sizes = [64, 1], strides = [1, 1]} : vector<64x2xf32> to vector<64x1xf32>
      %131 = vector.extract_strided_slice %121 {offsets = [1, 0], sizes = [1, 256], strides = [1, 1]} : vector<2x256xf32> to vector<1x256xf32>
      %132 = vector.broadcast %130 : vector<64x1xf32> to vector<64x256xf32>
      %133 = vector.broadcast %131 : vector<1x256xf32> to vector<64x256xf32>
      %134 = arith.mulf %132, %133 : vector<64x256xf32>
      %135 = arith.addf %129, %134 : vector<64x256xf32>
      %136 = arith.index_cast %118 : i32 to index
      %c0_52 = arith.constant 0 : index
      %c0_53 = arith.constant 0 : index
      %137 = vector.load %arg3[%136, %c0_52, %c0_53] : memref<24x64x1xf32, #tpu.memory_space<vmem>>, vector<1x64x1xf32>
      %138 = vector.shape_cast %137 : vector<1x64x1xf32> to vector<64x1xf32>
      %139 = vector.broadcast %138 : vector<64x1xf32> to vector<64x256xf32>
      %140 = arith.addf %135, %139 : vector<64x256xf32>
      %cst_54 = arith.constant 0.000000e+00 : f32
      %141 = vector.broadcast %cst_54 : f32 to vector<64x256xf32>
      %142 = arith.maximumf %140, %141 : vector<64x256xf32>
      %143 = arith.index_cast %118 : i32 to index
      %c0_55 = arith.constant 0 : index
      %c0_56 = arith.constant 0 : index
      %144 = vector.load %arg4[%143, %c0_55, %c0_56] : memref<24x64x64xbf16, #tpu.memory_space<vmem>>, vector<1x64x64xbf16>
      %145 = vector.shape_cast %144 : vector<1x64x64xbf16> to vector<64x64xbf16>
      %146 = arith.truncf %142 : vector<64x256xf32> to vector<64x256xbf16>
      %cst_57 = arith.constant dense<0.000000e+00> : vector<64x256xf32>
      %147 = tpu.matmul %145, %146, %cst_57 {dimension_numbers = #tpu.dot_dimension_numbers<[1], [0], [0], [1], [0, 0, 1, 1], [], []>} : vector<64x64xbf16>, vector<64x256xbf16>, vector<64x256xf32> -> vector<64x256xf32>
      %148 = arith.index_cast %118 : i32 to index
      %c0_58 = arith.constant 0 : index
      %c0_59 = arith.constant 0 : index
      %149 = vector.load %arg5[%148, %c0_58, %c0_59] : memref<24x64x1xf32, #tpu.memory_space<vmem>>, vector<1x64x1xf32>
      %150 = vector.shape_cast %149 : vector<1x64x1xf32> to vector<64x1xf32>
      %151 = vector.broadcast %150 : vector<64x1xf32> to vector<64x256xf32>
      %152 = arith.addf %147, %151 : vector<64x256xf32>
      %cst_60 = arith.constant 0.000000e+00 : f32
      %153 = vector.broadcast %cst_60 : f32 to vector<64x256xf32>
      %154 = arith.maximumf %152, %153 : vector<64x256xf32>
      %155 = arith.index_cast %118 : i32 to index
      %c0_61 = arith.constant 0 : index
      %c0_62 = arith.constant 0 : index
      %156 = vector.load %arg6[%155, %c0_61, %c0_62] : memref<24x32x64xbf16, #tpu.memory_space<vmem>>, vector<1x32x64xbf16>
      %157 = vector.shape_cast %156 : vector<1x32x64xbf16> to vector<32x64xbf16>
      %158 = arith.truncf %154 : vector<64x256xf32> to vector<64x256xbf16>
      %cst_63 = arith.constant dense<0.000000e+00> : vector<32x256xf32>
      %159 = tpu.matmul %157, %158, %cst_63 {dimension_numbers = #tpu.dot_dimension_numbers<[1], [0], [0], [1], [0, 0, 1, 1], [], []>} : vector<32x64xbf16>, vector<64x256xbf16>, vector<32x256xf32> -> vector<32x256xf32>
      %160 = arith.index_cast %118 : i32 to index
      %c0_64 = arith.constant 0 : index
      %c0_65 = arith.constant 0 : index
      %161 = vector.load %arg7[%160, %c0_64, %c0_65] : memref<24x32x1xf32, #tpu.memory_space<vmem>>, vector<1x32x1xf32>
      %162 = vector.shape_cast %161 : vector<1x32x1xf32> to vector<32x1xf32>
      %163 = vector.broadcast %162 : vector<32x1xf32> to vector<32x256xf32>
      %164 = arith.addf %159, %163 : vector<32x256xf32>
      %cst_66 = arith.constant 0.000000e+00 : f32
      %165 = vector.broadcast %cst_66 : f32 to vector<32x256xf32>
      %166 = arith.maximumf %164, %165 : vector<32x256xf32>
      %167 = arith.index_cast %118 : i32 to index
      %c0_67 = arith.constant 0 : index
      %c0_68 = arith.constant 0 : index
      %168 = vector.load %arg8[%167, %c0_67, %c0_68] : memref<24x32x1xf32, #tpu.memory_space<vmem>>, vector<1x32x1xf32>
      %169 = vector.shape_cast %168 : vector<1x32x1xf32> to vector<32x1xf32>
      %170 = vector.broadcast %169 : vector<32x1xf32> to vector<32x256xf32>
      %171 = arith.mulf %166, %170 : vector<32x256xf32>
      %cst_69 = arith.constant dense<0.000000e+00> : vector<256xf32>
      %172 = vector.multi_reduction <add>, %171, %cst_69 [0] : vector<32x256xf32> to vector<256xf32>
      %173 = vector.shape_cast %172 : vector<256xf32> to vector<1x256xf32>
      %c3_i32_70 = arith.constant 3 : i32
      %174 = arith.addi %5, %c3_i32_70 : i32
      %175 = arith.index_cast %174 : i32 to index
      %c0_71 = arith.constant 0 : index
      %c0_72 = arith.constant 0 : index
      %176 = vector.load %arg1[%175, %c0_71, %c0_72] : memref<24x2x256xf32, #tpu.memory_space<vmem>>, vector<1x2x256xf32>
      %177 = vector.shape_cast %176 : vector<1x2x256xf32> to vector<2x256xf32>
      %178 = arith.index_cast %174 : i32 to index
      %c0_73 = arith.constant 0 : index
      %c0_74 = arith.constant 0 : index
      %179 = vector.load %arg2[%178, %c0_73, %c0_74] : memref<24x64x2xf32, #tpu.memory_space<vmem>>, vector<1x64x2xf32>
      %180 = vector.shape_cast %179 : vector<1x64x2xf32> to vector<64x2xf32>
      %181 = vector.extract_strided_slice %180 {offsets = [0, 0], sizes = [64, 1], strides = [1, 1]} : vector<64x2xf32> to vector<64x1xf32>
      %182 = vector.extract_strided_slice %177 {offsets = [0, 0], sizes = [1, 256], strides = [1, 1]} : vector<2x256xf32> to vector<1x256xf32>
      %183 = vector.broadcast %181 : vector<64x1xf32> to vector<64x256xf32>
      %184 = vector.broadcast %182 : vector<1x256xf32> to vector<64x256xf32>
      %185 = arith.mulf %183, %184 : vector<64x256xf32>
      %186 = vector.extract_strided_slice %180 {offsets = [0, 1], sizes = [64, 1], strides = [1, 1]} : vector<64x2xf32> to vector<64x1xf32>
      %187 = vector.extract_strided_slice %177 {offsets = [1, 0], sizes = [1, 256], strides = [1, 1]} : vector<2x256xf32> to vector<1x256xf32>
      %188 = vector.broadcast %186 : vector<64x1xf32> to vector<64x256xf32>
      %189 = vector.broadcast %187 : vector<1x256xf32> to vector<64x256xf32>
      %190 = arith.mulf %188, %189 : vector<64x256xf32>
      %191 = arith.addf %185, %190 : vector<64x256xf32>
      %192 = arith.index_cast %174 : i32 to index
      %c0_75 = arith.constant 0 : index
      %c0_76 = arith.constant 0 : index
      %193 = vector.load %arg3[%192, %c0_75, %c0_76] : memref<24x64x1xf32, #tpu.memory_space<vmem>>, vector<1x64x1xf32>
      %194 = vector.shape_cast %193 : vector<1x64x1xf32> to vector<64x1xf32>
      %195 = vector.broadcast %194 : vector<64x1xf32> to vector<64x256xf32>
      %196 = arith.addf %191, %195 : vector<64x256xf32>
      %cst_77 = arith.constant 0.000000e+00 : f32
      %197 = vector.broadcast %cst_77 : f32 to vector<64x256xf32>
      %198 = arith.maximumf %196, %197 : vector<64x256xf32>
      %199 = arith.index_cast %174 : i32 to index
      %c0_78 = arith.constant 0 : index
      %c0_79 = arith.constant 0 : index
      %200 = vector.load %arg4[%199, %c0_78, %c0_79] : memref<24x64x64xbf16, #tpu.memory_space<vmem>>, vector<1x64x64xbf16>
      %201 = vector.shape_cast %200 : vector<1x64x64xbf16> to vector<64x64xbf16>
      %202 = arith.truncf %198 : vector<64x256xf32> to vector<64x256xbf16>
      %cst_80 = arith.constant dense<0.000000e+00> : vector<64x256xf32>
      %203 = tpu.matmul %201, %202, %cst_80 {dimension_numbers = #tpu.dot_dimension_numbers<[1], [0], [0], [1], [0, 0, 1, 1], [], []>} : vector<64x64xbf16>, vector<64x256xbf16>, vector<64x256xf32> -> vector<64x256xf32>
      %204 = arith.index_cast %174 : i32 to index
      %c0_81 = arith.constant 0 : index
      %c0_82 = arith.constant 0 : index
      %205 = vector.load %arg5[%204, %c0_81, %c0_82] : memref<24x64x1xf32, #tpu.memory_space<vmem>>, vector<1x64x1xf32>
      %206 = vector.shape_cast %205 : vector<1x64x1xf32> to vector<64x1xf32>
      %207 = vector.broadcast %206 : vector<64x1xf32> to vector<64x256xf32>
      %208 = arith.addf %203, %207 : vector<64x256xf32>
      %cst_83 = arith.constant 0.000000e+00 : f32
      %209 = vector.broadcast %cst_83 : f32 to vector<64x256xf32>
      %210 = arith.maximumf %208, %209 : vector<64x256xf32>
      %211 = arith.index_cast %174 : i32 to index
      %c0_84 = arith.constant 0 : index
      %c0_85 = arith.constant 0 : index
      %212 = vector.load %arg6[%211, %c0_84, %c0_85] : memref<24x32x64xbf16, #tpu.memory_space<vmem>>, vector<1x32x64xbf16>
      %213 = vector.shape_cast %212 : vector<1x32x64xbf16> to vector<32x64xbf16>
      %214 = arith.truncf %210 : vector<64x256xf32> to vector<64x256xbf16>
      %cst_86 = arith.constant dense<0.000000e+00> : vector<32x256xf32>
      %215 = tpu.matmul %213, %214, %cst_86 {dimension_numbers = #tpu.dot_dimension_numbers<[1], [0], [0], [1], [0, 0, 1, 1], [], []>} : vector<32x64xbf16>, vector<64x256xbf16>, vector<32x256xf32> -> vector<32x256xf32>
      %216 = arith.index_cast %174 : i32 to index
      %c0_87 = arith.constant 0 : index
      %c0_88 = arith.constant 0 : index
      %217 = vector.load %arg7[%216, %c0_87, %c0_88] : memref<24x32x1xf32, #tpu.memory_space<vmem>>, vector<1x32x1xf32>
      %218 = vector.shape_cast %217 : vector<1x32x1xf32> to vector<32x1xf32>
      %219 = vector.broadcast %218 : vector<32x1xf32> to vector<32x256xf32>
      %220 = arith.addf %215, %219 : vector<32x256xf32>
      %cst_89 = arith.constant 0.000000e+00 : f32
      %221 = vector.broadcast %cst_89 : f32 to vector<32x256xf32>
      %222 = arith.maximumf %220, %221 : vector<32x256xf32>
      %223 = arith.index_cast %174 : i32 to index
      %c0_90 = arith.constant 0 : index
      %c0_91 = arith.constant 0 : index
      %224 = vector.load %arg8[%223, %c0_90, %c0_91] : memref<24x32x1xf32, #tpu.memory_space<vmem>>, vector<1x32x1xf32>
      %225 = vector.shape_cast %224 : vector<1x32x1xf32> to vector<32x1xf32>
      %226 = vector.broadcast %225 : vector<32x1xf32> to vector<32x256xf32>
      %227 = arith.mulf %222, %226 : vector<32x256xf32>
      %cst_92 = arith.constant dense<0.000000e+00> : vector<256xf32>
      %228 = vector.multi_reduction <add>, %227, %cst_92 [0] : vector<32x256xf32> to vector<256xf32>
      %229 = vector.shape_cast %228 : vector<256xf32> to vector<1x256xf32>
      %c4_i32 = arith.constant 4 : i32
      %230 = arith.addi %5, %c4_i32 : i32
      %231 = arith.index_cast %230 : i32 to index
      %c0_93 = arith.constant 0 : index
      %c0_94 = arith.constant 0 : index
      %232 = vector.load %arg1[%231, %c0_93, %c0_94] : memref<24x2x256xf32, #tpu.memory_space<vmem>>, vector<1x2x256xf32>
      %233 = vector.shape_cast %232 : vector<1x2x256xf32> to vector<2x256xf32>
      %234 = arith.index_cast %230 : i32 to index
      %c0_95 = arith.constant 0 : index
      %c0_96 = arith.constant 0 : index
      %235 = vector.load %arg2[%234, %c0_95, %c0_96] : memref<24x64x2xf32, #tpu.memory_space<vmem>>, vector<1x64x2xf32>
      %236 = vector.shape_cast %235 : vector<1x64x2xf32> to vector<64x2xf32>
      %237 = vector.extract_strided_slice %236 {offsets = [0, 0], sizes = [64, 1], strides = [1, 1]} : vector<64x2xf32> to vector<64x1xf32>
      %238 = vector.extract_strided_slice %233 {offsets = [0, 0], sizes = [1, 256], strides = [1, 1]} : vector<2x256xf32> to vector<1x256xf32>
      %239 = vector.broadcast %237 : vector<64x1xf32> to vector<64x256xf32>
      %240 = vector.broadcast %238 : vector<1x256xf32> to vector<64x256xf32>
      %241 = arith.mulf %239, %240 : vector<64x256xf32>
      %242 = vector.extract_strided_slice %236 {offsets = [0, 1], sizes = [64, 1], strides = [1, 1]} : vector<64x2xf32> to vector<64x1xf32>
      %243 = vector.extract_strided_slice %233 {offsets = [1, 0], sizes = [1, 256], strides = [1, 1]} : vector<2x256xf32> to vector<1x256xf32>
      %244 = vector.broadcast %242 : vector<64x1xf32> to vector<64x256xf32>
      %245 = vector.broadcast %243 : vector<1x256xf32> to vector<64x256xf32>
      %246 = arith.mulf %244, %245 : vector<64x256xf32>
      %247 = arith.addf %241, %246 : vector<64x256xf32>
      %248 = arith.index_cast %230 : i32 to index
      %c0_97 = arith.constant 0 : index
      %c0_98 = arith.constant 0 : index
      %249 = vector.load %arg3[%248, %c0_97, %c0_98] : memref<24x64x1xf32, #tpu.memory_space<vmem>>, vector<1x64x1xf32>
      %250 = vector.shape_cast %249 : vector<1x64x1xf32> to vector<64x1xf32>
      %251 = vector.broadcast %250 : vector<64x1xf32> to vector<64x256xf32>
      %252 = arith.addf %247, %251 : vector<64x256xf32>
      %cst_99 = arith.constant 0.000000e+00 : f32
      %253 = vector.broadcast %cst_99 : f32 to vector<64x256xf32>
      %254 = arith.maximumf %252, %253 : vector<64x256xf32>
      %255 = arith.index_cast %230 : i32 to index
      %c0_100 = arith.constant 0 : index
      %c0_101 = arith.constant 0 : index
      %256 = vector.load %arg4[%255, %c0_100, %c0_101] : memref<24x64x64xbf16, #tpu.memory_space<vmem>>, vector<1x64x64xbf16>
      %257 = vector.shape_cast %256 : vector<1x64x64xbf16> to vector<64x64xbf16>
      %258 = arith.truncf %254 : vector<64x256xf32> to vector<64x256xbf16>
      %cst_102 = arith.constant dense<0.000000e+00> : vector<64x256xf32>
      %259 = tpu.matmul %257, %258, %cst_102 {dimension_numbers = #tpu.dot_dimension_numbers<[1], [0], [0], [1], [0, 0, 1, 1], [], []>} : vector<64x64xbf16>, vector<64x256xbf16>, vector<64x256xf32> -> vector<64x256xf32>
      %260 = arith.index_cast %230 : i32 to index
      %c0_103 = arith.constant 0 : index
      %c0_104 = arith.constant 0 : index
      %261 = vector.load %arg5[%260, %c0_103, %c0_104] : memref<24x64x1xf32, #tpu.memory_space<vmem>>, vector<1x64x1xf32>
      %262 = vector.shape_cast %261 : vector<1x64x1xf32> to vector<64x1xf32>
      %263 = vector.broadcast %262 : vector<64x1xf32> to vector<64x256xf32>
      %264 = arith.addf %259, %263 : vector<64x256xf32>
      %cst_105 = arith.constant 0.000000e+00 : f32
      %265 = vector.broadcast %cst_105 : f32 to vector<64x256xf32>
      %266 = arith.maximumf %264, %265 : vector<64x256xf32>
      %267 = arith.index_cast %230 : i32 to index
      %c0_106 = arith.constant 0 : index
      %c0_107 = arith.constant 0 : index
      %268 = vector.load %arg6[%267, %c0_106, %c0_107] : memref<24x32x64xbf16, #tpu.memory_space<vmem>>, vector<1x32x64xbf16>
      %269 = vector.shape_cast %268 : vector<1x32x64xbf16> to vector<32x64xbf16>
      %270 = arith.truncf %266 : vector<64x256xf32> to vector<64x256xbf16>
      %cst_108 = arith.constant dense<0.000000e+00> : vector<32x256xf32>
      %271 = tpu.matmul %269, %270, %cst_108 {dimension_numbers = #tpu.dot_dimension_numbers<[1], [0], [0], [1], [0, 0, 1, 1], [], []>} : vector<32x64xbf16>, vector<64x256xbf16>, vector<32x256xf32> -> vector<32x256xf32>
      %272 = arith.index_cast %230 : i32 to index
      %c0_109 = arith.constant 0 : index
      %c0_110 = arith.constant 0 : index
      %273 = vector.load %arg7[%272, %c0_109, %c0_110] : memref<24x32x1xf32, #tpu.memory_space<vmem>>, vector<1x32x1xf32>
      %274 = vector.shape_cast %273 : vector<1x32x1xf32> to vector<32x1xf32>
      %275 = vector.broadcast %274 : vector<32x1xf32> to vector<32x256xf32>
      %276 = arith.addf %271, %275 : vector<32x256xf32>
      %cst_111 = arith.constant 0.000000e+00 : f32
      %277 = vector.broadcast %cst_111 : f32 to vector<32x256xf32>
      %278 = arith.maximumf %276, %277 : vector<32x256xf32>
      %279 = arith.index_cast %230 : i32 to index
      %c0_112 = arith.constant 0 : index
      %c0_113 = arith.constant 0 : index
      %280 = vector.load %arg8[%279, %c0_112, %c0_113] : memref<24x32x1xf32, #tpu.memory_space<vmem>>, vector<1x32x1xf32>
      %281 = vector.shape_cast %280 : vector<1x32x1xf32> to vector<32x1xf32>
      %282 = vector.broadcast %281 : vector<32x1xf32> to vector<32x256xf32>
      %283 = arith.mulf %278, %282 : vector<32x256xf32>
      %cst_114 = arith.constant dense<0.000000e+00> : vector<256xf32>
      %284 = vector.multi_reduction <add>, %283, %cst_114 [0] : vector<32x256xf32> to vector<256xf32>
      %285 = vector.shape_cast %284 : vector<256xf32> to vector<1x256xf32>
      %c5_i32 = arith.constant 5 : i32
      %286 = arith.addi %5, %c5_i32 : i32
      %287 = arith.index_cast %286 : i32 to index
      %c0_115 = arith.constant 0 : index
      %c0_116 = arith.constant 0 : index
      %288 = vector.load %arg1[%287, %c0_115, %c0_116] : memref<24x2x256xf32, #tpu.memory_space<vmem>>, vector<1x2x256xf32>
      %289 = vector.shape_cast %288 : vector<1x2x256xf32> to vector<2x256xf32>
      %290 = arith.index_cast %286 : i32 to index
      %c0_117 = arith.constant 0 : index
      %c0_118 = arith.constant 0 : index
      %291 = vector.load %arg2[%290, %c0_117, %c0_118] : memref<24x64x2xf32, #tpu.memory_space<vmem>>, vector<1x64x2xf32>
      %292 = vector.shape_cast %291 : vector<1x64x2xf32> to vector<64x2xf32>
      %293 = vector.extract_strided_slice %292 {offsets = [0, 0], sizes = [64, 1], strides = [1, 1]} : vector<64x2xf32> to vector<64x1xf32>
      %294 = vector.extract_strided_slice %289 {offsets = [0, 0], sizes = [1, 256], strides = [1, 1]} : vector<2x256xf32> to vector<1x256xf32>
      %295 = vector.broadcast %293 : vector<64x1xf32> to vector<64x256xf32>
      %296 = vector.broadcast %294 : vector<1x256xf32> to vector<64x256xf32>
      %297 = arith.mulf %295, %296 : vector<64x256xf32>
      %298 = vector.extract_strided_slice %292 {offsets = [0, 1], sizes = [64, 1], strides = [1, 1]} : vector<64x2xf32> to vector<64x1xf32>
      %299 = vector.extract_strided_slice %289 {offsets = [1, 0], sizes = [1, 256], strides = [1, 1]} : vector<2x256xf32> to vector<1x256xf32>
      %300 = vector.broadcast %298 : vector<64x1xf32> to vector<64x256xf32>
      %301 = vector.broadcast %299 : vector<1x256xf32> to vector<64x256xf32>
      %302 = arith.mulf %300, %301 : vector<64x256xf32>
      %303 = arith.addf %297, %302 : vector<64x256xf32>
      %304 = arith.index_cast %286 : i32 to index
      %c0_119 = arith.constant 0 : index
      %c0_120 = arith.constant 0 : index
      %305 = vector.load %arg3[%304, %c0_119, %c0_120] : memref<24x64x1xf32, #tpu.memory_space<vmem>>, vector<1x64x1xf32>
      %306 = vector.shape_cast %305 : vector<1x64x1xf32> to vector<64x1xf32>
      %307 = vector.broadcast %306 : vector<64x1xf32> to vector<64x256xf32>
      %308 = arith.addf %303, %307 : vector<64x256xf32>
      %cst_121 = arith.constant 0.000000e+00 : f32
      %309 = vector.broadcast %cst_121 : f32 to vector<64x256xf32>
      %310 = arith.maximumf %308, %309 : vector<64x256xf32>
      %311 = arith.index_cast %286 : i32 to index
      %c0_122 = arith.constant 0 : index
      %c0_123 = arith.constant 0 : index
      %312 = vector.load %arg4[%311, %c0_122, %c0_123] : memref<24x64x64xbf16, #tpu.memory_space<vmem>>, vector<1x64x64xbf16>
      %313 = vector.shape_cast %312 : vector<1x64x64xbf16> to vector<64x64xbf16>
      %314 = arith.truncf %310 : vector<64x256xf32> to vector<64x256xbf16>
      %cst_124 = arith.constant dense<0.000000e+00> : vector<64x256xf32>
      %315 = tpu.matmul %313, %314, %cst_124 {dimension_numbers = #tpu.dot_dimension_numbers<[1], [0], [0], [1], [0, 0, 1, 1], [], []>} : vector<64x64xbf16>, vector<64x256xbf16>, vector<64x256xf32> -> vector<64x256xf32>
      %316 = arith.index_cast %286 : i32 to index
      %c0_125 = arith.constant 0 : index
      %c0_126 = arith.constant 0 : index
      %317 = vector.load %arg5[%316, %c0_125, %c0_126] : memref<24x64x1xf32, #tpu.memory_space<vmem>>, vector<1x64x1xf32>
      %318 = vector.shape_cast %317 : vector<1x64x1xf32> to vector<64x1xf32>
      %319 = vector.broadcast %318 : vector<64x1xf32> to vector<64x256xf32>
      %320 = arith.addf %315, %319 : vector<64x256xf32>
      %cst_127 = arith.constant 0.000000e+00 : f32
      %321 = vector.broadcast %cst_127 : f32 to vector<64x256xf32>
      %322 = arith.maximumf %320, %321 : vector<64x256xf32>
      %323 = arith.index_cast %286 : i32 to index
      %c0_128 = arith.constant 0 : index
      %c0_129 = arith.constant 0 : index
      %324 = vector.load %arg6[%323, %c0_128, %c0_129] : memref<24x32x64xbf16, #tpu.memory_space<vmem>>, vector<1x32x64xbf16>
      %325 = vector.shape_cast %324 : vector<1x32x64xbf16> to vector<32x64xbf16>
      %326 = arith.truncf %322 : vector<64x256xf32> to vector<64x256xbf16>
      %cst_130 = arith.constant dense<0.000000e+00> : vector<32x256xf32>
      %327 = tpu.matmul %325, %326, %cst_130 {dimension_numbers = #tpu.dot_dimension_numbers<[1], [0], [0], [1], [0, 0, 1, 1], [], []>} : vector<32x64xbf16>, vector<64x256xbf16>, vector<32x256xf32> -> vector<32x256xf32>
      %328 = arith.index_cast %286 : i32 to index
      %c0_131 = arith.constant 0 : index
      %c0_132 = arith.constant 0 : index
      %329 = vector.load %arg7[%328, %c0_131, %c0_132] : memref<24x32x1xf32, #tpu.memory_space<vmem>>, vector<1x32x1xf32>
      %330 = vector.shape_cast %329 : vector<1x32x1xf32> to vector<32x1xf32>
      %331 = vector.broadcast %330 : vector<32x1xf32> to vector<32x256xf32>
      %332 = arith.addf %327, %331 : vector<32x256xf32>
      %cst_133 = arith.constant 0.000000e+00 : f32
      %333 = vector.broadcast %cst_133 : f32 to vector<32x256xf32>
      %334 = arith.maximumf %332, %333 : vector<32x256xf32>
      %335 = arith.index_cast %286 : i32 to index
      %c0_134 = arith.constant 0 : index
      %c0_135 = arith.constant 0 : index
      %336 = vector.load %arg8[%335, %c0_134, %c0_135] : memref<24x32x1xf32, #tpu.memory_space<vmem>>, vector<1x32x1xf32>
      %337 = vector.shape_cast %336 : vector<1x32x1xf32> to vector<32x1xf32>
      %338 = vector.broadcast %337 : vector<32x1xf32> to vector<32x256xf32>
      %339 = arith.mulf %334, %338 : vector<32x256xf32>
      %cst_136 = arith.constant dense<0.000000e+00> : vector<256xf32>
      %340 = vector.multi_reduction <add>, %339, %cst_136 [0] : vector<32x256xf32> to vector<256xf32>
      %341 = vector.shape_cast %340 : vector<256xf32> to vector<1x256xf32>
      %c6_i32 = arith.constant 6 : i32
      %342 = arith.addi %5, %c6_i32 : i32
      %343 = arith.index_cast %342 : i32 to index
      %c0_137 = arith.constant 0 : index
      %c0_138 = arith.constant 0 : index
      %344 = vector.load %arg1[%343, %c0_137, %c0_138] : memref<24x2x256xf32, #tpu.memory_space<vmem>>, vector<1x2x256xf32>
      %345 = vector.shape_cast %344 : vector<1x2x256xf32> to vector<2x256xf32>
      %346 = arith.index_cast %342 : i32 to index
      %c0_139 = arith.constant 0 : index
      %c0_140 = arith.constant 0 : index
      %347 = vector.load %arg2[%346, %c0_139, %c0_140] : memref<24x64x2xf32, #tpu.memory_space<vmem>>, vector<1x64x2xf32>
      %348 = vector.shape_cast %347 : vector<1x64x2xf32> to vector<64x2xf32>
      %349 = vector.extract_strided_slice %348 {offsets = [0, 0], sizes = [64, 1], strides = [1, 1]} : vector<64x2xf32> to vector<64x1xf32>
      %350 = vector.extract_strided_slice %345 {offsets = [0, 0], sizes = [1, 256], strides = [1, 1]} : vector<2x256xf32> to vector<1x256xf32>
      %351 = vector.broadcast %349 : vector<64x1xf32> to vector<64x256xf32>
      %352 = vector.broadcast %350 : vector<1x256xf32> to vector<64x256xf32>
      %353 = arith.mulf %351, %352 : vector<64x256xf32>
      %354 = vector.extract_strided_slice %348 {offsets = [0, 1], sizes = [64, 1], strides = [1, 1]} : vector<64x2xf32> to vector<64x1xf32>
      %355 = vector.extract_strided_slice %345 {offsets = [1, 0], sizes = [1, 256], strides = [1, 1]} : vector<2x256xf32> to vector<1x256xf32>
      %356 = vector.broadcast %354 : vector<64x1xf32> to vector<64x256xf32>
      %357 = vector.broadcast %355 : vector<1x256xf32> to vector<64x256xf32>
      %358 = arith.mulf %356, %357 : vector<64x256xf32>
      %359 = arith.addf %353, %358 : vector<64x256xf32>
      %360 = arith.index_cast %342 : i32 to index
      %c0_141 = arith.constant 0 : index
      %c0_142 = arith.constant 0 : index
      %361 = vector.load %arg3[%360, %c0_141, %c0_142] : memref<24x64x1xf32, #tpu.memory_space<vmem>>, vector<1x64x1xf32>
      %362 = vector.shape_cast %361 : vector<1x64x1xf32> to vector<64x1xf32>
      %363 = vector.broadcast %362 : vector<64x1xf32> to vector<64x256xf32>
      %364 = arith.addf %359, %363 : vector<64x256xf32>
      %cst_143 = arith.constant 0.000000e+00 : f32
      %365 = vector.broadcast %cst_143 : f32 to vector<64x256xf32>
      %366 = arith.maximumf %364, %365 : vector<64x256xf32>
      %367 = arith.index_cast %342 : i32 to index
      %c0_144 = arith.constant 0 : index
      %c0_145 = arith.constant 0 : index
      %368 = vector.load %arg4[%367, %c0_144, %c0_145] : memref<24x64x64xbf16, #tpu.memory_space<vmem>>, vector<1x64x64xbf16>
      %369 = vector.shape_cast %368 : vector<1x64x64xbf16> to vector<64x64xbf16>
      %370 = arith.truncf %366 : vector<64x256xf32> to vector<64x256xbf16>
      %cst_146 = arith.constant dense<0.000000e+00> : vector<64x256xf32>
      %371 = tpu.matmul %369, %370, %cst_146 {dimension_numbers = #tpu.dot_dimension_numbers<[1], [0], [0], [1], [0, 0, 1, 1], [], []>} : vector<64x64xbf16>, vector<64x256xbf16>, vector<64x256xf32> -> vector<64x256xf32>
      %372 = arith.index_cast %342 : i32 to index
      %c0_147 = arith.constant 0 : index
      %c0_148 = arith.constant 0 : index
      %373 = vector.load %arg5[%372, %c0_147, %c0_148] : memref<24x64x1xf32, #tpu.memory_space<vmem>>, vector<1x64x1xf32>
      %374 = vector.shape_cast %373 : vector<1x64x1xf32> to vector<64x1xf32>
      %375 = vector.broadcast %374 : vector<64x1xf32> to vector<64x256xf32>
      %376 = arith.addf %371, %375 : vector<64x256xf32>
      %cst_149 = arith.constant 0.000000e+00 : f32
      %377 = vector.broadcast %cst_149 : f32 to vector<64x256xf32>
      %378 = arith.maximumf %376, %377 : vector<64x256xf32>
      %379 = arith.index_cast %342 : i32 to index
      %c0_150 = arith.constant 0 : index
      %c0_151 = arith.constant 0 : index
      %380 = vector.load %arg6[%379, %c0_150, %c0_151] : memref<24x32x64xbf16, #tpu.memory_space<vmem>>, vector<1x32x64xbf16>
      %381 = vector.shape_cast %380 : vector<1x32x64xbf16> to vector<32x64xbf16>
      %382 = arith.truncf %378 : vector<64x256xf32> to vector<64x256xbf16>
      %cst_152 = arith.constant dense<0.000000e+00> : vector<32x256xf32>
      %383 = tpu.matmul %381, %382, %cst_152 {dimension_numbers = #tpu.dot_dimension_numbers<[1], [0], [0], [1], [0, 0, 1, 1], [], []>} : vector<32x64xbf16>, vector<64x256xbf16>, vector<32x256xf32> -> vector<32x256xf32>
      %384 = arith.index_cast %342 : i32 to index
      %c0_153 = arith.constant 0 : index
      %c0_154 = arith.constant 0 : index
      %385 = vector.load %arg7[%384, %c0_153, %c0_154] : memref<24x32x1xf32, #tpu.memory_space<vmem>>, vector<1x32x1xf32>
      %386 = vector.shape_cast %385 : vector<1x32x1xf32> to vector<32x1xf32>
      %387 = vector.broadcast %386 : vector<32x1xf32> to vector<32x256xf32>
      %388 = arith.addf %383, %387 : vector<32x256xf32>
      %cst_155 = arith.constant 0.000000e+00 : f32
      %389 = vector.broadcast %cst_155 : f32 to vector<32x256xf32>
      %390 = arith.maximumf %388, %389 : vector<32x256xf32>
      %391 = arith.index_cast %342 : i32 to index
      %c0_156 = arith.constant 0 : index
      %c0_157 = arith.constant 0 : index
      %392 = vector.load %arg8[%391, %c0_156, %c0_157] : memref<24x32x1xf32, #tpu.memory_space<vmem>>, vector<1x32x1xf32>
      %393 = vector.shape_cast %392 : vector<1x32x1xf32> to vector<32x1xf32>
      %394 = vector.broadcast %393 : vector<32x1xf32> to vector<32x256xf32>
      %395 = arith.mulf %390, %394 : vector<32x256xf32>
      %cst_158 = arith.constant dense<0.000000e+00> : vector<256xf32>
      %396 = vector.multi_reduction <add>, %395, %cst_158 [0] : vector<32x256xf32> to vector<256xf32>
      %397 = vector.shape_cast %396 : vector<256xf32> to vector<1x256xf32>
      %c7_i32 = arith.constant 7 : i32
      %398 = arith.addi %5, %c7_i32 : i32
      %399 = arith.index_cast %398 : i32 to index
      %c0_159 = arith.constant 0 : index
      %c0_160 = arith.constant 0 : index
      %400 = vector.load %arg1[%399, %c0_159, %c0_160] : memref<24x2x256xf32, #tpu.memory_space<vmem>>, vector<1x2x256xf32>
      %401 = vector.shape_cast %400 : vector<1x2x256xf32> to vector<2x256xf32>
      %402 = arith.index_cast %398 : i32 to index
      %c0_161 = arith.constant 0 : index
      %c0_162 = arith.constant 0 : index
      %403 = vector.load %arg2[%402, %c0_161, %c0_162] : memref<24x64x2xf32, #tpu.memory_space<vmem>>, vector<1x64x2xf32>
      %404 = vector.shape_cast %403 : vector<1x64x2xf32> to vector<64x2xf32>
      %405 = vector.extract_strided_slice %404 {offsets = [0, 0], sizes = [64, 1], strides = [1, 1]} : vector<64x2xf32> to vector<64x1xf32>
      %406 = vector.extract_strided_slice %401 {offsets = [0, 0], sizes = [1, 256], strides = [1, 1]} : vector<2x256xf32> to vector<1x256xf32>
      %407 = vector.broadcast %405 : vector<64x1xf32> to vector<64x256xf32>
      %408 = vector.broadcast %406 : vector<1x256xf32> to vector<64x256xf32>
      %409 = arith.mulf %407, %408 : vector<64x256xf32>
      %410 = vector.extract_strided_slice %404 {offsets = [0, 1], sizes = [64, 1], strides = [1, 1]} : vector<64x2xf32> to vector<64x1xf32>
      %411 = vector.extract_strided_slice %401 {offsets = [1, 0], sizes = [1, 256], strides = [1, 1]} : vector<2x256xf32> to vector<1x256xf32>
      %412 = vector.broadcast %410 : vector<64x1xf32> to vector<64x256xf32>
      %413 = vector.broadcast %411 : vector<1x256xf32> to vector<64x256xf32>
      %414 = arith.mulf %412, %413 : vector<64x256xf32>
      %415 = arith.addf %409, %414 : vector<64x256xf32>
      %416 = arith.index_cast %398 : i32 to index
      %c0_163 = arith.constant 0 : index
      %c0_164 = arith.constant 0 : index
      %417 = vector.load %arg3[%416, %c0_163, %c0_164] : memref<24x64x1xf32, #tpu.memory_space<vmem>>, vector<1x64x1xf32>
      %418 = vector.shape_cast %417 : vector<1x64x1xf32> to vector<64x1xf32>
      %419 = vector.broadcast %418 : vector<64x1xf32> to vector<64x256xf32>
      %420 = arith.addf %415, %419 : vector<64x256xf32>
      %cst_165 = arith.constant 0.000000e+00 : f32
      %421 = vector.broadcast %cst_165 : f32 to vector<64x256xf32>
      %422 = arith.maximumf %420, %421 : vector<64x256xf32>
      %423 = arith.index_cast %398 : i32 to index
      %c0_166 = arith.constant 0 : index
      %c0_167 = arith.constant 0 : index
      %424 = vector.load %arg4[%423, %c0_166, %c0_167] : memref<24x64x64xbf16, #tpu.memory_space<vmem>>, vector<1x64x64xbf16>
      %425 = vector.shape_cast %424 : vector<1x64x64xbf16> to vector<64x64xbf16>
      %426 = arith.truncf %422 : vector<64x256xf32> to vector<64x256xbf16>
      %cst_168 = arith.constant dense<0.000000e+00> : vector<64x256xf32>
      %427 = tpu.matmul %425, %426, %cst_168 {dimension_numbers = #tpu.dot_dimension_numbers<[1], [0], [0], [1], [0, 0, 1, 1], [], []>} : vector<64x64xbf16>, vector<64x256xbf16>, vector<64x256xf32> -> vector<64x256xf32>
      %428 = arith.index_cast %398 : i32 to index
      %c0_169 = arith.constant 0 : index
      %c0_170 = arith.constant 0 : index
      %429 = vector.load %arg5[%428, %c0_169, %c0_170] : memref<24x64x1xf32, #tpu.memory_space<vmem>>, vector<1x64x1xf32>
      %430 = vector.shape_cast %429 : vector<1x64x1xf32> to vector<64x1xf32>
      %431 = vector.broadcast %430 : vector<64x1xf32> to vector<64x256xf32>
      %432 = arith.addf %427, %431 : vector<64x256xf32>
      %cst_171 = arith.constant 0.000000e+00 : f32
      %433 = vector.broadcast %cst_171 : f32 to vector<64x256xf32>
      %434 = arith.maximumf %432, %433 : vector<64x256xf32>
      %435 = arith.index_cast %398 : i32 to index
      %c0_172 = arith.constant 0 : index
      %c0_173 = arith.constant 0 : index
      %436 = vector.load %arg6[%435, %c0_172, %c0_173] : memref<24x32x64xbf16, #tpu.memory_space<vmem>>, vector<1x32x64xbf16>
      %437 = vector.shape_cast %436 : vector<1x32x64xbf16> to vector<32x64xbf16>
      %438 = arith.truncf %434 : vector<64x256xf32> to vector<64x256xbf16>
      %cst_174 = arith.constant dense<0.000000e+00> : vector<32x256xf32>
      %439 = tpu.matmul %437, %438, %cst_174 {dimension_numbers = #tpu.dot_dimension_numbers<[1], [0], [0], [1], [0, 0, 1, 1], [], []>} : vector<32x64xbf16>, vector<64x256xbf16>, vector<32x256xf32> -> vector<32x256xf32>
      %440 = arith.index_cast %398 : i32 to index
      %c0_175 = arith.constant 0 : index
      %c0_176 = arith.constant 0 : index
      %441 = vector.load %arg7[%440, %c0_175, %c0_176] : memref<24x32x1xf32, #tpu.memory_space<vmem>>, vector<1x32x1xf32>
      %442 = vector.shape_cast %441 : vector<1x32x1xf32> to vector<32x1xf32>
      %443 = vector.broadcast %442 : vector<32x1xf32> to vector<32x256xf32>
      %444 = arith.addf %439, %443 : vector<32x256xf32>
      %cst_177 = arith.constant 0.000000e+00 : f32
      %445 = vector.broadcast %cst_177 : f32 to vector<32x256xf32>
      %446 = arith.maximumf %444, %445 : vector<32x256xf32>
      %447 = arith.index_cast %398 : i32 to index
      %c0_178 = arith.constant 0 : index
      %c0_179 = arith.constant 0 : index
      %448 = vector.load %arg8[%447, %c0_178, %c0_179] : memref<24x32x1xf32, #tpu.memory_space<vmem>>, vector<1x32x1xf32>
      %449 = vector.shape_cast %448 : vector<1x32x1xf32> to vector<32x1xf32>
      %450 = vector.broadcast %449 : vector<32x1xf32> to vector<32x256xf32>
      %451 = arith.mulf %446, %450 : vector<32x256xf32>
      %cst_180 = arith.constant dense<0.000000e+00> : vector<256xf32>
      %452 = vector.multi_reduction <add>, %451, %cst_180 [0] : vector<32x256xf32> to vector<256xf32>
      %453 = vector.shape_cast %452 : vector<256xf32> to vector<1x256xf32>
      %454 = tpu.concatenate %61, %117, %173, %229, %285, %341, %397, %453 in 0 : vector<1x256xf32>, vector<1x256xf32>, vector<1x256xf32>, vector<1x256xf32>, vector<1x256xf32>, vector<1x256xf32>, vector<1x256xf32>, vector<1x256xf32> -> vector<8x256xf32>
      %455 = arith.index_cast %5 : i32 to index
      %c0_181 = arith.constant 0 : index
      %456 = vector.load %arg9[%455, %c0_181] : memref<24x256xf32, #tpu.memory_space<vmem>>, vector<8x256xf32>
      tpu.vector_store %arg9[%455, %c0_181], %454 {strides = array<i32>} : memref<24x256xf32, #tpu.memory_space<vmem>>, vector<8x256xf32>,
      %cst_182 = arith.constant dense<0.000000e+00> : vector<256xf32>
      %457 = vector.multi_reduction <add>, %454, %cst_182 [0] : vector<8x256xf32> to vector<256xf32>
      %458 = vector.shape_cast %457 : vector<256xf32> to vector<1x256xf32>
      %459 = arith.addf %arg12, %458 : vector<1x256xf32>
      scf.yield %459 : vector<1x256xf32>
    }
    %c3_i32_0 = arith.constant 3 : i32
    %c0 = arith.constant 0 : index
    %c0_1 = arith.constant 0 : index
    %3 = vector.load %arg10[%c0, %c0_1] : memref<1x256xf32, #tpu.memory_space<vmem>>, vector<1x256xf32>
    tpu.vector_store %arg10[%c0, %c0_1], %2 {strides = array<i32>} : memref<1x256xf32, #tpu.memory_space<vmem>>, vector<1x256xf32>,
    return
  }
  func.func @transform_0(%arg0: i32) -> (i32, i32, i32) {
    %c0_i32 = arith.constant 0 : i32
    %c0_i32_0 = arith.constant 0 : i32
    %c0_i32_1 = arith.constant 0 : i32
    return %c0_i32, %c0_i32_0, %arg0 : i32, i32, i32
  }
  func.func @transform_1(%arg0: i32) -> (i32, i32, i32) {
    %c0_i32 = arith.constant 0 : i32
    %c0_i32_0 = arith.constant 0 : i32
    %c0_i32_1 = arith.constant 0 : i32
    %c0_i32_2 = arith.constant 0 : i32
    return %c0_i32, %c0_i32_0, %c0_i32_1 : i32, i32, i32
  }
  func.func @transform_2(%arg0: i32) -> (i32, i32, i32) {
    %c0_i32 = arith.constant 0 : i32
    %c0_i32_0 = arith.constant 0 : i32
    %c0_i32_1 = arith.constant 0 : i32
    %c0_i32_2 = arith.constant 0 : i32
    return %c0_i32, %c0_i32_0, %c0_i32_1 : i32, i32, i32
  }
  func.func @transform_3(%arg0: i32) -> (i32, i32, i32) {
    %c0_i32 = arith.constant 0 : i32
    %c0_i32_0 = arith.constant 0 : i32
    %c0_i32_1 = arith.constant 0 : i32
    %c0_i32_2 = arith.constant 0 : i32
    return %c0_i32, %c0_i32_0, %c0_i32_1 : i32, i32, i32
  }
  func.func @transform_4(%arg0: i32) -> (i32, i32, i32) {
    %c0_i32 = arith.constant 0 : i32
    %c0_i32_0 = arith.constant 0 : i32
    %c0_i32_1 = arith.constant 0 : i32
    %c0_i32_2 = arith.constant 0 : i32
    return %c0_i32, %c0_i32_0, %c0_i32_1 : i32, i32, i32
  }
  func.func @transform_5(%arg0: i32) -> (i32, i32, i32) {
    %c0_i32 = arith.constant 0 : i32
    %c0_i32_0 = arith.constant 0 : i32
    %c0_i32_1 = arith.constant 0 : i32
    %c0_i32_2 = arith.constant 0 : i32
    return %c0_i32, %c0_i32_0, %c0_i32_1 : i32, i32, i32
  }
  func.func @transform_6(%arg0: i32) -> (i32, i32, i32) {
    %c0_i32 = arith.constant 0 : i32
    %c0_i32_0 = arith.constant 0 : i32
    %c0_i32_1 = arith.constant 0 : i32
    %c0_i32_2 = arith.constant 0 : i32
    return %c0_i32, %c0_i32_0, %c0_i32_1 : i32, i32, i32
  }
  func.func @transform_7(%arg0: i32) -> (i32, i32, i32) {
    %c0_i32 = arith.constant 0 : i32
    %c0_i32_0 = arith.constant 0 : i32
    %c0_i32_1 = arith.constant 0 : i32
    %c0_i32_2 = arith.constant 0 : i32
    return %c0_i32, %c0_i32_0, %c0_i32_1 : i32, i32, i32
  }
  func.func @transform_8(%arg0: i32) -> (i32, i32) {
    %c0_i32 = arith.constant 0 : i32
    %c0_i32_0 = arith.constant 0 : i32
    return %c0_i32, %arg0 : i32, i32
  }
  func.func @transform_9(%arg0: i32) -> (i32, i32) {
    %c0_i32 = arith.constant 0 : i32
    %c0_i32_0 = arith.constant 0 : i32
    return %c0_i32, %arg0 : i32, i32
  }
}

</mosaic_0001>

<bundles_post_ra>
// kernel: tpu_custom_call.1
= control target key start
LH: loop header
LB: loop body
LE: loop exit
PB: predicated region body
PF: predicated region fallthrough
CT: control target
= control target key end

     0   :  { %s9445_s0 = inlined_call_operand.vmem [shape: f32[24,2,512], index: 0, kind: input, shape index: {}]   ;;  %s9446_s1 = inlined_call_operand.vmem [shape: f32[24,64,2], index: 1, kind: input, shape index: {}]   ;;  %s9447_s2 = inlined_call_operand.vmem [shape: f32[24,64,1], index: 2, kind: input, shape index: {}]   ;;  %s9448_s3 = inlined_call_operand.vmem [shape: bf16[24,64,64], index: 3, kind: input, shape index: {}]   ;;  %s9449_s4 = inlined_call_operand.vmem [shape: f32[24,64,1], index: 4, kind: input, shape index: {}]   ;;  %s9450_s5 = inlined_call_operand.vmem [shape: bf16[24,32,64], index: 5, kind: input, shape index: {}]   ;;  %s9451_s6 = inlined_call_operand.vmem [shape: f32[24,32,1], index: 6, kind: input, shape index: {}]   ;;  %s9452_s7 = inlined_call_operand.vmem [shape: f32[24,32,1], index: 7, kind: input, shape index: {}]   ;;  %s9453_s8 = inlined_call_operand.hbm [shape: f32[24,512], index: 8, kind: output, shape index: {0}]   ;;  %s9454_s9 = inlined_call_operand.hbm [shape: f32[1,512], index: 9, kind: output, shape index: {1}]  }
   0x1   :  { %9682 = sst [smem:[#allocation176_spill]] %s9445_s0 }
   0x2   :  { %9683 = sst [smem:[#allocation177_spill]] %s9446_s1 }
   0x3   :  { %9684 = sst [smem:[#allocation178_spill]] %s9447_s2 }
   0x4   :  { %9685 = sst [smem:[#allocation179_spill]] %s9448_s3 }
   0x5   :  { %15 = vsyncpa [#allocation4], 0 }
   0x6   :  { %17 = vsyncpa [#allocation4 + $0x1], 0 }
   0x7   :  { %18 = vsyncpa [#allocation6], 0 }
   0x8   :  { %20 = vsyncpa [#allocation6 + $0x1], 0  ;;  %s6825_s30 = smov 0   ;;  %s6827_s10 = smov 0  }
   0x9   :  { %s6829_s11 = smov 0   ;;  %s6831_s12 = smov 0  }
   0xa LB: > { %s6846_s13 = sadd.s32 4294967295, %s6753_s12   ;;  %s5830_s14 = sadd.s32 4294967294, %s6753_s12   ;;  %s6753_s12 = sphi %s6831_s12, %s10152_s12   ;;  %s6749_s11 = sphi %s6829_s11, %s10151_s11   ;;  %s6745_s10 = sphi %s6827_s10, %s10150_s10   ;;  %s6741_s30 = sphi %s6825_s30, %s10149_s30  }
   0xb   : > { %s6850_s15 = sadd.s32 1, %s6753_s12   ;;  %s33_s16 = sadd.s32 1, %s6749_s11 }
   0xc   : > { %s30_s17 = ssub.s32 %s6753_s12, %s6850_s15  ;;  %p40_p0 = scmp.ne.s32.totalorder %s6749_s11, %s6745_s10 }
   0xd   : > { %p31_p1 = scmp.eq.s32.totalorder %s30_s17, 0  ;;  %p41_p2 = scmp.eq.s32.totalorder %s6753_s12, 0 }
   0xe   : > { %p217_p3 = scmp.eq.s32.totalorder %s6846_s13, 1  ;;  %p222_p4 = scmp.ne.s32.totalorder %s6745_s10, %s6741_s30 }
   0xf   : > { %s6862_s18 = scalar_select %p31_p1, %s6749_s11, %s33_s16  }
  0x10   : > { %p42_p5 = por %p41_p2, %p40_p0  ;;  %p6864_p6 = por %p217_p3, %p40_p0 }
  0x11   : > { %p223_p7 = scmp.eq.s32.totalorder %s5830_s14, 1  ;;  %p9681_p9 = scmp.ge.s32.totalorder %s6753_s12, 2 }
  0x13   : > { %p6868_p8 = por %p223_p7, %p222_p4  ;;  %286 = sbr.rel (%p9681_p9) target bundleno = 50 (0x32), region = 44 }
  0x18   : > { %289 = sbr.rel (!%p42_p5) target bundleno = 50 (0x32), region = 48  ;;  %s291_s21 = sand.u32 (%p42_p5), 1, %s6749_s11  }
  0x19   : > { %s6378_s22 = sshll.u32 (%p42_p5), %s6753_s12, 2  ;;  %s6446_s23 = smul.u32 (%p42_p5), 96, %s291_s21 }
  0x1a   : > { %s9688_s0 = sld [smem:[#allocation176_spill]] (%p42_p5) }
  0x1b   : > { %s6887_s27 = scalar_lea.vmem (%p42_p5), [#allocation2], %s6446_s23 }
  0x20   : > { %s6880_s26 = scalar_lea.vmem %s9688_s0, %s6378_s22 }
  0x21   : > { %v313_v0 = vld [vmem:[%s6880_s26] sm:$0xf]  ;;  %v315_v1 = vld [vmem:[%s6880_s26 + $0x8] sm:$0xf]  ;;  %v317_v2 = vld [vmem:[%s6880_s26 + $0x10] sm:$0xf] }
  0x22   : > { %v319_v3 = vld [vmem:[%s6880_s26 + $0x18] sm:$0xf]  ;;  %v321_v4 = vld [vmem:[%s6880_s26 + $0x20] sm:$0xf]  ;;  %314 = vst [vmem:[%s6887_s27] sm:$0xf] %v313_v0 }
  0x23   : > { %316 = vst [vmem:[%s6887_s27 + $0x4] sm:$0xf] %v315_v1  ;;  %318 = vst [vmem:[%s6887_s27 + $0x8] sm:$0xf] %v317_v2  ;;  %v323_v5 = vld [vmem:[%s6880_s26 + $0x28] sm:$0xf] }
  0x24   : > { %320 = vst [vmem:[%s6887_s27 + $0xc] sm:$0xf] %v319_v3  ;;  %322 = vst [vmem:[%s6887_s27 + $0x10] sm:$0xf] %v321_v4  ;;  %v325_v6 = vld [vmem:[%s6880_s26 + $0x30] sm:$0xf] }
  0x25   : > { %v327_v7 = vld [vmem:[%s6880_s26 + $0x38] sm:$0xf]  ;;  %324 = vst [vmem:[%s6887_s27 + $0x14] sm:$0xf] %v323_v5  ;;  %326 = vst [vmem:[%s6887_s27 + $0x18] sm:$0xf] %v325_v6 }
  0x26   : > { %328 = vst [vmem:[%s6887_s27 + $0x1c] sm:$0xf] %v327_v7  ;;  %v329_v8 = vld [vmem:[%s6880_s26 + $0x40] sm:$0xf]  ;;  %v331_v9 = vld [vmem:[%s6880_s26 + $0x48] sm:$0xf] }
  0x27   : > { %v333_v10 = vld [vmem:[%s6880_s26 + $0x50] sm:$0xf]  ;;  %330 = vst [vmem:[%s6887_s27 + $0x20] sm:$0xf] %v329_v8  ;;  %332 = vst [vmem:[%s6887_s27 + $0x24] sm:$0xf] %v331_v9 }
  0x28   : > { %334 = vst [vmem:[%s6887_s27 + $0x28] sm:$0xf] %v333_v10  ;;  %v335_v11 = vld [vmem:[%s6880_s26 + $0x58] sm:$0xf]  ;;  %v337_v12 = vld [vmem:[%s6880_s26 + $0x60] sm:$0xf] }
  0x29   : > { %v339_v13 = vld [vmem:[%s6880_s26 + $0x68] sm:$0xf]  ;;  %336 = vst [vmem:[%s6887_s27 + $0x2c] sm:$0xf] %v335_v11  ;;  %338 = vst [vmem:[%s6887_s27 + $0x30] sm:$0xf] %v337_v12 }
  0x2a   : > { %340 = vst [vmem:[%s6887_s27 + $0x34] sm:$0xf] %v339_v13  ;;  %v341_v14 = vld [vmem:[%s6880_s26 + $0x70] sm:$0xf]  ;;  %v343_v15 = vld [vmem:[%s6880_s26 + $0x78] sm:$0xf] }
  0x2b   : > { %v345_v16 = vld [vmem:[%s6880_s26 + $0x80] sm:$0xf]  ;;  %342 = vst [vmem:[%s6887_s27 + $0x38] sm:$0xf] %v341_v14  ;;  %344 = vst [vmem:[%s6887_s27 + $0x3c] sm:$0xf] %v343_v15 }
  0x2c   : > { %346 = vst [vmem:[%s6887_s27 + $0x40] sm:$0xf] %v345_v16  ;;  %v347_v17 = vld [vmem:[%s6880_s26 + $0x88] sm:$0xf]  ;;  %v349_v18 = vld [vmem:[%s6880_s26 + $0x90] sm:$0xf] }
  0x2d   : > { %v351_v19 = vld [vmem:[%s6880_s26 + $0x98] sm:$0xf]  ;;  %348 = vst [vmem:[%s6887_s27 + $0x44] sm:$0xf] %v347_v17  ;;  %350 = vst [vmem:[%s6887_s27 + $0x48] sm:$0xf] %v349_v18 }
  0x2e   : > { %352 = vst [vmem:[%s6887_s27 + $0x4c] sm:$0xf] %v351_v19  ;;  %v353_v20 = vld [vmem:[%s6880_s26 + $0xa0] sm:$0xf]  ;;  %v355_v21 = vld [vmem:[%s6880_s26 + $0xa8] sm:$0xf] }
  0x2f   : > { %v357_v22 = vld [vmem:[%s6880_s26 + $0xb0] sm:$0xf]  ;;  %354 = vst [vmem:[%s6887_s27 + $0x50] sm:$0xf] %v353_v20  ;;  %356 = vst [vmem:[%s6887_s27 + $0x54] sm:$0xf] %v355_v21 }
  0x30   : > { %358 = vst [vmem:[%s6887_s27 + $0x58] sm:$0xf] %v357_v22  ;;  %v359_v23 = vld [vmem:[%s6880_s26 + $0xb8] sm:$0xf] }
  0x31   : > { %360 = vst [vmem:[%s6887_s27 + $0x5c] sm:$0xf] %v359_v23 }
  0x32 PF: > { %p5835_p10 = scmp.ge.s32.totalorder %s6753_s12, 1  ;;  %p431_p11 = scmp.lt.s32.totalorder %s6753_s12, 3 }
  0x34   : > { %p432_p12 = pnand %p5835_p10, %p431_p11 }
  0x36   : > { %435 = sbr.rel (%p432_p12) target bundleno = 2621 (0xa3d), region = 89 }
  0x3b   : > { %s6935_s28 = sand.u32 1, %s6745_s10   ;;  %v6946_v24 = vmov 0.0   ;;  %v6948_v25 = vmov 0.0   ;;  %s6950_s23 = smov 0  }
  0x3c   : > { %s6447_s29 = smul.u32 96, %s6935_s28  ;;  %s5836_s14 = sshll.u32 %s6935_s28, 1 }
  0x3d   : > { %s6448_s16 = smul.u32 48, %s6935_s28  ;;  %s6944_s22 = scalar_lea.vmem [#allocation5], %s5836_s14 }
  0x3e   : > { %s6940_s17 = scalar_lea.vmem [#allocation2], %s6447_s29 }
  0x3f   : > { %s6942_s21 = scalar_lea.vmem [#allocation3], %s6448_s16 }
  0x40 LB: >> { %9689 = vst [vmem:[#allocation9_spill] sm:$0xff] %v6757_v24  ;;  %9690 = vst [vmem:[#allocation10_spill] sm:$0xff] %v6761_v25  ;;  %v9459_v26 = vmov 1   ;;  %s6964_s24 = sshll.u32 %s6765_s23, 9  ;;  %v9456_v27 = vmov 0   ;;  %s9691_s1 = sld [smem:[#allocation177_spill]]  ;;  %v9455_v7 = vlaneseq  ;;  %s6765_s23 = sphi %s6950_s23, %s487_s23   ;;  %v6761_v25 = vphi %v6948_v25, %v10145_v25   ;;  %v6757_v24 = vphi %v6946_v24, %v10144_v24  }
  0x41   : >> { %6525 = vset.pattern.permute.xlu0 %v9459_v26  ;;  %6523 = vset.pattern.permute.xlu1 %v9459_v26  ;;  %s9692_s2 = sld [smem:[#allocation178_spill]]  ;;  %s7010_s29 = scalar_lea.vmem %s9449_s4, %s6964_s24  ;;  %vm831_vm0 = vcmask 523264   ;;  %vm5379_vm1 = vcmask 1040384   ;;  %vm5382_vm2 = vcmask 1041408   ;;  %vm5385_vm3 = vcmask 1042432  }
  0x42   : >> { %876 = vmatprep.mubr.bf16.mxu0 %v9456_v27  ;;  %1022 = vmatprep.mubr.bf16.mxu1 %v9456_v27  ;;  %v769_v44 = vld [vmem:[%s7010_s29 + $0x30] sm:$0xff]  ;;  %v767_v46 = vld [vmem:[%s7010_s29 + $0x20] sm:$0xff]  ;;  %v770_v51 = vld [vmem:[%s7010_s29 + $0x38] sm:$0xff]  ;;  %s9693_s3 = sld [smem:[#allocation179_spill]]  ;;  %s6380_s14 = sshll.u32 %s6765_s23, 5  ;;  %v7073_v13 = vshrl.u32 %v9455_v7, 7 }
  0x43   : >> { %v765_v48 = vld [vmem:[%s7010_s29 + $0x10] sm:$0xff]  ;;  %v763_v50 = vld [vmem:[%s7010_s29] sm:$0xff]  ;;  %v768_v52 = vld [vmem:[%s7010_s29 + $0x28] sm:$0xff]  ;;  %s7078_s25 = scalar_lea.vmem %s6940_s17, %s6380_s14 [#allocation2]  ;;  %s6385_s14 = sshll.u32 %s6765_s23, 7  ;;  %vm5388_vm4 = vcmask 1043456   ;;  %vm5391_vm5 = vcmask 1044480  }
  0x44   : >> { %v766_v54 = vld [vmem:[%s7010_s29 + $0x18] sm:$0xff]  ;;  %v764_v56 = vld [vmem:[%s7010_s29 + $0x8] sm:$0xff]  ;;  %v5899_v0 = vld [vmem:[%s7010_s29 + $0x70] sm:$0xff]  ;;  %9694 = vst [vmem:[#allocation11_spill] sm:$0xff] %v7073_v13  ;;  %v7081_v16 = vsub.s32 1, %v7073_v13  ;;  %v7084_v17 = vsub.s32 3, %v7073_v13 }
  0x45   : >> { %v5897_v2 = vld [vmem:[%s7010_s29 + $0x60] sm:$0xff]  ;;  %v5895_v4 = vld [vmem:[%s7010_s29 + $0x50] sm:$0xff]  ;;  %v7087_v18 = vsub.s32 0, %v7073_v13  ;;  %v7090_v19 = vsub.s32 2, %v7073_v13  ;;  %v9718_v13 = vmov 0   ;;  %vm5394_vm6 = vcmask 1045504  }
  0x46   : >> { %s6972_s27 = scalar_lea.vmem %s9691_s1, %s6964_s24  ;;  %v5893_v5 = vld [vmem:[%s7010_s29 + $0x40] sm:$0xff]  ;;  %9695 = vst [vmem:[#allocation12_spill] sm:$0xff] %v7081_v16  ;;  %9696 = vst [vmem:[#allocation13_spill] sm:$0xff] %v7084_v17  ;;  %vm5397_vm7 = vcmask 1046528  }
  0x47   : >> { %v503_v28 = vld [vmem:[%s6972_s27 + $0x30] sm:$0xff]  ;;  %v501_v29 = vld [vmem:[%s6972_s27 + $0x20] sm:$0xff]  ;;  %v504_v30 = vld [vmem:[%s6972_s27 + $0x38] sm:$0xff]  ;;  %s6987_s16 = scalar_lea.vmem %s9692_s2, %s6964_s24  ;;  %s7024_s24 = sshll.u32 %s6765_s23, 8  ;;  %9697 = vst [vmem:[#allocation14_spill] sm:$0xff] %v7087_v18 }
  0x48   : >> { %605 = vperm.xlu1 %6523, %v503_v28   ;;  %597 = vperm.xlu0 %6525, %v501_v29   ;;  %v499_v31 = vld [vmem:[%s6972_s27 + $0x10] sm:$0xff]  ;;  %v497_v32 = vld [vmem:[%s6972_s27] sm:$0xff]  ;;  %v502_v33 = vld [vmem:[%s6972_s27 + $0x28] sm:$0xff]  ;;  %s7031_s26 = scalar_lea.vmem %s9693_s3, %s7024_s24  ;;  %9698 = vst [vmem:[#allocation15_spill] sm:$0xff] %v7090_v19  ;;  %s7408_s2 = scalar_lea.vmem %s9450_s5, %s6385_s14 }
  0x49   : >> { %v669_v34 = vld [vmem:[%s6987_s16 + $0x30] sm:$0xff]  ;;  %v670_v35 = vld [vmem:[%s6987_s16 + $0x38] sm:$0xff]  ;;  %v668_v37 = vld [vmem:[%s6987_s16 + $0x28] sm:$0xff]  ;;  %s7700_s14 = scalar_lea.vmem %s9451_s6, %s7024_s24  ;;  %s7747_s3 = scalar_lea.vmem %s9452_s7, %s7024_s24 }
  0x4a   : >> { %v500_v36 = vld [vmem:[%s6972_s27 + $0x18] sm:$0xff]  ;;  %v667_v39 = vld [vmem:[%s6987_s16 + $0x20] sm:$0xff]  ;;  %v5869_v40 = vld [vmem:[%s6972_s27 + $0x70] sm:$0xff] }
  0x4b   : >> { %v666_v38 = vld [vmem:[%s6987_s16 + $0x18] sm:$0xff]  ;;  %v5865_v41 = vld [vmem:[%s6972_s27 + $0x50] sm:$0xff]  ;;  %v498_v42 = vld [vmem:[%s6972_s27 + $0x8] sm:$0xff] }
  0x4c   : >> { %609 = vperm.xlu1 %6523, %v504_v30   ;;  %589 = vperm.xlu0 %6525, %v499_v31   ;;  %v7003_v43 = vld [vmem:[%s6972_s27 + $0x40] sm:$0xff]  ;;  %v665_v45 = vld [vmem:[%s6987_s16 + $0x10] sm:$0xff]  ;;  %v664_v49 = vld [vmem:[%s6987_s16 + $0x8] sm:$0xff] }
  0x4d   : >> { %v663_v47 = vld [vmem:[%s6987_s16] sm:$0xff]  ;;  %v5868_v53 = vld [vmem:[%s6972_s27 + $0x68] sm:$0xff]  ;;  %v5879_v55 = vld [vmem:[%s6987_s16 + $0x70] sm:$0xff] }
  0x4e   : >> { %v5870_v57 = vld [vmem:[%s6972_s27 + $0x78] sm:$0xff]  ;;  %v5878_v58 = vld [vmem:[%s6987_s16 + $0x68] sm:$0xff]  ;;  %v5942_v60 = vld [vmem:[%s6972_s27 + $0xb0] sm:$0xff] }
  0x4f   : >> { %v5876_v59 = vld [vmem:[%s6987_s16 + $0x58] sm:$0xff]  ;;  %v5867_v61 = vld [vmem:[%s6972_s27 + $0x60] sm:$0xff]  ;;  %v5938_v62 = vld [vmem:[%s6972_s27 + $0x90] sm:$0xff] }
  0x50   : >> { %6524 = vset.pattern.permute.xlu1 %v9456_v27  ;;  %581 = vperm.xlu0 %6525, %v497_v32   ;;  %v7048_v63 = vld [vmem:[%s6972_s27 + $0x80] sm:$0xff]  ;;  %v5880_v1 = vld [vmem:[%s6987_s16 + $0x78] sm:$0xff]  ;;  %v7065_v10 = vld [vmem:[%s6972_s27 + $0xa8] sm:$0xff] }
  0x51   : >> { %532 = vperm.xlu1 %6524, %v502_v33   ;;  %v5866_v3 = vld [vmem:[%s6972_s27 + $0x58] sm:$0xff]  ;;  %v5877_v6 = vld [vmem:[%s6987_s16 + $0x60] sm:$0xff]  ;;  %v5864_v11 = vld [vmem:[%s6972_s27 + $0x48] sm:$0xff] }
  0x52   : >> { %v5952_v12 = vld [vmem:[%s6987_s16 + $0xb0] sm:$0xff]  ;;  %v494_v21 = vld [vmem:[%s7078_s25] sm:$0xf]  ;;  %v5951_v23 = vld [vmem:[%s6987_s16 + $0xa8] sm:$0xff] }
  0x54   : >> { %6530 = vset.pattern.permute.xlu0 %v9456_v27 }
  0x55   : >> { %6526 = vset.pattern.permute.xlu1 %v9459_v26  ;;  %537 = vperm.xlu0 %6530, %v503_v28   ;;  %v615_v28 = vrot.slane %v494_v21, %v7081_v16 }
  0x56   : >> { %601 = vperm.xlu1 %6526, %v502_v33   ;;  %v5875_v33 = vld [vmem:[%s6987_s16 + $0x50] sm:$0xff] }
  0x59   : >> { %542 = vperm.xlu0 %6530, %v504_v30   ;;  %v549_v30 = vrot.slane %v494_v21, %v7087_v18 }
  0x5a   : >> { %6527 = vset.pattern.permute.xlu1 %v9456_v27 }
  0x5b   : >> { %703 = vperm.xlu1 %6527, %v669_v34  }
  0x5d   : >> { %527 = vperm.xlu0 %6530, %v501_v29   ;;  %v619_v29 = vrot.slane %v494_v21, %v7084_v17 }
  0x5f   : >> { %517 = vperm.xlu1 %6527, %v499_v31   ;;  %v553_v31 = vrot.slane %v494_v21, %v7090_v19 }
  0x61   : >> { %708 = vperm.xlu0 %6530, %v670_v35   ;;  %v5949_v35 = vld [vmem:[%s6987_s16 + $0x98] sm:$0xff] }
  0x63   : >> { %522 = vperm.xlu1 %6527, %v500_v36  }
  0x65   : >> { %698 = vperm.xlu0 %6530, %v668_v37   ;;  %v7110_v37 = vrot.slane %v619_v29, %v7081_v16 }
  0x67   : >> { %6528 = vset.pattern.permute.xlu1 %v9459_v26 }
  0x68   : >> { %593 = vperm.xlu1 %6528, %v500_v36   ;;  %v7107_v36 = vrot.slane %v615_v28, %v7081_v16 }
  0x69   : >> { %688 = vperm.xlu0 %6530, %v666_v38   ;;  %v7113_v38 = vrot.slane %v549_v30, %v7087_v18 }
  0x6c   : >> { %6529 = vset.pattern.permute.xlu1 %v9456_v27 }
  0x6d   : >> { %693 = vperm.xlu1 %6529, %v667_v39   ;;  %6533 = vset.pattern.permute.xlu0 %v9459_v26  ;;  %v7116_v39 = vrot.slane %v553_v31, %v7087_v18 }
  0x6e   : >> { %1217 = vperm.xlu0 %6533, %v5869_v40  }
  0x71   : >> { %507 = vperm.xlu1 %6529, %v497_v32  }
  0x72   : >> { %1201 = vperm.xlu0 %6533, %v5865_v41  }
  0x75   : >> { %512 = vperm.xlu1 %6529, %v498_v42  }
  0x76   : >> { %1193 = vperm.xlu0 %6533, %v7003_v43  }
  0x79   : >> { %6531 = vset.pattern.permute.xlu1 %v9459_v26 }
  0x7a   : >> { %585 = vperm.xlu1 %6531, %v498_v42   ;;  %6540 = vset.pattern.permute.xlu0 %v9456_v27 }
  0x7b   : >> { %803 = vperm.xlu0 %6540, %v769_v44  }
  0x7e   : >> { %6532 = vset.pattern.permute.xlu1 %v9456_v27 }
  0x7f   : >> { %683 = vperm.xlu1 %6532, %v665_v45   ;;  %793 = vperm.xlu0 %6540, %v767_v46  }
  0x83   : >> { %673 = vperm.xlu1 %6532, %v663_v47   ;;  %783 = vperm.xlu0 %6540, %v765_v48  }
  0x87   : >> { %678 = vperm.xlu1 %6532, %v664_v49   ;;  %773 = vperm.xlu0 %6540, %v763_v50   ;;  %v7126_v49 = vld [vmem:[%s6972_s27 + $0xf0] sm:$0xff] }
  0x8b   : >> { %808 = vperm.xlu1 %6532, %v770_v51   ;;  %1149 = vperm.xlu0 %6540, %v5869_v40   ;;  %v5874_v51 = vld [vmem:[%s6987_s16 + $0x48] sm:$0xff] }
  0x8f   : >> { %798 = vperm.xlu1 %6532, %v768_v52   ;;  %1144 = vperm.xlu0 %6540, %v5868_v53  }
  0x93   : >> { %788 = vperm.xlu1 %6532, %v766_v54   ;;  %1315 = vperm.xlu0 %6540, %v5879_v55  }
  0x97   : >> { %778 = vperm.xlu1 %6532, %v764_v56   ;;  %1129 = vperm.xlu0 %6540, %v5865_v41   ;;  %v5873_v41 = vld [vmem:[%s6987_s16 + $0x40] sm:$0xff] }
  0x9b   : >> { %1154 = vperm.xlu1 %6532, %v5870_v57   ;;  %1310 = vperm.xlu0 %6540, %v5878_v58  }
  0x9f   : >> { %6534 = vset.pattern.permute.xlu1 %v9459_v26  ;;  %1300 = vperm.xlu0 %6540, %v5876_v59  }
  0xa0   : >> { %1221 = vperm.xlu1 %6534, %v5870_v57  }
  0xa3   : >> { %6543 = vset.pattern.permute.xlu0 %v9459_v26 }
  0xa4   : >> { %6535 = vset.pattern.permute.xlu1 %v9456_v27  ;;  %1828 = vperm.xlu0 %6543, %v5942_v60  }
  0xa5   : >> { %1139 = vperm.xlu1 %6535, %v5867_v61  }
  0xa8   : >> { %1812 = vperm.xlu0 %6543, %v5938_v62  }
  0xa9   : >> { %6536 = vset.pattern.permute.xlu1 %v9459_v26 }
  0xaa   : >> { %1209 = vperm.xlu1 %6536, %v5867_v61   ;;  %v7136_v61 = vld [vmem:[%s6972_s27 + $0xd0] sm:$0xff] }
  0xac   : >> { %1804 = vperm.xlu0 %6543, %v7048_v63  }
  0xae   : >> { %1213 = vperm.xlu1 %6536, %v5868_v53  }
  0xb0   : >> { %6550 = vset.pattern.permute.xlu0 %v9456_v27 }
  0xb1   : >> { %1415 = vperm.xlu0 %6550, %v5899_v0   ;;  %v5900_v0 = vld [vmem:[%s7010_s29 + $0x78] sm:$0xff] }
  0xb2   : >> { %6537 = vset.pattern.permute.xlu1 %v9456_v27 }
  0xb3   : >> { %1320 = vperm.xlu1 %6537, %v5880_v1  }
  0xb5   : >> { %1405 = vperm.xlu0 %6550, %v5897_v2  }
  0xb7   : >> { %1134 = vperm.xlu1 %6537, %v5866_v3  }
  0xb9   : >> { %1395 = vperm.xlu0 %6550, %v5895_v4  }
  0xbb   : >> { %6538 = vset.pattern.permute.xlu1 %v9459_v26 }
  0xbc   : >> { %1205 = vperm.xlu1 %6538, %v5866_v3  }
  0xbd   : >> { %1385 = vperm.xlu0 %6550, %v5893_v5  }
  0xc0   : >> { %6539 = vset.pattern.permute.xlu1 %v9456_v27 }
  0xc1   : >> { %1305 = vperm.xlu1 %6539, %v5877_v6   ;;  %1760 = vperm.xlu0 %6550, %v5942_v60  }
  0xc3   : >> { %v606_v8 = vpop.permute.xlu1 %605  ;;  %v7062_v9 = vpop.permute.xlu0 %597 }
  0xc4   : >> { %v642_v45 = vmul.f32 %v7107_v36, %v606_v8  ;;  %v643_v46 = vmul.f32 %v7110_v37, %v606_v8  ;;  %v638_v30 = vmul.f32 %v7107_v36, %v7062_v9  ;;  %v639_v31 = vmul.f32 %v7110_v37, %v7062_v9  ;;  %v5972_v9 = vld [vmem:[%s7010_s29 + $0xb0] sm:$0xff] }
  0xc5   : >> { %1119 = vperm.xlu1 %6539, %v7003_v43   ;;  %1755 = vperm.xlu0 %6550, %v7065_v10  }
  0xc7   : >> { %v610_v14 = vpop.permute.xlu1 %609  ;;  %v7075_v15 = vpop.permute.xlu0 %589 }
  0xc8   : >> { %v644_v52 = vmul.f32 %v7107_v36, %v610_v14  ;;  %v645_v53 = vmul.f32 %v7110_v37, %v610_v14 }
  0xc9   : >> { %1124 = vperm.xlu1 %6539, %v5864_v11   ;;  %1926 = vperm.xlu0 %6550, %v5952_v12   ;;  %v5898_v12 = vld [vmem:[%s7010_s29 + $0x68] sm:$0xff] }
  0xcb   : >> { %v7092_v20 = vpop.permute.xlu0 %581 }
  0xcc   : >> { %v7095_v22 = vpop.permute.xlu1 %532 }
  0xcd   : >> { %6541 = vset.pattern.permute.xlu1 %v9459_v26  ;;  %1740 = vperm.xlu0 %6550, %v5938_v62  }
  0xce   : >> { %1197 = vperm.xlu1 %6541, %v5864_v11   ;;  %v7143_v11 = vld [vmem:[%s6972_s27 + $0xc0] sm:$0xff] }
  0xd0   : >> { %v538_v32 = vpop.permute.xlu0 %537 }
  0xd1   : >> { %v602_v34 = vpop.permute.xlu1 %601  ;;  %1921 = vperm.xlu0 %6550, %v5951_v23   ;;  %v576_v42 = vmul.f32 %v7113_v38, %v538_v32  ;;  %v577_v43 = vmul.f32 %v7116_v39, %v538_v32 }
  0xd2   : >> { %6542 = vset.pattern.permute.xlu1 %v9456_v27  ;;  %v640_v14 = vmul.f32 %v7107_v36, %v602_v34  ;;  %v641_v21 = vmul.f32 %v7110_v37, %v602_v34  ;;  %v575_v34 = vmul.f32 %v7116_v39, %v7095_v22 }
  0xd3   : >> { %1295 = vperm.xlu1 %6542, %v5875_v33   ;;  %v658_v54 = vadd.f32 %v642_v45, %v576_v42  ;;  %v659_v55 = vadd.f32 %v643_v46, %v577_v43  ;;  %v574_v33 = vmul.f32 %v7113_v38, %v7095_v22 }
  0xd4   : >> { %v543_v40 = vpop.permute.xlu0 %542  ;;  %v657_v43 = vadd.f32 %v641_v21, %v575_v34  ;;  %v5940_v34 = vld [vmem:[%s6972_s27 + $0xa0] sm:$0xff] }
  0xd5   : >> { %1911 = vperm.xlu0 %6550, %v5949_v35   ;;  %v578_v47 = vmul.f32 %v7113_v38, %v543_v40  ;;  %v579_v48 = vmul.f32 %v7116_v39, %v543_v40  ;;  %v656_v42 = vadd.f32 %v640_v14, %v574_v33  ;;  %v5966_v14 = vld [vmem:[%s7010_s29 + $0x80] sm:$0xff] }
  0xd6   : >> { %v704_v44 = vpop.permute.xlu1 %703 }
  0xd7   : >> { %1285 = vperm.xlu1 %6542, %v5873_v41   ;;  %v723_v57 = vadd.f32 %v704_v44, %v658_v54  ;;  %v660_v58 = vadd.f32 %v644_v52, %v578_v47  ;;  %v661_v59 = vadd.f32 %v645_v53, %v579_v48  ;;  %v724_v60 = vadd.f32 %v704_v44, %v659_v55  ;;  %v5896_v41 = vld [vmem:[%s7010_s29 + $0x58] sm:$0xff] }
  0xd8   : >> { %v528_v50 = vpop.permute.xlu0 %527 }
  0xd9   : >> { %6553 = vset.pattern.permute.xlu0 %v9459_v26  ;;  %v740_v4 = vmax.f32 %v724_v60, 0.0  ;;  %v739_v6 = vmax.f32 %v723_v57, 0.0  ;;  %v572_v32 = vmul.f32 %v7113_v38, %v528_v50  ;;  %v573_v35 = vmul.f32 %v7116_v39, %v528_v50  ;;  %v5894_v50 = vld [vmem:[%s7010_s29 + $0x48] sm:$0xff] }
  0xda   : >> { %v7132_v56 = vpop.permute.xlu1 %517  ;;  %2439 = vperm.xlu0 %6553, %v7126_v49  }
  0xdb   : >> { %1290 = vperm.xlu1 %6542, %v5874_v51   ;;  %v654_v45 = vadd.f32 %v638_v30, %v572_v32  ;;  %v655_v22 = vadd.f32 %v639_v31, %v573_v35  ;;  %v5970_v51 = vld [vmem:[%s7010_s29 + $0xa0] sm:$0xff]  ;;  %v634_v30 = vmul.f32 %v7107_v36, %v7075_v15  ;;  %v635_v31 = vmul.f32 %v7110_v37, %v7075_v15  ;;  %v7194_v15 = vld [vmem:[%s6972_s27 + $0xe8] sm:$0xff] }
  0xdc   : >> { %v709_v62 = vpop.permute.xlu0 %708  ;;  %v568_v32 = vmul.f32 %v7113_v38, %v7132_v56  ;;  %v569_v33 = vmul.f32 %v7116_v39, %v7132_v56 }
  0xdd   : >> { %v725_v1 = vadd.f32 %v709_v62, %v660_v58  ;;  %v726_v2 = vadd.f32 %v709_v62, %v661_v59  ;;  %v5943_v62 = vld [vmem:[%s6972_s27 + $0xb8] sm:$0xff] }
  0xde   : >> { %v7139_v3 = vpop.permute.xlu1 %522  ;;  %2423 = vperm.xlu0 %6553, %v7136_v61  }
  0xdf   : >> { %1420 = vperm.xlu1 %6542, %v5900_v0   ;;  %v742_v5 = vmax.f32 %v726_v2, 0.0  ;;  %v741_v8 = vmax.f32 %v725_v1, 0.0  ;;  %v570_v21 = vmul.f32 %v7113_v38, %v7139_v3 }
  0xe0   : >> { %v699_v23 = vpop.permute.xlu0 %698 }
  0xe1   : >> { %v761_v28 = vpack.c.bf16 %v742_v5, %v740_v4  ;;  %v760_v29 = vpack.c.bf16 %v741_v8, %v739_v6  ;;  %v721_v46 = vadd.f32 %v699_v23, %v656_v42  ;;  %v722_v47 = vadd.f32 %v699_v23, %v657_v43  ;;  %v5968_v4 = vld [vmem:[%s7010_s29 + $0x90] sm:$0xff] }
  0xe2   : >> { %2415 = vperm.xlu0 %6553, %v7143_v11   ;;  %v571_v23 = vmul.f32 %v7116_v39, %v7139_v3  ;;  %v651_v42 = vadd.f32 %v635_v31, %v569_v33  ;;  %v6024_v31 = vld [vmem:[%s6987_s16 + $0xe8] sm:$0xff] }
  0xe3   : >> { %v594_v40 = vpop.permute.xlu1 %593  ;;  %1410 = vperm.xlu1 %6542, %v5898_v12   ;;  %852 = vmatprep.subr.bf16.mxu0 %v761_v28  ;;  %v737_v55 = vmax.f32 %v721_v46, 0.0  ;;  %v738_v57 = vmax.f32 %v722_v47, 0.0 }
  0xe4   : >> { %853 = vmatpush1.bf16.msra.mxu0 %v760_v29  ;;  %v689_v44 = vpop.permute.xlu0 %688  ;;  %v636_v5 = vmul.f32 %v7107_v36, %v594_v40  ;;  %v637_v6 = vmul.f32 %v7110_v37, %v594_v40 }
  0xe6   : >> { %6560 = vset.pattern.permute.xlu0 %v9456_v27  ;;  %v652_v28 = vadd.f32 %v636_v5, %v570_v21  ;;  %v653_v29 = vadd.f32 %v637_v6, %v571_v23  ;;  %v5953_v23 = vld [vmem:[%s6987_s16 + $0xb8] sm:$0xff] }
  0xe7   : >> { %1400 = vperm.xlu1 %6542, %v5896_v41   ;;  %2026 = vperm.xlu0 %6560, %v5972_v9   ;;  %v650_v9 = vadd.f32 %v634_v30, %v568_v32 }
  0xe8   : >> { %v694_v48 = vpop.permute.xlu1 %693  ;;  %v717_v40 = vadd.f32 %v689_v44, %v652_v28  ;;  %v718_v41 = vadd.f32 %v689_v44, %v653_v29  ;;  %v630_v44 = vmul.f32 %v7107_v36, %v7092_v20 }
  0xe9   : >> { %v719_v52 = vadd.f32 %v694_v48, %v654_v45  ;;  %v720_v53 = vadd.f32 %v694_v48, %v655_v22  ;;  %v7164_v54 = vpop.permute.xlu0 %1217 }
  0xea   : >> { %v733_v48 = vmax.f32 %v717_v40, 0.0 }
  0xeb   : >> { %v735_v58 = vmax.f32 %v719_v52, 0.0  ;;  %v736_v59 = vmax.f32 %v720_v53, 0.0  ;;  %1390 = vperm.xlu1 %6542, %v5894_v50   ;;  %2016 = vperm.xlu0 %6560, %v5970_v51   ;;  %v734_v50 = vmax.f32 %v718_v41, 0.0 }
  0xec   : >> { %v508_v60 = vpop.permute.xlu1 %507 }
  0xed   : >> { %v759_v0 = vpack.c.bf16 %v738_v57, %v736_v59  ;;  %v758_v1 = vpack.c.bf16 %v737_v55, %v735_v58  ;;  %v7167_v2 = vpop.permute.xlu0 %1201  ;;  %v564_v43 = vmul.f32 %v7113_v38, %v508_v60  ;;  %v565_v56 = vmul.f32 %v7116_v39, %v508_v60  ;;  %v6025_v57 = vld [vmem:[%s6987_s16 + $0xf0] sm:$0xff] }
  0xef   : >> { %1765 = vperm.xlu1 %6542, %v5943_v62   ;;  %854 = vmatprep.subr.bf16.mxu0 %v759_v0  ;;  %v646_v59 = vadd.f32 %v630_v44, %v564_v43  ;;  %v6604_v43 = vld [vmem:[%s7031_s26 + $0x8] sm:$0xff]  }
  0xf0   : >> { %v513_v8 = vpop.permute.xlu1 %512  ;;  %855 = vmatpush1.bf16.msra.mxu0 %v758_v1  ;;  %2006 = vperm.xlu0 %6560, %v5968_v4  }
  0xf1   : >> { %v7172_v12 = vpop.permute.xlu0 %1193 }
  0xf3   : >> { %6544 = vset.pattern.permute.xlu1 %v9459_v26 }
  0xf4   : >> { %1832 = vperm.xlu1 %6544, %v5943_v62   ;;  %1996 = vperm.xlu0 %6560, %v5966_v14   ;;  %v566_v62 = vmul.f32 %v7113_v38, %v513_v8 }
  0xf5   : >> { %v586_v3 = vpop.permute.xlu1 %585 }
  0xf6   : >> { %v7189_v35 = vpop.permute.xlu0 %803  ;;  %v632_v51 = vmul.f32 %v7107_v36, %v586_v3  ;;  %v633_v52 = vmul.f32 %v7110_v37, %v586_v3  ;;  %v5939_v3 = vld [vmem:[%s6972_s27 + $0x98] sm:$0xff] }
  0xf8   : >> { %6545 = vset.pattern.permute.xlu1 %v9456_v27  ;;  %2371 = vperm.xlu0 %6560, %v7126_v49   ;;  %v631_v49 = vmul.f32 %v7110_v37, %v7092_v20  ;;  %v567_v20 = vmul.f32 %v7116_v39, %v513_v8  ;;  %v648_v5 = vadd.f32 %v632_v51, %v566_v62  ;;  %v5937_v51 = vld [vmem:[%s6972_s27 + $0x88] sm:$0xff]  ;;  %v6041_v62 = vld [vmem:[%s7010_s29 + $0xd0] sm:$0xff] }
  0xf9   : >> { %1750 = vperm.xlu1 %6545, %v5940_v34  }
  0xfa   : >> { %v684_v45 = vpop.permute.xlu1 %683  ;;  %v7198_v46 = vpop.permute.xlu0 %793  ;;  %v647_v60 = vadd.f32 %v631_v49, %v565_v56  ;;  %v649_v6 = vadd.f32 %v633_v52, %v567_v20 }
  0xfb   : >> { %v715_v47 = vadd.f32 %v684_v45, %v650_v9  ;;  %v716_v22 = vadd.f32 %v684_v45, %v651_v42  ;;  %v6088_v42 = vld [vmem:[%s6972_s27 + $0x130] sm:$0xff] }
  0xfc   : >> { %2366 = vperm.xlu0 %6560, %v7194_v15  }
  0xfd   : >> { %v731_v53 = vmax.f32 %v715_v47, 0.0  ;;  %v732_v55 = vmax.f32 %v716_v22, 0.0  ;;  %6546 = vset.pattern.permute.xlu1 %v9459_v26  ;;  %v5950_v47 = vld [vmem:[%s6987_s16 + $0xa0] sm:$0xff]  ;;  %v6084_v22 = vld [vmem:[%s6972_s27 + $0x110] sm:$0xff] }
  0xfe   : >> { %1820 = vperm.xlu1 %6546, %v5940_v34   ;;  %v674_v58 = vpop.permute.xlu1 %673  ;;  %v7211_v4 = vpop.permute.xlu0 %783  ;;  %v6022_v34 = vld [vmem:[%s6987_s16 + $0xd8] sm:$0xff] }
  0xff   : >> { %v757_v0 = vpack.c.bf16 %v734_v50, %v732_v55  ;;  %v756_v1 = vpack.c.bf16 %v733_v48, %v731_v53  ;;  %v711_v36 = vadd.f32 %v674_v58, %v646_v59  ;;  %v712_v37 = vadd.f32 %v674_v58, %v647_v60  ;;  %v7251_v48 = vld [vmem:[%s6972_s27 + $0x100] sm:$0xff]  ;;  %v6605_v50 = vld [vmem:[%s7031_s26 + $0x10] sm:$0xff]   ;;  %v6606_v58 = vld [vmem:[%s7031_s26 + $0x18] sm:$0xff]  }
 0x100   : >> { %2537 = vperm.xlu0 %6560, %v6025_v57   ;;  %v6045_v55 = vld [vmem:[%s7010_s29 + $0xf0] sm:$0xff]  ;;  %v6043_v57 = vld [vmem:[%s7010_s29 + $0xe0] sm:$0xff] }
 0x101   : >> { %856 = vmatprep.subr.bf16.mxu0 %v757_v0  ;;  %v727_v39 = vmax.f32 %v711_v36, 0.0  ;;  %v728_v8 = vmax.f32 %v712_v37, 0.0  ;;  %v5948_v60 = vld [vmem:[%s6987_s16 + $0x90] sm:$0xff]  ;;  %v6039_v36 = vld [vmem:[%s7010_s29 + $0xc0] sm:$0xff] }
 0x102   : >> { %1824 = vperm.xlu1 %6546, %v7065_v10   ;;  %v679_v14 = vpop.permute.xlu1 %678  ;;  %857 = vmatpush1.bf16.msra.mxu0 %v756_v1  ;;  %v7216_v30 = vpop.permute.xlu0 %773  ;;  %v5946_v1 = vld [vmem:[%s6987_s16 + $0x80] sm:$0xff] }
 0x103   : >> { %v713_v38 = vadd.f32 %v679_v14, %v648_v5  ;;  %v714_v21 = vadd.f32 %v679_v14, %v649_v6  ;;  %v5947_v5 = vld [vmem:[%s6987_s16 + $0x88] sm:$0xff] }
 0x104   : >> { %2351 = vperm.xlu0 %6560, %v7136_v61   ;;  %v6603_v61 = vld [vmem:[%s7031_s26] sm:$0xff]  }
 0x105   : >> { %v729_v28 = vmax.f32 %v713_v38, 0.0  ;;  %v730_v29 = vmax.f32 %v714_v21, 0.0  ;;  %v5973_v38 = vld [vmem:[%s7010_s29 + $0xb8] sm:$0xff]  ;;  %v7292_v21 = vld [vmem:[%s6972_s27 + $0x128] sm:$0xff] }
 0x106   : >> { %6547 = vset.pattern.permute.xlu1 %v9456_v27  ;;  %v7220_v10 = vpop.permute.xlu1 %808  ;;  %v7227_v41 = vpop.permute.xlu0 %1149 }
 0x107   : >> { %1931 = vperm.xlu1 %6547, %v5953_v23   ;;  %v755_v32 = vpack.c.bf16 %v730_v29, %v728_v8  ;;  %v754_v33 = vpack.c.bf16 %v729_v28, %v727_v39  ;;  %v5971_v8 = vld [vmem:[%s7010_s29 + $0xa8] sm:$0xff]  ;;  %v6098_v28 = vld [vmem:[%s6987_s16 + $0x130] sm:$0xff] }
 0x108   : >> { %2532 = vperm.xlu0 %6560, %v6024_v31   ;;  %v5969_v31 = vld [vmem:[%s7010_s29 + $0x98] sm:$0xff] }
 0x109   : >> { %858 = vmatprep.subr.bf16.mxu0 %v755_v32 }
 0x10a   : >> { %v7225_v40 = vpop.permute.xlu1 %798  ;;  %859 = vmatpush1.bf16.msra.mxu0 %v754_v33  ;;  %v7237_v56 = vpop.permute.xlu0 %1144  ;;  %v5967_v33 = vld [vmem:[%s7010_s29 + $0x88] sm:$0xff] }
 0x10b   : >> { %1745 = vperm.xlu1 %6547, %v5939_v3  }
 0x10c   : >> { %2522 = vperm.xlu0 %6560, %v6022_v34  }
 0x10d   : >> { %5847 = vmatmul.mubr.msk.bf16.vlgmr.msra.gmra.mxu0 %vm831_vm0, %v6603_v61  ;;  %v6097_v61 = vld [vmem:[%s6987_s16 + $0x128] sm:$0xff] }
 0x10e   : >> { %v7230_v9 = vpop.permute.xlu1 %788  ;;  %886 = vmatprep.mubr.bf16.mxu0 %v9456_v27  ;;  %v7248_v49 = vpop.permute.xlu0 %1315 }
 0x10f   : >> { %6548 = vset.pattern.permute.xlu1 %v9459_v26 }
 0x110   : >> { %1816 = vperm.xlu1 %6548, %v5939_v3   ;;  %6563 = vset.pattern.permute.xlu0 %v9459_v26 }
 0x111   : >> { %3050 = vperm.xlu0 %6563, %v6088_v42  }
 0x112   : >> { %v7239_v45 = vpop.permute.xlu1 %778  ;;  %v7257_v52 = vpop.permute.xlu0 %1129 }
 0x114   : >> { %6549 = vset.pattern.permute.xlu1 %v9456_v27 }
 0x115   : >> { %1916 = vperm.xlu1 %6549, %v5950_v47   ;;  %5848 = vmatmul.mubr.msk.bf16.gmra.mxu0 %vm831_vm0, %v6604_v43  ;;  %v6095_v47 = vld [vmem:[%s6987_s16 + $0x118] sm:$0xff] }
 0x116   : >> { %v7245_v44 = vpop.permute.xlu1 %1154  ;;  %896 = vmatprep.mubr.bf16.mxu0 %v9456_v27  ;;  %3034 = vperm.xlu0 %6563, %v6084_v22   ;;  %v7270_v59 = vpop.permute.xlu0 %1310 }
 0x119   : >> { %1730 = vperm.xlu1 %6549, %v7048_v63  }
 0x11a   : >> { %3026 = vperm.xlu0 %6563, %v7251_v48   ;;  %v7279_v0 = vpop.permute.xlu0 %1300 }
 0x11b   : >> { %v7259_v53 = vpop.permute.xlu1 %1221 }
 0x11d   : >> { %1735 = vperm.xlu1 %6549, %v5937_v51   ;;  %5849 = vmatmul.mubr.msk.bf16.gmra.mxu0 %vm831_vm0, %v6605_v50 }
 0x11e   : >> { %906 = vmatprep.mubr.bf16.mxu0 %v9456_v27  ;;  %6570 = vset.pattern.permute.xlu0 %v9456_v27 }
 0x11f   : >> { %2637 = vperm.xlu0 %6570, %v6045_v55   ;;  %v7286_v6 = vpop.permute.xlu0 %1828 }
 0x120   : >> { %v7265_v63 = vpop.permute.xlu1 %1139  ;;  %9699 = vst [vmem:[#allocation16_spill] sm:$0xff] %v7286_v6 }
 0x121   : >> { %6551 = vset.pattern.permute.xlu1 %v9459_v26 }
 0x122   : >> { %1808 = vperm.xlu1 %6551, %v5937_v51   ;;  %v6161_v51 = vld [vmem:[%s6972_s27 + $0x170] sm:$0xff] }
 0x123   : >> { %2627 = vperm.xlu0 %6570, %v6043_v57   ;;  %v7296_v39 = vpop.permute.xlu0 %1812  ;;  %v6157_v57 = vld [vmem:[%s6972_s27 + $0x150] sm:$0xff] }
 0x124   : >> { %9700 = vst [vmem:[#allocation17_spill] sm:$0xff] %v7296_v39 }
 0x125   : >> { %5850 = vmatmul.mubr.msk.bf16.gmra.mxu0 %vm831_vm0, %v6606_v58  ;;  %v7275_v20 = vpop.permute.xlu1 %1209  ;;  %v6013_v58 = vld [vmem:[%s6972_s27 + $0xe0] sm:$0xff] }
 0x126   : >> { %6552 = vset.pattern.permute.xlu1 %v9456_v27  ;;  %1633 = vmatprep.mubr.bf16.mxu0 %v9456_v27 }
 0x127   : >> { %1906 = vperm.xlu1 %6552, %v5948_v60   ;;  %2617 = vperm.xlu0 %6570, %v6041_v62   ;;  %v7304_v32 = vpop.permute.xlu0 %1804  ;;  %v7331_v62 = vld [vmem:[%s6972_s27 + $0x140] sm:$0xff] }
 0x128   : >> { %9701 = vst [vmem:[#allocation18_spill] sm:$0xff] %v7304_v32  ;;  %9705 = vst [vmem:[#allocation22_spill] sm:$0xff] %v7331_v62  ;;  %v6119_v32 = vld [vmem:[%s7010_s29 + $0x138] sm:$0xff] }
 0x129   : >> { %v7283_v37 = vpop.permute.xlu1 %1213 }
 0x12b   : >> { %1896 = vperm.xlu1 %6552, %v5946_v1   ;;  %2607 = vperm.xlu0 %6570, %v6039_v36  }
 0x12c   : >> { %v7310_v34 = vpop.permute.xlu0 %1415 }
 0x12d   : >> { %9702 = vst [vmem:[#allocation19_spill] sm:$0xff] %v7310_v34 }
 0x12e   : >> { %v7288_v14 = vpop.permute.xlu1 %1320 }
 0x12f   : >> { %1901 = vperm.xlu1 %6552, %v5947_v5   ;;  %2982 = vperm.xlu0 %6570, %v6088_v42   ;;  %v6016_v42 = vld [vmem:[%s6972_s27 + $0xf8] sm:$0xff] }
 0x132   : >> { %v7294_v23 = vpop.permute.xlu1 %1134 }
 0x133   : >> { %2031 = vperm.xlu1 %6552, %v5973_v38   ;;  %2977 = vperm.xlu0 %6570, %v7292_v21   ;;  %v6118_v38 = vld [vmem:[%s7010_s29 + $0x130] sm:$0xff] }
 0x137   : >> { %2021 = vperm.xlu1 %6552, %v5971_v8   ;;  %v7301_v29 = vpop.permute.xlu1 %1205  ;;  %3148 = vperm.xlu0 %6570, %v6098_v28   ;;  %v6116_v28 = vld [vmem:[%s7010_s29 + $0x120] sm:$0xff] }
 0x13b   : >> { %2011 = vperm.xlu1 %6552, %v5969_v31   ;;  %2962 = vperm.xlu0 %6570, %v6084_v22   ;;  %v7318_v22 = vpop.permute.xlu0 %1405 }
 0x13c   : >> { %v7307_v3 = vpop.permute.xlu1 %1305  ;;  %9703 = vst [vmem:[#allocation20_spill] sm:$0xff] %v7318_v22 }
 0x13f   : >> { %2001 = vperm.xlu1 %6552, %v5967_v33   ;;  %3143 = vperm.xlu0 %6570, %v6097_v61   ;;  %v7327_v60 = vpop.permute.xlu0 %1395  ;;  %v6026_v33 = vld [vmem:[%s6987_s16 + $0xf8] sm:$0xff] }
 0x140   : >> { %v7313_v43 = vpop.permute.xlu1 %1119  ;;  %9704 = vst [vmem:[#allocation21_spill] sm:$0xff] %v7327_v60 }
 0x143   : >> { %2376 = vperm.xlu1 %6552, %v6016_v42   ;;  %3133 = vperm.xlu0 %6570, %v6095_v47   ;;  %v7337_v36 = vpop.permute.xlu0 %1385  ;;  %v6012_v47 = vld [vmem:[%s6972_s27 + $0xd8] sm:$0xff] }
 0x144   : >> { %v7316_v50 = vpop.permute.xlu1 %1124  ;;  %9707 = vst [vmem:[#allocation24_spill] sm:$0xff] %v7337_v36 }
 0x147   : >> { %6554 = vset.pattern.permute.xlu1 %v9459_v26  ;;  %6573 = vset.pattern.permute.xlu0 %v9459_v26  ;;  %v7347_v31 = vpop.permute.xlu0 %1760 }
 0x148   : >> { %2443 = vperm.xlu1 %6554, %v6016_v42   ;;  %3661 = vperm.xlu0 %6573, %v6161_v51   ;;  %9710 = vst [vmem:[#allocation27_spill] sm:$0xff] %v7347_v31  ;;  %v6114_v42 = vld [vmem:[%s7010_s29 + $0x110] sm:$0xff] }
 0x149   : >> { %v7323_v55 = vpop.permute.xlu1 %1197 }
 0x14c   : >> { %6555 = vset.pattern.permute.xlu1 %v9456_v27  ;;  %3645 = vperm.xlu0 %6573, %v6157_v57  }
 0x14d   : >> { %2361 = vperm.xlu1 %6555, %v6013_v58  }
 0x14e   : >> { %v7333_v1 = vpop.permute.xlu1 %1295 }
 0x14f   : >> { %9706 = vst [vmem:[#allocation23_spill] sm:$0xff] %v7333_v1 }
 0x150   : >> { %3637 = vperm.xlu0 %6573, %v7331_v62   ;;  %v6113_v62 = vld [vmem:[%s7010_s29 + $0x108] sm:$0xff] }
 0x151   : >> { %6556 = vset.pattern.permute.xlu1 %v9459_v26 }
 0x152   : >> { %2431 = vperm.xlu1 %6556, %v6013_v58   ;;  %v7339_v5 = vpop.permute.xlu1 %1285  ;;  %v7355_v58 = vpop.permute.xlu0 %1755 }
 0x153   : >> { %9708 = vst [vmem:[#allocation25_spill] sm:$0xff] %v7339_v5  ;;  %9712 = vst [vmem:[#allocation29_spill] sm:$0xff] %v7355_v58  ;;  %v6089_v58 = vld [vmem:[%s6972_s27 + $0x138] sm:$0xff] }
 0x154   : >> { %6580 = vset.pattern.permute.xlu0 %v9456_v27 }
 0x155   : >> { %3248 = vperm.xlu0 %6580, %v6118_v38   ;;  %v6112_v38 = vld [vmem:[%s7010_s29 + $0x100] sm:$0xff] }
 0x156   : >> { %2435 = vperm.xlu1 %6556, %v7194_v15   ;;  %v7344_v8 = vpop.permute.xlu1 %1290 }
 0x157   : >> { %9709 = vst [vmem:[#allocation26_spill] sm:$0xff] %v7344_v8 }
 0x159   : >> { %3238 = vperm.xlu0 %6580, %v6116_v28   ;;  %v7363_v28 = vpop.permute.xlu0 %1926 }
 0x15a   : >> { %6557 = vset.pattern.permute.xlu1 %v9456_v27  ;;  %v7351_v61 = vpop.permute.xlu1 %1420  ;;  %9715 = vst [vmem:[#allocation32_spill] sm:$0xff] %v7363_v28 }
 0x15b   : >> { %9711 = vst [vmem:[#allocation28_spill] sm:$0xff] %v7351_v61  ;;  %2542 = vperm.xlu1 %6557, %v6026_v33   ;;  %v6023_v33 = vld [vmem:[%s6987_s16 + $0xe0] sm:$0xff]  ;;  %v6191_v61 = vld [vmem:[%s7010_s29 + $0x170] sm:$0xff] }
 0x15d   : >> { %3228 = vperm.xlu0 %6580, %v6114_v42   ;;  %v7369_v42 = vld [vmem:[%s6972_s27 + $0x168] sm:$0xff]  ;;  %v7372_v24 = vpop.permute.xlu0 %1740 }
 0x15e   : >> { %v7357_v15 = vpop.permute.xlu1 %1410  ;;  %9717 = vst [vmem:[#allocation34_spill] sm:$0xff] %v7369_v42  ;;  %9719 = vst [vmem:[#allocation35_spill] sm:$0xff] %v7372_v24 }
 0x15f   : >> { %9713 = vst [vmem:[#allocation30_spill] sm:$0xff] %v7357_v15  ;;  %2356 = vperm.xlu1 %6557, %v6012_v47  }
 0x161   : >> { %3218 = vperm.xlu0 %6580, %v6112_v38   ;;  %v7382_v25 = vpop.permute.xlu0 %1921 }
 0x162   : >> { %v7360_v7 = vpop.permute.xlu1 %1400  ;;  %9722 = vst [vmem:[#allocation38_spill] sm:$0xff] %v7382_v25  ;;  %v6234_v25 = vld [vmem:[%s6972_s27 + $0x1b0] sm:$0xff] }
 0x163   : >> { %9714 = vst [vmem:[#allocation31_spill] sm:$0xff] %v7360_v7  ;;  %6558 = vset.pattern.permute.xlu1 %v9459_v26  ;;  %v6171_v26 = vld [vmem:[%s6987_s16 + $0x170] sm:$0xff] }
 0x164   : >> { %2427 = vperm.xlu1 %6558, %v6012_v47  }
 0x165   : >> { %3593 = vperm.xlu0 %6580, %v6161_v51   ;;  %v6010_v51 = vld [vmem:[%s6972_s27 + $0xc8] sm:$0xff]  ;;  %v7388_v60 = vpop.permute.xlu0 %1911 }
 0x166   : >> { %v7366_v27 = vpop.permute.xlu1 %1390  ;;  %9725 = vst [vmem:[#allocation40_spill] sm:$0xff] %v7388_v60  ;;  %v6019_v60 = vld [vmem:[%s6987_s16 + $0xc0] sm:$0xff] }
 0x167   : >> { %9716 = vst [vmem:[#allocation33_spill] sm:$0xff] %v7366_v27  ;;  %v9724_v27 = vmov 1  }
 0x168   : >> { %6559 = vset.pattern.permute.xlu1 %v9718_v13 }
 0x169   : >> { %2527 = vperm.xlu1 %6559, %v6023_v33   ;;  %3588 = vperm.xlu0 %6580, %v7369_v42   ;;  %v6170_v33 = vld [vmem:[%s6987_s16 + $0x168] sm:$0xff]  ;;  %v6335_v42 = vld [vmem:[%s7010_s29 + $0x1e0] sm:$0xff] }
 0x16a   : >> { %v7375_v38 = vpop.permute.xlu1 %1765 }
 0x16b   : >> { %9720 = vst [vmem:[#allocation36_spill] sm:$0xff] %v7375_v38  ;;  %v6317_v38 = vld [vmem:[%s6987_s16 + $0x1f0] sm:$0xff] }
 0x16d   : >> { %2341 = vperm.xlu1 %6559, %v7143_v11   ;;  %3759 = vperm.xlu0 %6580, %v6171_v26   ;;  %v6168_v26 = vld [vmem:[%s6987_s16 + $0x158] sm:$0xff]  ;;  %v6021_v11 = vld [vmem:[%s6987_s16 + $0xd0] sm:$0xff] }
 0x16f   : >> { %v7380_v47 = vpop.permute.xlu1 %1832 }
 0x170   : >> { %9721 = vst [vmem:[#allocation37_spill] sm:$0xff] %v7380_v47 }
 0x171   : >> { %2346 = vperm.xlu1 %6559, %v6010_v51   ;;  %3573 = vperm.xlu0 %6580, %v6157_v57   ;;  %v7395_v57 = vpop.permute.xlu0 %2439 }
 0x172   : >> { %9727 = vst [vmem:[#allocation42_spill] sm:$0xff] %v7395_v57  ;;  %v7415_v57 = vld [vmem:[%s6972_s27 + $0x180] sm:$0xff] }
 0x173   : >> { %9731 = vst [vmem:[#allocation46_spill] sm:$0xff] %v7415_v57 }
 0x174   : >> { %v7385_v36 = vpop.permute.xlu1 %1750 }
 0x175   : >> { %9723 = vst [vmem:[#allocation39_spill] sm:$0xff] %v7385_v36  ;;  %6561 = vset.pattern.permute.xlu1 %v9724_v27  ;;  %3754 = vperm.xlu0 %6580, %v6170_v33   ;;  %v6020_v33 = vld [vmem:[%s6987_s16 + $0xc8] sm:$0xff] }
 0x176   : >> { %2419 = vperm.xlu1 %6561, %v6010_v51   ;;  %v6230_v51 = vld [vmem:[%s6972_s27 + $0x190] sm:$0xff] }
 0x179   : >> { %v7392_v7 = vpop.permute.xlu1 %1820  ;;  %3744 = vperm.xlu0 %6580, %v6168_v26   ;;  %v7410_v26 = vpop.permute.xlu0 %2423 }
 0x17a   : >> { %9726 = vst [vmem:[#allocation41_spill] sm:$0xff] %v7392_v7  ;;  %6562 = vset.pattern.permute.xlu1 %v9718_v13  ;;  %9729 = vst [vmem:[#allocation44_spill] sm:$0xff] %v7410_v26  ;;  %v6042_v26 = vld [vmem:[%s7010_s29 + $0xd8] sm:$0xff] }
 0x17b   : >> { %2517 = vperm.xlu1 %6562, %v6021_v11  }
 0x17d   : >> { %v7399_v36 = vpop.permute.xlu1 %1824  ;;  %6583 = vset.pattern.permute.xlu0 %v9724_v27  ;;  %v7422_v22 = vpop.permute.xlu0 %2415 }
 0x17e   : >> { %9728 = vst [vmem:[#allocation43_spill] sm:$0xff] %v7399_v36  ;;  %4272 = vperm.xlu0 %6583, %v6234_v25   ;;  %v6044_v36 = vld [vmem:[%s7010_s29 + $0xe8] sm:$0xff]  ;;  %9733 = vst [vmem:[#allocation48_spill] sm:$0xff] %v7422_v22  ;;  %v6187_v22 = vld [vmem:[%s7010_s29 + $0x150] sm:$0xff] }
 0x17f   : >> { %2507 = vperm.xlu1 %6562, %v6019_v60   ;;  %v6046_v60 = vld [vmem:[%s7010_s29 + $0xf8] sm:$0xff] }
 0x181   : >> { %v7430_v34 = vpop.permute.xlu0 %2026 }
 0x182   : >> { %v7412_v11 = vpop.permute.xlu1 %1931  ;;  %4256 = vperm.xlu0 %6583, %v6230_v51   ;;  %9735 = vst [vmem:[#allocation50_spill] sm:$0xff] %v7430_v34 }
 0x183   : >> { %9730 = vst [vmem:[#allocation45_spill] sm:$0xff] %v7412_v11  ;;  %2512 = vperm.xlu1 %6562, %v6020_v33   ;;  %v6189_v33 = vld [vmem:[%s7010_s29 + $0x160] sm:$0xff] }
 0x185   : >> { %v7436_v15 = vpop.permute.xlu0 %2016 }
 0x186   : >> { %v7419_v7 = vpop.permute.xlu1 %1745  ;;  %4248 = vperm.xlu0 %6583, %v7415_v57   ;;  %9737 = vst [vmem:[#allocation52_spill] sm:$0xff] %v7436_v15 }
 0x187   : >> { %9732 = vst [vmem:[#allocation47_spill] sm:$0xff] %v7419_v7  ;;  %2642 = vperm.xlu1 %6562, %v6046_v60   ;;  %v6040_v7 = vld [vmem:[%s7010_s29 + $0xc8] sm:$0xff] }
 0x18a   : >> { %6590 = vset.pattern.permute.xlu0 %v9718_v13 }
 0x18b   : >> { %2632 = vperm.xlu1 %6562, %v6044_v36   ;;  %v7427_v11 = vpop.permute.xlu1 %1816  ;;  %3859 = vperm.xlu0 %6590, %v6191_v61   ;;  %v6185_v61 = vld [vmem:[%s7010_s29 + $0x140] sm:$0xff] }
 0x18c   : >> { %9734 = vst [vmem:[#allocation49_spill] sm:$0xff] %v7427_v11  ;;  %v6093_v11 = vld [vmem:[%s6987_s16 + $0x108] sm:$0xff] }
 0x18f   : >> { %2622 = vperm.xlu1 %6562, %v6042_v26   ;;  %3849 = vperm.xlu0 %6590, %v6189_v33   ;;  %v7444_v26 = vpop.permute.xlu0 %2006 }
 0x190   : >> { %v7433_v60 = vpop.permute.xlu1 %1916  ;;  %9740 = vst [vmem:[#allocation55_spill] sm:$0xff] %v7444_v26 }
 0x191   : >> { %9736 = vst [vmem:[#allocation51_spill] sm:$0xff] %v7433_v60  ;;  %v7536_v60 = vld [vmem:[%s6972_s27 + $0x1e8] sm:$0xff] }
 0x192   : >> { %9765 = vst [vmem:[#allocation80_spill] sm:$0xff] %v7536_v60 }
 0x193   : >> { %2612 = vperm.xlu1 %6562, %v6040_v7   ;;  %3839 = vperm.xlu0 %6590, %v6187_v22   ;;  %v7448_v7 = vld [vmem:[%s6972_s27 + $0x1a8] sm:$0xff]  ;;  %v6086_v22 = vld [vmem:[%s6972_s27 + $0x120] sm:$0xff]  ;;  %v7453_v15 = vpop.permute.xlu0 %1996 }
 0x194   : >> { %v7439_v36 = vpop.permute.xlu1 %1730  ;;  %9741 = vst [vmem:[#allocation56_spill] sm:$0xff] %v7448_v7  ;;  %9743 = vst [vmem:[#allocation58_spill] sm:$0xff] %v7453_v15  ;;  %v6243_v15 = vld [vmem:[%s6987_s16 + $0x1a8] sm:$0xff] }
 0x195   : >> { %9738 = vst [vmem:[#allocation53_spill] sm:$0xff] %v7439_v36 }
 0x197   : >> { %2987 = vperm.xlu1 %6562, %v6089_v58   ;;  %3829 = vperm.xlu0 %6590, %v6185_v61   ;;  %v6244_v61 = vld [vmem:[%s6987_s16 + $0x1b0] sm:$0xff] }
 0x198   : >> { %v7442_v34 = vpop.permute.xlu1 %1735 }
 0x199   : >> { %9739 = vst [vmem:[#allocation54_spill] sm:$0xff] %v7442_v34 }
 0x19b   : >> { %6564 = vset.pattern.permute.xlu1 %v9724_v27  ;;  %4204 = vperm.xlu0 %6590, %v6234_v25   ;;  %v7461_v25 = vpop.permute.xlu0 %2371 }
 0x19c   : >> { %3054 = vperm.xlu1 %6564, %v6089_v58   ;;  %9745 = vst [vmem:[#allocation60_spill] sm:$0xff] %v7461_v25 }
 0x19d   : >> { %v7450_v33 = vpop.permute.xlu1 %1808 }
 0x19e   : >> { %9742 = vst [vmem:[#allocation57_spill] sm:$0xff] %v7450_v33 }
 0x19f   : >> { %4199 = vperm.xlu0 %6590, %v7448_v7   ;;  %v7469_v34 = vpop.permute.xlu0 %2366 }
 0x1a0   : >> { %6565 = vset.pattern.permute.xlu1 %v9718_v13  ;;  %9748 = vst [vmem:[#allocation63_spill] sm:$0xff] %v7469_v34 }
 0x1a1   : >> { %2972 = vperm.xlu1 %6565, %v6086_v22  }
 0x1a2   : >> { %v7458_v26 = vpop.permute.xlu1 %1906 }
 0x1a3   : >> { %9744 = vst [vmem:[#allocation59_spill] sm:$0xff] %v7458_v26  ;;  %4370 = vperm.xlu0 %6590, %v6244_v61   ;;  %v6099_v61 = vld [vmem:[%s6987_s16 + $0x138] sm:$0xff] }
 0x1a4   : >> { %v6241_v26 = vld [vmem:[%s6987_s16 + $0x198] sm:$0xff] }
 0x1a5   : >> { %6566 = vset.pattern.permute.xlu1 %v9724_v27 }
 0x1a6   : >> { %3042 = vperm.xlu1 %6566, %v6086_v22   ;;  %v7463_v58 = vpop.permute.xlu1 %1896  ;;  %v7477_v22 = vpop.permute.xlu0 %2537 }
 0x1a7   : >> { %9746 = vst [vmem:[#allocation61_spill] sm:$0xff] %v7463_v58  ;;  %4184 = vperm.xlu0 %6590, %v6230_v51   ;;  %v6085_v51 = vld [vmem:[%s6972_s27 + $0x118] sm:$0xff]  ;;  %9750 = vst [vmem:[#allocation65_spill] sm:$0xff] %v7477_v22 }
 0x1aa   : >> { %3046 = vperm.xlu1 %6566, %v7292_v21   ;;  %v7467_v33 = vpop.permute.xlu1 %1901  ;;  %v6307_v21 = vld [vmem:[%s6972_s27 + $0x1f0] sm:$0xff] }
 0x1ab   : >> { %9747 = vst [vmem:[#allocation62_spill] sm:$0xff] %v7467_v33  ;;  %4365 = vperm.xlu0 %6590, %v6243_v15   ;;  %v7484_v15 = vld [vmem:[%s6972_s27 + $0x1d0] sm:$0xff] }
 0x1ae   : >> { %6567 = vset.pattern.permute.xlu1 %v9718_v13  ;;  %v7474_v36 = vpop.permute.xlu1 %2031 }
 0x1af   : >> { %9749 = vst [vmem:[#allocation64_spill] sm:$0xff] %v7474_v36  ;;  %3153 = vperm.xlu1 %6567, %v6099_v61   ;;  %4355 = vperm.xlu0 %6590, %v6241_v26   ;;  %v7489_v61 = vpop.permute.xlu0 %2351  ;;  %v7493_v26 = vld [vmem:[%s6972_s27 + $0x1c0] sm:$0xff] }
 0x1b0   : >> { %9753 = vst [vmem:[#allocation68_spill] sm:$0xff] %v7489_v61  ;;  %9754 = vst [vmem:[#allocation69_spill] sm:$0xff] %v7493_v26  ;;  %v6096_v36 = vld [vmem:[%s6987_s16 + $0x120] sm:$0xff]  ;;  %v6264_v61 = vld [vmem:[%s7010_s29 + $0x1b0] sm:$0xff] }
 0x1b2   : >> { %v7480_v25 = vpop.permute.xlu1 %2021 }
 0x1b3   : >> { %9751 = vst [vmem:[#allocation66_spill] sm:$0xff] %v7480_v25  ;;  %2967 = vperm.xlu1 %6567, %v6085_v51   ;;  %6593 = vset.pattern.permute.xlu0 %v9724_v27 }
 0x1b4   : >> { %4883 = vperm.xlu0 %6593, %v6307_v21  }
 0x1b6   : >> { %v7486_v34 = vpop.permute.xlu1 %2011 }
 0x1b7   : >> { %9752 = vst [vmem:[#allocation67_spill] sm:$0xff] %v7486_v34  ;;  %6568 = vset.pattern.permute.xlu1 %v9724_v27  ;;  %v7500_v34 = vpop.permute.xlu0 %2532 }
 0x1b8   : >> { %3038 = vperm.xlu1 %6568, %v6085_v51   ;;  %4867 = vperm.xlu0 %6593, %v7484_v15   ;;  %9756 = vst [vmem:[#allocation71_spill] sm:$0xff] %v7500_v34  ;;  %v6083_v51 = vld [vmem:[%s6972_s27 + $0x108] sm:$0xff] }
 0x1ba   : >> { %v7496_v25 = vpop.permute.xlu1 %2001 }
 0x1bb   : >> { %9755 = vst [vmem:[#allocation70_spill] sm:$0xff] %v7496_v25  ;;  %v6262_v25 = vld [vmem:[%s7010_s29 + $0x1a0] sm:$0xff]  ;;  %v7509_v33 = vpop.permute.xlu0 %2522 }
 0x1bc   : >> { %6569 = vset.pattern.permute.xlu1 %v9718_v13  ;;  %4859 = vperm.xlu0 %6593, %v7493_v26   ;;  %9758 = vst [vmem:[#allocation73_spill] sm:$0xff] %v7509_v33 }
 0x1bd   : >> { %3138 = vperm.xlu1 %6569, %v6096_v36   ;;  %v6260_v36 = vld [vmem:[%s7010_s29 + $0x190] sm:$0xff] }
 0x1be   : >> { %v7502_v22 = vpop.permute.xlu1 %2376 }
 0x1bf   : >> { %9757 = vst [vmem:[#allocation72_spill] sm:$0xff] %v7502_v22  ;;  %v7517_v22 = vpop.permute.xlu0 %3050 }
 0x1c0   : >> { %6600 = vset.pattern.permute.xlu0 %v9718_v13  ;;  %9761 = vst [vmem:[#allocation76_spill] sm:$0xff] %v7517_v22  ;;  %v6092_v22 = vld [vmem:[%s6987_s16 + $0x100] sm:$0xff] }
 0x1c1   : >> { %2952 = vperm.xlu1 %6569, %v7251_v48   ;;  %4470 = vperm.xlu0 %6600, %v6264_v61   ;;  %v6258_v48 = vld [vmem:[%s7010_s29 + $0x180] sm:$0xff]  ;;  %v6094_v61 = vld [vmem:[%s6987_s16 + $0x110] sm:$0xff] }
 0x1c3   : >> { %v7511_v58 = vpop.permute.xlu1 %2443 }
 0x1c4   : >> { %9759 = vst [vmem:[#allocation74_spill] sm:$0xff] %v7511_v58 }
 0x1c5   : >> { %2957 = vperm.xlu1 %6569, %v6083_v51   ;;  %4460 = vperm.xlu0 %6600, %v6262_v25  }
 0x1c8   : >> { %v7514_v34 = vpop.permute.xlu1 %2361 }
 0x1c9   : >> { %9760 = vst [vmem:[#allocation75_spill] sm:$0xff] %v7514_v34  ;;  %6571 = vset.pattern.permute.xlu1 %v9724_v27  ;;  %4450 = vperm.xlu0 %6600, %v6260_v36   ;;  %v7528_v34 = vpop.permute.xlu0 %3034 }
 0x1ca   : >> { %3030 = vperm.xlu1 %6571, %v6083_v51   ;;  %9763 = vst [vmem:[#allocation78_spill] sm:$0xff] %v7528_v34 }
 0x1cd   : >> { %v7521_v33 = vpop.f32.mrf.mxu0  ;;  %v7523_v58 = vpop.permute.xlu1 %2431  ;;  %4440 = vperm.xlu0 %6600, %v6258_v48   ;;  %v5860_v48 = vld [vmem:[%s7078_s25 + $0x4] sm:$0xf] }
 0x1ce   : >> { %9762 = vst [vmem:[#allocation77_spill] sm:$0xff] %v7523_v58  ;;  %6572 = vset.pattern.permute.xlu1 %v9718_v13  ;;  %v7544_v47 = vpop.permute.xlu0 %3026  ;;  %v1231_v24 = vrot.slane %v5860_v48, %v7084_v17  ;;  %v1165_v28 = vrot.slane %v5860_v48, %v7090_v19  ;;  %v6117_v17 = vld [vmem:[%s7010_s29 + $0x128] sm:$0xff] }
 0x1cf   : >> { %3128 = vperm.xlu1 %6572, %v6094_v61   ;;  %v7526_v25 = vpop.f32.mrf.mxu0  ;;  %9766 = vst [vmem:[#allocation81_spill] sm:$0xff] %v7544_v47 }
 0x1d1   : >> { %v7531_v36 = vpop.f32.mrf.mxu0  ;;  %v7533_v51 = vpop.permute.xlu1 %2435  ;;  %4815 = vperm.xlu0 %6600, %v6307_v21   ;;  %v1161_v21 = vrot.slane %v5860_v48, %v7087_v18 }
 0x1d2   : >> { %9764 = vst [vmem:[#allocation79_spill] sm:$0xff] %v7533_v51  ;;  %v1227_v51 = vrot.slane %v5860_v48, %v7081_v16  ;;  %v7569_v6 = vpop.permute.xlu0 %2637  ;;  %v7573_v48 = vrot.slane %v1231_v24, %v7081_v16 }
 0x1d3   : >> { %3118 = vperm.xlu1 %6572, %v6092_v22   ;;  %v7538_v58 = vpop.f32.mrf.mxu0  ;;  %v7565_v31 = vrot.slane %v1161_v21, %v7087_v18  ;;  %9769 = vst [vmem:[#allocation84_spill] sm:$0xff] %v7569_v6  ;;  %v6316_v6 = vld [vmem:[%s6987_s16 + $0x1e8] sm:$0xff] }
 0x1d4   : >> { %v1255_v24 = vmul.f32 %v7573_v48, %v7164_v54 }
 0x1d5   : >> { %v7542_v61 = vpop.f32.mrf.mxu0  ;;  %4810 = vperm.xlu0 %6600, %v7536_v60   ;;  %v1188_v21 = vmul.f32 %v7565_v31, %v7227_v41 }
 0x1d6   : >> { %v7547_v34 = vpop.permute.xlu1 %2542  ;;  %v7593_v60 = vpop.permute.xlu0 %2627 }
 0x1d7   : >> { %9767 = vst [vmem:[#allocation82_spill] sm:$0xff] %v7547_v34  ;;  %3123 = vperm.xlu1 %6572, %v6093_v11   ;;  %v7552_v22 = vpop.f32.mrf.mxu0  ;;  %v7562_v34 = vrot.slane %v1227_v51, %v7081_v16  ;;  %v7578_v51 = vrot.slane %v1165_v28, %v7087_v18  ;;  %v6115_v18 = vld [vmem:[%s7010_s29 + $0x118] sm:$0xff]  ;;  %9771 = vst [vmem:[#allocation86_spill] sm:$0xff] %v7593_v60  ;;  %v7635_v60 = vmul.f32 %v7565_v31, %v7237_v56 }
 0x1d9   : >> { %v7557_v47 = vpop.f32.mrf.mxu0  ;;  %4981 = vperm.xlu0 %6600, %v6317_v38   ;;  %v1254_v38 = vmul.f32 %v7562_v34, %v7164_v54  ;;  %v7649_v1 = vmul.f32 %v7578_v51, %v7257_v52 }
 0x1da   : >> { %v7559_v39 = vpop.permute.xlu1 %2356 }
 0x1db   : >> { %9768 = vst [vmem:[#allocation83_spill] sm:$0xff] %v7559_v39  ;;  %3253 = vperm.xlu1 %6572, %v6119_v32   ;;  %v7567_v11 = vpop.f32.mrf.mxu0  ;;  %v1189_v39 = vmul.f32 %v7578_v51, %v7227_v41  ;;  %v1270_v16 = vadd.f32 %v1254_v38, %v1188_v21  ;;  %v1246_v38 = vmul.f32 %v7562_v34, %v7167_v2 }
 0x1dd   : >> { %v7582_v32 = vpop.f32.mrf.mxu0  ;;  %4795 = vperm.xlu0 %6600, %v7484_v15   ;;  %v6314_v15 = vld [vmem:[%s6987_s16 + $0x1d8] sm:$0xff]  ;;  %v1271_v57 = vadd.f32 %v1255_v24, %v1189_v39  ;;  %v1180_v39 = vmul.f32 %v7565_v31, %v7257_v52  ;;  %v7618_v24 = vmul.f32 %v7562_v34, %v7172_v12  ;;  %v1184_v52 = vmul.f32 %v7565_v31, %v7265_v63 }
 0x1df   : >> { %3243 = vperm.xlu1 %6572, %v6117_v17   ;;  %v900_v19 = vpop.f32.mrf.mxu0  ;;  %v7590_v28 = vpop.permute.xlu1 %2427  ;;  %v7600_v17 = vadd.f32 %v7248_v49, %v1270_v16  ;;  %9775 = vst [vmem:[#allocation90_spill] sm:$0xff] %v7618_v24 }
 0x1e0   : >> { %9770 = vst [vmem:[#allocation85_spill] sm:$0xff] %v7590_v28  ;;  %v6337_v28 = vld [vmem:[%s7010_s29 + $0x1f0] sm:$0xff]  ;;  %v7614_v16 = vpop.permute.xlu0 %2617 }
 0x1e1   : >> { %v902_v26 = vpop.f32.mrf.mxu0  ;;  %4976 = vperm.xlu0 %6600, %v6316_v6   ;;  %9773 = vst [vmem:[#allocation88_spill] sm:$0xff] %v7600_v17  ;;  %v7607_v6 = vmul.f32 %v7573_v48, %v7167_v2  ;;  %9774 = vst [vmem:[#allocation89_spill] sm:$0xff] %v7614_v16  ;;  %v1256_v2 = vmul.f32 %v7562_v34, %v7259_v53  ;;  %v1190_v16 = vmul.f32 %v7565_v31, %v7245_v44 }
 0x1e3   : >> { %3233 = vperm.xlu1 %6572, %v6115_v18   ;;  %v904_v7 = vpop.f32.mrf.mxu0  ;;  %v7610_v18 = vadd.f32 %v7248_v49, %v1271_v57  ;;  %v1257_v49 = vmul.f32 %v7573_v48, %v7259_v53  ;;  %v6162_v57 = vld [vmem:[%s6972_s27 + $0x178] sm:$0xff]  ;;  %v1191_v53 = vmul.f32 %v7578_v51, %v7245_v44  ;;  %v7654_v44 = vadd.f32 %v1256_v2, %v1190_v16 }
 0x1e4   : >> { %v7597_v54 = vpop.permute.xlu1 %2527  ;;  %v905_v5 = vadd.f32 %v904_v7, %v7225_v40  ;;  %v895_v16 = vadd.f32 %v7567_v11, %v7230_v9 }
 0x1e5   : >> { %9772 = vst [vmem:[#allocation87_spill] sm:$0xff] %v7597_v54  ;;  %v908_v41 = vpop.f32.mrf.mxu0  ;;  %4966 = vperm.xlu0 %6600, %v6314_v15   ;;  %v7622_v15 = vmul.f32 %v7573_v48, %v7172_v12  ;;  %v1187_v12 = vmul.f32 %v7578_v51, %v7237_v56  ;;  %v7651_v56 = vadd.f32 %v1246_v38, %v1180_v39  ;;  %v7665_v39 = vpop.permute.xlu0 %2607 }
 0x1e6   : >> { %v1273_v7 = vadd.f32 %v1257_v49, %v1191_v53  ;;  %v1253_v38 = vmul.f32 %v7573_v48, %v7283_v37  ;;  %9778 = vst [vmem:[#allocation93_spill] sm:$0xff] %v7665_v39  ;;  %v1185_v49 = vmul.f32 %v7578_v51, %v7265_v63  ;;  %v1250_v53 = vmul.f32 %v7562_v34, %v7275_v20 }
 0x1e7   : >> { %3223 = vperm.xlu1 %6572, %v6113_v62   ;;  %v910_v21 = vpop.f32.mrf.mxu0  ;;  %9776 = vst [vmem:[#allocation91_spill] sm:$0xff] %v7622_v15  ;;  %v1352_v15 = vmax.f32 %v7610_v18, 0.0  ;;  %v9786_v18 = vld [vmem:[#allocation34_spill] sm:$0xff] }
 0x1e8   : >> { %v7629_v62 = vpop.permute.xlu1 %2341 }
 0x1e9   : >> { %9777 = vst [vmem:[#allocation92_spill] sm:$0xff] %v7629_v62  ;;  %v912_v8 = vpop.f32.mrf.mxu0  ;;  %5081 = vperm.xlu0 %6600, %v6337_v28   ;;  %v911_v62 = vadd.f32 %v910_v21, %v7189_v35  ;;  %v909_v28 = vadd.f32 %v908_v41, %v7189_v35  ;;  %v901_v21 = vadd.f32 %v900_v19, %v7198_v46  ;;  %v928_v19 = vmax.f32 %v905_v5, 0.0 }
 0x1ea   : >> { %v913_v24 = vadd.f32 %v912_v8, %v7220_v10  ;;  %v903_v35 = vadd.f32 %v902_v26, %v7225_v40  ;;  %v899_v40 = vadd.f32 %v7582_v32, %v7198_v46  ;;  %v891_v5 = vadd.f32 %v7552_v22, %v7211_v4 }
 0x1eb   : >> { %3598 = vperm.xlu1 %6572, %v6162_v57   ;;  %v914_v54 = vpop.f32.mrf.mxu0  ;;  %v930_v2 = vmax.f32 %v911_v62, 0.0  ;;  %v929_v26 = vmax.f32 %v909_v28, 0.0  ;;  %v926_v11 = vmax.f32 %v901_v21, 0.0  ;;  %v893_v46 = vadd.f32 %v7557_v47, %v7230_v9 }
 0x1ec   : >> { %v915_v8 = vadd.f32 %v914_v54, %v7220_v10  ;;  %v7658_v17 = vpop.permute.xlu1 %2346  ;;  %v931_v41 = vmax.f32 %v913_v24, 0.0  ;;  %v6333_v54 = vld [vmem:[%s7010_s29 + $0x1d0] sm:$0xff]  ;;  %v1252_v24 = vmul.f32 %v7562_v34, %v7283_v37  ;;  %v927_v32 = vmax.f32 %v903_v35, 0.0  ;;  %v7694_v35 = vpop.permute.xlu0 %2982 }
 0x1ed   : >> { %5071 = vperm.xlu0 %6600, %v6335_v42   ;;  %v1251_v42 = vmul.f32 %v7573_v48, %v7275_v20  ;;  %v1269_v20 = vadd.f32 %v1253_v38, %v1187_v12  ;;  %v885_v22 = vadd.f32 %v7538_v58, %v7239_v45  ;;  %v945_v21 = vpack.c.bf16 %v928_v19, %v926_v11 }
 0x1ee   : >> { %v932_v10 = vmax.f32 %v915_v8, 0.0  ;;  %v946_v62 = vpack.c.bf16 %v931_v41, %v929_v26  ;;  %v924_v8 = vmax.f32 %v895_v16, 0.0  ;;  %v1338_v37 = vadd.f32 %v7288_v14, %v1273_v7  ;;  %9780 = vst [vmem:[#allocation95_spill] sm:$0xff] %v7694_v35 }
 0x1ef   : >> { %6574 = vset.pattern.permute.xlu1 %v9724_v27  ;;  %v889_v9 = vadd.f32 %v7542_v61, %v7211_v4  ;;  %v925_v47 = vmax.f32 %v899_v40, 0.0  ;;  %v1183_v58 = vmul.f32 %v7578_v51, %v7294_v23  ;;  %v1249_v12 = vmul.f32 %v7573_v48, %v7301_v29  ;;  %v950_v40 = vld [vmem:[%s7700_s14] sm:$0xff] }
 0x1f0   : >> { %3665 = vperm.xlu1 %6574, %v6162_v57   ;;  %v947_v63 = vpack.c.bf16 %v932_v10, %v930_v2  ;;  %v6159_v57 = vld [vmem:[%s6972_s27 + $0x160] sm:$0xff]  ;;  %v1266_v10 = vadd.f32 %v1250_v53, %v1184_v52  ;;  %v881_v7 = vadd.f32 %v7526_v25, %v7216_v30  ;;  %v922_v4 = vmax.f32 %v891_v5, 0.0 }
 0x1f1   : >> { %v7685_v28 = vpop.permute.xlu1 %2419  ;;  %5061 = vperm.xlu0 %6600, %v6333_v54   ;;  %v6331_v2 = vld [vmem:[%s7010_s29 + $0x1c0] sm:$0xff]  ;;  %v1267_v61 = vadd.f32 %v1251_v42, %v1185_v49  ;;  %v883_v52 = vadd.f32 %v7531_v36, %v7239_v45  ;;  %v923_v38 = vmax.f32 %v893_v46, 0.0  ;;  %v944_v41 = vpack.c.bf16 %v927_v32, %v925_v47  ;;  %v9785_v47 = vld [vmem:[#allocation91_spill] sm:$0xff] }
 0x1f2   : >> { %9779 = vst [vmem:[#allocation94_spill] sm:$0xff] %v7685_v28  ;;  %998 = vmatprep.subr.bf16.mxu1 %v947_v63  ;;  %v1268_v16 = vadd.f32 %v1252_v24, %v7635_v60  ;;  %v7713_v19 = vadd.f32 %v7270_v59, %v1269_v20  ;;  %v920_v54 = vmax.f32 %v885_v22, 0.0  ;;  %v943_v53 = vpack.c.bf16 %v924_v8, %v922_v4  ;;  %v9899_v28 = vld [vmem:[#allocation39_spill] sm:$0xff] }
 0x1f3   : >> { %999 = vmatpush1.bf16.msra.mxu1 %v946_v62  ;;  %v1337_v49 = vadd.f32 %v7288_v14, %v7654_v44  ;;  %v1354_v26 = vmax.f32 %v1338_v37, 0.0  ;;  %v879_v45 = vadd.f32 %v7521_v33, %v7216_v30  ;;  %v921_v36 = vmax.f32 %v889_v9, 0.0  ;;  %v7730_v30 = vpop.permute.xlu0 %2977 }
 0x1f4   : >> { %6575 = vset.pattern.permute.xlu1 %v9718_v13  ;;  %1000 = vmatprep.subr.bf16.mxu1 %v945_v21  ;;  %v1182_v60 = vmul.f32 %v7565_v31, %v7294_v23  ;;  %v1248_v42 = vmul.f32 %v7562_v34, %v7301_v29  ;;  %v1265_v5 = vadd.f32 %v1249_v12, %v1183_v58  ;;  %v918_v11 = vmax.f32 %v881_v7, 0.0 }
 0x1f5   : >> { %3583 = vperm.xlu1 %6575, %v6159_v57   ;;  %5051 = vperm.xlu0 %6600, %v6331_v2   ;;  %v1332_v63 = vadd.f32 %v7307_v3, %v1267_v61  ;;  %v1263_v14 = vadd.f32 %v7607_v6, %v7649_v1  ;;  %v919_v44 = vmax.f32 %v883_v52, 0.0  ;;  %v942_v24 = vpack.c.bf16 %v923_v38, %v921_v36  ;;  %v952_v6 = vld [vmem:[%s7700_s14 + $0x10] sm:$0xff]  ;;  %v6172_v38 = vld [vmem:[%s6987_s16 + $0x178] sm:$0xff] }
 0x1f6   : >> { %v7715_v25 = vpop.permute.xlu1 %2517  ;;  %9782 = vst [vmem:[#allocation97_spill] sm:$0xff] %v7730_v30  ;;  %v1177_v23 = vmul.f32 %v7578_v51, %v7313_v43  ;;  %v1179_v29 = vmul.f32 %v7578_v51, %v7316_v50  ;;  %v1245_v33 = vmul.f32 %v7573_v48, %v7323_v55  ;;  %v941_v46 = vpack.c.bf16 %v920_v54, %v918_v11  ;;  %v9896_v30 = vld [vmem:[#allocation19_spill] sm:$0xff] }
 0x1f7   : >> { %9781 = vst [vmem:[#allocation96_spill] sm:$0xff] %v7715_v25  ;;  %1001 = vmatpush1.bf16.msra.mxu1 %v944_v41  ;;  %v1353_v32 = vmax.f32 %v1337_v49, 0.0  ;;  %v1333_v62 = vadd.f32 %v7270_v59, %v1268_v16  ;;  %v1350_v20 = vmax.f32 %v7713_v19, 0.0  ;;  %v917_v22 = vmax.f32 %v879_v45, 0.0  ;;  %v9791_v19 = vld [vmem:[#allocation90_spill] sm:$0xff]  ;;  %v9792_v49 = vld [vmem:[#allocation25_spill] sm:$0xff] }
 0x1f8   : >> { %1002 = vmatprep.subr.bf16.mxu1 %v943_v53  ;;  %v1331_v48 = vadd.f32 %v7307_v3, %v1266_v10  ;;  %v1264_v51 = vadd.f32 %v1248_v42, %v1182_v60  ;;  %v1330_v8 = vadd.f32 %v7279_v0, %v1265_v5  ;;  %v1373_v59 = vpack.c.bf16 %v1354_v26, %v1352_v15  ;;  %v9784_v10 = vld [vmem:[#allocation23_spill] sm:$0xff]  ;;  %v6607_v15 = vld [vmem:[%s7408_s2] sm:$0xff]   ;;  %v9793_v45 = vld [vmem:[#allocation26_spill] sm:$0xff] }
 0x1f9   : >> { %6576 = vset.pattern.permute.xlu1 %v9724_v27  ;;  %956 = vperm.xlu0 %6600, %v950_v40   ;;  %v1176_v21 = vmul.f32 %v7565_v31, %v7313_v43  ;;  %v1244_v2 = vmul.f32 %v7562_v34, %v7323_v55  ;;  %v940_v37 = vpack.c.bf16 %v919_v44, %v917_v22  ;;  %v1348_v3 = vmax.f32 %v1332_v63, 0.0  ;;  %v1052_v43 = vld [vmem:[%s7747_s3] sm:$0xff]  ;;  %v1054_v42 = vld [vmem:[%s7747_s3 + $0x10] sm:$0xff]  ;;  %v6158_v5 = vld [vmem:[%s6972_s27 + $0x158] sm:$0xff] }
 0x1fa   : >> { %3653 = vperm.xlu1 %6576, %v6159_v57   ;;  %v7738_v1 = vpop.permute.xlu1 %2507  ;;  %v1178_v57 = vmul.f32 %v7565_v31, %v7316_v50  ;;  %v1328_v9 = vadd.f32 %v9784_v10, %v1263_v14  ;;  %v1259_v58 = vadd.f32 %v9785_v47, %v1177_v23  ;;  %v1261_v12 = vadd.f32 %v1245_v33, %v1179_v29  ;;  %v7766_v50 = vpop.permute.xlu0 %3148  ;;  %v9789_v31 = vld [vmem:[#allocation88_spill] sm:$0xff]  ;;  %v6611_v47 = vld [vmem:[%s7031_s26 + $0x30] sm:$0xff]  }
 0x1fb   : >> { %9783 = vst [vmem:[#allocation98_spill] sm:$0xff] %v7738_v1  ;;  %1003 = vmatpush1.bf16.msra.mxu1 %v942_v24  ;;  %9788 = vst [vmem:[#allocation91_spill] sm:$0xff] %v7766_v50  ;;  %v9790_v34 = vmax.f32 %v9789_v31, 0.0  ;;  %v1349_v4 = vmax.f32 %v1333_v62, 0.0  ;;  %v1329_v61 = vadd.f32 %v7279_v0, %v1264_v51  ;;  %v1346_v52 = vmax.f32 %v1330_v8, 0.0  ;;  %v6169_v8 = vld [vmem:[%s6987_s16 + $0x160] sm:$0xff] }
 0x1fc   : >> { %1004 = vmatprep.subr.bf16.mxu1 %v941_v46  ;;  %v1347_v41 = vmax.f32 %v1331_v48, 0.0  ;;  %v1327_v16 = vadd.f32 %v9784_v10, %v7651_v56  ;;  %v1258_v54 = vadd.f32 %v9791_v19, %v1176_v21  ;;  %v1260_v53 = vadd.f32 %v1244_v2, %v1178_v57  ;;  %v6608_v46 = vld [vmem:[%s7408_s2 + $0x8] sm:$0xff]   ;;  %v6235_v19 = vld [vmem:[%s6972_s27 + $0x1b8] sm:$0xff] }
 0x1fd   : >> { %966 = vperm.xlu0 %6600, %v952_v6   ;;  %v1372_v55 = vpack.c.bf16 %v1353_v32, %v9790_v34  ;;  %v1344_v40 = vmax.f32 %v1328_v9, 0.0  ;;  %v1324_v26 = vadd.f32 %v9792_v49, %v1259_v58  ;;  %v1326_v36 = vadd.f32 %v9793_v45, %v1261_v12  ;;  %v9800_v2 = vld [vmem:[#allocation22_spill] sm:$0xff]  ;;  %v9898_v25 = vld [vmem:[#allocation20_spill] sm:$0xff] }
 0x1fe   : >> { %3657 = vperm.xlu1 %6576, %v9786_v18   ;;  %v7763_v7 = vpop.permute.xlu1 %2512  ;;  %v1371_v0 = vpack.c.bf16 %v1350_v20, %v1348_v3  ;;  %v1345_v56 = vmax.f32 %v1329_v61, 0.0  ;;  %v1370_v11 = vpack.c.bf16 %v1349_v4, %v1347_v41  ;;  %v1343_v63 = vmax.f32 %v1327_v16, 0.0  ;;  %v7786_v24 = vpop.permute.xlu0 %2962  ;;  %v6610_v3 = vld [vmem:[%s7031_s26 + $0x28] sm:$0xff]   ;;  %v6167_v58 = vld [vmem:[%s6987_s16 + $0x150] sm:$0xff]  ;;  %v6165_v18 = vld [vmem:[%s6987_s16 + $0x140] sm:$0xff] }
 0x1ff   : >> { %9787 = vst [vmem:[#allocation23_spill] sm:$0xff] %v7763_v7  ;;  %1005 = vmatpush1.bf16.msra.mxu1 %v940_v37  ;;  %v1323_v14 = vadd.f32 %v9792_v49, %v1258_v54  ;;  %v1325_v44 = vadd.f32 %v9793_v45, %v1260_v53  ;;  %9795 = vst [vmem:[#allocation88_spill] sm:$0xff] %v7786_v24  ;;  %v1340_v23 = vmax.f32 %v1324_v26, 0.0  ;;  %v1342_v29 = vmax.f32 %v1326_v36, 0.0  ;;  %v6156_v37 = vld [vmem:[%s6972_s27 + $0x148] sm:$0xff]  ;;  %v6232_v49 = vld [vmem:[%s6972_s27 + $0x1a0] sm:$0xff] }
 0x200   : >> { %1463 = vmatprep.subr.bf16.mxu1 %v1373_v59  ;;  %v1369_v33 = vpack.c.bf16 %v1346_v52, %v1344_v40  ;;  %v1368_v32 = vpack.c.bf16 %v1345_v56, %v1343_v63  ;;  %v6609_v59 = vld [vmem:[%s7031_s26 + $0x20] sm:$0xff]   ;;  %v6166_v31 = vld [vmem:[%s6987_s16 + $0x148] sm:$0xff]  ;;  %v1055_v7 = vld [vmem:[%s7747_s3 + $0x18] sm:$0xff] }
 0x201   : >> { %1058 = vperm.xlu0 %6600, %v1052_v43   ;;  %v1339_v62 = vmax.f32 %v1323_v14, 0.0  ;;  %v1341_v20 = vmax.f32 %v1325_v44, 0.0  ;;  %v1367_v22 = vpack.c.bf16 %v1342_v29, %v1340_v23  ;;  %v6612_v43 = vld [vmem:[%s7031_s26 + $0x38] sm:$0xff]   ;;  %v6190_v61 = vld [vmem:[%s7010_s29 + $0x168] sm:$0xff] }
 0x202   : >> { %6577 = vset.pattern.permute.xlu1 %v9718_v13  ;;  %5856 = vmatmul.mubr.msk.bf16.vlgmr.msra.gmra.mxu1 %vm831_vm0, %v6607_v15  ;;  %v7779_v60 = vpop.permute.xlu1 %2642  ;;  %v6186_v41 = vld [vmem:[%s7010_s29 + $0x148] sm:$0xff]  ;;  %v7853_v45 = vpop.permute.xlu0 %3143  ;;  %v6231_v14 = vld [vmem:[%s6972_s27 + $0x198] sm:$0xff] }
 0x203   : >> { %9794 = vst [vmem:[#allocation34_spill] sm:$0xff] %v7779_v60  ;;  %3764 = vperm.xlu1 %6577, %v6172_v38   ;;  %1464 = vmatpush1.bf16.msra.mxu1 %v1372_v55  ;;  %v1366_v51 = vpack.c.bf16 %v1341_v20, %v1339_v62  ;;  %v6192_v55 = vld [vmem:[%s7010_s29 + $0x178] sm:$0xff]  ;;  %9813 = vst [vmem:[#allocation111_spill] sm:$0xff] %v7853_v45 }
 0x204   : >> { %1465 = vmatprep.subr.bf16.mxu1 %v1371_v0  ;;  %1032 = vmatprep.mubr.bf16.mxu1 %v9718_v13  ;;  %v6188_v38 = vld [vmem:[%s7010_s29 + $0x158] sm:$0xff] }
 0x205   : >> { %1068 = vperm.xlu0 %6600, %v1054_v42   ;;  %v9816_v42 = vld [vmem:[#allocation56_spill] sm:$0xff] }
 0x206   : >> { %v7789_v6 = vpop.permute.xlu1 %2632  ;;  %v7858_v0 = vpop.permute.xlu0 %3133 }
 0x207   : >> { %9796 = vst [vmem:[#allocation90_spill] sm:$0xff] %v7789_v6  ;;  %3578 = vperm.xlu1 %6577, %v6158_v5   ;;  %1466 = vmatpush1.bf16.msra.mxu1 %v1370_v11  ;;  %9815 = vst [vmem:[#allocation113_spill] sm:$0xff] %v7858_v0 }
 0x208   : >> { %1467 = vmatprep.subr.bf16.mxu1 %v1369_v33  ;;  %v6242_v33 = vld [vmem:[%s6987_s16 + $0x1a0] sm:$0xff] }
 0x20a   : >> { %5857 = vmatmul.mubr.msk.bf16.gmra.mxu1 %vm831_vm0, %v6608_v46  ;;  %v7792_v48 = vpop.permute.xlu1 %2622  ;;  %v7867_v63 = vpop.permute.xlu0 %3661 }
 0x20b   : >> { %9797 = vst [vmem:[#allocation25_spill] sm:$0xff] %v7792_v48  ;;  %6578 = vset.pattern.permute.xlu1 %v9724_v27  ;;  %1468 = vmatpush1.bf16.msra.mxu1 %v1368_v32  ;;  %9819 = vst [vmem:[#allocation115_spill] sm:$0xff] %v7867_v63 }
 0x20c   : >> { %3649 = vperm.xlu1 %6578, %v6158_v5   ;;  %1469 = vmatprep.subr.bf16.mxu1 %v1367_v22  ;;  %v6245_v5 = vld [vmem:[%s6987_s16 + $0x1b8] sm:$0xff]  ;;  %v9827_v22 = vld [vmem:[#allocation46_spill] sm:$0xff] }
 0x20d   : >> { %1487 = vmatprep.mubr.bf16.mxu1 %v9718_v13 }
 0x20e   : >> { %v7798_v21 = vpop.permute.xlu1 %2612  ;;  %v7872_v23 = vpop.permute.xlu0 %3645 }
 0x20f   : >> { %9798 = vst [vmem:[#allocation26_spill] sm:$0xff] %v7798_v21  ;;  %1470 = vmatpush1.bf16.msra.mxu1 %v1366_v51  ;;  %9821 = vst [vmem:[#allocation117_spill] sm:$0xff] %v7872_v23  ;;  %v6229_v51 = vld [vmem:[%s6972_s27 + $0x188] sm:$0xff] }
 0x210   : >> { %6579 = vset.pattern.permute.xlu1 %v9718_v13  ;;  %v6332_v23 = vld [vmem:[%s7010_s29 + $0x1c8] sm:$0xff] }
 0x211   : >> { %3749 = vperm.xlu1 %6579, %v6169_v8  }
 0x212   : >> { %5905 = vmatmul.mubr.msk.bf16.vlgmr.msra.gmra.mxu1 %vm831_vm0, %v6609_v59  ;;  %v7802_v57 = vpop.permute.xlu1 %2987  ;;  %v7880_v32 = vpop.permute.xlu0 %3637 }
 0x213   : >> { %9799 = vst [vmem:[#allocation99_spill] sm:$0xff] %v7802_v57  ;;  %1497 = vmatprep.mubr.bf16.mxu1 %v9718_v13  ;;  %9824 = vst [vmem:[#allocation120_spill] sm:$0xff] %v7880_v32  ;;  %v6334_v32 = vld [vmem:[%s7010_s29 + $0x1d8] sm:$0xff] }
 0x215   : >> { %3563 = vperm.xlu1 %6579, %v9800_v2  }
 0x216   : >> { %v7885_v20 = vpop.permute.xlu0 %3248 }
 0x217   : >> { %v7808_v10 = vpop.permute.xlu1 %3054  ;;  %9826 = vst [vmem:[#allocation122_spill] sm:$0xff] %v7885_v20 }
 0x218   : >> { %9801 = vst [vmem:[#allocation22_spill] sm:$0xff] %v7808_v10  ;;  %v9897_v10 = vld [vmem:[#allocation28_spill] sm:$0xff] }
 0x219   : >> { %3568 = vperm.xlu1 %6579, %v6156_v37  }
 0x21a   : >> { %5906 = vmatmul.mubr.msk.bf16.gmra.mxu1 %vm831_vm0, %v6610_v3  ;;  %v7891_v59 = vpop.permute.xlu0 %3238 }
 0x21b   : >> { %1507 = vmatprep.mubr.bf16.mxu1 %v9718_v13  ;;  %9829 = vst [vmem:[#allocation123_spill] sm:$0xff] %v7891_v59  ;;  %v5933_v59 = vld [vmem:[%s7078_s25 + $0x8] sm:$0xf] }
 0x21c   : >> { %v7812_v9 = vpop.permute.xlu1 %2972 }
 0x21d   : >> { %9802 = vst [vmem:[#allocation100_spill] sm:$0xff] %v7812_v9  ;;  %6581 = vset.pattern.permute.xlu1 %v9724_v27 }
 0x21e   : >> { %3641 = vperm.xlu1 %6581, %v6156_v37   ;;  %v6240_v37 = vld [vmem:[%s6987_s16 + $0x190] sm:$0xff]  ;;  %v7897_v3 = vpop.permute.xlu0 %3228 }
 0x21f   : >> { %9831 = vst [vmem:[#allocation125_spill] sm:$0xff] %v7897_v3 }
 0x221   : >> { %v7817_v12 = vpop.permute.xlu1 %3042 }
 0x222   : >> { %9803 = vst [vmem:[#allocation101_spill] sm:$0xff] %v7817_v12  ;;  %6582 = vset.pattern.permute.xlu1 %v9718_v13  ;;  %5907 = vmatmul.mubr.msk.bf16.gmra.mxu1 %vm831_vm0, %v6611_v47  ;;  %v9894_v12 = vld [vmem:[#allocation29_spill] sm:$0xff] }
 0x223   : >> { %3739 = vperm.xlu1 %6582, %v6167_v58   ;;  %1517 = vmatprep.mubr.bf16.mxu1 %v9718_v13  ;;  %v6238_v58 = vld [vmem:[%s6987_s16 + $0x180] sm:$0xff] }
 0x225   : >> { %v7823_v15 = vpop.permute.xlu1 %3046 }
 0x226   : >> { %9804 = vst [vmem:[#allocation102_spill] sm:$0xff] %v7823_v15 }
 0x227   : >> { %3729 = vperm.xlu1 %6582, %v6165_v18  }
 0x22a   : >> { %5908 = vmatmul.mubr.msk.bf16.gmra.mxu1 %vm831_vm0, %v6612_v43  ;;  %v7828_v34 = vpop.permute.xlu1 %3153  ;;  %v7905_v43 = vpop.permute.xlu0 %3218 }
 0x22b   : >> { %9805 = vst [vmem:[#allocation103_spill] sm:$0xff] %v7828_v34  ;;  %3734 = vperm.xlu1 %6582, %v6166_v31   ;;  %2244 = vmatprep.mubr.bf16.mxu1 %v9718_v13  ;;  %9834 = vst [vmem:[#allocation128_spill] sm:$0xff] %v7905_v43  ;;  %v6239_v31 = vld [vmem:[%s6987_s16 + $0x188] sm:$0xff]  ;;  %v9890_v34 = vld [vmem:[#allocation36_spill] sm:$0xff] }
 0x22e   : >> { %v7832_v4 = vpop.permute.xlu1 %2967 }
 0x22f   : >> { %9806 = vst [vmem:[#allocation104_spill] sm:$0xff] %v7832_v4  ;;  %3864 = vperm.xlu1 %6582, %v6192_v55  }
 0x233   : >> { %3854 = vperm.xlu1 %6582, %v6190_v61   ;;  %v7835_v52 = vpop.permute.xlu1 %3038  ;;  %v6265_v61 = vld [vmem:[%s7010_s29 + $0x1b8] sm:$0xff] }
 0x234   : >> { %9807 = vst [vmem:[#allocation105_spill] sm:$0xff] %v7835_v52  ;;  %v9886_v52 = vld [vmem:[#allocation17_spill] sm:$0xff] }
 0x237   : >> { %3844 = vperm.xlu1 %6582, %v6188_v38   ;;  %v7911_v38 = vpop.permute.xlu0 %3593 }
 0x238   : >> { %v7839_v16 = vpop.permute.xlu1 %3138  ;;  %9836 = vst [vmem:[#allocation130_spill] sm:$0xff] %v7911_v38 }
 0x239   : >> { %9808 = vst [vmem:[#allocation106_spill] sm:$0xff] %v7839_v16 }
 0x23b   : >> { %3834 = vperm.xlu1 %6582, %v6186_v41  }
 0x23c   : >> { %v7842_v54 = vpop.permute.xlu1 %2952 }
 0x23d   : >> { %9809 = vst [vmem:[#allocation107_spill] sm:$0xff] %v7842_v54  ;;  %v953_v54 = vld [vmem:[%s7700_s14 + $0x18] sm:$0xff] }
 0x23f   : >> { %4209 = vperm.xlu1 %6582, %v6235_v19  }
 0x240   : >> { %v7844_v53 = vpop.permute.xlu1 %2957 }
 0x241   : >> { %9810 = vst [vmem:[#allocation108_spill] sm:$0xff] %v7844_v53 }
 0x243   : >> { %6584 = vset.pattern.permute.xlu1 %v9724_v27 }
 0x244   : >> { %4276 = vperm.xlu1 %6584, %v6235_v19   ;;  %v6263_v19 = vld [vmem:[%s7010_s29 + $0x1a8] sm:$0xff] }
 0x245   : >> { %v7847_v40 = vpop.permute.xlu1 %3030 }
 0x246   : >> { %9811 = vst [vmem:[#allocation109_spill] sm:$0xff] %v7847_v40 }
 0x248   : >> { %6585 = vset.pattern.permute.xlu1 %v9718_v13 }
 0x249   : >> { %4194 = vperm.xlu1 %6585, %v6232_v49  }
 0x24a   : >> { %v7851_v26 = vpop.permute.xlu1 %3128 }
 0x24b   : >> { %9812 = vst [vmem:[#allocation110_spill] sm:$0xff] %v7851_v26 }
 0x24d   : >> { %6586 = vset.pattern.permute.xlu1 %v9724_v27 }
 0x24e   : >> { %4264 = vperm.xlu1 %6586, %v6232_v49   ;;  %v7856_v36 = vpop.permute.xlu1 %3118  ;;  %v7916_v49 = vpop.permute.xlu0 %3588 }
 0x24f   : >> { %9814 = vst [vmem:[#allocation112_spill] sm:$0xff] %v7856_v36  ;;  %9838 = vst [vmem:[#allocation132_spill] sm:$0xff] %v7916_v49  ;;  %v9877_v49 = vld [vmem:[#allocation14_spill] sm:$0xff] }
 0x252   : >> { %4268 = vperm.xlu1 %6586, %v9816_v42   ;;  %v7861_v56 = vpop.permute.xlu1 %3123 }
 0x253   : >> { %9817 = vst [vmem:[#allocation56_spill] sm:$0xff] %v7861_v56  ;;  %v9882_v56 = vld [vmem:[#allocation27_spill] sm:$0xff] }
 0x256   : >> { %6587 = vset.pattern.permute.xlu1 %v9718_v13  ;;  %v7865_v11 = vpop.permute.xlu1 %3253 }
 0x257   : >> { %9818 = vst [vmem:[#allocation114_spill] sm:$0xff] %v7865_v11  ;;  %4375 = vperm.xlu1 %6587, %v6245_v5   ;;  %v6261_v5 = vld [vmem:[%s7010_s29 + $0x198] sm:$0xff] }
 0x25a   : >> { %v7870_v44 = vpop.permute.xlu1 %3243 }
 0x25b   : >> { %9820 = vst [vmem:[#allocation116_spill] sm:$0xff] %v7870_v44  ;;  %4189 = vperm.xlu1 %6587, %v6231_v14   ;;  %v9876_v44 = vld [vmem:[#allocation13_spill] sm:$0xff] }
 0x25e   : >> { %v7874_v29 = vpop.permute.xlu1 %3233 }
 0x25f   : >> { %9822 = vst [vmem:[#allocation118_spill] sm:$0xff] %v7874_v29  ;;  %6588 = vset.pattern.permute.xlu1 %v9724_v27 }
 0x260   : >> { %4260 = vperm.xlu1 %6588, %v6231_v14   ;;  %v6259_v14 = vld [vmem:[%s7010_s29 + $0x188] sm:$0xff] }
 0x262   : >> { %v7878_v46 = vpop.permute.xlu1 %3223 }
 0x263   : >> { %9823 = vst [vmem:[#allocation119_spill] sm:$0xff] %v7878_v46 }
 0x264   : >> { %6589 = vset.pattern.permute.xlu1 %v9718_v13 }
 0x265   : >> { %4360 = vperm.xlu1 %6589, %v6242_v33  }
 0x266   : >> { %v7883_v62 = vpop.permute.xlu1 %3598 }
 0x267   : >> { %9825 = vst [vmem:[#allocation121_spill] sm:$0xff] %v7883_v62 }
 0x269   : >> { %4174 = vperm.xlu1 %6589, %v9827_v22   ;;  %v7924_v22 = vpop.permute.xlu0 %3759 }
 0x26a   : >> { %9841 = vst [vmem:[#allocation135_spill] sm:$0xff] %v7924_v22 }
 0x26b   : >> { %v7889_v8 = vpop.permute.xlu1 %3665 }
 0x26c   : >> { %9828 = vst [vmem:[#allocation46_spill] sm:$0xff] %v7889_v8  ;;  %v1772_v8 = vrot.slane %v5933_v59, %v9877_v49 }
 0x26d   : >> { %4179 = vperm.xlu1 %6589, %v6229_v51  }
 0x270   : >> { %v7893_v2 = vpop.permute.xlu1 %3583 }
 0x271   : >> { %9830 = vst [vmem:[#allocation124_spill] sm:$0xff] %v7893_v2  ;;  %6591 = vset.pattern.permute.xlu1 %v9724_v27 }
 0x272   : >> { %4252 = vperm.xlu1 %6591, %v6229_v51   ;;  %v6308_v51 = vld [vmem:[%s6972_s27 + $0x1f8] sm:$0xff] }
 0x275   : >> { %v7899_v47 = vpop.permute.xlu1 %3653 }
 0x276   : >> { %9832 = vst [vmem:[#allocation126_spill] sm:$0xff] %v7899_v47  ;;  %6592 = vset.pattern.permute.xlu1 %v9718_v13 }
 0x277   : >> { %4350 = vperm.xlu1 %6592, %v6240_v37  }
 0x279   : >> { %v7903_v18 = vpop.permute.xlu1 %3657 }
 0x27a   : >> { %9833 = vst [vmem:[#allocation127_spill] sm:$0xff] %v7903_v18 }
 0x27b   : >> { %4340 = vperm.xlu1 %6592, %v6238_v58   ;;  %v7929_v58 = vpop.permute.xlu0 %3573 }
 0x27c   : >> { %9843 = vst [vmem:[#allocation137_spill] sm:$0xff] %v7929_v58 }
 0x27e   : >> { %v7908_v55 = vpop.permute.xlu1 %3764 }
 0x27f   : >> { %9835 = vst [vmem:[#allocation129_spill] sm:$0xff] %v7908_v55  ;;  %4345 = vperm.xlu1 %6592, %v6239_v31  }
 0x282   : >> { %v7913_v41 = vpop.permute.xlu1 %3578 }
 0x283   : >> { %9837 = vst [vmem:[#allocation131_spill] sm:$0xff] %v7913_v41  ;;  %4475 = vperm.xlu1 %6592, %v6265_v61   ;;  %v7934_v61 = vpop.permute.xlu0 %3754 }
 0x284   : >> { %9845 = vst [vmem:[#allocation139_spill] sm:$0xff] %v7934_v61  ;;  %v9851_v61 = vld [vmem:[#allocation80_spill] sm:$0xff] }
 0x287   : >> { %4465 = vperm.xlu1 %6592, %v6263_v19   ;;  %v7918_v42 = vpop.permute.xlu1 %3649 }
 0x288   : >> { %9839 = vst [vmem:[#allocation133_spill] sm:$0xff] %v7918_v42 }
 0x28b   : >> { %4455 = vperm.xlu1 %6592, %v6261_v5   ;;  %v6305_v5 = vld [vmem:[%s6972_s27 + $0x1e0] sm:$0xff] }
 0x28c   : >> { %v7922_v33 = vpop.permute.xlu1 %3749 }
 0x28d   : >> { %9840 = vst [vmem:[#allocation134_spill] sm:$0xff] %v7922_v33  ;;  %v6318_v33 = vld [vmem:[%s6987_s16 + $0x1f8] sm:$0xff] }
 0x28f   : >> { %4445 = vperm.xlu1 %6592, %v6259_v14  }
 0x290   : >> { %v7927_v37 = vpop.permute.xlu1 %3563 }
 0x291   : >> { %9842 = vst [vmem:[#allocation136_spill] sm:$0xff] %v7927_v37  ;;  %v7942_v37 = vpop.permute.xlu0 %3744 }
 0x292   : >> { %9848 = vst [vmem:[#allocation142_spill] sm:$0xff] %v7942_v37  ;;  %v6304_v37 = vld [vmem:[%s6972_s27 + $0x1d8] sm:$0xff] }
 0x293   : >> { %4820 = vperm.xlu1 %6592, %v6308_v51  }
 0x294   : >> { %v7931_v31 = vpop.permute.xlu1 %3568 }
 0x295   : >> { %9844 = vst [vmem:[#allocation138_spill] sm:$0xff] %v7931_v31 }
 0x297   : >> { %6594 = vset.pattern.permute.xlu1 %v9724_v27 }
 0x298   : >> { %4887 = vperm.xlu1 %6594, %v6308_v51   ;;  %v7947_v51 = vpop.permute.xlu0 %4272 }
 0x299   : >> { %v7936_v19 = vpop.permute.xlu1 %3641  ;;  %9850 = vst [vmem:[#allocation144_spill] sm:$0xff] %v7947_v51 }
 0x29a   : >> { %9846 = vst [vmem:[#allocation140_spill] sm:$0xff] %v7936_v19 }
 0x29c   : >> { %6595 = vset.pattern.permute.xlu1 %v9718_v13 }
 0x29d   : >> { %4805 = vperm.xlu1 %6595, %v6305_v5  }
 0x29e   : >> { %v7940_v14 = vpop.permute.xlu1 %3739 }
 0x29f   : >> { %9847 = vst [vmem:[#allocation141_spill] sm:$0xff] %v7940_v14  ;;  %v7956_v14 = vpop.permute.xlu0 %4256 }
 0x2a0   : >> { %9854 = vst [vmem:[#allocation146_spill] sm:$0xff] %v7956_v14 }
 0x2a1   : >> { %6596 = vset.pattern.permute.xlu1 %v9724_v27 }
 0x2a2   : >> { %4875 = vperm.xlu1 %6596, %v6305_v5   ;;  %v7945_v31 = vpop.permute.xlu1 %3729 }
 0x2a3   : >> { %9849 = vst [vmem:[#allocation143_spill] sm:$0xff] %v7945_v31  ;;  %v7961_v31 = vpop.permute.xlu0 %4248 }
 0x2a4   : >> { %9856 = vst [vmem:[#allocation148_spill] sm:$0xff] %v7961_v31 }
 0x2a6   : >> { %4879 = vperm.xlu1 %6596, %v9851_v61   ;;  %v7950_v19 = vpop.permute.xlu1 %3734  ;;  %v6315_v61 = vld [vmem:[%s6987_s16 + $0x1e0] sm:$0xff] }
 0x2a7   : >> { %9852 = vst [vmem:[#allocation80_spill] sm:$0xff] %v7950_v19  ;;  %v7969_v43 = vpop.permute.xlu0 %3859 }
 0x2a8   : >> { %9859 = vst [vmem:[#allocation151_spill] sm:$0xff] %v7969_v43 }
 0x2aa   : >> { %6597 = vset.pattern.permute.xlu1 %v9718_v13  ;;  %v7954_v42 = vpop.permute.xlu1 %3864 }
 0x2ab   : >> { %9853 = vst [vmem:[#allocation145_spill] sm:$0xff] %v7954_v42  ;;  %4986 = vperm.xlu1 %6597, %v6318_v33   ;;  %v7974_v42 = vpop.permute.xlu0 %3849 }
 0x2ac   : >> { %9861 = vst [vmem:[#allocation153_spill] sm:$0xff] %v7974_v42 }
 0x2ae   : >> { %v7959_v5 = vpop.permute.xlu1 %3854 }
 0x2af   : >> { %9855 = vst [vmem:[#allocation147_spill] sm:$0xff] %v7959_v5  ;;  %4800 = vperm.xlu1 %6597, %v6304_v37   ;;  %v9862_v5 = vld [vmem:[#allocation69_spill] sm:$0xff] }
 0x2b2   : >> { %v7963_v51 = vpop.permute.xlu1 %3844 }
 0x2b3   : >> { %9857 = vst [vmem:[#allocation149_spill] sm:$0xff] %v7963_v51  ;;  %6598 = vset.pattern.permute.xlu1 %v9724_v27  ;;  %v6302_v51 = vld [vmem:[%s6972_s27 + $0x1c8] sm:$0xff] }
 0x2b4   : >> { %4871 = vperm.xlu1 %6598, %v6304_v37  }
 0x2b6   : >> { %v7967_v19 = vpop.permute.xlu1 %3834 }
 0x2b7   : >> { %9858 = vst [vmem:[#allocation150_spill] sm:$0xff] %v7967_v19  ;;  %v7982_v19 = vpop.permute.xlu0 %3839 }
 0x2b8   : >> { %6599 = vset.pattern.permute.xlu1 %v9718_v13  ;;  %9864 = vst [vmem:[#allocation154_spill] sm:$0xff] %v7982_v19 }
 0x2b9   : >> { %4971 = vperm.xlu1 %6599, %v6315_v61  }
 0x2ba   : >> { %v7972_v33 = vpop.permute.xlu1 %4209 }
 0x2bb   : >> { %9860 = vst [vmem:[#allocation152_spill] sm:$0xff] %v7972_v33  ;;  %v6313_v33 = vld [vmem:[%s6987_s16 + $0x1d0] sm:$0xff]  ;;  %v7995_v14 = vpop.permute.xlu0 %3829 }
 0x2bc   : >> { %9866 = vst [vmem:[#allocation156_spill] sm:$0xff] %v7995_v14 }
 0x2bd   : >> { %4785 = vperm.xlu1 %6599, %v9862_v5  }
 0x2bf   : >> { %v7978_v31 = vpop.permute.xlu1 %4276  ;;  %v8010_v14 = vpop.permute.xlu0 %4204 }
 0x2c0   : >> { %9863 = vst [vmem:[#allocation69_spill] sm:$0xff] %v7978_v31  ;;  %v5917_v31 = vld [vmem:[%s7700_s14 + $0x20] sm:$0xff]  ;;  %9869 = vst [vmem:[#allocation159_spill] sm:$0xff] %v8010_v14  ;;  %v5929_v14 = vld [vmem:[%s7747_s3 + $0x30] sm:$0xff] }
 0x2c1   : >> { %4790 = vperm.xlu1 %6599, %v6302_v51   ;;  %1567 = vperm.xlu0 %6600, %v5917_v31  }
 0x2c2   : >> { %v7980_v37 = vpop.f32.mrf.mxu1 }
 0x2c3   : >> { %v8023_v47 = vpop.permute.xlu0 %4199 }
 0x2c4   : >> { %v7984_v43 = vpop.f32.mrf.mxu1  ;;  %v7986_v61 = vpop.permute.xlu1 %4194  ;;  %9871 = vst [vmem:[#allocation161_spill] sm:$0xff] %v8023_v47  ;;  %v9875_v47 = vld [vmem:[#allocation12_spill] sm:$0xff] }
 0x2c5   : >> { %9865 = vst [vmem:[#allocation155_spill] sm:$0xff] %v7986_v61  ;;  %6601 = vset.pattern.permute.xlu1 %v9724_v27  ;;  %v5919_v61 = vld [vmem:[%s7700_s14 + $0x30] sm:$0xff]  ;;  %v1838_v20 = vrot.slane %v5933_v59, %v9875_v47 }
 0x2c6   : >> { %4863 = vperm.xlu1 %6601, %v6302_v51   ;;  %v7989_v42 = vpop.f32.mrf.mxu1  ;;  %v6311_v51 = vld [vmem:[%s6987_s16 + $0x1c0] sm:$0xff]  ;;  %1577 = vperm.xlu0 %6600, %v5919_v61   ;;  %v6338_v61 = vld [vmem:[%s7010_s29 + $0x1f8] sm:$0xff] }
 0x2c8   : >> { %v7991_v5 = vpop.f32.mrf.mxu1 }
 0x2c9   : >> { %v7997_v19 = vpop.permute.xlu1 %4264 }
 0x2ca   : >> { %9867 = vst [vmem:[#allocation157_spill] sm:$0xff] %v7997_v19  ;;  %6602 = vset.pattern.permute.xlu1 %v9718_v13  ;;  %v8000_v41 = vpop.f32.mrf.mxu1  ;;  %v6312_v19 = vld [vmem:[%s6987_s16 + $0x1c8] sm:$0xff] }
 0x2cb   : >> { %4961 = vperm.xlu1 %6602, %v6313_v33   ;;  %v5927_v33 = vld [vmem:[%s7747_s3 + $0x20] sm:$0xff] }
 0x2cc   : >> { %v8002_v27 = vpop.f32.mrf.mxu1  ;;  %1669 = vperm.xlu0 %6600, %v5927_v33   ;;  %v6336_v33 = vld [vmem:[%s7010_s29 + $0x1e8] sm:$0xff] }
 0x2cd   : >> { %v8006_v55 = vpop.permute.xlu1 %4268 }
 0x2ce   : >> { %9868 = vst [vmem:[#allocation158_spill] sm:$0xff] %v8006_v55  ;;  %v8008_v46 = vpop.f32.mrf.mxu1 }
 0x2cf   : >> { %4951 = vperm.xlu1 %6602, %v6311_v51  }
 0x2d0   : >> { %v8012_v31 = vpop.f32.mrf.mxu1  ;;  %1679 = vperm.xlu0 %6600, %v5929_v14  }
 0x2d2   : >> { %v8016_v3 = vpop.f32.mrf.mxu1  ;;  %v8018_v18 = vpop.permute.xlu1 %4375 }
 0x2d3   : >> { %9870 = vst [vmem:[#allocation160_spill] sm:$0xff] %v8018_v18  ;;  %4956 = vperm.xlu1 %6602, %v6312_v19   ;;  %v8036_v19 = vpop.permute.xlu0 %4370 }
 0x2d4   : >> { %v8020_v55 = vpop.f32.mrf.mxu1  ;;  %9873 = vst [vmem:[#allocation163_spill] sm:$0xff] %v8036_v19  ;;  %v8050_v19 = vrot.slane %v1838_v20, %v9875_v47  ;;  %v9881_v20 = vld [vmem:[#allocation16_spill] sm:$0xff] }
 0x2d6   : >> { %v8025_v29 = vpop.f32.mrf.mxu1  ;;  %v8027_v51 = vpop.permute.xlu1 %4189  ;;  %v1857_v39 = vmul.f32 %v8050_v19, %v9886_v52 }
 0x2d7   : >> { %9872 = vst [vmem:[#allocation162_spill] sm:$0xff] %v8027_v51  ;;  %5086 = vperm.xlu1 %6602, %v6338_v61   ;;  %v1842_v51 = vrot.slane %v5933_v59, %v9876_v44  ;;  %v9878_v61 = vld [vmem:[#allocation15_spill] sm:$0xff]  ;;  %v8064_v63 = vpop.permute.xlu0 %4184 }
 0x2d8   : >> { %v8030_v2 = vpop.f32.mrf.mxu1  ;;  %v1776_v14 = vrot.slane %v5933_v59, %v9878_v61  ;;  %9880 = vst [vmem:[#allocation13_spill] sm:$0xff] %v8064_v63 }
 0x2da   : >> { %v8034_v11 = vpop.f32.mrf.mxu1  ;;  %v8059_v22 = vrot.slane %v1776_v14, %v9877_v49 }
 0x2db   : >> { %5076 = vperm.xlu1 %6602, %v6336_v33   ;;  %v8038_v18 = vpop.permute.xlu1 %4260  ;;  %v8053_v33 = vrot.slane %v1842_v51, %v9875_v47  ;;  %v1865_v51 = vmul.f32 %v8050_v19, %v9881_v20  ;;  %v8079_v45 = vpop.permute.xlu0 %4365 }
 0x2dc   : >> { %9874 = vst [vmem:[#allocation164_spill] sm:$0xff] %v8038_v18  ;;  %v8044_v62 = vpop.f32.mrf.mxu1  ;;  %v8056_v18 = vrot.slane %v1772_v8, %v9877_v49  ;;  %v1800_v36 = vmul.f32 %v8059_v22, %v9882_v56  ;;  %9884 = vst [vmem:[#allocation15_spill] sm:$0xff] %v8079_v45  ;;  %v1802_v9 = vmul.f32 %v8059_v22, %v9890_v34 }
 0x2dd   : >> { %v1866_v8 = vmul.f32 %v8053_v33, %v9881_v20 }
 0x2de   : >> { %v8047_v58 = vpop.f32.mrf.mxu1  ;;  %v1799_v14 = vmul.f32 %v8056_v18, %v9882_v56  ;;  %v1858_v56 = vmul.f32 %v8053_v33, %v9886_v52  ;;  %v8117_v48 = vmul.f32 %v8056_v18, %v9894_v12 }
 0x2df   : >> { %5066 = vperm.xlu1 %6602, %v6334_v32   ;;  %v1882_v40 = vadd.f32 %v1866_v8, %v1800_v36  ;;  %v1053_v8 = vld [vmem:[%s7747_s3 + $0x8] sm:$0xff] }
 0x2e0   : >> { %v1505_v59 = vpop.f32.mrf.mxu1  ;;  %v8062_v38 = vpop.permute.xlu1 %4360 }
 0x2e1   : >> { %9879 = vst [vmem:[#allocation12_spill] sm:$0xff] %v8062_v38  ;;  %v951_v38 = vld [vmem:[%s7700_s14 + $0x8] sm:$0xff] }
 0x2e2   : >> { %v8066_v32 = vpop.f32.mrf.mxu1 }
 0x2e3   : >> { %5056 = vperm.xlu1 %6602, %v6332_v23   ;;  %v1881_v23 = vadd.f32 %v1865_v51, %v1799_v14  ;;  %v9889_v14 = vld [vmem:[#allocation18_spill] sm:$0xff] }
 0x2e4   : >> { %v1511_v0 = vpop.f32.mrf.mxu1  ;;  %v8077_v26 = vpop.permute.xlu1 %4174  ;;  %v8113_v15 = vmul.f32 %v8053_v33, %v9889_v14 }
 0x2e5   : >> { %9883 = vst [vmem:[#allocation14_spill] sm:$0xff] %v8077_v26  ;;  %v9887_v26 = vld [vmem:[#allocation32_spill] sm:$0xff] }
 0x2e6   : >> { %v1513_v63 = vpop.f32.mrf.mxu1  ;;  %v8089_v4 = vadd.f32 %v9887_v26, %v1881_v23  ;;  %v8092_v45 = vadd.f32 %v9887_v26, %v1882_v40  ;;  %v9891_v23 = vld [vmem:[#allocation37_spill] sm:$0xff]  ;;  %v8107_v40 = vpop.permute.xlu0 %4355 }
 0x2e7   : >> { %961 = vperm.xlu1 %6602, %v951_v38   ;;  %v9888_v38 = vld [vmem:[#allocation35_spill] sm:$0xff]  ;;  %v1867_v21 = vmul.f32 %v8050_v19, %v9891_v23  ;;  %9892 = vst [vmem:[#allocation27_spill] sm:$0xff] %v8107_v40  ;;  %v8125_v40 = vmul.f32 %v8059_v22, %v9894_v12 }
 0x2e8   : >> { %v1515_v53 = vpop.f32.mrf.mxu1  ;;  %v8082_v20 = vpop.permute.xlu1 %4179  ;;  %v1791_v36 = vmul.f32 %v8056_v18, %v9888_v38  ;;  %v1792_v52 = vmul.f32 %v8059_v22, %v9888_v38  ;;  %v1868_v38 = vmul.f32 %v8053_v33, %v9891_v23 }
 0x2e9   : >> { %9885 = vst [vmem:[#allocation16_spill] sm:$0xff] %v8082_v20  ;;  %v8099_v20 = vmul.f32 %v8050_v19, %v9889_v14 }
 0x2ea   : >> { %v1519_v16 = vpop.f32.mrf.mxu1  ;;  %v8136_v12 = vadd.f32 %v1858_v56, %v1792_v52 }
 0x2eb   : >> { %971 = vperm.xlu1 %6602, %v953_v54   ;;  %v1801_v54 = vmul.f32 %v8056_v18, %v9890_v34  ;;  %v8132_v34 = vadd.f32 %v1857_v39, %v1791_v36  ;;  %v1520_v23 = vadd.f32 %v1519_v16, %v9896_v30  ;;  %v9902_v16 = vld [vmem:[#allocation31_spill] sm:$0xff] }
 0x2ec   : >> { %v1521_v51 = vpop.f32.mrf.mxu1 }
 0x2ed   : >> { %v8109_v26 = vpop.permute.xlu1 %4252  ;;  %v1522_v14 = vadd.f32 %v1521_v51, %v9896_v30  ;;  %v1883_v1 = vadd.f32 %v1867_v21, %v1801_v54  ;;  %v8145_v30 = vpop.permute.xlu0 %4883  ;;  %v1506_v21 = vadd.f32 %v1505_v59, %v9902_v16 }
 0x2ee   : >> { %9893 = vst [vmem:[#allocation17_spill] sm:$0xff] %v8109_v26  ;;  %v1523_v60 = vpop.f32.mrf.mxu1  ;;  %v9895_v26 = vld [vmem:[#allocation30_spill] sm:$0xff]  ;;  %9901 = vst [vmem:[#allocation35_spill] sm:$0xff] %v8145_v30 }
 0x2ef   : >> { %v1516_v6 = vadd.f32 %v1515_v53, %v9895_v26  ;;  %v1524_v57 = vadd.f32 %v1523_v60, %v9897_v10  ;;  %1063 = vperm.xlu1 %6602, %v1053_v8   ;;  %v1512_v53 = vadd.f32 %v1511_v0, %v9898_v25  ;;  %v1795_v60 = vmul.f32 %v8056_v18, %v9899_v28 }
 0x2f0   : >> { %v1525_v35 = vpop.f32.mrf.mxu1  ;;  %v1884_v8 = vadd.f32 %v1868_v38, %v1802_v9  ;;  %v1514_v24 = vadd.f32 %v1513_v63, %v9895_v26  ;;  %v1541_v54 = vmax.f32 %v1522_v14, 0.0  ;;  %v1510_v9 = vadd.f32 %v8066_v32, %v9898_v25  ;;  %v5918_v63 = vld [vmem:[%s7700_s14 + $0x28] sm:$0xff] }
 0x2f1   : >> { %v1526_v51 = vadd.f32 %v1525_v35, %v9897_v10  ;;  %v1542_v39 = vmax.f32 %v1524_v57, 0.0  ;;  %v1539_v56 = vmax.f32 %v1516_v6, 0.0  ;;  %v1796_v35 = vmul.f32 %v8059_v22, %v9899_v28  ;;  %v9903_v10 = vld [vmem:[#allocation41_spill] sm:$0xff] }
 0x2f2   : >> { %v8143_v36 = vpop.permute.xlu1 %4350  ;;  %v1861_v0 = vmul.f32 %v8050_v19, %v9903_v10  ;;  %v1540_v57 = vmax.f32 %v1520_v23, 0.0  ;;  %v1862_v26 = vmul.f32 %v8053_v33, %v9903_v10  ;;  %v9904_v38 = vld [vmem:[#allocation21_spill] sm:$0xff]  ;;  %v1537_v59 = vmax.f32 %v1512_v53, 0.0 }
 0x2f3   : >> { %9900 = vst [vmem:[#allocation32_spill] sm:$0xff] %v8143_v36  ;;  %v1543_v52 = vmax.f32 %v1526_v51, 0.0  ;;  %1073 = vperm.xlu1 %6602, %v1055_v7   ;;  %v1502_v6 = vadd.f32 %v8044_v62, %v9904_v38  ;;  %v9905_v7 = vld [vmem:[#allocation43_spill] sm:$0xff]  ;;  %v1504_v28 = vadd.f32 %v8047_v58, %v9902_v16  ;;  %v1538_v50 = vmax.f32 %v1514_v24, 0.0  ;;  %v9907_v23 = vld [vmem:[#allocation33_spill] sm:$0xff] }
 0x2f4   : >> { %v1863_v51 = vmul.f32 %v8050_v19, %v9905_v7  ;;  %v1557_v30 = vpack.c.bf16 %v1542_v39, %v1540_v57  ;;  %v1864_v32 = vmul.f32 %v8053_v33, %v9905_v7  ;;  %v1496_v10 = vadd.f32 %v8030_v2, %v9907_v23  ;;  %v5920_v39 = vld [vmem:[%s7700_s14 + $0x38] sm:$0xff] }
 0x2f5   : >> { %v1558_v14 = vpack.c.bf16 %v1543_v52, %v1541_v54  ;;  %v1535_v62 = vmax.f32 %v1506_v21, 0.0  ;;  %v1556_v53 = vpack.c.bf16 %v1539_v56, %v1537_v59  ;;  %v9908_v54 = vld [vmem:[#allocation45_spill] sm:$0xff]  ;;  %v1877_v36 = vadd.f32 %v1861_v0, %v1795_v60  ;;  %v9909_v16 = vld [vmem:[#allocation47_spill] sm:$0xff]  ;;  %v9910_v2 = vld [vmem:[#allocation24_spill] sm:$0xff] }
 0x2f6   : >> { %v8163_v25 = vpop.permute.xlu1 %4340  ;;  %v1949_v52 = vadd.f32 %v9908_v54, %v1884_v8  ;;  %v1500_v58 = vadd.f32 %v8034_v11, %v9904_v38  ;;  %v1536_v24 = vmax.f32 %v1510_v9, 0.0  ;;  %v1794_v57 = vmul.f32 %v8059_v22, %v9909_v16 }
 0x2f7   : >> { %9906 = vst [vmem:[#allocation18_spill] sm:$0xff] %v8163_v25  ;;  %1609 = vmatprep.subr.bf16.mxu0 %v1558_v14  ;;  %1572 = vperm.xlu1 %6602, %v5918_v63   ;;  %v1878_v7 = vadd.f32 %v1862_v26, %v1796_v35  ;;  %v8175_v25 = vpop.permute.xlu0 %4867  ;;  %v1492_v21 = vadd.f32 %v8020_v55, %v9910_v2  ;;  %v1533_v56 = vmax.f32 %v1502_v6, 0.0  ;;  %v9911_v63 = vld [vmem:[#allocation49_spill] sm:$0xff]  ;;  %v1534_v8 = vmax.f32 %v1504_v28, 0.0 }
 0x2f8   : >> { %1610 = vmatpush1.bf16.msra.mxu0 %v1557_v30  ;;  %v1860_v60 = vmul.f32 %v8053_v33, %v9911_v63  ;;  %v1494_v11 = vadd.f32 %v8025_v29, %v9907_v23  ;;  %v1555_v30 = vpack.c.bf16 %v1538_v50, %v1536_v24  ;;  %v1879_v35 = vadd.f32 %v1863_v51, %v8117_v48  ;;  %v5928_v29 = vld [vmem:[%s7747_s3 + $0x28] sm:$0xff]  ;;  %v9912_v51 = vld [vmem:[#allocation51_spill] sm:$0xff] }
 0x2f9   : >> { %1611 = vmatprep.subr.bf16.mxu0 %v1556_v53  ;;  %v1880_v9 = vadd.f32 %v1864_v32, %v8125_v40  ;;  %v1531_v26 = vmax.f32 %v1496_v10, 0.0  ;;  %v1554_v38 = vpack.c.bf16 %v1535_v62, %v1533_v56  ;;  %v1948_v55 = vadd.f32 %v9908_v54, %v1883_v1  ;;  %v9913_v23 = vld [vmem:[#allocation53_spill] sm:$0xff]  ;;  %v9915_v53 = vld [vmem:[#allocation54_spill] sm:$0xff] }
 0x2fa   : >> { %v8183_v0 = vpop.permute.xlu1 %4345  ;;  %v1965_v6 = vmax.f32 %v1949_v52, 0.0  ;;  %v1490_v59 = vadd.f32 %v8016_v3, %v9910_v2  ;;  %v1532_v14 = vmax.f32 %v1500_v58, 0.0  ;;  %v1793_v50 = vmul.f32 %v8056_v18, %v9909_v16  ;;  %v9916_v52 = vld [vmem:[#allocation57_spill] sm:$0xff]  ;;  %v9918_v16 = vld [vmem:[#allocation38_spill] sm:$0xff] }
 0x2fb   : >> { %1582 = vperm.xlu1 %6602, %v5920_v39   ;;  %v1859_v48 = vmul.f32 %v8050_v19, %v9911_v63  ;;  %v1943_v40 = vadd.f32 %v9912_v51, %v1878_v7  ;;  %v1529_v28 = vmax.f32 %v1492_v21, 0.0  ;;  %v1876_v32 = vadd.f32 %v1860_v60, %v1794_v57  ;;  %v8204_v24 = vpop.permute.xlu0 %4859  ;;  %v5930_v60 = vld [vmem:[%s7747_s3 + $0x38] sm:$0xff] }
 0x2fc   : >> { %1612 = vmatpush1.bf16.msra.mxu0 %v1555_v30  ;;  %v1788_v1 = vmul.f32 %v8059_v22, %v9913_v23  ;;  %v1530_v10 = vmax.f32 %v1494_v11, 0.0  ;;  %v1553_v3 = vpack.c.bf16 %v1534_v8, %v1532_v14  ;;  %v1790_v54 = vmul.f32 %v8059_v22, %v9915_v53  ;;  %9917 = vst [vmem:[#allocation37_spill] sm:$0xff] %v8204_v24  ;;  %v9922_v14 = vld [vmem:[#allocation40_spill] sm:$0xff] }
 0x2fd   : >> { %1613 = vmatprep.subr.bf16.mxu0 %v1554_v38  ;;  %v1856_v58 = vmul.f32 %v8053_v33, %v9916_v52  ;;  %v1552_v39 = vpack.c.bf16 %v1531_v26, %v1529_v28  ;;  %v1945_v7 = vadd.f32 %v9918_v16, %v1880_v9  ;;  %v1944_v57 = vadd.f32 %v9918_v16, %v1879_v35  ;;  %v9920_v9 = vld [vmem:[#allocation59_spill] sm:$0xff] }
 0x2fe   : >> { %v8198_v62 = vpop.permute.xlu1 %4475  ;;  %v1964_v2 = vmax.f32 %v1948_v55, 0.0  ;;  %v1528_v21 = vmax.f32 %v1490_v59, 0.0  ;;  %v9919_v56 = vmax.f32 %v8092_v45, 0.0  ;;  %v1875_v22 = vadd.f32 %v1859_v48, %v1793_v50 }
 0x2ff   : >> { %9914 = vst [vmem:[#allocation36_spill] sm:$0xff] %v8198_v62  ;;  %1674 = vperm.xlu1 %6602, %v5928_v29   ;;  %v1942_v11 = vadd.f32 %v9912_v51, %v1877_v36  ;;  %v1959_v33 = vmax.f32 %v1943_v40, 0.0  ;;  %v1787_v8 = vmul.f32 %v8056_v18, %v9913_v23  ;;  %v1789_v30 = vmul.f32 %v8056_v18, %v9915_v53 }
 0x300   : >> { %1614 = vmatpush1.bf16.msra.mxu0 %v1553_v3  ;;  %v1984_v63 = vpack.c.bf16 %v1965_v6, %v9919_v56  ;;  %v1855_v35 = vmul.f32 %v8050_v19, %v9916_v52  ;;  %v1939_v26 = vadd.f32 %v9920_v9, %v8136_v12  ;;  %v1551_v45 = vpack.c.bf16 %v1530_v10, %v1528_v21  ;;  %v6613_v6 = vld [vmem:[%s7408_s2 + $0x10] sm:$0xff]   ;;  %v8228_v12 = vpop.permute.xlu0 %4470  ;;  %v6614_v56 = vld [vmem:[%s7408_s2 + $0x18] sm:$0xff]  }
 0x301   : >> { %1615 = vmatprep.subr.bf16.mxu0 %v1552_v39  ;;  %v1870_v55 = vadd.f32 %v8113_v15, %v1788_v1  ;;  %v1872_v36 = vadd.f32 %v1856_v58, %v1790_v54  ;;  %v1961_v59 = vmax.f32 %v1945_v7, 0.0  ;;  %v1941_v29 = vadd.f32 %v9922_v14, %v1876_v32  ;;  %9924 = vst [vmem:[#allocation30_spill] sm:$0xff] %v8228_v12  ;;  %v9926_v1 = vld [vmem:[#allocation61_spill] sm:$0xff] }
 0x302   : >> { %v8220_v38 = vpop.permute.xlu1 %4465  ;;  %v9923_v18 = vmax.f32 %v8089_v4, 0.0  ;;  %v1940_v19 = vadd.f32 %v9922_v14, %v1875_v22  ;;  %v1958_v48 = vmax.f32 %v1942_v11, 0.0  ;;  %v1960_v51 = vmax.f32 %v1944_v57, 0.0  ;;  %v9927_v4 = vld [vmem:[#allocation62_spill] sm:$0xff] }
 0x303   : >> { %9921 = vst [vmem:[#allocation29_spill] sm:$0xff] %v8220_v38  ;;  %1684 = vperm.xlu1 %6602, %v5930_v60   ;;  %v1938_v15 = vadd.f32 %v9920_v9, %v8132_v34  ;;  %v1955_v40 = vmax.f32 %v1939_v26, 0.0  ;;  %v1869_v28 = vadd.f32 %v8099_v20, %v1787_v8  ;;  %v1871_v23 = vadd.f32 %v1855_v35, %v1789_v30  ;;  %v6615_v35 = vld [vmem:[%s7031_s26 + $0x40] sm:$0xff]  }
 0x304   : >> { %1616 = vmatpush1.bf16.msra.mxu0 %v1551_v45  ;;  %v1983_v50 = vpack.c.bf16 %v1964_v2, %v9923_v18  ;;  %v1935_v10 = vadd.f32 %v9926_v1, %v1870_v55  ;;  %v1937_v3 = vadd.f32 %v9927_v4, %v1872_v36  ;;  %v1982_v53 = vpack.c.bf16 %v1961_v59, %v1959_v33  ;;  %v8243_v2 = vpop.permute.xlu0 %4460  ;;  %v6616_v55 = vld [vmem:[%s7031_s26 + $0x48] sm:$0xff]  }
 0x305   : >> { %2074 = vmatprep.subr.bf16.mxu0 %v1984_v63  ;;  %v1957_v54 = vmax.f32 %v1941_v29, 0.0  ;;  %v1956_v52 = vmax.f32 %v1940_v19, 0.0  ;;  %v1981_v34 = vpack.c.bf16 %v1960_v51, %v1958_v48  ;;  %v1954_v58 = vmax.f32 %v1938_v15, 0.0  ;;  %9929 = vst [vmem:[#allocation20_spill] sm:$0xff] %v8243_v2  ;;  %v6617_v29 = vld [vmem:[%s7031_s26 + $0x50] sm:$0xff]   ;;  %v6618_v48 = vld [vmem:[%s7031_s26 + $0x58] sm:$0xff]  }
 0x306   : >> { %v8233_v32 = vpop.permute.xlu1 %4455  ;;  %v1934_v20 = vadd.f32 %v9926_v1, %v1869_v28  ;;  %v1936_v39 = vadd.f32 %v9927_v4, %v1871_v23  ;;  %v1951_v7 = vmax.f32 %v1935_v10, 0.0  ;;  %v1953_v57 = vmax.f32 %v1937_v3, 0.0  ;;  %v9974_v2 = vld [vmem:[#allocation67_spill] sm:$0xff] }
 0x307   : >> { %9925 = vst [vmem:[#allocation19_spill] sm:$0xff] %v8233_v32  ;;  %5923 = vmatmul.mubr.msk.bf16.vlgmr.msra.gmra.mxu0 %vm831_vm0, %v6613_v6  ;;  %v1980_v21 = vpack.c.bf16 %v1957_v54, %v1955_v40  ;;  %v1979_v63 = vpack.c.bf16 %v1956_v52, %v1954_v58  ;;  %v9971_v32 = vld [vmem:[#allocation64_spill] sm:$0xff] }
 0x308   : >> { %2075 = vmatpush1.bf16.msra.mxu0 %v1983_v50  ;;  %1643 = vmatprep.mubr.bf16.mxu0 %v9718_v13  ;;  %v1950_v60 = vmax.f32 %v1934_v20, 0.0  ;;  %v1952_v22 = vmax.f32 %v1936_v39, 0.0  ;;  %v1978_v33 = vpack.c.bf16 %v1953_v57, %v1951_v7  ;;  %v8250_v8 = vpop.permute.xlu0 %4450 }
 0x309   : >> { %2076 = vmatprep.subr.bf16.mxu0 %v1982_v53  ;;  %9931 = vst [vmem:[#allocation31_spill] sm:$0xff] %v8250_v8 }
 0x30a   : >> { %v8241_v16 = vpop.permute.xlu1 %4445  ;;  %v1977_v30 = vpack.c.bf16 %v1952_v22, %v1950_v60 }
 0x30b   : >> { %9928 = vst [vmem:[#allocation28_spill] sm:$0xff] %v8241_v16  ;;  %v9969_v16 = vld [vmem:[#allocation66_spill] sm:$0xff] }
 0x30c   : >> { %2077 = vmatpush1.bf16.msra.mxu0 %v1981_v34  ;;  %v8255_v26 = vpop.permute.xlu0 %4440 }
 0x30d   : >> { %2078 = vmatprep.subr.bf16.mxu0 %v1980_v21  ;;  %9933 = vst [vmem:[#allocation21_spill] sm:$0xff] %v8255_v26 }
 0x30e   : >> { %v8246_v11 = vpop.permute.xlu1 %4820 }
 0x30f   : >> { %9930 = vst [vmem:[#allocation39_spill] sm:$0xff] %v8246_v11  ;;  %5924 = vmatmul.mubr.msk.bf16.gmra.mxu0 %vm831_vm0, %v6614_v56 }
 0x310   : >> { %2079 = vmatpush1.bf16.msra.mxu0 %v1979_v63  ;;  %2098 = vmatprep.mubr.bf16.mxu0 %v9718_v13  ;;  %v8262_v36 = vpop.permute.xlu0 %4815 }
 0x311   : >> { %2080 = vmatprep.subr.bf16.mxu0 %v1978_v33 }
 0x313   : >> { %v8253_v9 = vpop.permute.xlu1 %4887 }
 0x314   : >> { %9932 = vst [vmem:[#allocation41_spill] sm:$0xff] %v8253_v9  ;;  %2081 = vmatpush1.bf16.msra.mxu0 %v1977_v30  ;;  %v8270_v14 = vpop.permute.xlu0 %4810  ;;  %v9973_v9 = vld [vmem:[#allocation75_spill] sm:$0xff] }
 0x315   : >> { %9937 = vst [vmem:[#allocation47_spill] sm:$0xff] %v8270_v14  ;;  %v9972_v14 = vld [vmem:[#allocation52_spill] sm:$0xff] }
 0x317   : >> { %5978 = vmatmul.mubr.msk.bf16.vlgmr.msra.gmra.mxu0 %vm831_vm0, %v6615_v35 }
 0x318   : >> { %v8258_v45 = vpop.permute.xlu1 %4805  ;;  %2108 = vmatprep.mubr.bf16.mxu0 %v9718_v13  ;;  %v8277_v50 = vpop.permute.xlu0 %4981 }
 0x319   : >> { %9934 = vst [vmem:[#allocation43_spill] sm:$0xff] %v8258_v45  ;;  %9939 = vst [vmem:[#allocation49_spill] sm:$0xff] %v8277_v50 }
 0x31c   : >> { %v8282_v51 = vpop.permute.xlu0 %4795 }
 0x31d   : >> { %v8264_v6 = vpop.permute.xlu1 %4875  ;;  %9941 = vst [vmem:[#allocation53_spill] sm:$0xff] %v8282_v51 }
 0x31e   : >> { %9935 = vst [vmem:[#allocation33_spill] sm:$0xff] %v8264_v6 }
 0x31f   : >> { %5979 = vmatmul.mubr.msk.bf16.gmra.mxu0 %vm831_vm0, %v6616_v55 }
 0x320   : >> { %2118 = vmatprep.mubr.bf16.mxu0 %v9718_v13  ;;  %v8290_v28 = vpop.permute.xlu0 %4976 }
 0x321   : >> { %v8268_v59 = vpop.permute.xlu1 %4879  ;;  %9944 = vst [vmem:[#allocation38_spill] sm:$0xff] %v8290_v28 }
 0x322   : >> { %9936 = vst [vmem:[#allocation45_spill] sm:$0xff] %v8268_v59  ;;  %v9970_v59 = vld [vmem:[#allocation50_spill] sm:$0xff] }
 0x324   : >> { %v8294_v1 = vpop.permute.xlu0 %4966 }
 0x325   : >> { %9946 = vst [vmem:[#allocation40_spill] sm:$0xff] %v8294_v1 }
 0x326   : >> { %v8273_v18 = vpop.permute.xlu1 %4986 }
 0x327   : >> { %9938 = vst [vmem:[#allocation24_spill] sm:$0xff] %v8273_v18  ;;  %5980 = vmatmul.mubr.msk.bf16.gmra.mxu0 %vm831_vm0, %v6617_v29 }
 0x328   : >> { %2128 = vmatprep.mubr.bf16.mxu0 %v9718_v13  ;;  %v8298_v4 = vpop.permute.xlu0 %5081 }
 0x329   : >> { %9948 = vst [vmem:[#allocation62_spill] sm:$0xff] %v8298_v4 }
 0x32a   : >> { %v8279_v19 = vpop.permute.xlu1 %4800 }
 0x32b   : >> { %9940 = vst [vmem:[#allocation51_spill] sm:$0xff] %v8279_v19 }
 0x32c   : >> { %v8304_v54 = vpop.permute.xlu0 %5071 }
 0x32d   : >> { %9951 = vst [vmem:[#allocation167_spill] sm:$0xff] %v8304_v54 }
 0x32f   : >> { %5981 = vmatmul.mubr.msk.bf16.gmra.mxu0 %vm831_vm0, %v6618_v48  ;;  %v8285_v15 = vpop.permute.xlu1 %4871 }
 0x330   : >> { %9942 = vst [vmem:[#allocation54_spill] sm:$0xff] %v8285_v15  ;;  %2855 = vmatprep.mubr.bf16.mxu0 %v9718_v13  ;;  %v8308_v34 = vpop.permute.xlu0 %5061 }
 0x331   : >> { %9953 = vst [vmem:[#allocation169_spill] sm:$0xff] %v8308_v34 }
 0x334   : >> { %v8288_v40 = vpop.permute.xlu1 %4971  ;;  %v8314_v39 = vpop.permute.xlu0 %5051 }
 0x335   : >> { %9943 = vst [vmem:[#allocation57_spill] sm:$0xff] %v8288_v40  ;;  %9956 = vst [vmem:[#allocation172_spill] sm:$0xff] %v8314_v39  ;;  %v9967_v40 = vld [vmem:[#allocation74_spill] sm:$0xff] }
 0x338   : >> { %v8292_v23 = vpop.permute.xlu1 %4785  ;;  %v957_v57 = vpop.permute.xlu0 %956 }
 0x339   : >> { %9945 = vst [vmem:[#allocation59_spill] sm:$0xff] %v8292_v23  ;;  %v1025_v22 = vadd.f32 %v7980_v37, %v957_v57  ;;  %v1027_v33 = vadd.f32 %v7984_v43, %v957_v57 }
 0x33b   : >> { %v1043_v34 = vmax.f32 %v1025_v22, 0.0 }
 0x33c   : >> { %v8296_v10 = vpop.permute.xlu1 %4790  ;;  %v967_v63 = vpop.permute.xlu0 %966 }
 0x33d   : >> { %9947 = vst [vmem:[#allocation61_spill] sm:$0xff] %v8296_v10  ;;  %v1035_v30 = vadd.f32 %v8000_v41, %v967_v63  ;;  %v1037_v35 = vadd.f32 %v8002_v27, %v967_v63 }
 0x33f   : >> { %v1047_v54 = vmax.f32 %v1035_v30, 0.0 }
 0x340   : >> { %v1059_v55 = vpop.permute.xlu0 %1058 }
 0x341   : >> { %v8300_v3 = vpop.permute.xlu1 %4863  ;;  %v1076_v57 = vmul.f32 %v1059_v55, %v1043_v34 }
 0x342   : >> { %9949 = vst [vmem:[#allocation165_spill] sm:$0xff] %v8300_v3 }
 0x346   : >> { %v8302_v53 = vpop.permute.xlu1 %4961 }
 0x347   : >> { %9950 = vst [vmem:[#allocation166_spill] sm:$0xff] %v8302_v53 }
 0x34a   : >> { %v8306_v52 = vpop.permute.xlu1 %4951 }
 0x34b   : >> { %9952 = vst [vmem:[#allocation168_spill] sm:$0xff] %v8306_v52 }
 0x34e   : >> { %v8310_v58 = vpop.permute.xlu1 %4956 }
 0x34f   : >> { %9954 = vst [vmem:[#allocation170_spill] sm:$0xff] %v8310_v58 }
 0x352   : >> { %v8312_v20 = vpop.permute.xlu1 %5086 }
 0x353   : >> { %9955 = vst [vmem:[#allocation171_spill] sm:$0xff] %v8312_v20  ;;  %v1069_v20 = vpop.permute.xlu0 %1068 }
 0x356   : >> { %v8316_v7 = vpop.permute.xlu1 %5076 }
 0x357   : >> { %9957 = vst [vmem:[#allocation173_spill] sm:$0xff] %v8316_v7 }
 0x35a   : >> { %v8318_v21 = vpop.permute.xlu1 %5066 }
 0x35b   : >> { %9958 = vst [vmem:[#allocation174_spill] sm:$0xff] %v8318_v21  ;;  %v1044_v21 = vmax.f32 %v1027_v33, 0.0 }
 0x35d   : >> { %v1077_v27 = vmul.f32 %v1059_v55, %v1044_v21  ;;  %v6000_v55 = vld [vmem:[%s7747_s3 + $0x40] sm:$0xff] }
 0x35e   : >> { %v8320_v56 = vpop.permute.xlu1 %5056 }
 0x35f   : >> { %9959 = vst [vmem:[#allocation175_spill] sm:$0xff] %v8320_v56  ;;  %v1048_v56 = vmax.f32 %v1037_v35, 0.0 }
 0x362   : >> { %v962_v60 = vpop.permute.xlu1 %961 }
 0x363   : >> { %v1029_v29 = vadd.f32 %v7989_v42, %v962_v60  ;;  %v1031_v48 = vadd.f32 %v7991_v5, %v962_v60  ;;  %v1080_v5 = vmul.f32 %v1069_v20, %v1047_v54  ;;  %v1081_v60 = vmul.f32 %v1069_v20, %v1048_v56  ;;  %v5991_v54 = vld [vmem:[%s7700_s14 + $0x48] sm:$0xff]  ;;  %v5992_v20 = vld [vmem:[%s7700_s14 + $0x50] sm:$0xff]  ;;  %v5993_v56 = vld [vmem:[%s7700_s14 + $0x58] sm:$0xff] }
 0x364   : >> { %2183 = vperm.xlu1 %6602, %v5991_v54  }
 0x365   : >> { %v1045_v4 = vmax.f32 %v1029_v29, 0.0  ;;  %v1046_v7 = vmax.f32 %v1031_v48, 0.0  ;;  %v6001_v48 = vld [vmem:[%s7747_s3 + $0x48] sm:$0xff] }
 0x366   : >> { %v972_v39 = vpop.permute.xlu1 %971 }
 0x367   : >> { %v1039_v37 = vadd.f32 %v8008_v46, %v972_v39  ;;  %v1041_v43 = vadd.f32 %v8012_v31, %v972_v39 }
 0x368   : >> { %2193 = vperm.xlu1 %6602, %v5993_v56  }
 0x369   : >> { %v1049_v22 = vmax.f32 %v1039_v37, 0.0  ;;  %v1050_v33 = vmax.f32 %v1041_v43, 0.0  ;;  %v6002_v37 = vld [vmem:[%s7747_s3 + $0x50] sm:$0xff]  ;;  %v6003_v43 = vld [vmem:[%s7747_s3 + $0x58] sm:$0xff] }
 0x36a   : >> { %v1064_v41 = vpop.permute.xlu1 %1063 }
 0x36b   : >> { %v1078_v63 = vmul.f32 %v1064_v41, %v1045_v4  ;;  %v1079_v42 = vmul.f32 %v1064_v41, %v1046_v7  ;;  %v5990_v7 = vld [vmem:[%s7700_s14 + $0x40] sm:$0xff]  ;;  %v1568_v41 = vpop.permute.xlu0 %1567 }
 0x36c   : >> { %2178 = vperm.xlu0 %6600, %v5990_v7   ;;  %2285 = vperm.xlu1 %6602, %v6001_v48  }
 0x36d   : >> { %v1084_v30 = vadd.f32 %v1078_v63, %v1076_v57  ;;  %v1093_v35 = vadd.f32 %v1079_v42, %v1077_v27 }
 0x36e   : >> { %v1074_v29 = vpop.permute.xlu1 %1073 }
 0x36f   : >> { %v1082_v46 = vmul.f32 %v1074_v29, %v1049_v22  ;;  %v1083_v31 = vmul.f32 %v1074_v29, %v1050_v33  ;;  %v1085_v39 = vadd.f32 %v1084_v30, %v1080_v5  ;;  %v1094_v34 = vadd.f32 %v1093_v35, %v1081_v60  ;;  %v1578_v27 = vpop.permute.xlu0 %1577 }
 0x370   : >> { %2188 = vperm.xlu0 %6600, %v5992_v20   ;;  %2295 = vperm.xlu1 %6602, %v6003_v43  }
 0x371   : >> { %v1086_v4 = vadd.f32 %v1085_v39, %v1082_v46  ;;  %v1095_v21 = vadd.f32 %v1094_v34, %v1083_v31 }
 0x372   : >> { %v1573_v57 = vpop.permute.xlu1 %1572 }
 0x373   : >> { %v1670_v35 = vpop.permute.xlu0 %1669  ;;  %v1096_v53 = vrot.slane %v1095_v21, 4 }
 0x374   : >> { %2280 = vperm.xlu0 %6600, %v6000_v55  }
 0x376   : >> { %v1583_v42 = vpop.permute.xlu1 %1582 }
 0x378   : >> { %2290 = vperm.xlu0 %6600, %v6002_v37   ;;  %v1087_v37 = vrot.slane %v1086_v4, 4 }
 0x37a   : >> { %v1675_v39 = vpop.permute.xlu1 %1674 }
 0x3c7   : >> { %v1635_v63 = vpop.f32.mrf.mxu0 }
 0x3c8   : >> { %v1636_v5 = vadd.f32 %v1635_v63, %v1568_v41  ;;  %v1680_v63 = vpop.permute.xlu0 %1679 }
 0x3c9   : >> { %v1637_v60 = vpop.f32.mrf.mxu0 }
 0x3ca   : >> { %v1638_v22 = vadd.f32 %v1637_v60, %v1568_v41  ;;  %v1654_v30 = vmax.f32 %v1636_v5, 0.0 }
 0x3cb   : >> { %v1639_v33 = vpop.f32.mrf.mxu0 }
 0x3cc   : >> { %v1640_v29 = vadd.f32 %v1639_v33, %v1573_v57  ;;  %v1655_v46 = vmax.f32 %v1638_v22, 0.0  ;;  %v1687_v20 = vmul.f32 %v1670_v35, %v1654_v30  ;;  %v1685_v30 = vpop.permute.xlu1 %1684 }
 0x3cd   : >> { %v1641_v31 = vpop.f32.mrf.mxu0 }
 0x3ce   : >> { %v1656_v34 = vmax.f32 %v1640_v29, 0.0  ;;  %v1642_v7 = vadd.f32 %v1641_v31, %v1573_v57  ;;  %v1688_v43 = vmul.f32 %v1670_v35, %v1655_v46  ;;  %v1088_v57 = vadd.f32 %v1087_v37, %v1086_v4 }
 0x3cf   : >> { %v1645_v54 = vpop.f32.mrf.mxu0 }
 0x3d0   : >> { %v1657_v56 = vmax.f32 %v1642_v7, 0.0  ;;  %v1689_v55 = vmul.f32 %v1675_v39, %v1656_v34  ;;  %v1646_v48 = vadd.f32 %v1645_v54, %v1578_v27 }
 0x3d1   : >> { %v1647_v58 = vpop.f32.mrf.mxu0 }
 0x3d2   : >> { %v1690_v52 = vmul.f32 %v1675_v39, %v1657_v56  ;;  %v1695_v41 = vadd.f32 %v1689_v55, %v1687_v20  ;;  %v1658_v60 = vmax.f32 %v1646_v48, 0.0  ;;  %v1648_v5 = vadd.f32 %v1647_v58, %v1578_v27 }
 0x3d3   : >> { %v1649_v33 = vpop.f32.mrf.mxu0  ;;  %v1097_v39 = vadd.f32 %v1096_v53, %v1095_v21 }
 0x3d4   : >> { %v1704_v22 = vadd.f32 %v1690_v52, %v1688_v43  ;;  %v1659_v1 = vmax.f32 %v1648_v5, 0.0  ;;  %v1691_v3 = vmul.f32 %v1680_v63, %v1658_v60  ;;  %v1650_v29 = vadd.f32 %v1649_v33, %v1583_v42 }
 0x3d5   : >> { %v1651_v31 = vpop.f32.mrf.mxu0  ;;  %v1089_v52 = vrot.slane %v1088_v57, 2  ;;  %v1098_v4 = vrot.slane %v1097_v39, 2 }
 0x3d6   : >> { %v1692_v7 = vmul.f32 %v1680_v63, %v1659_v1  ;;  %v1696_v34 = vadd.f32 %v1695_v41, %v1691_v3  ;;  %v1660_v54 = vmax.f32 %v1650_v29, 0.0  ;;  %v1652_v35 = vadd.f32 %v1651_v31, %v1583_v42  ;;  %v6006_v3 = vld [vmem:[%s7078_s25 + $0xc] sm:$0xf] }
 0x3d7   : >> { %v8338_v46 = vpop.f32.mrf.mxu0  ;;  %v1090_v42 = vadd.f32 %v1089_v52, %v1088_v57  ;;  %v2449_v21 = vrot.slane %v6006_v3, %v9875_v47  ;;  %v1099_v5 = vadd.f32 %v1098_v4, %v1097_v39  ;;  %v2453_v29 = vrot.slane %v6006_v3, %v9876_v44 }
 0x3d8   : >> { %v1705_v20 = vadd.f32 %v1704_v22, %v1692_v7  ;;  %v1661_v56 = vmax.f32 %v1652_v35, 0.0  ;;  %v1693_v58 = vmul.f32 %v1685_v30, %v1660_v54  ;;  %v2383_v31 = vrot.slane %v6006_v3, %v9877_v49 }
 0x3d9   : >> { %v8340_v27 = vpop.f32.mrf.mxu0  ;;  %v8361_v52 = vrot.slane %v2453_v29, %v9875_v47 }
 0x3da   : >> { %v1694_v55 = vmul.f32 %v1685_v30, %v1661_v56  ;;  %v1697_v48 = vadd.f32 %v1696_v34, %v1693_v58  ;;  %v2387_v30 = vrot.slane %v6006_v3, %v9878_v61  ;;  %v1091_v34 = vrot.slane %v1090_v42, 1 }
 0x3db   : >> { %v8342_v43 = vpop.f32.mrf.mxu0  ;;  %v1100_v56 = vrot.slane %v1099_v5, 1  ;;  %v2479_v15 = vmul.f32 %v8361_v52, %v9967_v40 }
 0x3dc   : >> { %v1698_v37 = vrot.slane %v1697_v48, 4  ;;  %v1706_v1 = vadd.f32 %v1705_v20, %v1694_v55  ;;  %v8358_v20 = vrot.slane %v2449_v21, %v9875_v47  ;;  %v8364_v55 = vrot.slane %v2383_v31, %v9877_v49 }
 0x3dd   : >> { %v8345_v63 = vpop.f32.mrf.mxu0 }
 0x3de   : >> { %v1699_v41 = vadd.f32 %v1698_v37, %v1697_v48  ;;  %v1707_v60 = vrot.slane %v1706_v1, 4  ;;  %v8367_v48 = vrot.slane %v2387_v30, %v9877_v49  ;;  %v1092_v37 = vadd.f32 %v1091_v34, %v1090_v42 }
 0x3df   : >> { %v8347_v53 = vpop.f32.mrf.mxu0 }
 0x3e0   : >> { %v1700_v33 = vrot.slane %v1699_v41, 2  ;;  %v1708_v22 = vadd.f32 %v1707_v60, %v1706_v1  ;;  %v1101_v60 = vadd.f32 %v1100_v56, %v1099_v5 }
 0x3e1   : >> { %v8353_v7 = vpop.f32.mrf.mxu0 }
 0x3e2   : >> { %v1701_v54 = vadd.f32 %v1700_v33, %v1699_v41  ;;  %v1709_v57 = vrot.slane %v1708_v22, 2 }
 0x3e3   : >> { %v8355_v35 = vpop.f32.mrf.mxu0 }
 0x3e4   : >> { %v1702_v39 = vrot.slane %v1701_v54, 1  ;;  %v1710_v58 = vadd.f32 %v1709_v57, %v1708_v22  ;;  %v9960_v22 = vld [vmem:[#allocation42_spill] sm:$0xff]  ;;  %v9961_v57 = vld [vmem:[#allocation60_spill] sm:$0xff] }
 0x3e5   : >> { %v2116_v4 = vpop.f32.mrf.mxu0  ;;  %v2476_v29 = vmul.f32 %v8358_v20, %v9960_v22  ;;  %v2477_v31 = vmul.f32 %v8361_v52, %v9960_v22  ;;  %v2410_v30 = vmul.f32 %v8364_v55, %v9961_v57  ;;  %v2411_v10 = vmul.f32 %v8367_v48, %v9961_v57  ;;  %v9963_v22 = vld [vmem:[#allocation65_spill] sm:$0xff]  ;;  %v9964_v57 = vld [vmem:[#allocation68_spill] sm:$0xff] }
 0x3e6   : >> { %v1703_v1 = vadd.f32 %v1702_v39, %v1701_v54  ;;  %v1711_v3 = vrot.slane %v1710_v58, 1 }
 0x3e7   : >> { %v2120_v41 = vpop.f32.mrf.mxu0  ;;  %v2492_v5 = vadd.f32 %v2476_v29, %v2410_v30  ;;  %v2493_v56 = vadd.f32 %v2477_v31, %v2411_v10  ;;  %v9965_v29 = vld [vmem:[#allocation48_spill] sm:$0xff]  ;;  %v2403_v31 = vmul.f32 %v8367_v48, %v9964_v57 }
 0x3e8   : >> { %v1712_v21 = vadd.f32 %v1711_v3, %v1710_v58  ;;  %v8369_v33 = vsel %vm5379_vm1, %v1092_v37, %v1703_v1  ;;  %v9962_v37 = vld [vmem:[#allocation44_spill] sm:$0xff]  ;;  %v8395_v10 = vmul.f32 %v8358_v20, %v9965_v29 }
 0x3e9   : >> { %v2122_v42 = vpop.f32.mrf.mxu0  ;;  %v2468_v1 = vmul.f32 %v8358_v20, %v9962_v37  ;;  %v2469_v3 = vmul.f32 %v8361_v52, %v9962_v37  ;;  %v8386_v23 = vadd.f32 %v9963_v22, %v2492_v5  ;;  %v8389_v28 = vadd.f32 %v9963_v22, %v2493_v56  ;;  %v9966_v30 = vld [vmem:[#allocation72_spill] sm:$0xff]  ;;  %v9968_v22 = vld [vmem:[#allocation63_spill] sm:$0xff] }
 0x3ea   : >> { %v8379_v34 = vsel %vm5379_vm1, %v1101_v60, %v1712_v21  ;;  %v2402_v60 = vmul.f32 %v8364_v55, %v9964_v57  ;;  %v2412_v37 = vmul.f32 %v8364_v55, %v9966_v30  ;;  %v2478_v5 = vmul.f32 %v8358_v20, %v9967_v40 }
 0x3eb   : >> { %v2124_v54 = vpop.f32.mrf.mxu0  ;;  %v8405_v56 = vmul.f32 %v8361_v52, %v9965_v29  ;;  %v2408_v18 = vmul.f32 %v8364_v55, %v9968_v22  ;;  %v2413_v26 = vmul.f32 %v8367_v48, %v9966_v30  ;;  %v2409_v19 = vmul.f32 %v8367_v48, %v9968_v22 }
 0x3ec   : >> { %v8420_v62 = vadd.f32 %v2468_v1, %v2402_v60  ;;  %v2494_v40 = vadd.f32 %v2478_v5, %v2412_v37  ;;  %v8423_v38 = vadd.f32 %v2469_v3, %v2403_v31  ;;  %v2123_v22 = vadd.f32 %v2122_v42, %v9972_v14  ;;  %v9976_v31 = vld [vmem:[#allocation79_spill] sm:$0xff] }
 0x3ed   : >> { %v2126_v39 = vpop.f32.mrf.mxu0  ;;  %v2125_v45 = vadd.f32 %v2124_v54, %v9969_v16  ;;  %v2117_v1 = vadd.f32 %v2116_v4, %v9974_v2  ;;  %v2474_v42 = vmul.f32 %v8358_v20, %v9976_v31 }
 0x3ee   : >> { %v2127_v8 = vadd.f32 %v2126_v39, %v9969_v16  ;;  %v2148_v54 = vmax.f32 %v2123_v22, 0.0 }
 0x3ef   : >> { %v2130_v58 = vpop.f32.mrf.mxu0  ;;  %v2149_v37 = vmax.f32 %v2125_v45, 0.0  ;;  %v9980_v45 = vld [vmem:[#allocation83_spill] sm:$0xff] }
 0x3f0   : >> { %v2131_v30 = vadd.f32 %v2130_v58, %v9970_v59  ;;  %v2150_v60 = vmax.f32 %v2127_v8, 0.0  ;;  %v9975_v58 = vld [vmem:[#allocation77_spill] sm:$0xff] }
 0x3f1   : >> { %v2132_v21 = vpop.f32.mrf.mxu0  ;;  %v2473_v3 = vmul.f32 %v8361_v52, %v9975_v58  ;;  %v2472_v8 = vmul.f32 %v8358_v20, %v9975_v58 }
 0x3f2   : >> { %v2133_v6 = vadd.f32 %v2132_v21, %v9970_v59  ;;  %v2407_v21 = vmul.f32 %v8367_v48, %v9973_v9 }
 0x3f3   : >> { %v2134_v57 = vpop.f32.mrf.mxu0 }
 0x3f4   : >> { %v2135_v29 = vadd.f32 %v2134_v57, %v9971_v32  ;;  %v2495_v57 = vadd.f32 %v2479_v15, %v2413_v26  ;;  %v2152_v24 = vmax.f32 %v2133_v6, 0.0  ;;  %v2406_v26 = vmul.f32 %v8364_v55, %v9973_v9  ;;  %v9977_v15 = vld [vmem:[#allocation55_spill] sm:$0xff] }
 0x3f5   : >> { %v2136_v12 = vpop.f32.mrf.mxu0  ;;  %v2113_v16 = vadd.f32 %v8353_v7, %v9977_v15  ;;  %v2115_v6 = vadd.f32 %v8355_v35, %v9974_v2  ;;  %v2146_v9 = vmax.f32 %v2117_v1, 0.0  ;;  %v2490_v7 = vadd.f32 %v2474_v42, %v2408_v18  ;;  %v9981_v35 = vld [vmem:[#allocation58_spill] sm:$0xff] }
 0x3f6   : >> { %v2137_v39 = vadd.f32 %v2136_v12, %v9971_v32  ;;  %v2153_v11 = vmax.f32 %v2135_v29, 0.0  ;;  %v2121_v12 = vadd.f32 %v2120_v41, %v9972_v14  ;;  %v2151_v32 = vmax.f32 %v2131_v30, 0.0  ;;  %v9978_v41 = vld [vmem:[#allocation70_spill] sm:$0xff] }
 0x3f7   : >> { %v2475_v14 = vmul.f32 %v8361_v52, %v9976_v31  ;;  %v2107_v29 = vadd.f32 %v8345_v63, %v9978_v41  ;;  %v2167_v30 = vpack.c.bf16 %v2150_v60, %v2148_v54  ;;  %v2489_v22 = vadd.f32 %v2473_v3, %v2407_v21  ;;  %v9982_v63 = vld [vmem:[#allocation85_spill] sm:$0xff] }
 0x3f8   : >> { %v2154_v59 = vmax.f32 %v2137_v39, 0.0  ;;  %v2168_v5 = vpack.c.bf16 %v2153_v11, %v2151_v32  ;;  %v2147_v39 = vmax.f32 %v2121_v12, 0.0  ;;  %v2405_v11 = vmul.f32 %v8367_v48, %v9980_v45 }
 0x3f9   : >> { %v2103_v58 = vadd.f32 %v8340_v27, %v9981_v35  ;;  %v2144_v31 = vmax.f32 %v2113_v16, 0.0  ;;  %v2471_v1 = vmul.f32 %v8361_v52, %v9982_v63  ;;  %v2105_v18 = vadd.f32 %v8342_v43, %v9978_v41  ;;  %v9983_v43 = vld [vmem:[#allocation87_spill] sm:$0xff] }
 0x3fa   : >> { %v2169_v4 = vpack.c.bf16 %v2154_v59, %v2152_v24  ;;  %v2111_v24 = vadd.f32 %v8347_v53, %v9977_v15  ;;  %v9979_v59 = vld [vmem:[#allocation82_spill] sm:$0xff]  ;;  %v2145_v21 = vmax.f32 %v2115_v6, 0.0  ;;  %v2166_v53 = vpack.c.bf16 %v2149_v37, %v2147_v39 }
 0x3fb   : >> { %v2560_v2 = vadd.f32 %v9979_v59, %v2495_v57  ;;  %v2491_v60 = vadd.f32 %v2475_v14, %v2409_v19  ;;  %v2559_v3 = vadd.f32 %v9979_v59, %v2494_v40  ;;  %v2142_v57 = vmax.f32 %v2107_v29, 0.0  ;;  %v9985_v29 = vld [vmem:[#allocation94_spill] sm:$0xff] }
 0x3fc   : >> { %2220 = vmatprep.subr.bf16.mxu1 %v2169_v4  ;;  %v2165_v42 = vpack.c.bf16 %v2146_v9, %v2144_v31  ;;  %v2404_v12 = vmul.f32 %v8364_v55, %v9980_v45  ;;  %v2470_v27 = vmul.f32 %v8358_v20, %v9982_v63  ;;  %v2101_v32 = vadd.f32 %v8338_v46, %v9981_v35  ;;  %v9984_v4 = vld [vmem:[#allocation92_spill] sm:$0xff] }
 0x3fd   : >> { %2221 = vmatpush1.bf16.msra.mxu1 %v2168_v5  ;;  %v2143_v15 = vmax.f32 %v2111_v24, 0.0  ;;  %v2488_v16 = vadd.f32 %v2472_v8, %v2406_v26  ;;  %v2554_v54 = vadd.f32 %v9983_v43, %v2489_v22  ;;  %v2399_v19 = vmul.f32 %v8367_v48, %v9984_v4 }
 0x3fe   : >> { %2222 = vmatprep.subr.bf16.mxu1 %v2167_v30  ;;  %v2140_v40 = vmax.f32 %v2103_v58, 0.0  ;;  %v2576_v6 = vmax.f32 %v2560_v2, 0.0  ;;  %v2487_v37 = vadd.f32 %v2471_v1, %v2405_v11  ;;  %v2141_v5 = vmax.f32 %v2105_v18, 0.0  ;;  %v9986_v30 = vld [vmem:[#allocation71_spill] sm:$0xff]  ;;  %v9987_v11 = vld [vmem:[#allocation96_spill] sm:$0xff] }
 0x3ff   : >> { %v2164_v14 = vpack.c.bf16 %v2145_v21, %v2143_v15  ;;  %v2401_v41 = vmul.f32 %v8367_v48, %v7658_v17  ;;  %v2467_v46 = vmul.f32 %v8361_v52, %v9985_v29  ;;  %v2556_v26 = vadd.f32 %v9986_v30, %v2491_v60  ;;  %v6619_v18 = vld [vmem:[%s7408_s2 + $0x20] sm:$0xff]  }
 0x400   : >> { %v2163_v9 = vpack.c.bf16 %v2142_v57, %v2140_v40  ;;  %v2555_v8 = vadd.f32 %v9986_v30, %v2490_v7  ;;  %v2575_v22 = vmax.f32 %v2559_v3, 0.0  ;;  %v2486_v24 = vadd.f32 %v2470_v27, %v2404_v12  ;;  %v9991_v12 = vld [vmem:[#allocation98_spill] sm:$0xff] }
 0x401   : >> { %2223 = vmatpush1.bf16.msra.mxu1 %v2166_v53  ;;  %v2139_v39 = vmax.f32 %v2101_v32, 0.0  ;;  %v2553_v59 = vadd.f32 %v9983_v43, %v2488_v16  ;;  %v2570_v2 = vmax.f32 %v2554_v54, 0.0  ;;  %v2398_v45 = vmul.f32 %v8364_v55, %v9984_v4  ;;  %v9989_v53 = vld [vmem:[#allocation73_spill] sm:$0xff]  ;;  %v9992_v32 = vld [vmem:[#allocation23_spill] sm:$0xff] }
 0x402   : >> { %2224 = vmatprep.subr.bf16.mxu1 %v2165_v42  ;;  %v2481_v48 = vadd.f32 %v8405_v56, %v2399_v19  ;;  %v2400_v52 = vmul.f32 %v8364_v55, %v7658_v17  ;;  %v2466_v7 = vmul.f32 %v8358_v20, %v9985_v29  ;;  %v2550_v35 = vadd.f32 %v9987_v11, %v8423_v38  ;;  %v6622_v30 = vld [vmem:[%s7031_s26 + $0x68] sm:$0xff]  }
 0x403   : >> { %v2162_v58 = vpack.c.bf16 %v2141_v5, %v2139_v39  ;;  %v2483_v31 = vadd.f32 %v2467_v46, %v2401_v41  ;;  %v9988_v63 = vmax.f32 %v8389_v28, 0.0  ;;  %v2572_v21 = vmax.f32 %v2556_v26, 0.0  ;;  %v6623_v26 = vld [vmem:[%s7031_s26 + $0x70] sm:$0xff]  }
 0x404   : >> { %v2552_v60 = vadd.f32 %v9989_v53, %v2487_v37  ;;  %v9990_v56 = vmax.f32 %v8386_v23, 0.0  ;;  %v2551_v17 = vadd.f32 %v9989_v53, %v2486_v24  ;;  %v2569_v55 = vmax.f32 %v2553_v59, 0.0  ;;  %v6620_v37 = vld [vmem:[%s7408_s2 + $0x28] sm:$0xff]   ;;  %v6065_v39 = vld [vmem:[%s7700_s14 + $0x70] sm:$0xff]  ;;  %v6066_v59 = vld [vmem:[%s7700_s14 + $0x78] sm:$0xff] }
 0x405   : >> { %2225 = vmatpush1.bf16.msra.mxu1 %v2164_v14  ;;  %v2595_v1 = vpack.c.bf16 %v2576_v6, %v9988_v63  ;;  %v2571_v20 = vmax.f32 %v2555_v8, 0.0  ;;  %v2549_v38 = vadd.f32 %v9987_v11, %v8420_v62  ;;  %v2566_v57 = vmax.f32 %v2550_v35, 0.0  ;;  %v6624_v8 = vld [vmem:[%s7031_s26 + $0x78] sm:$0xff]   ;;  %v6064_v24 = vld [vmem:[%s7700_s14 + $0x68] sm:$0xff]  ;;  %v2184_v11 = vpop.permute.xlu1 %2183 }
 0x406   : >> { %2226 = vmatprep.subr.bf16.mxu1 %v2163_v9  ;;  %v2594_v3 = vpack.c.bf16 %v2575_v22, %v9990_v56  ;;  %v2480_v28 = vadd.f32 %v8395_v10, %v2398_v45  ;;  %v2482_v42 = vadd.f32 %v2466_v7, %v2400_v52  ;;  %v2546_v27 = vadd.f32 %v9991_v12, %v2481_v48  ;;  %v6621_v9 = vld [vmem:[%s7031_s26 + $0x60] sm:$0xff]   ;;  %v6074_v45 = vld [vmem:[%s7747_s3 + $0x68] sm:$0xff]  ;;  %v6075_v48 = vld [vmem:[%s7747_s3 + $0x70] sm:$0xff]  ;;  %v2179_v7 = vpop.permute.xlu0 %2178 }
 0x407   : >> { %v2548_v15 = vadd.f32 %v9992_v32, %v2483_v31  ;;  %v2593_v23 = vpack.c.bf16 %v2572_v21, %v2570_v2  ;;  %v2568_v16 = vmax.f32 %v2552_v60, 0.0  ;;  %v2567_v43 = vmax.f32 %v2551_v17, 0.0  ;;  %v6063_v22 = vld [vmem:[%s7700_s14 + $0x60] sm:$0xff]  ;;  %2794 = vperm.xlu1 %6602, %v6064_v24   ;;  %v6076_v52 = vld [vmem:[%s7747_s3 + $0x78] sm:$0xff] }
 0x408   : >> { %v2592_v54 = vpack.c.bf16 %v2571_v20, %v2569_v55  ;;  %v2565_v62 = vmax.f32 %v2549_v38, 0.0  ;;  %v2545_v4 = vadd.f32 %v9991_v12, %v2480_v28  ;;  %v2547_v10 = vadd.f32 %v9992_v32, %v2482_v42  ;;  %2789 = vperm.xlu0 %6600, %v6063_v22   ;;  %v6073_v2 = vld [vmem:[%s7747_s3 + $0x60] sm:$0xff] }
 0x409   : >> { %2227 = vmatpush1.bf16.msra.mxu1 %v2162_v58  ;;  %v2562_v19 = vmax.f32 %v2546_v27, 0.0  ;;  %v2564_v40 = vmax.f32 %v2548_v15, 0.0  ;;  %v2591_v6 = vpack.c.bf16 %v2568_v16, %v2566_v57  ;;  %v2194_v31 = vpop.permute.xlu1 %2193 }
 0x40a   : >> { %2685 = vmatprep.subr.bf16.mxu1 %v2595_v1  ;;  %v2590_v5 = vpack.c.bf16 %v2567_v43, %v2565_v62  ;;  %v2561_v14 = vmax.f32 %v2545_v4, 0.0  ;;  %v2563_v41 = vmax.f32 %v2547_v10, 0.0  ;;  %v2189_v35 = vpop.permute.xlu0 %2188 }
 0x40b   : >> { %v2589_v29 = vpack.c.bf16 %v2564_v40, %v2562_v19  ;;  %2804 = vperm.xlu1 %6602, %v6066_v59  }
 0x40c   : >> { %5996 = vmatmul.mubr.msk.bf16.vlgmr.msra.gmra.mxu1 %vm831_vm0, %v6619_v18  ;;  %v2588_v46 = vpack.c.bf16 %v2563_v41, %v2561_v14  ;;  %2799 = vperm.xlu0 %6600, %v6065_v39  }
 0x40d   : >> { %2686 = vmatpush1.bf16.msra.mxu1 %v2594_v3  ;;  %2254 = vmatprep.mubr.bf16.mxu1 %v9718_v13  ;;  %v2286_v55 = vpop.permute.xlu1 %2285 }
 0x40e   : >> { %2687 = vmatprep.subr.bf16.mxu1 %v2593_v23  ;;  %v2281_v60 = vpop.permute.xlu0 %2280 }
 0x40f   : >> { %2896 = vperm.xlu1 %6602, %v6074_v45  }
 0x410   : >> { %2891 = vperm.xlu0 %6600, %v6073_v2  }
 0x411   : >> { %2688 = vmatpush1.bf16.msra.mxu1 %v2592_v54 }
 0x412   : >> { %2689 = vmatprep.subr.bf16.mxu1 %v2591_v6  ;;  %v2291_v23 = vpop.permute.xlu0 %2290 }
 0x413   : >> { %2906 = vperm.xlu1 %6602, %v6076_v52  }
 0x414   : >> { %5997 = vmatmul.mubr.msk.bf16.gmra.mxu1 %vm831_vm0, %v6620_v37  ;;  %2901 = vperm.xlu0 %6600, %v6075_v48   ;;  %v6079_v48 = vld [vmem:[%s7078_s25 + $0x10] sm:$0xf] }
 0x415   : >> { %2690 = vmatpush1.bf16.msra.mxu1 %v2590_v5  ;;  %2709 = vmatprep.mubr.bf16.mxu1 %v9718_v13  ;;  %v2296_v5 = vpop.permute.xlu1 %2295 }
 0x416   : >> { %2691 = vmatprep.subr.bf16.mxu1 %v2589_v29 }
 0x419   : >> { %2692 = vmatpush1.bf16.msra.mxu1 %v2588_v46 }
 0x41c   : >> { %6051 = vmatmul.mubr.msk.bf16.vlgmr.msra.gmra.mxu1 %vm831_vm0, %v6621_v9 }
 0x41d   : >> { %2719 = vmatprep.mubr.bf16.mxu1 %v9718_v13 }
 0x424   : >> { %6052 = vmatmul.mubr.msk.bf16.gmra.mxu1 %vm831_vm0, %v6622_v30 }
 0x425   : >> { %2729 = vmatprep.mubr.bf16.mxu1 %v9718_v13 }
 0x42c   : >> { %6053 = vmatmul.mubr.msk.bf16.gmra.mxu1 %vm831_vm0, %v6623_v26 }
 0x42d   : >> { %2739 = vmatprep.mubr.bf16.mxu1 %v9718_v13 }
 0x434   : >> { %6054 = vmatmul.mubr.msk.bf16.gmra.mxu1 %vm831_vm0, %v6624_v8 }
 0x435   : >> { %3466 = vmatprep.mubr.bf16.mxu1 %v9718_v13 }
 0x4cc   : >> { %v2246_v58 = vpop.f32.mrf.mxu1 }
 0x4cd   : >> { %v2247_v63 = vadd.f32 %v2246_v58, %v2179_v7  ;;  %v3060_v58 = vrot.slane %v6079_v48, %v9875_v47 }
 0x4ce   : >> { %v2248_v1 = vpop.f32.mrf.mxu1 }
 0x4cf   : >> { %v2249_v18 = vadd.f32 %v2248_v1, %v2179_v7  ;;  %v2265_v53 = vmax.f32 %v2247_v63, 0.0  ;;  %v3064_v1 = vrot.slane %v6079_v48, %v9876_v44 }
 0x4d0   : >> { %v2250_v21 = vpop.f32.mrf.mxu1 }
 0x4d1   : >> { %v2251_v56 = vadd.f32 %v2250_v21, %v2184_v11  ;;  %v2266_v3 = vmax.f32 %v2249_v18, 0.0  ;;  %v2298_v28 = vmul.f32 %v2281_v60, %v2265_v53  ;;  %v2994_v18 = vrot.slane %v6079_v48, %v9877_v49 }
 0x4d2   : >> { %v2252_v17 = vpop.f32.mrf.mxu1  ;;  %v2998_v21 = vrot.slane %v6079_v48, %v9878_v61 }
 0x4d3   : >> { %v2267_v20 = vmax.f32 %v2251_v56, 0.0  ;;  %v2253_v38 = vadd.f32 %v2252_v17, %v2184_v11  ;;  %v2299_v32 = vmul.f32 %v2281_v60, %v2266_v3  ;;  %v8544_v17 = vrot.slane %v3060_v58, %v9875_v47  ;;  %v10000_v58 = vld [vmem:[#allocation22_spill] sm:$0xff] }
 0x4d4   : >> { %v2256_v57 = vpop.f32.mrf.mxu1 }
 0x4d5   : >> { %v2268_v42 = vmax.f32 %v2253_v38, 0.0  ;;  %v2300_v12 = vmul.f32 %v2286_v55, %v2267_v20  ;;  %v2257_v27 = vadd.f32 %v2256_v57, %v2189_v35  ;;  %v8547_v38 = vrot.slane %v3064_v1, %v9875_v47  ;;  %v10001_v1 = vld [vmem:[#allocation97_spill] sm:$0xff] }
 0x4d6   : >> { %v2258_v15 = vpop.f32.mrf.mxu1  ;;  %v8550_v57 = vrot.slane %v2994_v18, %v9877_v49 }
 0x4d7   : >> { %v2301_v16 = vmul.f32 %v2286_v55, %v2268_v42  ;;  %v2306_v43 = vadd.f32 %v2300_v12, %v2298_v28  ;;  %v2269_v54 = vmax.f32 %v2257_v27, 0.0  ;;  %v2259_v62 = vadd.f32 %v2258_v15, %v2189_v35 }
 0x4d8   : >> { %v2260_v4 = vpop.f32.mrf.mxu1  ;;  %v8553_v28 = vrot.slane %v2998_v21, %v9877_v49  ;;  %v3019_v18 = vmul.f32 %v8550_v57, %v10001_v1 }
 0x4d9   : >> { %v2315_v10 = vadd.f32 %v2301_v16, %v2299_v32  ;;  %v2270_v19 = vmax.f32 %v2259_v62, 0.0  ;;  %v2302_v40 = vmul.f32 %v2291_v23, %v2269_v54  ;;  %v2261_v6 = vadd.f32 %v2260_v4, %v2194_v31  ;;  %v9993_v16 = vld [vmem:[#allocation76_spill] sm:$0xff]  ;;  %v9994_v62 = vld [vmem:[#allocation95_spill] sm:$0xff] }
 0x4da   : >> { %v2262_v37 = vpop.f32.mrf.mxu1  ;;  %v3088_v54 = vmul.f32 %v8547_v38, %v9993_v16  ;;  %v3021_v4 = vmul.f32 %v8550_v57, %v9994_v62 }
 0x4db   : >> { %v2303_v14 = vmul.f32 %v2291_v23, %v2270_v19  ;;  %v2307_v41 = vadd.f32 %v2306_v43, %v2302_v40  ;;  %v2271_v29 = vmax.f32 %v2261_v6, 0.0  ;;  %v2263_v46 = vadd.f32 %v2262_v37, %v2194_v31 }
 0x4dc   : >> { %v8524_v9 = vpop.f32.mrf.mxu1  ;;  %v3087_v43 = vmul.f32 %v8544_v17, %v9993_v16  ;;  %v10004_v16 = vld [vmem:[#allocation34_spill] sm:$0xff] }
 0x4dd   : >> { %v2316_v30 = vadd.f32 %v2315_v10, %v2303_v14  ;;  %v2272_v26 = vmax.f32 %v2263_v46, 0.0  ;;  %v2304_v8 = vmul.f32 %v2296_v5, %v2271_v29  ;;  %v3022_v10 = vmul.f32 %v8553_v28, %v9994_v62 }
 0x4de   : >> { %v8526_v22 = vpop.f32.mrf.mxu1  ;;  %v3103_v37 = vadd.f32 %v3087_v43, %v3021_v4 }
 0x4df   : >> { %v2305_v24 = vmul.f32 %v2296_v5, %v2272_v26  ;;  %v2308_v39 = vadd.f32 %v2307_v41, %v2304_v8  ;;  %v9995_v41 = vld [vmem:[#allocation78_spill] sm:$0xff] }
 0x4e0   : >> { %v8528_v59 = vpop.f32.mrf.mxu1  ;;  %v3079_v29 = vmul.f32 %v8544_v17, %v9995_v41  ;;  %v3080_v46 = vmul.f32 %v8547_v38, %v9995_v41 }
 0x4e1   : >> { %v2309_v2 = vrot.slane %v2308_v39, 4  ;;  %v2317_v45 = vadd.f32 %v2316_v30, %v2305_v24  ;;  %v9996_v30 = vld [vmem:[#allocation91_spill] sm:$0xff]  ;;  %v9997_v24 = vld [vmem:[#allocation88_spill] sm:$0xff] }
 0x4e2   : >> { %v8531_v52 = vpop.f32.mrf.mxu1  ;;  %v8574_v26 = vadd.f32 %v9996_v30, %v3103_v37  ;;  %v3014_v48 = vmul.f32 %v8553_v28, %v9997_v24 }
 0x4e3   : >> { %v2310_v7 = vadd.f32 %v2309_v2, %v2308_v39  ;;  %v2318_v11 = vrot.slane %v2317_v45, 4  ;;  %v9998_v2 = vld [vmem:[#allocation81_spill] sm:$0xff] }
 0x4e4   : >> { %v8533_v35 = vpop.f32.mrf.mxu1  ;;  %v8611_v41 = vadd.f32 %v3080_v46, %v3014_v48  ;;  %v10009_v48 = vld [vmem:[#allocation102_spill] sm:$0xff] }
 0x4e5   : >> { %v2311_v31 = vrot.slane %v2310_v7, 2  ;;  %v2319_v63 = vadd.f32 %v2318_v11, %v2317_v45  ;;  %v8583_v45 = vmul.f32 %v8544_v17, %v9998_v2 }
 0x4e6   : >> { %v8539_v53 = vpop.f32.mrf.mxu1 }
 0x4e7   : >> { %v2312_v60 = vadd.f32 %v2311_v31, %v2310_v7  ;;  %v2320_v56 = vrot.slane %v2319_v63, 2  ;;  %v9999_v7 = vld [vmem:[#allocation99_spill] sm:$0xff]  ;;  %v3089_v31 = vmul.f32 %v8544_v17, %v10000_v58 }
 0x4e8   : >> { %v8541_v3 = vpop.f32.mrf.mxu1  ;;  %v3023_v11 = vmul.f32 %v8550_v57, %v9999_v7  ;;  %v3024_v21 = vmul.f32 %v8553_v28, %v9999_v7 }
 0x4e9   : >> { %v2313_v55 = vrot.slane %v2312_v60, 1  ;;  %v2321_v20 = vadd.f32 %v2320_v56, %v2319_v63  ;;  %v8593_v63 = vmul.f32 %v8547_v38, %v9998_v2  ;;  %v10006_v2 = vld [vmem:[#allocation100_spill] sm:$0xff] }
 0x4ea   : >> { %v2727_v42 = vpop.f32.mrf.mxu1 }
 0x4eb   : >> { %v2314_v12 = vadd.f32 %v2313_v55, %v2312_v60  ;;  %v2322_v27 = vrot.slane %v2321_v20, 1  ;;  %v3090_v60 = vmul.f32 %v8547_v38, %v10000_v58  ;;  %v3020_v55 = vmul.f32 %v8553_v28, %v10001_v1 }
 0x4ec   : >> { %v2731_v32 = vpop.f32.mrf.mxu1 }
 0x4ed   : >> { %v2323_v15 = vadd.f32 %v2322_v27, %v2321_v20  ;;  %v8556_v23 = vsel %vm5382_vm2, %v8369_v33, %v2314_v12  ;;  %v3104_v33 = vadd.f32 %v3088_v54, %v3022_v10  ;;  %v10002_v20 = vld [vmem:[#allocation90_spill] sm:$0xff]  ;;  %v10003_v27 = vld [vmem:[#allocation84_spill] sm:$0xff]  ;;  %v3106_v7 = vadd.f32 %v3090_v60, %v3024_v21  ;;  %v10010_v60 = vld [vmem:[#allocation89_spill] sm:$0xff] }
 0x4ee   : >> { %v2733_v19 = vpop.f32.mrf.mxu1  ;;  %v3017_v21 = vmul.f32 %v8550_v57, %v10006_v2 }
 0x4ef   : >> { %v8567_v40 = vsel %vm5382_vm2, %v8379_v34, %v2323_v15  ;;  %v8577_v8 = vadd.f32 %v9996_v30, %v3104_v33  ;;  %v3013_v34 = vmul.f32 %v8550_v57, %v9997_v24  ;;  %v3105_v33 = vadd.f32 %v3089_v31, %v3023_v11  ;;  %v10005_v30 = vld [vmem:[#allocation86_spill] sm:$0xff] }
 0x4f0   : >> { %v2735_v6 = vpop.f32.mrf.mxu1  ;;  %v2734_v24 = vadd.f32 %v2733_v19, %v10005_v30  ;;  %v3085_v19 = vmul.f32 %v8544_v17, %v10009_v48  ;;  %v2732_v11 = vadd.f32 %v2731_v32, %v10005_v30  ;;  %v3086_v32 = vmul.f32 %v8547_v38, %v10009_v48 }
 0x4f1   : >> { %v3185_v62 = vmax.f32 %v8577_v8, 0.0  ;;  %v8608_v4 = vadd.f32 %v3079_v29, %v3013_v34  ;;  %v2736_v58 = vadd.f32 %v2735_v6, %v10002_v20  ;;  %v2724_v6 = vadd.f32 %v8539_v53, %v10010_v60 }
 0x4f2   : >> { %v2737_v5 = vpop.f32.mrf.mxu1  ;;  %v3101_v53 = vadd.f32 %v3085_v19, %v3019_v18 }
 0x4f3   : >> { %v2738_v12 = vadd.f32 %v2737_v5, %v10002_v20  ;;  %v2759_v20 = vmax.f32 %v2734_v24, 0.0  ;;  %v2755_v48 = vmax.f32 %v2724_v6, 0.0 }
 0x4f4   : >> { %v2741_v14 = vpop.f32.mrf.mxu1 }
 0x4f5   : >> { %v2742_v10 = vadd.f32 %v2741_v14, %v10003_v27  ;;  %v2761_v34 = vmax.f32 %v2738_v12, 0.0 }
 0x4f6   : >> { %v2743_v39 = vpop.f32.mrf.mxu1 }
 0x4f7   : >> { %v2744_v15 = vadd.f32 %v2743_v39, %v10003_v27  ;;  %v3018_v39 = vmul.f32 %v8553_v28, %v10006_v2  ;;  %v10008_v27 = vld [vmem:[#allocation101_spill] sm:$0xff]  ;;  %v2762_v31 = vmax.f32 %v2742_v10, 0.0  ;;  %v10011_v10 = vld [vmem:[#allocation26_spill] sm:$0xff]  ;;  %v2758_v2 = vmax.f32 %v2732_v11, 0.0 }
 0x4f8   : >> { %v2745_v56 = vpop.f32.mrf.mxu1  ;;  %v3084_v46 = vmul.f32 %v8547_v38, %v10008_v27  ;;  %v3083_v12 = vmul.f32 %v8544_v17, %v10008_v27  ;;  %v2716_v18 = vadd.f32 %v8528_v59, %v10011_v10  ;;  %v10016_v59 = vld [vmem:[#allocation106_spill] sm:$0xff] }
 0x4f9   : >> { %v2746_v43 = vadd.f32 %v2745_v56, %v10004_v16  ;;  %v10007_v56 = vld [vmem:[#allocation25_spill] sm:$0xff]  ;;  %v2763_v54 = vmax.f32 %v2744_v15, 0.0 }
 0x4fa   : >> { %v2747_v37 = vpop.f32.mrf.mxu1  ;;  %v2728_v29 = vadd.f32 %v2727_v42, %v10007_v56  ;;  %v2726_v15 = vadd.f32 %v8541_v3, %v10007_v56  ;;  %v3100_v24 = vadd.f32 %v3084_v46, %v3018_v39  ;;  %v10014_v56 = vld [vmem:[#allocation93_spill] sm:$0xff]  ;;  %v3099_v6 = vadd.f32 %v3083_v12, %v3017_v21 }
 0x4fb   : >> { %v2748_v5 = vadd.f32 %v2747_v37, %v10004_v16  ;;  %v2764_v1 = vmax.f32 %v2746_v43, 0.0  ;;  %v2760_v16 = vmax.f32 %v2736_v58, 0.0  ;;  %v2718_v37 = vadd.f32 %v8531_v52, %v10011_v10  ;;  %v10013_v58 = vld [vmem:[#allocation104_spill] sm:$0xff]  ;;  %v10015_v52 = vld [vmem:[#allocation105_spill] sm:$0xff] }
 0x4fc   : >> { %v2757_v30 = vmax.f32 %v2728_v29, 0.0  ;;  %v2714_v27 = vadd.f32 %v8526_v22, %v10014_v56  ;;  %v3082_v29 = vmul.f32 %v8547_v38, %v10015_v52  ;;  %v2756_v39 = vmax.f32 %v2726_v15, 0.0  ;;  %v10018_v10 = vld [vmem:[#allocation108_spill] sm:$0xff] }
 0x4fd   : >> { %v2765_v14 = vmax.f32 %v2748_v5, 0.0  ;;  %v2779_v43 = vpack.c.bf16 %v2764_v1, %v2762_v31  ;;  %v2778_v5 = vpack.c.bf16 %v2761_v34, %v2759_v20  ;;  %v3016_v1 = vmul.f32 %v8553_v28, %v10013_v58 }
 0x4fe   : >> { %v3102_v34 = vadd.f32 %v3086_v32, %v3020_v55  ;;  %v2776_v19 = vpack.c.bf16 %v2757_v30, %v2755_v48  ;;  %v3015_v11 = vmul.f32 %v8550_v57, %v10013_v58  ;;  %v3081_v22 = vmul.f32 %v8544_v17, %v10015_v52  ;;  %v10019_v30 = vld [vmem:[#allocation109_spill] sm:$0xff] }
 0x4ff   : >> { %v2780_v42 = vpack.c.bf16 %v2765_v14, %v2763_v54  ;;  %v2722_v54 = vadd.f32 %v8533_v35, %v10010_v60  ;;  %v10012_v14 = vld [vmem:[#allocation103_spill] sm:$0xff]  ;;  %v2777_v35 = vpack.c.bf16 %v2760_v16, %v2758_v2  ;;  %v2712_v31 = vadd.f32 %v8524_v9, %v10014_v56  ;;  %v10021_v56 = vld [vmem:[#allocation110_spill] sm:$0xff] }
 0x500   : >> { %v3171_v3 = vadd.f32 %v10012_v14, %v3106_v7  ;;  %v3170_v46 = vadd.f32 %v10012_v14, %v3105_v33  ;;  %v2753_v7 = vmax.f32 %v2718_v37, 0.0  ;;  %v3165_v20 = vadd.f32 %v10016_v59, %v3100_v24 }
 0x501   : >> { %2831 = vmatprep.subr.bf16.mxu0 %v2780_v42  ;;  %v2754_v60 = vmax.f32 %v2722_v54, 0.0  ;;  %v10017_v42 = vld [vmem:[#allocation107_spill] sm:$0xff]  ;;  %v2751_v33 = vmax.f32 %v2714_v27, 0.0  ;;  %v3098_v16 = vadd.f32 %v3082_v29, %v3016_v1  ;;  %v3012_v37 = vmul.f32 %v8553_v28, %v10018_v10 }
 0x502   : >> { %2832 = vmatpush1.bf16.msra.mxu0 %v2779_v43  ;;  %v3010_v55 = vmul.f32 %v8553_v28, %v10017_v42  ;;  %v3187_v15 = vmax.f32 %v3171_v3, 0.0  ;;  %v2752_v43 = vmax.f32 %v2716_v18, 0.0  ;;  %v3078_v9 = vmul.f32 %v8547_v38, %v10019_v30  ;;  %v10020_v54 = vld [vmem:[#allocation111_spill] sm:$0xff] }
 0x503   : >> { %2833 = vmatprep.subr.bf16.mxu0 %v2778_v5  ;;  %v2775_v32 = vpack.c.bf16 %v2756_v39, %v2754_v60  ;;  %v2774_v5 = vpack.c.bf16 %v2753_v7, %v2751_v33  ;;  %v3167_v21 = vadd.f32 %v10020_v54, %v3102_v34  ;;  %v3166_v12 = vadd.f32 %v10020_v54, %v3101_v53  ;;  %v6625_v18 = vld [vmem:[%s7408_s2 + $0x30] sm:$0xff]  }
 0x504   : >> { %v3186_v24 = vmax.f32 %v3170_v46, 0.0  ;;  %v3097_v2 = vadd.f32 %v3081_v22, %v3015_v11  ;;  %v2750_v14 = vmax.f32 %v2712_v31, 0.0  ;;  %v3164_v3 = vadd.f32 %v10016_v59, %v3099_v6  ;;  %v10024_v11 = vld [vmem:[#allocation112_spill] sm:$0xff]  ;;  %v6629_v54 = vld [vmem:[%s7031_s26 + $0x90] sm:$0xff]  }
 0x505   : >> { %v3181_v58 = vmax.f32 %v3165_v20, 0.0  ;;  %v3009_v1 = vmul.f32 %v8550_v57, %v10017_v42  ;;  %v3092_v28 = vadd.f32 %v8593_v63, %v3010_v55  ;;  %v3011_v38 = vmul.f32 %v8550_v57, %v10018_v10  ;;  %v10025_v31 = vld [vmem:[#allocation56_spill] sm:$0xff] }
 0x506   : >> { %2834 = vmatpush1.bf16.msra.mxu0 %v2777_v35  ;;  %v3077_v53 = vmul.f32 %v8544_v17, %v10019_v30  ;;  %v3161_v27 = vadd.f32 %v10021_v56, %v8611_v41  ;;  %v2773_v48 = vpack.c.bf16 %v2752_v43, %v2750_v14  ;;  %v3094_v52 = vadd.f32 %v3078_v9, %v3012_v37  ;;  %v10022_v35 = vld [vmem:[#allocation113_spill] sm:$0xff]  ;;  %v6148_v14 = vld [vmem:[%s7747_s3 + $0x90] sm:$0xff] }
 0x507   : >> { %2835 = vmatprep.subr.bf16.mxu0 %v2776_v19  ;;  %v3206_v29 = vpack.c.bf16 %v3187_v15, %v3185_v62  ;;  %v3183_v39 = vmax.f32 %v3167_v21, 0.0  ;;  %v3163_v34 = vadd.f32 %v10022_v35, %v3098_v16  ;;  %v10023_v63 = vmax.f32 %v8574_v26, 0.0  ;;  %v6626_v16 = vld [vmem:[%s7408_s2 + $0x38] sm:$0xff]   ;;  %v6627_v9 = vld [vmem:[%s7031_s26 + $0x80] sm:$0xff]  }
 0x508   : >> { %v3162_v57 = vadd.f32 %v10022_v35, %v3097_v2  ;;  %v3180_v7 = vmax.f32 %v3164_v3, 0.0  ;;  %v3182_v17 = vmax.f32 %v3166_v12, 0.0  ;;  %v3160_v41 = vadd.f32 %v10021_v56, %v8608_v4  ;;  %v6630_v21 = vld [vmem:[%s7031_s26 + $0x98] sm:$0xff]   ;;  %v6136_v12 = vld [vmem:[%s7700_s14 + $0x80] sm:$0xff]  ;;  %v6137_v3 = vld [vmem:[%s7700_s14 + $0x88] sm:$0xff]  ;;  %v2795_v56 = vpop.permute.xlu1 %2794 }
 0x509   : >> { %v3205_v46 = vpack.c.bf16 %v3186_v24, %v10023_v63  ;;  %v3177_v19 = vmax.f32 %v3161_v27, 0.0  ;;  %v3091_v8 = vadd.f32 %v8583_v45, %v3009_v1  ;;  %v3093_v62 = vadd.f32 %v3077_v53, %v3011_v38  ;;  %3400 = vperm.xlu0 %6600, %v6136_v12   ;;  %v6138_v24 = vld [vmem:[%s7700_s14 + $0x90] sm:$0xff]  ;;  %v6146_v2 = vld [vmem:[%s7747_s3 + $0x80] sm:$0xff]  ;;  %3405 = vperm.xlu1 %6602, %v6137_v3   ;;  %v6210_v1 = vld [vmem:[%s7700_s14 + $0xa8] sm:$0xff]  ;;  %v2790_v53 = vpop.permute.xlu0 %2789 }
 0x50a   : >> { %2836 = vmatpush1.bf16.msra.mxu0 %v2775_v32  ;;  %v3157_v22 = vadd.f32 %v10024_v11, %v3092_v28  ;;  %v3159_v60 = vadd.f32 %v10025_v31, %v3094_v52  ;;  %v3204_v26 = vpack.c.bf16 %v3183_v39, %v3181_v58  ;;  %v3179_v6 = vmax.f32 %v3163_v34, 0.0  ;;  %v6139_v58 = vld [vmem:[%s7700_s14 + $0x98] sm:$0xff]  ;;  %v6147_v28 = vld [vmem:[%s7747_s3 + $0x88] sm:$0xff]  ;;  %v6355_v27 = vld [vmem:[%s7700_s14 + $0xe0] sm:$0xff] }
 0x50b   : >> { %2837 = vmatprep.subr.bf16.mxu0 %v2774_v5  ;;  %v3178_v59 = vmax.f32 %v3162_v57, 0.0  ;;  %v3203_v20 = vpack.c.bf16 %v3182_v17, %v3180_v7  ;;  %v3176_v4 = vmax.f32 %v3160_v41, 0.0  ;;  %v3156_v42 = vadd.f32 %v10024_v11, %v3091_v8  ;;  %v6628_v5 = vld [vmem:[%s7031_s26 + $0x88] sm:$0xff]   ;;  %v6284_v52 = vld [vmem:[%s7700_s14 + $0xd0] sm:$0xff]  ;;  %v6219_v63 = vld [vmem:[%s7747_s3 + $0xa0] sm:$0xff] }
 0x50c   : >> { %v3158_v45 = vadd.f32 %v10025_v31, %v3093_v62  ;;  %v3173_v55 = vmax.f32 %v3157_v22, 0.0  ;;  %v3175_v33 = vmax.f32 %v3159_v60, 0.0  ;;  %v3202_v15 = vpack.c.bf16 %v3179_v6, %v3177_v19  ;;  %v6283_v38 = vld [vmem:[%s7700_s14 + $0xc8] sm:$0xff]  ;;  %v6357_v22 = vld [vmem:[%s7700_s14 + $0xf0] sm:$0xff] }
 0x50d   : >> { %v3201_v43 = vpack.c.bf16 %v3178_v59, %v3176_v4  ;;  %v3172_v32 = vmax.f32 %v3156_v42, 0.0  ;;  %3410 = vperm.xlu0 %6600, %v6138_v24   ;;  %3415 = vperm.xlu1 %6602, %v6139_v58  }
 0x50e   : >> { %2838 = vmatpush1.bf16.msra.mxu0 %v2773_v48  ;;  %v3174_v10 = vmax.f32 %v3158_v45, 0.0  ;;  %v3200_v37 = vpack.c.bf16 %v3175_v33, %v3173_v55  ;;  %v2800_v48 = vpop.permute.xlu0 %2799 }
 0x50f   : >> { %3296 = vmatprep.subr.bf16.mxu0 %v3206_v29 }
 0x510   : >> { %v3199_v30 = vpack.c.bf16 %v3174_v10, %v3172_v32 }
 0x511   : >> { %6069 = vmatmul.mubr.msk.bf16.vlgmr.msra.gmra.mxu0 %vm831_vm0, %v6625_v18  ;;  %3502 = vperm.xlu0 %6600, %v6146_v2   ;;  %v2805_v18 = vpop.permute.xlu1 %2804  ;;  %v6221_v2 = vld [vmem:[%s7747_s3 + $0xb0] sm:$0xff] }
 0x512   : >> { %3297 = vmatpush1.bf16.msra.mxu0 %v3205_v46  ;;  %2865 = vmatprep.mubr.bf16.mxu0 %v9718_v13  ;;  %v2892_v7 = vpop.permute.xlu0 %2891 }
 0x513   : >> { %3298 = vmatprep.subr.bf16.mxu0 %v3204_v26  ;;  %3507 = vperm.xlu1 %6602, %v6147_v28  }
 0x515   : >> { %3512 = vperm.xlu0 %6600, %v6148_v14   ;;  %v2897_v8 = vpop.permute.xlu1 %2896 }
 0x516   : >> { %3299 = vmatpush1.bf16.msra.mxu0 %v3203_v20  ;;  %v2902_v42 = vpop.permute.xlu0 %2901 }
 0x517   : >> { %3300 = vmatprep.subr.bf16.mxu0 %v3202_v15 }
 0x519   : >> { %6070 = vmatmul.mubr.msk.bf16.gmra.mxu0 %vm831_vm0, %v6626_v16  ;;  %4016 = vperm.xlu0 %6600, %v6210_v1   ;;  %v6292_v16 = vld [vmem:[%s7747_s3 + $0xc0] sm:$0xff] }
 0x51a   : >> { %3301 = vmatpush1.bf16.msra.mxu0 %v3201_v43  ;;  %3320 = vmatprep.mubr.bf16.mxu0 %v9718_v13 }
 0x51b   : >> { %3302 = vmatprep.subr.bf16.mxu0 %v3200_v37 }
 0x51d   : >> { %4627 = vperm.xlu0 %6600, %v6283_v38  }
 0x51e   : >> { %3303 = vmatpush1.bf16.msra.mxu0 %v3199_v30 }
 0x521   : >> { %6124 = vmatmul.mubr.msk.bf16.vlgmr.msra.gmra.mxu0 %vm831_vm0, %v6627_v9  ;;  %5233 = vperm.xlu0 %6600, %v6355_v27  }
 0x522   : >> { %3330 = vmatprep.mubr.bf16.mxu0 %v9718_v13 }
 0x525   : >> { %4632 = vperm.xlu0 %6600, %v6284_v52  }
 0x529   : >> { %6125 = vmatmul.mubr.msk.bf16.gmra.mxu0 %vm831_vm0, %v6628_v5  ;;  %4113 = vperm.xlu0 %6600, %v6219_v63   ;;  %v2907_v5 = vpop.permute.xlu1 %2906 }
 0x52a   : >> { %3340 = vmatprep.mubr.bf16.mxu0 %v9718_v13 }
 0x52d   : >> { %5243 = vperm.xlu0 %6600, %v6357_v22  }
 0x531   : >> { %6126 = vmatmul.mubr.msk.bf16.gmra.mxu0 %vm831_vm0, %v6629_v54  ;;  %4724 = vperm.xlu0 %6600, %v6292_v16   ;;  %v10026_v16 = vld [vmem:[#allocation115_spill] sm:$0xff] }
 0x532   : >> { %3350 = vmatprep.mubr.bf16.mxu0 %v9718_v13 }
 0x535   : >> { %4123 = vperm.xlu0 %6600, %v6221_v2   ;;  %v10028_v2 = vld [vmem:[#allocation117_spill] sm:$0xff] }
 0x539   : >> { %6127 = vmatmul.mubr.msk.bf16.gmra.mxu0 %vm831_vm0, %v6630_v21 }
 0x53a   : >> { %4077 = vmatprep.mubr.bf16.mxu0 %v9718_v13 }
 0x5d1   : >> { %v2857_v29 = vpop.f32.mrf.mxu0 }
 0x5d2   : >> { %v2858_v39 = vadd.f32 %v2857_v29, %v2790_v53  ;;  %v6152_v29 = vld [vmem:[%s7078_s25 + $0x14] sm:$0xf] }
 0x5d3   : >> { %v2859_v35 = vpop.f32.mrf.mxu0 }
 0x5d4   : >> { %v2860_v34 = vadd.f32 %v2859_v35, %v2790_v53  ;;  %v2876_v57 = vmax.f32 %v2858_v39, 0.0 }
 0x5d5   : >> { %v2861_v46 = vpop.f32.mrf.mxu0 }
 0x5d6   : >> { %v2862_v17 = vadd.f32 %v2861_v46, %v2795_v56  ;;  %v2877_v41 = vmax.f32 %v2860_v34, 0.0  ;;  %v2909_v60 = vmul.f32 %v2892_v7, %v2876_v57  ;;  %v6149_v34 = vld [vmem:[%s7747_s3 + $0x98] sm:$0xff]  ;;  %v3671_v46 = vrot.slane %v6152_v29, %v9875_v47 }
 0x5d7   : >> { %v2863_v19 = vpop.f32.mrf.mxu0 }
 0x5d8   : >> { %v2878_v62 = vmax.f32 %v2862_v17, 0.0  ;;  %v2864_v11 = vadd.f32 %v2863_v19, %v2795_v56  ;;  %v2910_v20 = vmul.f32 %v2892_v7, %v2877_v41  ;;  %v6365_v56 = vld [vmem:[%s7747_s3 + $0xe0] sm:$0xff]  ;;  %v3675_v17 = vrot.slane %v6152_v29, %v9876_v44 }
 0x5d9   : >> { %v2867_v31 = vpop.f32.mrf.mxu0  ;;  %5335 = vperm.xlu0 %6600, %v6365_v56   ;;  %v3605_v41 = vrot.slane %v6152_v29, %v9877_v49  ;;  %v3609_v19 = vrot.slane %v6152_v29, %v9878_v61  ;;  %v10030_v56 = vld [vmem:[#allocation137_spill] sm:$0xff] }
 0x5da   : >> { %v2879_v26 = vmax.f32 %v2864_v11, 0.0  ;;  %v2911_v6 = vmul.f32 %v2897_v8, %v2878_v62  ;;  %v2868_v59 = vadd.f32 %v2867_v31, %v2800_v48  ;;  %v8741_v31 = vrot.slane %v3671_v46, %v9875_v47  ;;  %v10033_v46 = vld [vmem:[#allocation46_spill] sm:$0xff] }
 0x5db   : >> { %v2869_v4 = vpop.f32.mrf.mxu0 }
 0x5dc   : >> { %v2912_v45 = vmul.f32 %v2897_v8, %v2879_v26  ;;  %v2917_v55 = vadd.f32 %v2911_v6, %v2909_v60  ;;  %v2880_v33 = vmax.f32 %v2868_v59, 0.0  ;;  %v2870_v15 = vadd.f32 %v2869_v4, %v2800_v48 }
 0x5dd   : >> { %v2871_v43 = vpop.f32.mrf.mxu0  ;;  %3517 = vperm.xlu0 %6600, %v6149_v34   ;;  %v8744_v6 = vrot.slane %v3675_v17, %v9875_v47  ;;  %v8747_v59 = vrot.slane %v3605_v41, %v9877_v49  ;;  %v10034_v17 = vld [vmem:[#allocation132_spill] sm:$0xff] }
 0x5de   : >> { %v2926_v32 = vadd.f32 %v2912_v45, %v2910_v20  ;;  %v2881_v10 = vmax.f32 %v2870_v15, 0.0  ;;  %v2913_v37 = vmul.f32 %v2902_v42, %v2880_v33  ;;  %v2872_v30 = vadd.f32 %v2871_v43, %v2805_v18 }
 0x5df   : >> { %v2873_v9 = vpop.f32.mrf.mxu0  ;;  %v8750_v20 = vrot.slane %v3609_v19, %v9877_v49  ;;  %v3698_v43 = vmul.f32 %v8741_v31, %v10026_v16  ;;  %v3630_v41 = vmul.f32 %v8747_v59, %v10034_v17 }
 0x5e0   : >> { %v2914_v54 = vmul.f32 %v2902_v42, %v2881_v10  ;;  %v2918_v21 = vadd.f32 %v2917_v55, %v2913_v37  ;;  %v2882_v12 = vmax.f32 %v2872_v30, 0.0  ;;  %v2874_v24 = vadd.f32 %v2873_v9, %v2805_v18  ;;  %v10027_v10 = vld [vmem:[#allocation130_spill] sm:$0xff] }
 0x5e1   : >> { %v8719_v14 = vpop.f32.mrf.mxu0  ;;  %v3632_v37 = vmul.f32 %v8747_v59, %v10027_v10  ;;  %v3633_v30 = vmul.f32 %v8750_v20, %v10027_v10 }
 0x5e2   : >> { %v2927_v3 = vadd.f32 %v2926_v32, %v2914_v54  ;;  %v2883_v58 = vmax.f32 %v2874_v24, 0.0  ;;  %v2915_v1 = vmul.f32 %v2907_v5, %v2882_v12  ;;  %v3699_v32 = vmul.f32 %v8744_v6, %v10026_v16  ;;  %v10037_v16 = vld [vmem:[#allocation114_spill] sm:$0xff] }
 0x5e3   : >> { %v8721_v28 = vpop.f32.mrf.mxu0 }
 0x5e4   : >> { %v2916_v38 = vmul.f32 %v2907_v5, %v2883_v58  ;;  %v2919_v53 = vadd.f32 %v2918_v21, %v2915_v1  ;;  %v3714_v21 = vadd.f32 %v3698_v43, %v3632_v37  ;;  %v3691_v58 = vmul.f32 %v8744_v6, %v10028_v2  ;;  %v10029_v1 = vld [vmem:[#allocation135_spill] sm:$0xff] }
 0x5e5   : >> { %v8724_v27 = vpop.f32.mrf.mxu0 }
 0x5e6   : >> { %v2920_v48 = vrot.slane %v2919_v53, 4  ;;  %v2928_v52 = vadd.f32 %v2927_v3, %v2916_v38  ;;  %v3690_v3 = vmul.f32 %v8741_v31, %v10028_v2  ;;  %v8771_v38 = vadd.f32 %v10029_v1, %v3714_v21 }
 0x5e7   : >> { %v8727_v39 = vpop.f32.mrf.mxu0 }
 0x5e8   : >> { %v2921_v18 = vadd.f32 %v2920_v48, %v2919_v53  ;;  %v2929_v35 = vrot.slane %v2928_v52, 4 }
 0x5e9   : >> { %v8730_v63 = vpop.f32.mrf.mxu0 }
 0x5ea   : >> { %v2922_v57 = vrot.slane %v2921_v18, 2  ;;  %v2930_v7 = vadd.f32 %v2929_v35, %v2928_v52  ;;  %v10031_v52 = vld [vmem:[#allocation120_spill] sm:$0xff]  ;;  %v10032_v35 = vld [vmem:[#allocation121_spill] sm:$0xff] }
 0x5eb   : >> { %v8736_v8 = vpop.f32.mrf.mxu0  ;;  %v8780_v29 = vmul.f32 %v8741_v31, %v10031_v52  ;;  %v3634_v34 = vmul.f32 %v8747_v59, %v10032_v35  ;;  %v3635_v19 = vmul.f32 %v8750_v20, %v10032_v35 }
 0x5ec   : >> { %v2923_v62 = vadd.f32 %v2922_v57, %v2921_v18  ;;  %v2931_v11 = vrot.slane %v2930_v7, 2  ;;  %v3625_v18 = vmul.f32 %v8750_v20, %v10030_v56  ;;  %v3700_v57 = vmul.f32 %v8741_v31, %v10033_v46 }
 0x5ed   : >> { %v8738_v22 = vpop.f32.mrf.mxu0 }
 0x5ee   : >> { %v2924_v60 = vrot.slane %v2923_v62, 1  ;;  %v2932_v26 = vadd.f32 %v2931_v11, %v2930_v7  ;;  %v8790_v7 = vmul.f32 %v8744_v6, %v10031_v52  ;;  %v8808_v2 = vadd.f32 %v3691_v58, %v3625_v18  ;;  %v10039_v52 = vld [vmem:[#allocation124_spill] sm:$0xff]  ;;  %v10042_v18 = vld [vmem:[#allocation127_spill] sm:$0xff] }
 0x5ef   : >> { %v3338_v4 = vpop.f32.mrf.mxu0 }
 0x5f0   : >> { %v2925_v42 = vadd.f32 %v2924_v60, %v2923_v62  ;;  %v2933_v45 = vrot.slane %v2932_v26, 1  ;;  %v3701_v62 = vmul.f32 %v8744_v6, %v10033_v46  ;;  %v3631_v60 = vmul.f32 %v8750_v20, %v10034_v17 }
 0x5f1   : >> { %v3342_v55 = vpop.f32.mrf.mxu0 }
 0x5f2   : >> { %v2934_v33 = vadd.f32 %v2933_v45, %v2932_v26  ;;  %v8753_v15 = vsel %vm5385_vm3, %v8556_v23, %v2925_v42  ;;  %v3715_v23 = vadd.f32 %v3699_v32, %v3633_v30  ;;  %v10035_v26 = vld [vmem:[#allocation116_spill] sm:$0xff]  ;;  %v10036_v45 = vld [vmem:[#allocation122_spill] sm:$0xff]  ;;  %v3717_v35 = vadd.f32 %v3701_v62, %v3635_v19  ;;  %v10043_v62 = vld [vmem:[#allocation125_spill] sm:$0xff] }
 0x5f3   : >> { %v3344_v9 = vpop.f32.mrf.mxu0  ;;  %v3628_v19 = vmul.f32 %v8747_v59, %v10039_v52 }
 0x5f4   : >> { %v8764_v5 = vsel %vm5385_vm3, %v8567_v40, %v2934_v33  ;;  %v8774_v53 = vadd.f32 %v10029_v1, %v3715_v23  ;;  %v3624_v40 = vmul.f32 %v8747_v59, %v10030_v56  ;;  %v3716_v23 = vadd.f32 %v3700_v57, %v3634_v34  ;;  %v10038_v1 = vld [vmem:[#allocation123_spill] sm:$0xff] }
 0x5f5   : >> { %v3346_v54 = vpop.f32.mrf.mxu0  ;;  %v3345_v56 = vadd.f32 %v3344_v9, %v10038_v1  ;;  %v3696_v9 = vmul.f32 %v8741_v31, %v10042_v18  ;;  %v3343_v34 = vadd.f32 %v3342_v55, %v10038_v1  ;;  %v3697_v55 = vmul.f32 %v8744_v6, %v10042_v18 }
 0x5f6   : >> { %v3796_v10 = vmax.f32 %v8774_v53, 0.0  ;;  %v8805_v37 = vadd.f32 %v3690_v3, %v3624_v40  ;;  %v3347_v46 = vadd.f32 %v3346_v54, %v10035_v26  ;;  %v3335_v54 = vadd.f32 %v8736_v8, %v10043_v62 }
 0x5f7   : >> { %v3348_v12 = vpop.f32.mrf.mxu0  ;;  %v3712_v8 = vadd.f32 %v3696_v9, %v3630_v41 }
 0x5f8   : >> { %v3349_v42 = vadd.f32 %v3348_v12, %v10035_v26  ;;  %v3370_v26 = vmax.f32 %v3345_v56, 0.0  ;;  %v3366_v18 = vmax.f32 %v3335_v54, 0.0 }
 0x5f9   : >> { %v3352_v24 = vpop.f32.mrf.mxu0 }
 0x5fa   : >> { %v3353_v30 = vadd.f32 %v3352_v24, %v10036_v45  ;;  %v3372_v40 = vmax.f32 %v3349_v42, 0.0 }
 0x5fb   : >> { %v3354_v48 = vpop.f32.mrf.mxu0 }
 0x5fc   : >> { %v3355_v33 = vadd.f32 %v3354_v48, %v10036_v45  ;;  %v3629_v48 = vmul.f32 %v8750_v20, %v10039_v52  ;;  %v10041_v45 = vld [vmem:[#allocation126_spill] sm:$0xff]  ;;  %v3373_v57 = vmax.f32 %v3353_v30, 0.0  ;;  %v10044_v30 = vld [vmem:[#allocation119_spill] sm:$0xff]  ;;  %v3369_v52 = vmax.f32 %v3343_v34, 0.0 }
 0x5fd   : >> { %v3356_v11 = vpop.f32.mrf.mxu0  ;;  %v3695_v58 = vmul.f32 %v8744_v6, %v10041_v45  ;;  %v3694_v42 = vmul.f32 %v8741_v31, %v10041_v45  ;;  %v3327_v41 = vadd.f32 %v8724_v27, %v10044_v30  ;;  %v10049_v27 = vld [vmem:[#allocation134_spill] sm:$0xff] }
 0x5fe   : >> { %v3357_v43 = vadd.f32 %v3356_v11, %v10037_v16  ;;  %v10040_v11 = vld [vmem:[#allocation118_spill] sm:$0xff]  ;;  %v3374_v32 = vmax.f32 %v3355_v33, 0.0 }
 0x5ff   : >> { %v3358_v21 = vpop.f32.mrf.mxu0  ;;  %v3339_v3 = vadd.f32 %v3338_v4, %v10040_v11  ;;  %v3337_v33 = vadd.f32 %v8738_v22, %v10040_v11  ;;  %v3711_v56 = vadd.f32 %v3695_v58, %v3629_v48  ;;  %v10047_v11 = vld [vmem:[#allocation128_spill] sm:$0xff]  ;;  %v3710_v54 = vadd.f32 %v3694_v42, %v3628_v19 }
 0x600   : >> { %v3359_v12 = vadd.f32 %v3358_v21, %v10037_v16  ;;  %v3375_v17 = vmax.f32 %v3357_v43, 0.0  ;;  %v3371_v16 = vmax.f32 %v3347_v46, 0.0  ;;  %v3329_v21 = vadd.f32 %v8727_v39, %v10044_v30  ;;  %v10046_v46 = vld [vmem:[#allocation131_spill] sm:$0xff]  ;;  %v10048_v39 = vld [vmem:[#allocation133_spill] sm:$0xff]  ;;  %v10051_v30 = vld [vmem:[#allocation138_spill] sm:$0xff] }
 0x601   : >> { %v3368_v1 = vmax.f32 %v3339_v3, 0.0  ;;  %v3325_v45 = vadd.f32 %v8721_v28, %v10047_v11  ;;  %v3693_v3 = vmul.f32 %v8744_v6, %v10048_v39  ;;  %v3367_v48 = vmax.f32 %v3337_v33, 0.0 }
 0x602   : >> { %v3376_v24 = vmax.f32 %v3359_v12, 0.0  ;;  %v3390_v43 = vpack.c.bf16 %v3375_v17, %v3373_v57  ;;  %v3389_v12 = vpack.c.bf16 %v3372_v40, %v3370_v26  ;;  %v3627_v17 = vmul.f32 %v8750_v20, %v10046_v46 }
 0x603   : >> { %v3713_v40 = vadd.f32 %v3697_v55, %v3631_v60  ;;  %v3387_v9 = vpack.c.bf16 %v3368_v1, %v3366_v18  ;;  %v3626_v34 = vmul.f32 %v8747_v59, %v10046_v46  ;;  %v3692_v28 = vmul.f32 %v8741_v31, %v10048_v39  ;;  %v10052_v1 = vld [vmem:[#allocation140_spill] sm:$0xff] }
 0x604   : >> { %v3391_v4 = vpack.c.bf16 %v3376_v24, %v3374_v32  ;;  %v3333_v32 = vadd.f32 %v8730_v63, %v10043_v62  ;;  %v10045_v24 = vld [vmem:[#allocation129_spill] sm:$0xff]  ;;  %v3388_v63 = vpack.c.bf16 %v3371_v16, %v3369_v52  ;;  %v3323_v57 = vadd.f32 %v8719_v14, %v10047_v11 }
 0x605   : >> { %v3782_v22 = vadd.f32 %v10045_v24, %v3717_v35  ;;  %v3781_v58 = vadd.f32 %v10045_v24, %v3716_v23  ;;  %v3364_v35 = vmax.f32 %v3329_v21, 0.0  ;;  %v3776_v26 = vadd.f32 %v10049_v27, %v3711_v56  ;;  %v10054_v11 = vld [vmem:[#allocation141_spill] sm:$0xff] }
 0x606   : >> { %3442 = vmatprep.subr.bf16.mxu1 %v3391_v4  ;;  %v3365_v62 = vmax.f32 %v3333_v32, 0.0  ;;  %v10050_v4 = vld [vmem:[#allocation136_spill] sm:$0xff]  ;;  %v3362_v23 = vmax.f32 %v3325_v45, 0.0  ;;  %v3709_v16 = vadd.f32 %v3693_v3, %v3627_v17  ;;  %v3623_v21 = vmul.f32 %v8750_v20, %v10051_v30  ;;  %v10053_v32 = vld [vmem:[#allocation139_spill] sm:$0xff] }
 0x607   : >> { %3443 = vmatpush1.bf16.msra.mxu1 %v3390_v43  ;;  %v3621_v60 = vmul.f32 %v8750_v20, %v10050_v4  ;;  %v3798_v33 = vmax.f32 %v3782_v22, 0.0  ;;  %v3363_v43 = vmax.f32 %v3327_v41, 0.0  ;;  %v3689_v14 = vmul.f32 %v8744_v6, %v10052_v1  ;;  %v6631_v41 = vld [vmem:[%s7408_s2 + $0x40] sm:$0xff]  }
 0x608   : >> { %3444 = vmatprep.subr.bf16.mxu1 %v3389_v12  ;;  %v3386_v55 = vpack.c.bf16 %v3367_v48, %v3365_v62  ;;  %v3385_v12 = vpack.c.bf16 %v3364_v35, %v3362_v23  ;;  %v3778_v19 = vadd.f32 %v10053_v32, %v3713_v40  ;;  %v3777_v42 = vadd.f32 %v10053_v32, %v3712_v8  ;;  %v6635_v32 = vld [vmem:[%s7031_s26 + $0xb0] sm:$0xff]  }
 0x609   : >> { %v3797_v56 = vmax.f32 %v3781_v58, 0.0  ;;  %v3708_v52 = vadd.f32 %v3692_v28, %v3626_v34  ;;  %v3361_v24 = vmax.f32 %v3323_v57, 0.0  ;;  %v3775_v22 = vadd.f32 %v10049_v27, %v3710_v54  ;;  %v10057_v34 = vld [vmem:[#allocation143_spill] sm:$0xff]  ;;  %v10058_v57 = vld [vmem:[#allocation80_spill] sm:$0xff] }
 0x60a   : >> { %v3792_v46 = vmax.f32 %v3776_v26, 0.0  ;;  %v3620_v17 = vmul.f32 %v8747_v59, %v10050_v4  ;;  %v3703_v20 = vadd.f32 %v8790_v7, %v3621_v60  ;;  %v3622_v6 = vmul.f32 %v8747_v59, %v10051_v30 }
 0x60b   : >> { %3445 = vmatpush1.bf16.msra.mxu1 %v3388_v63  ;;  %v3688_v8 = vmul.f32 %v8741_v31, %v10052_v1  ;;  %v3772_v45 = vadd.f32 %v10054_v11, %v8808_v2  ;;  %v3384_v18 = vpack.c.bf16 %v3363_v43, %v3361_v24  ;;  %v3705_v39 = vadd.f32 %v3689_v14, %v3623_v21  ;;  %v10055_v63 = vld [vmem:[#allocation142_spill] sm:$0xff]  ;;  %v6633_v14 = vld [vmem:[%s7031_s26 + $0xa0] sm:$0xff]  }
 0x60c   : >> { %3446 = vmatprep.subr.bf16.mxu1 %v3387_v9  ;;  %v3817_v3 = vpack.c.bf16 %v3798_v33, %v3796_v10  ;;  %v3794_v48 = vmax.f32 %v3778_v19, 0.0  ;;  %v3774_v40 = vadd.f32 %v10055_v63, %v3709_v16  ;;  %v10056_v7 = vmax.f32 %v8771_v38, 0.0  ;;  %v6632_v16 = vld [vmem:[%s7408_s2 + $0x48] sm:$0xff]   ;;  %v6636_v19 = vld [vmem:[%s7031_s26 + $0xb8] sm:$0xff]  }
 0x60d   : >> { %v3773_v59 = vadd.f32 %v10055_v63, %v3708_v52  ;;  %v3791_v35 = vmax.f32 %v3775_v22, 0.0  ;;  %v3793_v31 = vmax.f32 %v3777_v42, 0.0  ;;  %v3771_v2 = vadd.f32 %v10054_v11, %v8805_v37  ;;  %v3401_v42 = vpop.permute.xlu0 %3400  ;;  %v6222_v11 = vld [vmem:[%s7747_s3 + $0xb8] sm:$0xff] }
 0x60e   : >> { %v3816_v58 = vpack.c.bf16 %v3797_v56, %v10056_v7  ;;  %v3788_v9 = vmax.f32 %v3772_v45, 0.0  ;;  %v3702_v53 = vadd.f32 %v8780_v29, %v3620_v17  ;;  %v3704_v10 = vadd.f32 %v3688_v8, %v3622_v6  ;;  %v6209_v6 = vld [vmem:[%s7700_s14 + $0xa0] sm:$0xff]  ;;  %4128 = vperm.xlu0 %6600, %v6222_v11   ;;  %v6212_v63 = vld [vmem:[%s7700_s14 + $0xb8] sm:$0xff]  ;;  %v6220_v7 = vld [vmem:[%s7747_s3 + $0xa8] sm:$0xff] }
 0x60f   : >> { %3447 = vmatpush1.bf16.msra.mxu1 %v3386_v55  ;;  %v3768_v28 = vadd.f32 %v10057_v34, %v3703_v20  ;;  %v3770_v62 = vadd.f32 %v10058_v57, %v3705_v39  ;;  %v3815_v38 = vpack.c.bf16 %v3794_v48, %v3792_v46  ;;  %v3790_v54 = vmax.f32 %v3774_v40, 0.0  ;;  %4011 = vperm.xlu1 %6602, %v6209_v6   ;;  %v6282_v8 = vld [vmem:[%s7700_s14 + $0xc0] sm:$0xff]  ;;  %v6211_v39 = vld [vmem:[%s7700_s14 + $0xb0] sm:$0xff]  ;;  %v3406_v48 = vpop.permute.xlu1 %3405 }
 0x610   : >> { %3448 = vmatprep.subr.bf16.mxu1 %v3385_v12  ;;  %v3789_v27 = vmax.f32 %v3773_v59, 0.0  ;;  %v3814_v26 = vpack.c.bf16 %v3793_v31, %v3791_v35  ;;  %v3787_v37 = vmax.f32 %v3771_v2, 0.0  ;;  %v3767_v4 = vadd.f32 %v10057_v34, %v3702_v53  ;;  %v6634_v12 = vld [vmem:[%s7031_s26 + $0xa8] sm:$0xff]   ;;  %v6285_v53 = vld [vmem:[%s7700_s14 + $0xd8] sm:$0xff] }
 0x611   : >> { %v3769_v29 = vadd.f32 %v10058_v57, %v3704_v10  ;;  %v3784_v60 = vmax.f32 %v3768_v28, 0.0  ;;  %v3786_v23 = vmax.f32 %v3770_v62, 0.0  ;;  %v3813_v33 = vpack.c.bf16 %v3790_v54, %v3788_v9  ;;  %v3411_v56 = vpop.permute.xlu0 %3410 }
 0x612   : >> { %v3812_v43 = vpack.c.bf16 %v3789_v27, %v3787_v37  ;;  %v3783_v55 = vmax.f32 %v3767_v4, 0.0 }
 0x613   : >> { %3449 = vmatpush1.bf16.msra.mxu1 %v3384_v18  ;;  %v3785_v30 = vmax.f32 %v3769_v29, 0.0  ;;  %v3811_v21 = vpack.c.bf16 %v3786_v23, %v3784_v60  ;;  %v6295_v18 = vld [vmem:[%s7747_s3 + $0xd8] sm:$0xff]  ;;  %4622 = vperm.xlu1 %6602, %v6282_v8   ;;  %v3416_v59 = vpop.permute.xlu1 %3415 }
 0x614   : >> { %3907 = vmatprep.subr.bf16.mxu1 %v3817_v3  ;;  %4739 = vperm.xlu0 %6600, %v6295_v18  }
 0x615   : >> { %v3810_v1 = vpack.c.bf16 %v3785_v30, %v3783_v55  ;;  %v3503_v52 = vpop.permute.xlu0 %3502 }
 0x616   : >> { %6142 = vmatmul.mubr.msk.bf16.vlgmr.msra.gmra.mxu1 %vm831_vm0, %v6631_v41  ;;  %v6356_v41 = vld [vmem:[%s7700_s14 + $0xe8] sm:$0xff] }
 0x617   : >> { %3908 = vmatpush1.bf16.msra.mxu1 %v3816_v58  ;;  %3476 = vmatprep.mubr.bf16.mxu1 %v9718_v13 }
 0x618   : >> { %3909 = vmatprep.subr.bf16.mxu1 %v3815_v38  ;;  %4021 = vperm.xlu1 %6602, %v6211_v39   ;;  %v3508_v38 = vpop.permute.xlu1 %3507 }
 0x619   : >> { %v8901_v24 = vpop.permute.xlu0 %3512 }
 0x61b   : >> { %3910 = vmatpush1.bf16.msra.mxu1 %v3814_v26  ;;  %v6293_v26 = vld [vmem:[%s7747_s3 + $0xc8] sm:$0xff] }
 0x61c   : >> { %3911 = vmatprep.subr.bf16.mxu1 %v3813_v33  ;;  %5238 = vperm.xlu1 %6602, %v6356_v41  }
 0x61d   : >> { %v8903_v22 = vpop.permute.xlu0 %4016 }
 0x61e   : >> { %6143 = vmatmul.mubr.msk.bf16.gmra.mxu1 %vm831_vm0, %v6632_v16 }
 0x61f   : >> { %3912 = vmatpush1.bf16.msra.mxu1 %v3812_v43  ;;  %3931 = vmatprep.mubr.bf16.mxu1 %v9718_v13 }
 0x620   : >> { %3913 = vmatprep.subr.bf16.mxu1 %v3811_v21  ;;  %4026 = vperm.xlu1 %6602, %v6212_v63  }
 0x621   : >> { %v8905_v46 = vpop.permute.xlu0 %4627 }
 0x622   : >> { %10059 = vst [vmem:[#allocation42_spill] sm:$0xff] %v8905_v46  ;;  %v10078_v46 = vld [vmem:[#allocation155_spill] sm:$0xff] }
 0x623   : >> { %3914 = vmatpush1.bf16.msra.mxu1 %v3810_v1 }
 0x624   : >> { %4118 = vperm.xlu1 %6602, %v6220_v7  }
 0x625   : >> { %v8907_v17 = vpop.permute.xlu0 %5233 }
 0x626   : >> { %6197 = vmatmul.mubr.msk.bf16.vlgmr.msra.gmra.mxu1 %vm831_vm0, %v6633_v14  ;;  %10060 = vst [vmem:[#allocation60_spill] sm:$0xff] %v8907_v17  ;;  %v6358_v14 = vld [vmem:[%s7700_s14 + $0xf8] sm:$0xff] }
 0x627   : >> { %3941 = vmatprep.mubr.bf16.mxu1 %v9718_v13 }
 0x628   : >> { %4637 = vperm.xlu1 %6602, %v6285_v53   ;;  %v6294_v53 = vld [vmem:[%s7747_s3 + $0xd0] sm:$0xff] }
 0x629   : >> { %v8909_v20 = vpop.permute.xlu0 %4632 }
 0x62a   : >> { %10061 = vst [vmem:[#allocation44_spill] sm:$0xff] %v8909_v20 }
 0x62c   : >> { %4729 = vperm.xlu1 %6602, %v6293_v26  }
 0x62d   : >> { %v8914_v45 = vpop.permute.xlu0 %4113 }
 0x62e   : >> { %6198 = vmatmul.mubr.msk.bf16.gmra.mxu1 %vm831_vm0, %v6634_v12 }
 0x62f   : >> { %3951 = vmatprep.mubr.bf16.mxu1 %v9718_v13 }
 0x630   : >> { %5248 = vperm.xlu1 %6602, %v6358_v14  }
 0x631   : >> { %v8918_v3 = vpop.permute.xlu0 %5243 }
 0x632   : >> { %10062 = vst [vmem:[#allocation65_spill] sm:$0xff] %v8918_v3 }
 0x635   : >> { %v8922_v40 = vpop.permute.xlu0 %4724 }
 0x636   : >> { %6199 = vmatmul.mubr.msk.bf16.gmra.mxu1 %vm831_vm0, %v6635_v32  ;;  %10063 = vst [vmem:[#allocation68_spill] sm:$0xff] %v8922_v40  ;;  %v10077_v40 = vld [vmem:[#allocation153_spill] sm:$0xff] }
 0x637   : >> { %3961 = vmatprep.mubr.bf16.mxu1 %v9718_v13 }
 0x639   : >> { %v8925_v2 = vpop.permute.xlu0 %4123 }
 0x63e   : >> { %6200 = vmatmul.mubr.msk.bf16.gmra.mxu1 %vm831_vm0, %v6636_v19 }
 0x63f   : >> { %4688 = vmatprep.mubr.bf16.mxu1 %v9718_v13 }
 0x654   : >> { %v8929_v4 = vpop.permute.xlu0 %5335 }
 0x655   : >> { %10064 = vst [vmem:[#allocation48_spill] sm:$0xff] %v8929_v4  ;;  %v10079_v4 = vld [vmem:[#allocation149_spill] sm:$0xff] }
 0x658   : >> { %v3518_v11 = vpop.permute.xlu0 %3517 }
 0x6d6   : >> { %v3468_v58 = vpop.f32.mrf.mxu1 }
 0x6d7   : >> { %v3469_v35 = vadd.f32 %v3468_v58, %v3401_v42 }
 0x6d8   : >> { %v3470_v31 = vpop.f32.mrf.mxu1 }
 0x6d9   : >> { %v3471_v9 = vadd.f32 %v3470_v31, %v3401_v42  ;;  %v3487_v34 = vmax.f32 %v3469_v35, 0.0 }
 0x6da   : >> { %v3472_v10 = vpop.f32.mrf.mxu1 }
 0x6db   : >> { %v3473_v28 = vadd.f32 %v3472_v10, %v3406_v48  ;;  %v3488_v57 = vmax.f32 %v3471_v9, 0.0  ;;  %v3520_v29 = vmul.f32 %v3503_v52, %v3487_v34 }
 0x6dc   : >> { %v3474_v62 = vpop.f32.mrf.mxu1 }
 0x6dd   : >> { %v3489_v54 = vmax.f32 %v3473_v28, 0.0  ;;  %v3475_v27 = vadd.f32 %v3474_v62, %v3406_v48  ;;  %v3521_v16 = vmul.f32 %v3503_v52, %v3488_v57  ;;  %v6366_v48 = vld [vmem:[%s7747_s3 + $0xe8] sm:$0xff]  ;;  %v6225_v28 = vld [vmem:[%s7078_s25 + $0x18] sm:$0xf] }
 0x6de   : >> { %v3478_v37 = vpop.f32.mrf.mxu1  ;;  %5340 = vperm.xlu1 %6602, %v6366_v48  }
 0x6df   : >> { %v3490_v60 = vmax.f32 %v3475_v27, 0.0  ;;  %v3522_v23 = vmul.f32 %v3508_v38, %v3489_v54  ;;  %v3479_v33 = vadd.f32 %v3478_v37, %v3411_v56  ;;  %v4282_v27 = vrot.slane %v6225_v28, %v9875_v47 }
 0x6e0   : >> { %v3480_v43 = vpop.f32.mrf.mxu1 }
 0x6e1   : >> { %v3523_v55 = vmul.f32 %v3508_v38, %v3490_v60  ;;  %v3528_v30 = vadd.f32 %v3522_v23, %v3520_v29  ;;  %v3491_v21 = vmax.f32 %v3479_v33, 0.0  ;;  %v3481_v1 = vadd.f32 %v3480_v43, %v3411_v56  ;;  %v6367_v38 = vld [vmem:[%s7747_s3 + $0xf0] sm:$0xff] }
 0x6e2   : >> { %v3482_v12 = vpop.f32.mrf.mxu1  ;;  %4734 = vperm.xlu1 %6602, %v6294_v53   ;;  %v4286_v29 = vrot.slane %v6225_v28, %v9876_v44  ;;  %v4216_v60 = vrot.slane %v6225_v28, %v9877_v49  ;;  %v4220_v23 = vrot.slane %v6225_v28, %v9878_v61 }
 0x6e3   : >> { %v3537_v32 = vadd.f32 %v3523_v55, %v3521_v16  ;;  %v3524_v19 = vmul.f32 %v8901_v24, %v3491_v21  ;;  %v3492_v42 = vmax.f32 %v3481_v1, 0.0  ;;  %v3483_v6 = vadd.f32 %v3482_v12, %v3416_v59  ;;  %v6368_v55 = vld [vmem:[%s7747_s3 + $0xf8] sm:$0xff] }
 0x6e4   : >> { %v3484_v8 = vpop.f32.mrf.mxu1  ;;  %v8958_v21 = vrot.slane %v4282_v27, %v9875_v47  ;;  %v8961_v12 = vrot.slane %v4286_v29, %v9875_v47  ;;  %v10068_v27 = vld [vmem:[#allocation163_spill] sm:$0xff]  ;;  %v10069_v29 = vld [vmem:[#allocation13_spill] sm:$0xff] }
 0x6e5   : >> { %v3529_v18 = vadd.f32 %v3528_v30, %v3524_v19  ;;  %v3525_v52 = vmul.f32 %v8901_v24, %v3492_v42  ;;  %v3493_v39 = vmax.f32 %v3483_v6, 0.0  ;;  %v3485_v41 = vadd.f32 %v3484_v8, %v3416_v59 }
 0x6e6   : >> { %v8935_v63 = vpop.f32.mrf.mxu1  ;;  %5345 = vperm.xlu1 %6602, %v6367_v38   ;;  %v8967_v19 = vrot.slane %v4220_v23, %v9877_v49  ;;  %v10070_v23 = vld [vmem:[#allocation148_spill] sm:$0xff] }
 0x6e7   : >> { %v3538_v56 = vadd.f32 %v3537_v32, %v3525_v52  ;;  %v3494_v7 = vmax.f32 %v3485_v41, 0.0  ;;  %v3526_v58 = vmul.f32 %v3518_v11, %v3493_v39  ;;  %v8964_v32 = vrot.slane %v4216_v60, %v9877_v49  ;;  %v10065_v39 = vld [vmem:[#allocation144_spill] sm:$0xff] }
 0x6e8   : >> { %v8937_v35 = vpop.f32.mrf.mxu1  ;;  %v4309_v41 = vmul.f32 %v8958_v21, %v10065_v39  ;;  %v4310_v48 = vmul.f32 %v8961_v12, %v10065_v39 }
 0x6e9   : >> { %v3527_v31 = vmul.f32 %v3518_v11, %v3494_v7  ;;  %v3530_v9 = vadd.f32 %v3529_v18, %v3526_v58 }
 0x6ea   : >> { %v8940_v10 = vpop.f32.mrf.mxu1  ;;  %5350 = vperm.xlu1 %6602, %v6368_v55   ;;  %v10071_v55 = vld [vmem:[#allocation152_spill] sm:$0xff] }
 0x6eb   : >> { %v3531_v34 = vrot.slane %v3530_v9, 4  ;;  %v3539_v24 = vadd.f32 %v3538_v56, %v3527_v31  ;;  %v10066_v56 = vld [vmem:[#allocation159_spill] sm:$0xff] }
 0x6ec   : >> { %v8943_v57 = vpop.f32.mrf.mxu1  ;;  %v4243_v7 = vmul.f32 %v8964_v32, %v10066_v56  ;;  %v4244_v58 = vmul.f32 %v8967_v19, %v10066_v56 }
 0x6ed   : >> { %v3532_v59 = vadd.f32 %v3531_v34, %v3530_v9  ;;  %v3540_v62 = vrot.slane %v3539_v24, 4 }
 0x6ee   : >> { %v8946_v54 = vpop.f32.mrf.mxu1  ;;  %v4325_v34 = vadd.f32 %v4309_v41, %v4243_v7  ;;  %v4246_v41 = vmul.f32 %v8967_v19, %v10071_v55 }
 0x6ef   : >> { %v3533_v26 = vrot.slane %v3532_v59, 2  ;;  %v3541_v37 = vadd.f32 %v3540_v62, %v3539_v24 }
 0x6f0   : >> { %v8952_v33 = vpop.f32.mrf.mxu1 }
 0x6f1   : >> { %v3534_v16 = vadd.f32 %v3533_v26, %v3532_v59  ;;  %v3542_v43 = vrot.slane %v3541_v37, 2  ;;  %v10067_v59 = vld [vmem:[#allocation146_spill] sm:$0xff]  ;;  %v8988_v26 = vadd.f32 %v10068_v27, %v4325_v34 }
 0x6f2   : >> { %v8955_v30 = vpop.f32.mrf.mxu1  ;;  %v4301_v62 = vmul.f32 %v8958_v21, %v10067_v59  ;;  %v4302_v38 = vmul.f32 %v8961_v12, %v10067_v59 }
 0x6f3   : >> { %v3535_v1 = vrot.slane %v3534_v16, 1  ;;  %v3543_v14 = vadd.f32 %v3542_v43, %v3541_v37  ;;  %v4236_v43 = vmul.f32 %v8967_v19, %v10069_v29 }
 0x6f4   : >> { %v3949_v42 = vpop.f32.mrf.mxu1 }
 0x6f5   : >> { %v3536_v6 = vadd.f32 %v3535_v1, %v3534_v16  ;;  %v3544_v8 = vrot.slane %v3543_v14, 1  ;;  %v8997_v16 = vmul.f32 %v8958_v21, %v10070_v23  ;;  %v4245_v1 = vmul.f32 %v8964_v32, %v10071_v55 }
 0x6f6   : >> { %v3953_v11 = vpop.f32.mrf.mxu1  ;;  %v9025_v20 = vadd.f32 %v4302_v38, %v4236_v43  ;;  %v10081_v43 = vld [vmem:[#allocation158_spill] sm:$0xff] }
 0x6f7   : >> { %v3545_v18 = vadd.f32 %v3544_v8, %v3543_v14  ;;  %v8970_v52 = vsel %vm5388_vm4, %v8753_v15, %v3536_v6  ;;  %v4326_v15 = vadd.f32 %v4310_v48, %v4244_v58  ;;  %v10072_v14 = vld [vmem:[#allocation69_spill] sm:$0xff]  ;;  %v9007_v8 = vmul.f32 %v8961_v12, %v10070_v23  ;;  %v10074_v58 = vld [vmem:[#allocation147_spill] sm:$0xff] }
 0x6f8   : >> { %v3955_v31 = vpop.f32.mrf.mxu1  ;;  %v4311_v6 = vmul.f32 %v8958_v21, %v10072_v14  ;;  %v4312_v48 = vmul.f32 %v8961_v12, %v10072_v14 }
 0x6f9   : >> { %v8981_v9 = vsel %vm5388_vm4, %v8764_v5, %v3545_v18  ;;  %v8991_v37 = vadd.f32 %v10068_v27, %v4326_v15  ;;  %v4235_v5 = vmul.f32 %v8964_v32, %v10069_v29  ;;  %v10073_v18 = vld [vmem:[#allocation161_spill] sm:$0xff]  ;;  %v10075_v15 = vld [vmem:[#allocation151_spill] sm:$0xff] }
 0x6fa   : >> { %v3957_v53 = vpop.f32.mrf.mxu1  ;;  %v4241_v39 = vmul.f32 %v8964_v32, %v10073_v18  ;;  %v4242_v7 = vmul.f32 %v8967_v19, %v10073_v18  ;;  %v10076_v27 = vld [vmem:[#allocation145_spill] sm:$0xff]  ;;  %v4327_v14 = vadd.f32 %v4311_v6, %v4245_v1  ;;  %v3956_v18 = vadd.f32 %v3955_v31, %v10077_v40 }
 0x6fb   : >> { %v9022_v3 = vadd.f32 %v4301_v62, %v4235_v5  ;;  %v3958_v23 = vadd.f32 %v3957_v53, %v10074_v58  ;;  %v3950_v62 = vadd.f32 %v3949_v42, %v10079_v4  ;;  %v4307_v31 = vmul.f32 %v8958_v21, %v10081_v43 }
 0x6fc   : >> { %v3959_v24 = vpop.f32.mrf.mxu1  ;;  %v4239_v6 = vmul.f32 %v8964_v32, %v10078_v46 }
 0x6fd   : >> { %v3960_v34 = vadd.f32 %v3959_v24, %v10074_v58 }
 0x6fe   : >> { %v3963_v28 = vpop.f32.mrf.mxu1 }
 0x6ff   : >> { %v3964_v55 = vadd.f32 %v3963_v28, %v10075_v15  ;;  %v3983_v5 = vmax.f32 %v3960_v34, 0.0  ;;  %v3948_v34 = vadd.f32 %v8955_v30, %v10079_v4  ;;  %v10085_v30 = vld [vmem:[#allocation162_spill] sm:$0xff] }
 0x700   : >> { %v3965_v60 = vpop.f32.mrf.mxu1 }
 0x701   : >> { %v3966_v59 = vadd.f32 %v3965_v60, %v10075_v15  ;;  %v4240_v60 = vmul.f32 %v8967_v19, %v10078_v46  ;;  %v10080_v15 = vld [vmem:[#allocation157_spill] sm:$0xff]  ;;  %v3984_v1 = vmax.f32 %v3964_v55, 0.0  ;;  %v3979_v46 = vmax.f32 %v3950_v62, 0.0 }
 0x702   : >> { %v3967_v56 = vpop.f32.mrf.mxu1  ;;  %v4306_v38 = vmul.f32 %v8961_v12, %v10080_v15  ;;  %v4305_v58 = vmul.f32 %v8958_v21, %v10080_v15 }
 0x703   : >> { %v3968_v29 = vadd.f32 %v3967_v56, %v10076_v27  ;;  %v4328_v56 = vadd.f32 %v4312_v48, %v4246_v41  ;;  %v3985_v50 = vmax.f32 %v3966_v59, 0.0  ;;  %v10082_v41 = vld [vmem:[#allocation154_spill] sm:$0xff]  ;;  %v3981_v48 = vmax.f32 %v3956_v18, 0.0 }
 0x704   : >> { %v3969_v17 = vpop.f32.mrf.mxu1  ;;  %v3946_v53 = vadd.f32 %v8952_v33, %v10082_v41  ;;  %v3982_v59 = vmax.f32 %v3958_v23, 0.0  ;;  %v4323_v33 = vadd.f32 %v4307_v31, %v4241_v39  ;;  %v4322_v18 = vadd.f32 %v4306_v38, %v4240_v60  ;;  %v10086_v23 = vld [vmem:[#allocation156_spill] sm:$0xff] }
 0x705   : >> { %v3970_v24 = vadd.f32 %v3969_v17, %v10076_v27  ;;  %v3986_v51 = vmax.f32 %v3968_v29, 0.0  ;;  %v3954_v17 = vadd.f32 %v3953_v11, %v10077_v40  ;;  %v4308_v40 = vmul.f32 %v8961_v12, %v10081_v43  ;;  %v10083_v11 = vld [vmem:[#allocation150_spill] sm:$0xff] }
 0x706   : >> { %v3940_v29 = vadd.f32 %v8943_v57, %v10083_v11  ;;  %v4000_v55 = vpack.c.bf16 %v3983_v5, %v3981_v48  ;;  %v3936_v15 = vadd.f32 %v8937_v35, %v10086_v23  ;;  %v3977_v43 = vmax.f32 %v3946_v53, 0.0  ;;  %v10087_v57 = vld [vmem:[#allocation164_spill] sm:$0xff] }
 0x707   : >> { %v3987_v28 = vmax.f32 %v3970_v24, 0.0  ;;  %v4001_v27 = vpack.c.bf16 %v3986_v51, %v3984_v1  ;;  %v3980_v24 = vmax.f32 %v3954_v17, 0.0  ;;  %v4238_v51 = vmul.f32 %v8967_v19, %v10085_v30 }
 0x708   : >> { %v4304_v62 = vmul.f32 %v8961_v12, %v10087_v57  ;;  %v3938_v39 = vadd.f32 %v8940_v10, %v10083_v11  ;;  %v3978_v60 = vmax.f32 %v3948_v34, 0.0  ;;  %v4324_v5 = vadd.f32 %v4308_v40, %v4242_v7  ;;  %v10088_v10 = vld [vmem:[#allocation12_spill] sm:$0xff] }
 0x709   : >> { %v4002_v42 = vpack.c.bf16 %v3987_v28, %v3985_v50  ;;  %v3944_v50 = vadd.f32 %v8946_v54, %v10082_v41  ;;  %v10084_v28 = vld [vmem:[#allocation160_spill] sm:$0xff]  ;;  %v3999_v54 = vpack.c.bf16 %v3982_v59, %v3980_v24  ;;  %v3998_v31 = vpack.c.bf16 %v3979_v46, %v3977_v43  ;;  %v10091_v46 = vld [vmem:[#allocation17_spill] sm:$0xff] }
 0x70a   : >> { %v4393_v4 = vadd.f32 %v10084_v28, %v4328_v56  ;;  %v4392_v38 = vadd.f32 %v10084_v28, %v4327_v14  ;;  %v3975_v56 = vmax.f32 %v3940_v29, 0.0  ;;  %v4237_v17 = vmul.f32 %v8964_v32, %v10085_v30  ;;  %v10090_v11 = vld [vmem:[#allocation16_spill] sm:$0xff] }
 0x70b   : >> { %4053 = vmatprep.subr.bf16.mxu0 %v4002_v42  ;;  %v4303_v35 = vmul.f32 %v8958_v21, %v10087_v57  ;;  %v3934_v1 = vadd.f32 %v8935_v63, %v10086_v23  ;;  %v3976_v41 = vmax.f32 %v3944_v50, 0.0  ;;  %v4321_v53 = vadd.f32 %v4305_v58, %v4239_v6  ;;  %v10089_v42 = vld [vmem:[#allocation14_spill] sm:$0xff]  ;;  %v10092_v50 = vld [vmem:[#allocation15_spill] sm:$0xff]  ;;  %v10093_v23 = vld [vmem:[#allocation32_spill] sm:$0xff] }
 0x70c   : >> { %4054 = vmatpush1.bf16.msra.mxu0 %v4001_v27  ;;  %v4387_v48 = vadd.f32 %v10088_v10, %v4322_v18  ;;  %v4232_v7 = vmul.f32 %v8967_v19, %v10089_v42  ;;  %v3973_v14 = vmax.f32 %v3936_v15, 0.0  ;;  %v4409_v34 = vmax.f32 %v4393_v4, 0.0 }
 0x70d   : >> { %4055 = vmatprep.subr.bf16.mxu0 %v4000_v55  ;;  %v4320_v59 = vadd.f32 %v4304_v62, %v4238_v51  ;;  %v3974_v27 = vmax.f32 %v3938_v39, 0.0  ;;  %v3997_v40 = vpack.c.bf16 %v3978_v60, %v3976_v41  ;;  %v4234_v29 = vmul.f32 %v8967_v19, %v10090_v11  ;;  %v6637_v60 = vld [vmem:[%s7408_s2 + $0x50] sm:$0xff]  }
 0x70e   : >> { %v4300_v63 = vmul.f32 %v8961_v12, %v10091_v46  ;;  %v3996_v55 = vpack.c.bf16 %v3975_v56, %v3973_v14  ;;  %v4389_v6 = vadd.f32 %v10092_v50, %v4324_v5  ;;  %v4388_v58 = vadd.f32 %v10092_v50, %v4323_v33  ;;  %v10095_v5 = vld [vmem:[#allocation27_spill] sm:$0xff] }
 0x70f   : >> { %v4408_v18 = vmax.f32 %v4392_v38, 0.0  ;;  %v4319_v24 = vadd.f32 %v4303_v35, %v4237_v17  ;;  %v3972_v28 = vmax.f32 %v3934_v1, 0.0  ;;  %v4386_v4 = vadd.f32 %v10088_v10, %v4321_v53  ;;  %v10097_v1 = vld [vmem:[#allocation18_spill] sm:$0xff] }
 0x710   : >> { %4056 = vmatpush1.bf16.msra.mxu0 %v3999_v54  ;;  %v4403_v30 = vmax.f32 %v4387_v48, 0.0  ;;  %v4231_v51 = vmul.f32 %v8964_v32, %v10089_v42  ;;  %v4314_v19 = vadd.f32 %v9007_v8, %v4232_v7  ;;  %v4233_v12 = vmul.f32 %v8964_v32, %v10090_v11  ;;  %v6641_v50 = vld [vmem:[%s7031_s26 + $0xd0] sm:$0xff]  }
 0x711   : >> { %4057 = vmatprep.subr.bf16.mxu0 %v3998_v31  ;;  %v4299_v33 = vmul.f32 %v8958_v21, %v10091_v46  ;;  %v4383_v15 = vadd.f32 %v10093_v23, %v9025_v20  ;;  %v3995_v43 = vpack.c.bf16 %v3974_v27, %v3972_v28  ;;  %v4316_v57 = vadd.f32 %v4300_v63, %v4234_v29  ;;  %v6638_v27 = vld [vmem:[%s7408_s2 + $0x58] sm:$0xff]   ;;  %v6639_v63 = vld [vmem:[%s7031_s26 + $0xc0] sm:$0xff]  }
 0x712   : >> { %v10094_v62 = vmax.f32 %v8991_v37, 0.0  ;;  %v4405_v54 = vmax.f32 %v4389_v6, 0.0  ;;  %v4385_v38 = vadd.f32 %v10095_v5, %v4320_v59  ;;  %v10096_v8 = vmax.f32 %v8988_v26, 0.0  ;;  %v6642_v6 = vld [vmem:[%s7031_s26 + $0xd8] sm:$0xff]  }
 0x713   : >> { %v4384_v32 = vadd.f32 %v10095_v5, %v4319_v24  ;;  %v4402_v31 = vmax.f32 %v4386_v4, 0.0  ;;  %v4404_v21 = vmax.f32 %v4388_v58, 0.0  ;;  %v4382_v20 = vadd.f32 %v10093_v23, %v9022_v3  ;;  %v4012_v58 = vpop.permute.xlu1 %4011 }
 0x714   : >> { %4058 = vmatpush1.bf16.msra.mxu0 %v3997_v40  ;;  %v4428_v39 = vpack.c.bf16 %v4409_v34, %v10094_v62  ;;  %v4427_v56 = vpack.c.bf16 %v4408_v18, %v10096_v8  ;;  %v4399_v17 = vmax.f32 %v4383_v15, 0.0  ;;  %v4313_v37 = vadd.f32 %v8997_v16, %v4231_v51 }
 0x715   : >> { %4059 = vmatprep.subr.bf16.mxu0 %v3996_v55  ;;  %v4315_v35 = vadd.f32 %v4299_v33, %v4233_v12  ;;  %v4379_v41 = vadd.f32 %v10097_v1, %v4314_v19  ;;  %v4381_v53 = vadd.f32 %v8183_v0, %v4316_v57  ;;  %v4426_v26 = vpack.c.bf16 %v4405_v54, %v4403_v30  ;;  %v6640_v55 = vld [vmem:[%s7031_s26 + $0xc8] sm:$0xff]  }
 0x716   : >> { %v4401_v10 = vmax.f32 %v4385_v38, 0.0  ;;  %v4400_v48 = vmax.f32 %v4384_v32, 0.0  ;;  %v4425_v42 = vpack.c.bf16 %v4404_v21, %v4402_v31  ;;  %v4398_v3 = vmax.f32 %v4382_v20, 0.0 }
 0x717   : >> { %v4378_v7 = vadd.f32 %v10097_v1, %v4313_v37  ;;  %v4380_v16 = vadd.f32 %v8183_v0, %v4315_v35  ;;  %v4395_v14 = vmax.f32 %v4379_v41, 0.0  ;;  %v4397_v34 = vmax.f32 %v4381_v53, 0.0  ;;  %v9118_v18 = vpop.permute.xlu1 %4622 }
 0x718   : >> { %4060 = vmatpush1.bf16.msra.mxu0 %v3995_v43  ;;  %v4424_v59 = vpack.c.bf16 %v4401_v10, %v4399_v17  ;;  %v4423_v40 = vpack.c.bf16 %v4400_v48, %v4398_v3  ;;  %v4129_v10 = vpop.permute.xlu0 %4128 }
 0x719   : >> { %4518 = vmatprep.subr.bf16.mxu0 %v4428_v39  ;;  %v4394_v11 = vmax.f32 %v4378_v7, 0.0  ;;  %v4396_v29 = vmax.f32 %v4380_v16, 0.0  ;;  %v4422_v46 = vpack.c.bf16 %v4397_v34, %v4395_v14 }
 0x71b   : >> { %6215 = vmatmul.mubr.msk.bf16.vlgmr.msra.gmra.mxu0 %vm831_vm0, %v6637_v60  ;;  %v4421_v0 = vpack.c.bf16 %v4396_v29, %v4394_v11  ;;  %v4022_v24 = vpop.permute.xlu1 %4021 }
 0x71c   : >> { %4519 = vmatpush1.bf16.msra.mxu0 %v4427_v56  ;;  %4087 = vmatprep.mubr.bf16.mxu0 %v9718_v13 }
 0x71d   : >> { %4520 = vmatprep.subr.bf16.mxu0 %v4426_v26 }
 0x71f   : >> { %v9120_v28 = vpop.permute.xlu1 %5238 }
 0x720   : >> { %4521 = vmatpush1.bf16.msra.mxu0 %v4425_v42 }
 0x721   : >> { %4522 = vmatprep.subr.bf16.mxu0 %v4424_v59 }
 0x723   : >> { %6216 = vmatmul.mubr.msk.bf16.gmra.mxu0 %vm831_vm0, %v6638_v27  ;;  %v4027_v30 = vpop.permute.xlu1 %4026 }
 0x724   : >> { %4523 = vmatpush1.bf16.msra.mxu0 %v4423_v40  ;;  %4542 = vmatprep.mubr.bf16.mxu0 %v9718_v13 }
 0x725   : >> { %4524 = vmatprep.subr.bf16.mxu0 %v4422_v46 }
 0x727   : >> { %v4119_v62 = vpop.permute.xlu1 %4118 }
 0x728   : >> { %4525 = vmatpush1.bf16.msra.mxu0 %v4421_v0  ;;  %v6298_v0 = vld [vmem:[%s7078_s25 + $0x1c] sm:$0xf] }
 0x72b   : >> { %6270 = vmatmul.mubr.msk.bf16.vlgmr.msra.gmra.mxu0 %vm831_vm0, %v6639_v63 }
 0x72c   : >> { %4552 = vmatprep.mubr.bf16.mxu0 %v9718_v13 }
 0x733   : >> { %6271 = vmatmul.mubr.msk.bf16.gmra.mxu0 %vm831_vm0, %v6640_v55 }
 0x734   : >> { %4562 = vmatprep.mubr.bf16.mxu0 %v9718_v13 }
 0x73b   : >> { %6272 = vmatmul.mubr.msk.bf16.gmra.mxu0 %vm831_vm0, %v6641_v50 }
 0x73c   : >> { %4572 = vmatprep.mubr.bf16.mxu0 %v9718_v13 }
 0x743   : >> { %6273 = vmatmul.mubr.msk.bf16.gmra.mxu0 %vm831_vm0, %v6642_v6  ;;  %v4893_v6 = vrot.slane %v6298_v0, %v9875_v47 }
 0x744   : >> { %5299 = vmatprep.mubr.bf16.mxu0 %v9718_v13 }
 0x7db   : >> { %v4079_v4 = vpop.f32.mrf.mxu0 }
 0x7dc   : >> { %v4080_v51 = vadd.f32 %v4079_v4, %v4012_v58  ;;  %v4897_v4 = vrot.slane %v6298_v0, %v9876_v44 }
 0x7dd   : >> { %v4081_v19 = vpop.f32.mrf.mxu0 }
 0x7de   : >> { %v4082_v12 = vadd.f32 %v4081_v19, %v4012_v58  ;;  %v4098_v23 = vmax.f32 %v4080_v51, 0.0  ;;  %v4831_v51 = vrot.slane %v6298_v0, %v9878_v61 }
 0x7df   : >> { %v4083_v33 = vpop.f32.mrf.mxu0 }
 0x7e0   : >> { %v4084_v15 = vadd.f32 %v4083_v33, %v8903_v22  ;;  %v4099_v43 = vmax.f32 %v4082_v12, 0.0  ;;  %v4131_v5 = vmul.f32 %v8914_v45, %v4098_v23 }
 0x7e1   : >> { %v4085_v57 = vpop.f32.mrf.mxu0 }
 0x7e2   : >> { %v4100_v39 = vmax.f32 %v4084_v15, 0.0  ;;  %v4086_v60 = vadd.f32 %v4085_v57, %v8903_v22  ;;  %v4132_v32 = vmul.f32 %v8914_v45, %v4099_v43  ;;  %v9148_v15 = vrot.slane %v4893_v6, %v9875_v47  ;;  %v10105_v6 = vld [vmem:[#allocation29_spill] sm:$0xff] }
 0x7e3   : >> { %v4089_v54 = vpop.f32.mrf.mxu0 }
 0x7e4   : >> { %v4101_v38 = vmax.f32 %v4086_v60, 0.0  ;;  %v4133_v8 = vmul.f32 %v4119_v62, %v4100_v39  ;;  %v4090_v56 = vadd.f32 %v4089_v54, %v4022_v24  ;;  %v9157_v39 = vrot.slane %v4831_v51, %v9877_v49 }
 0x7e5   : >> { %v4091_v31 = vpop.f32.mrf.mxu0 }
 0x7e6   : >> { %v4134_v21 = vmul.f32 %v4119_v62, %v4101_v38  ;;  %v4139_v20 = vadd.f32 %v4133_v8, %v4131_v5  ;;  %v4102_v17 = vmax.f32 %v4090_v56, 0.0  ;;  %v4092_v37 = vadd.f32 %v4091_v31, %v4022_v24  ;;  %v10098_v56 = vld [vmem:[#allocation35_spill] sm:$0xff] }
 0x7e7   : >> { %v4093_v35 = vpop.f32.mrf.mxu0  ;;  %v9151_v62 = vrot.slane %v4897_v4, %v9875_v47 }
 0x7e8   : >> { %v4148_v1 = vadd.f32 %v4134_v21, %v4132_v32  ;;  %v4135_v41 = vmul.f32 %v8925_v2, %v4102_v17  ;;  %v4103_v53 = vmax.f32 %v4092_v37, 0.0  ;;  %v4094_v26 = vadd.f32 %v4093_v35, %v4027_v30 }
 0x7e9   : >> { %v4095_v22 = vpop.f32.mrf.mxu0  ;;  %v4920_v32 = vmul.f32 %v9148_v15, %v10098_v56  ;;  %v4921_v47 = vmul.f32 %v9151_v62, %v10098_v56  ;;  %v10108_v56 = vld [vmem:[#allocation20_spill] sm:$0xff] }
 0x7ea   : >> { %v4140_v48 = vadd.f32 %v4139_v20, %v4135_v41  ;;  %v4136_v42 = vmul.f32 %v8925_v2, %v4103_v53  ;;  %v4104_v3 = vmax.f32 %v4094_v26, 0.0  ;;  %v4096_v7 = vadd.f32 %v4095_v22, %v4027_v30  ;;  %v10099_v26 = vld [vmem:[#allocation49_spill] sm:$0xff] }
 0x7eb   : >> { %v9128_v45 = vpop.f32.mrf.mxu0  ;;  %v4827_v30 = vrot.slane %v6298_v0, %v9877_v49  ;;  %v4912_v41 = vmul.f32 %v9148_v15, %v8175_v25  ;;  %v4913_v53 = vmul.f32 %v9151_v62, %v8175_v25 }
 0x7ec   : >> { %v4149_v16 = vadd.f32 %v4148_v1, %v4136_v42  ;;  %v4105_v14 = vmax.f32 %v4096_v7, 0.0  ;;  %v4137_v34 = vmul.f32 %v4129_v10, %v4104_v3  ;;  %v10101_v42 = vld [vmem:[#allocation37_spill] sm:$0xff] }
 0x7ed   : >> { %v9130_v59 = vpop.f32.mrf.mxu0  ;;  %v9154_v44 = vrot.slane %v4827_v30, %v9877_v49  ;;  %v4855_v49 = vmul.f32 %v9157_v39, %v8262_v36  ;;  %v9187_v3 = vmul.f32 %v9148_v15, %v10101_v42  ;;  %v10107_v30 = vld [vmem:[#allocation36_spill] sm:$0xff] }
 0x7ee   : >> { %v4138_v27 = vmul.f32 %v4129_v10, %v4105_v14  ;;  %v4141_v40 = vadd.f32 %v4140_v48, %v4137_v34  ;;  %v10100_v10 = vld [vmem:[#allocation53_spill] sm:$0xff] }
 0x7ef   : >> { %v9132_v11 = vpop.f32.mrf.mxu0  ;;  %v4854_v31 = vmul.f32 %v9154_v44, %v8262_v36  ;;  %v4847_v7 = vmul.f32 %v9157_v39, %v10100_v10  ;;  %v10103_v14 = vld [vmem:[#allocation41_spill] sm:$0xff] }
 0x7f0   : >> { %v4142_v29 = vrot.slane %v4141_v40, 4  ;;  %v4150_v46 = vadd.f32 %v4149_v16, %v4138_v27  ;;  %v10102_v16 = vld [vmem:[#allocation39_spill] sm:$0xff]  ;;  %v4922_v34 = vmul.f32 %v9148_v15, %v10103_v14  ;;  %v9197_v27 = vmul.f32 %v9151_v62, %v10101_v42  ;;  %v10112_v42 = vld [vmem:[#allocation45_spill] sm:$0xff] }
 0x7f1   : >> { %v9135_v63 = vpop.f32.mrf.mxu0  ;;  %v4936_v37 = vadd.f32 %v4920_v32, %v4854_v31  ;;  %v4856_v25 = vmul.f32 %v9154_v44, %v10102_v16  ;;  %v4923_v0 = vmul.f32 %v9151_v62, %v10103_v14  ;;  %v10109_v31 = vld [vmem:[#allocation43_spill] sm:$0xff] }
 0x7f2   : >> { %v4143_v55 = vadd.f32 %v4142_v29, %v4141_v40  ;;  %v4151_v2 = vrot.slane %v4150_v46, 4  ;;  %v10104_v40 = vld [vmem:[#allocation47_spill] sm:$0xff] }
 0x7f3   : >> { %v9137_v50 = vpop.f32.mrf.mxu0  ;;  %v9178_v22 = vadd.f32 %v10099_v26, %v4936_v37  ;;  %v4852_v29 = vmul.f32 %v9154_v44, %v10104_v40  ;;  %v10113_v14 = vld [vmem:[#allocation31_spill] sm:$0xff] }
 0x7f4   : >> { %v4144_v58 = vrot.slane %v4143_v55, 2  ;;  %v4152_v24 = vadd.f32 %v4151_v2, %v4150_v46  ;;  %v4857_v46 = vmul.f32 %v9157_v39, %v10102_v16  ;;  %v4853_v2 = vmul.f32 %v9157_v39, %v10104_v40 }
 0x7f5   : >> { %v9143_v19 = vpop.f32.mrf.mxu0 }
 0x7f6   : >> { %v4145_v12 = vadd.f32 %v4144_v58, %v4143_v55  ;;  %v4153_v33 = vrot.slane %v4152_v24, 2  ;;  %v4939_v37 = vadd.f32 %v4923_v0, %v4857_v46 }
 0x7f7   : >> { %v9145_v23 = vpop.f32.mrf.mxu0 }
 0x7f8   : >> { %v4146_v43 = vrot.slane %v4145_v12, 1  ;;  %v4154_v57 = vadd.f32 %v4153_v33, %v4152_v24  ;;  %v10106_v24 = vld [vmem:[#allocation30_spill] sm:$0xff] }
 0x7f9   : >> { %v4560_v61 = vpop.f32.mrf.mxu0 }
 0x7fa   : >> { %v4147_v60 = vadd.f32 %v4146_v43, %v4145_v12  ;;  %v4155_v54 = vrot.slane %v4154_v57, 1  ;;  %v5017_v12 = vmax.f32 %v9178_v22, 0.0 }
 0x7fb   : >> { %v4564_v5 = vpop.f32.mrf.mxu0 }
 0x7fc   : >> { %v4156_v38 = vadd.f32 %v4155_v54, %v4154_v57  ;;  %v9160_v8 = vsel %vm5391_vm5, %v8970_v52, %v4147_v60  ;;  %v4937_v52 = vadd.f32 %v4921_v47, %v4855_v49  ;;  %v4938_v54 = vadd.f32 %v4922_v34, %v4856_v25 }
 0x7fd   : >> { %v4566_v21 = vpop.f32.mrf.mxu0  ;;  %v4851_v49 = vmul.f32 %v9157_v39, %v10109_v31  ;;  %v4850_v25 = vmul.f32 %v9154_v44, %v10109_v31 }
 0x7fe   : >> { %v9171_v20 = vsel %vm5391_vm5, %v8981_v9, %v4156_v38  ;;  %v9181_v36 = vadd.f32 %v10099_v26, %v4937_v52  ;;  %v4846_v9 = vmul.f32 %v9154_v44, %v10100_v10  ;;  %v9215_v38 = vadd.f32 %v4913_v53, %v4847_v7  ;;  %v10110_v26 = vld [vmem:[#allocation19_spill] sm:$0xff] }
 0x7ff   : >> { %v4568_v17 = vpop.f32.mrf.mxu0  ;;  %v4567_v32 = vadd.f32 %v4566_v21, %v10108_v56  ;;  %v4919_v21 = vmul.f32 %v9151_v62, %v10112_v42  ;;  %v4565_v7 = vadd.f32 %v4564_v5, %v10108_v56  ;;  %v4559_v46 = vadd.f32 %v9145_v23, %v10110_v26  ;;  %v10116_v56 = vld [vmem:[#allocation54_spill] sm:$0xff] }
 0x800   : >> { %v5018_v33 = vmax.f32 %v9181_v36, 0.0  ;;  %v9212_v43 = vadd.f32 %v4912_v41, %v4846_v9  ;;  %v4569_v52 = vadd.f32 %v4568_v17, %v10105_v6  ;;  %v4561_v41 = vadd.f32 %v4560_v61, %v10110_v26  ;;  %v10126_v36 = vld [vmem:[#allocation168_spill] sm:$0xff] }
 0x801   : >> { %v4570_v35 = vpop.f32.mrf.mxu0  ;;  %v4557_v17 = vadd.f32 %v9143_v19, %v10113_v14  ;;  %v4592_v34 = vmax.f32 %v4567_v32, 0.0  ;;  %v4918_v5 = vmul.f32 %v9148_v15, %v10112_v42  ;;  %v4935_v19 = vadd.f32 %v4919_v21, %v4853_v2  ;;  %v10119_v42 = vld [vmem:[#allocation57_spill] sm:$0xff] }
 0x802   : >> { %v4571_v58 = vadd.f32 %v4570_v35, %v10105_v6  ;;  %v4593_v0 = vmax.f32 %v4569_v52, 0.0  ;;  %v10114_v6 = vld [vmem:[#allocation28_spill] sm:$0xff]  ;;  %v4915_v32 = vmul.f32 %v9151_v62, %v10116_v56 }
 0x803   : >> { %v4574_v1 = vpop.f32.mrf.mxu0  ;;  %v10118_v52 = vld [vmem:[#allocation24_spill] sm:$0xff]  ;;  %v4549_v2 = vadd.f32 %v9132_v11, %v10114_v6  ;;  %v4934_v26 = vadd.f32 %v4918_v5, %v4852_v29 }
 0x804   : >> { %v4575_v57 = vadd.f32 %v4574_v1, %v10106_v24  ;;  %v4594_v10 = vmax.f32 %v4571_v58, 0.0  ;;  %v4551_v58 = vadd.f32 %v9135_v63, %v10114_v6  ;;  %v4588_v63 = vmax.f32 %v4557_v17, 0.0 }
 0x805   : >> { %v4576_v48 = vpop.f32.mrf.mxu0 }
 0x806   : >> { %v4577_v4 = vadd.f32 %v4576_v48, %v10106_v24  ;;  %v10111_v48 = vld [vmem:[#allocation33_spill] sm:$0xff]  ;;  %v4595_v16 = vmax.f32 %v4575_v57, 0.0  ;;  %v4590_v24 = vmax.f32 %v4561_v41, 0.0  ;;  %v4591_v57 = vmax.f32 %v4565_v7, 0.0 }
 0x807   : >> { %v4578_v55 = vpop.f32.mrf.mxu0  ;;  %v4917_v53 = vmul.f32 %v9151_v62, %v10111_v48  ;;  %v4916_v40 = vmul.f32 %v9148_v15, %v10111_v48  ;;  %v5003_v41 = vadd.f32 %v10118_v52, %v4938_v54  ;;  %v10120_v54 = vld [vmem:[#allocation38_spill] sm:$0xff] }
 0x808   : >> { %v4579_v51 = vadd.f32 %v4578_v55, %v10107_v30  ;;  %v4596_v9 = vmax.f32 %v4577_v4, 0.0  ;;  %v4611_v4 = vpack.c.bf16 %v4594_v10, %v4592_v34  ;;  %v4586_v10 = vmax.f32 %v4551_v58, 0.0  ;;  %v10121_v34 = vld [vmem:[#allocation59_spill] sm:$0xff] }
 0x809   : >> { %v4580_v60 = vpop.f32.mrf.mxu0  ;;  %v4932_v11 = vadd.f32 %v4916_v40, %v4850_v25  ;;  %v5000_v7 = vadd.f32 %v10120_v54, %v4935_v19  ;;  %v4999_v25 = vadd.f32 %v10120_v54, %v4934_v26  ;;  %v5019_v40 = vmax.f32 %v5003_v41, 0.0  ;;  %v6645_v54 = vld [vmem:[%s7031_s26 + $0xe0] sm:$0xff]  }
 0x80a   : >> { %v4581_v47 = vadd.f32 %v4580_v60, %v10107_v30  ;;  %v4597_v35 = vmax.f32 %v4579_v51, 0.0  ;;  %v4933_v30 = vadd.f32 %v4917_v53, %v4851_v49  ;;  %v4555_v51 = vadd.f32 %v9137_v50, %v10113_v14  ;;  %v10115_v60 = vld [vmem:[#allocation51_spill] sm:$0xff] }
 0x80b   : >> { %v4849_v23 = vmul.f32 %v9157_v39, %v10115_v60  ;;  %v4589_v49 = vmax.f32 %v4559_v46, 0.0  ;;  %v4610_v50 = vpack.c.bf16 %v4593_v0, %v4591_v57  ;;  %v4585_v14 = vmax.f32 %v4549_v2, 0.0  ;;  %v10122_v46 = vld [vmem:[#allocation61_spill] sm:$0xff]  ;;  %v10125_v57 = vld [vmem:[#allocation166_spill] sm:$0xff] }
 0x80c   : >> { %v4598_v1 = vmax.f32 %v4581_v47, 0.0  ;;  %v4612_v55 = vpack.c.bf16 %v4597_v35, %v4595_v16  ;;  %v10117_v47 = vld [vmem:[#allocation21_spill] sm:$0xff]  ;;  %v5004_v35 = vadd.f32 %v10118_v52, %v4939_v37  ;;  %v4587_v37 = vmax.f32 %v4555_v51, 0.0 }
 0x80d   : >> { %v4547_v31 = vadd.f32 %v9130_v59, %v10117_v47  ;;  %v4914_v59 = vmul.f32 %v9148_v15, %v10116_v56  ;;  %v4545_v48 = vadd.f32 %v9128_v45, %v10117_v47  ;;  %v4931_v53 = vadd.f32 %v4915_v32, %v4849_v23  ;;  %v10123_v45 = vld [vmem:[#allocation165_spill] sm:$0xff] }
 0x80e   : >> { %v4613_v61 = vpack.c.bf16 %v4598_v1, %v4596_v9  ;;  %v4609_v9 = vpack.c.bf16 %v4590_v24, %v4588_v63  ;;  %v4848_v1 = vmul.f32 %v9154_v44, %v10115_v60  ;;  %v4998_v21 = vadd.f32 %v10119_v42, %v4933_v30  ;;  %v10124_v24 = vld [vmem:[#allocation40_spill] sm:$0xff] }
 0x80f   : >> { %v4584_v29 = vmax.f32 %v4547_v31, 0.0  ;;  %v5020_v16 = vmax.f32 %v5004_v35, 0.0  ;;  %v4608_v17 = vpack.c.bf16 %v4589_v49, %v4587_v37  ;;  %v4845_v0 = vmul.f32 %v9157_v39, %v10122_v46  ;;  %v6643_v31 = vld [vmem:[%s7408_s2 + $0x60] sm:$0xff]   ;;  %v6644_v37 = vld [vmem:[%s7408_s2 + $0x68] sm:$0xff]  }
 0x810   : >> { %4664 = vmatprep.subr.bf16.mxu1 %v4613_v61  ;;  %v4843_v61 = vmul.f32 %v9157_v39, %v10121_v34  ;;  %v4930_v6 = vadd.f32 %v4914_v59, %v4848_v1  ;;  %v4583_v58 = vmax.f32 %v4545_v48, 0.0  ;;  %v4997_v19 = vadd.f32 %v10119_v42, %v4932_v11 }
 0x811   : >> { %4665 = vmatpush1.bf16.msra.mxu1 %v4612_v55  ;;  %v4911_v55 = vmul.f32 %v9151_v62, %v10123_v45  ;;  %v4607_v5 = vpack.c.bf16 %v4586_v10, %v4584_v29  ;;  %v5014_v30 = vmax.f32 %v4998_v21, 0.0  ;;  %v4842_v51 = vmul.f32 %v9154_v44, %v10121_v34 }
 0x812   : >> { %4666 = vmatprep.subr.bf16.mxu1 %v4611_v4  ;;  %v4996_v4 = vadd.f32 %v10124_v24, %v4931_v53  ;;  %v4844_v62 = vmul.f32 %v9154_v44, %v10122_v46  ;;  %v4910_v39 = vmul.f32 %v9148_v15, %v10123_v45  ;;  %v4994_v60 = vadd.f32 %v10125_v57, %v9215_v38 }
 0x813   : >> { %v4606_v23 = vpack.c.bf16 %v4585_v14, %v4583_v58  ;;  %v4925_v56 = vadd.f32 %v9197_v27, %v4843_v61  ;;  %v4927_v32 = vadd.f32 %v4911_v55, %v4845_v0  ;;  %v5039_v47 = vpack.c.bf16 %v5020_v16, %v5018_v33  ;;  %v6647_v16 = vld [vmem:[%s7031_s26 + $0xf0] sm:$0xff]   ;;  %v6648_v14 = vld [vmem:[%s7031_s26 + $0xf8] sm:$0xff]  }
 0x814   : >> { %v5016_v63 = vmax.f32 %v5000_v7, 0.0  ;;  %v5038_v52 = vpack.c.bf16 %v5019_v40, %v5017_v12  ;;  %v4995_v44 = vadd.f32 %v10124_v24, %v4930_v6  ;;  %v5013_v35 = vmax.f32 %v4997_v19, 0.0  ;;  %v6646_v7 = vld [vmem:[%s7031_s26 + $0xe8] sm:$0xff]  }
 0x815   : >> { %4667 = vmatpush1.bf16.msra.mxu1 %v4610_v50  ;;  %v5015_v15 = vmax.f32 %v4999_v25, 0.0  ;;  %v4993_v38 = vadd.f32 %v10125_v57, %v9212_v43  ;;  %v5010_v2 = vmax.f32 %v4994_v60, 0.0  ;;  %v4924_v27 = vadd.f32 %v9187_v3, %v4842_v51  ;;  %v10127_v50 = vld [vmem:[#allocation170_spill] sm:$0xff] }
 0x816   : >> { %4668 = vmatprep.subr.bf16.mxu1 %v4609_v9  ;;  %v4926_v49 = vadd.f32 %v4910_v39, %v4844_v62  ;;  %v4990_v33 = vadd.f32 %v10126_v36, %v4925_v56  ;;  %v4992_v26 = vadd.f32 %v10127_v50, %v4927_v32  ;;  %v5037_v22 = vpack.c.bf16 %v5016_v63, %v5014_v30  ;;  %v10128_v40 = vld [vmem:[#allocation42_spill] sm:$0xff]  ;;  %v10129_v62 = vld [vmem:[#allocation68_spill] sm:$0xff] }
 0x817   : >> { %v5012_v12 = vmax.f32 %v4996_v4, 0.0  ;;  %v5011_v41 = vmax.f32 %v4995_v44, 0.0  ;;  %v5036_v10 = vpack.c.bf16 %v5015_v15, %v5013_v35  ;;  %v5009_v43 = vmax.f32 %v4993_v38, 0.0 }
 0x818   : >> { %v4989_v9 = vadd.f32 %v10126_v36, %v4924_v27  ;;  %v4991_v3 = vadd.f32 %v10127_v50, %v4926_v49  ;;  %v5006_v1 = vmax.f32 %v4990_v33, 0.0  ;;  %v5008_v59 = vmax.f32 %v4992_v26, 0.0 }
 0x819   : >> { %4669 = vmatpush1.bf16.msra.mxu1 %v4608_v17  ;;  %v5035_v48 = vpack.c.bf16 %v5012_v12, %v5010_v2  ;;  %v5034_v53 = vpack.c.bf16 %v5011_v41, %v5009_v43  ;;  %v4638_v17 = vpop.permute.xlu1 %4637 }
 0x81a   : >> { %4670 = vmatprep.subr.bf16.mxu1 %v4607_v5  ;;  %v5005_v11 = vmax.f32 %v4989_v9, 0.0  ;;  %v5007_v42 = vmax.f32 %v4991_v3, 0.0  ;;  %v5033_v21 = vpack.c.bf16 %v5008_v59, %v5006_v1 }
 0x81c   : >> { %v5032_v29 = vpack.c.bf16 %v5007_v42, %v5005_v11 }
 0x81d   : >> { %4671 = vmatpush1.bf16.msra.mxu1 %v4606_v23  ;;  %v4730_v34 = vpop.permute.xlu1 %4729  ;;  %v10130_v23 = vld [vmem:[#allocation44_spill] sm:$0xff] }
 0x81e   : >> { %5129 = vmatprep.subr.bf16.mxu1 %v5039_v47 }
 0x820   : >> { %6288 = vmatmul.mubr.msk.bf16.vlgmr.msra.gmra.mxu1 %vm831_vm0, %v6643_v31 }
 0x821   : >> { %5130 = vmatpush1.bf16.msra.mxu1 %v5038_v52  ;;  %4698 = vmatprep.mubr.bf16.mxu1 %v9718_v13  ;;  %v9307_v61 = vpop.permute.xlu1 %5248 }
 0x822   : >> { %5131 = vmatprep.subr.bf16.mxu1 %v5037_v22  ;;  %v4740_v22 = vpop.permute.xlu0 %4739 }
 0x825   : >> { %5132 = vmatpush1.bf16.msra.mxu1 %v5036_v10  ;;  %v9312_v58 = vpop.permute.xlu1 %5340 }
 0x826   : >> { %5133 = vmatprep.subr.bf16.mxu1 %v5035_v48 }
 0x828   : >> { %6289 = vmatmul.mubr.msk.bf16.gmra.mxu1 %vm831_vm0, %v6644_v37 }
 0x829   : >> { %5134 = vmatpush1.bf16.msra.mxu1 %v5034_v53  ;;  %5153 = vmatprep.mubr.bf16.mxu1 %v9718_v13  ;;  %v4735_v44 = vpop.permute.xlu1 %4734 }
 0x82a   : >> { %5135 = vmatprep.subr.bf16.mxu1 %v5033_v21 }
 0x82d   : >> { %5136 = vmatpush1.bf16.msra.mxu1 %v5032_v29 }
 0x830   : >> { %6343 = vmatmul.mubr.msk.bf16.vlgmr.msra.gmra.mxu1 %vm831_vm0, %v6645_v54 }
 0x831   : >> { %5163 = vmatprep.mubr.bf16.mxu1 %v9718_v13 }
 0x838   : >> { %6344 = vmatmul.mubr.msk.bf16.gmra.mxu1 %vm831_vm0, %v6646_v7 }
 0x839   : >> { %5173 = vmatprep.mubr.bf16.mxu1 %v9718_v13 }
 0x840   : >> { %6345 = vmatmul.mubr.msk.bf16.gmra.mxu1 %vm831_vm0, %v6647_v16 }
 0x841   : >> { %5183 = vmatprep.mubr.bf16.mxu1 %v9718_v13 }
 0x848   : >> { %6346 = vmatmul.mubr.msk.bf16.gmra.mxu1 %vm831_vm0, %v6648_v14 }
 0x8e0   : >> { %v4690_v46 = vpop.f32.mrf.mxu1 }
 0x8e1   : >> { %v4691_v0 = vadd.f32 %v4690_v46, %v9118_v18 }
 0x8e2   : >> { %v4692_v45 = vpop.f32.mrf.mxu1 }
 0x8e3   : >> { %v4693_v55 = vadd.f32 %v4692_v45, %v9118_v18  ;;  %v4709_v25 = vmax.f32 %v4691_v0, 0.0 }
 0x8e4   : >> { %v4694_v5 = vpop.f32.mrf.mxu1 }
 0x8e5   : >> { %v4695_v6 = vadd.f32 %v4694_v5, %v10128_v40  ;;  %v4710_v24 = vmax.f32 %v4693_v55, 0.0  ;;  %v4742_v39 = vmul.f32 %v10129_v62, %v4709_v25 }
 0x8e6   : >> { %v4696_v4 = vpop.f32.mrf.mxu1 }
 0x8e7   : >> { %v4711_v19 = vmax.f32 %v4695_v6, 0.0  ;;  %v4697_v30 = vadd.f32 %v4696_v4, %v10128_v40  ;;  %v4743_v18 = vmul.f32 %v10129_v62, %v4710_v24 }
 0x8e8   : >> { %v4700_v51 = vpop.f32.mrf.mxu1 }
 0x8e9   : >> { %v4744_v57 = vmul.f32 %v4730_v34, %v4711_v19  ;;  %v4712_v60 = vmax.f32 %v4697_v30, 0.0  ;;  %v4701_v56 = vadd.f32 %v4700_v51, %v10130_v23 }
 0x8ea   : >> { %v4702_v32 = vpop.f32.mrf.mxu1 }
 0x8eb   : >> { %v4750_v47 = vadd.f32 %v4744_v57, %v4742_v39  ;;  %v4745_v31 = vmul.f32 %v4730_v34, %v4712_v60  ;;  %v4713_v63 = vmax.f32 %v4701_v56, 0.0  ;;  %v4703_v52 = vadd.f32 %v4702_v32, %v10130_v23  ;;  %v10131_v39 = vld [vmem:[#allocation173_spill] sm:$0xff]  ;;  %v10132_v60 = vld [vmem:[#allocation62_spill] sm:$0xff]  ;;  %v10133_v56 = vld [vmem:[#allocation171_spill] sm:$0xff] }
 0x8ec   : >> { %v4704_v35 = vpop.f32.mrf.mxu1 }
 0x8ed   : >> { %v4759_v15 = vadd.f32 %v4745_v31, %v4743_v18  ;;  %v4746_v38 = vmul.f32 %v4735_v44, %v4713_v63  ;;  %v4714_v2 = vmax.f32 %v4703_v52, 0.0  ;;  %v4705_v27 = vadd.f32 %v4704_v35, %v4638_v17 }
 0x8ee   : >> { %v4706_v49 = vpop.f32.mrf.mxu1 }
 0x8ef   : >> { %v4751_v36 = vadd.f32 %v4750_v47, %v4746_v38  ;;  %v4747_v33 = vmul.f32 %v4735_v44, %v4714_v2  ;;  %v4715_v50 = vmax.f32 %v4705_v27, 0.0  ;;  %v4707_v26 = vadd.f32 %v4706_v49, %v4638_v17  ;;  %v10134_v47 = vld [vmem:[#allocation167_spill] sm:$0xff]  ;;  %v10135_v44 = vld [vmem:[#allocation174_spill] sm:$0xff] }
 0x8f0   : >> { %v9319_v12 = vpop.f32.mrf.mxu1 }
 0x8f1   : >> { %v4760_v41 = vadd.f32 %v4759_v15, %v4747_v33  ;;  %v4748_v10 = vmul.f32 %v4740_v22, %v4715_v50  ;;  %v4716_v43 = vmax.f32 %v4707_v26, 0.0 }
 0x8f2   : >> { %v5157_v9 = vpop.f32.mrf.mxu1 }
 0x8f3   : >> { %v4752_v3 = vadd.f32 %v4751_v36, %v4748_v10  ;;  %v4749_v1 = vmul.f32 %v4740_v22, %v4716_v43  ;;  %v10136_v36 = vld [vmem:[#allocation169_spill] sm:$0xff]  ;;  %v10137_v43 = vld [vmem:[#allocation175_spill] sm:$0xff] }
 0x8f4   : >> { %v5159_v59 = vpop.f32.mrf.mxu1 }
 0x8f5   : >> { %v4753_v48 = vrot.slane %v4752_v3, 4  ;;  %v4761_v37 = vadd.f32 %v4760_v41, %v4749_v1 }
 0x8f6   : >> { %v5161_v53 = vpop.f32.mrf.mxu1 }
 0x8f7   : >> { %v4754_v11 = vadd.f32 %v4753_v48, %v4752_v3  ;;  %v4762_v42 = vrot.slane %v4761_v37, 4  ;;  %v5162_v3 = vadd.f32 %v5161_v53, %v10137_v43 }
 0x8f8   : >> { %v5165_v21 = vpop.f32.mrf.mxu1 }
 0x8f9   : >> { %v4755_v29 = vrot.slane %v4754_v11, 2  ;;  %v4763_v54 = vadd.f32 %v4762_v42, %v4761_v37  ;;  %v5166_v37 = vadd.f32 %v5165_v21, %v10136_v36  ;;  %v10138_v42 = vld [vmem:[#allocation172_spill] sm:$0xff] }
 0x8fa   : >> { %v5167_v7 = vpop.f32.mrf.mxu1  ;;  %v5156_v53 = vadd.f32 %v9319_v12, %v10138_v42 }
 0x8fb   : >> { %v4756_v16 = vadd.f32 %v4755_v29, %v4754_v11  ;;  %v4764_v14 = vrot.slane %v4763_v54, 2  ;;  %v5168_v33 = vadd.f32 %v5167_v7, %v10136_v36  ;;  %v5158_v29 = vadd.f32 %v5157_v9, %v10138_v42 }
 0x8fc   : >> { %v5169_v17 = vpop.f32.mrf.mxu1  ;;  %v5160_v7 = vadd.f32 %v5159_v59, %v10137_v43 }
 0x8fd   : >> { %v4757_v34 = vrot.slane %v4756_v16, 1  ;;  %v4765_v46 = vadd.f32 %v4764_v14, %v4763_v54  ;;  %v5170_v22 = vadd.f32 %v5169_v17, %v10135_v44  ;;  %v5199_v54 = vmax.f32 %v5168_v33, 0.0 }
 0x8fe   : >> { %v5171_v0 = vpop.f32.mrf.mxu1  ;;  %v5197_v17 = vmax.f32 %v5162_v3, 0.0  ;;  %v5195_v21 = vmax.f32 %v5158_v29, 0.0 }
 0x8ff   : >> { %v4758_v45 = vadd.f32 %v4757_v34, %v4756_v16  ;;  %v4766_v55 = vrot.slane %v4765_v46, 1  ;;  %v5172_v35 = vadd.f32 %v5171_v0, %v10135_v44  ;;  %v5200_v16 = vmax.f32 %v5170_v22, 0.0  ;;  %v10141_v44 = vld [vmem:[#allocation48_spill] sm:$0xff] }
 0x900   : >> { %v5175_v5 = vpop.f32.mrf.mxu1  ;;  %v5196_v0 = vmax.f32 %v5160_v7, 0.0  ;;  %v5218_v9 = vpack.c.bf16 %v5197_v17, %v5195_v21 }
 0x901   : >> { %v9322_v25 = vsel %vm5394_vm6, %v9160_v8, %v4758_v45  ;;  %v4767_v40 = vadd.f32 %v4766_v55, %v4765_v46  ;;  %v5176_v27 = vadd.f32 %v5175_v5, %v10134_v47  ;;  %v5201_v1 = vmax.f32 %v5172_v35, 0.0  ;;  %v6649_v5 = vld [vmem:[%s7408_s2 + $0x70] sm:$0xff]  }
 0x902   : >> { %v5177_v6 = vpop.f32.mrf.mxu1  ;;  %v5198_v46 = vmax.f32 %v5166_v37, 0.0  ;;  %v5194_v55 = vmax.f32 %v5156_v53, 0.0 }
 0x903   : >> { %v9325_v24 = vsel %vm5394_vm6, %v9171_v20, %v4767_v40  ;;  %v5178_v31 = vadd.f32 %v5177_v6, %v10134_v47  ;;  %v5202_v11 = vmax.f32 %v5176_v27, 0.0  ;;  %v5220_v34 = vpack.c.bf16 %v5201_v1, %v5199_v54  ;;  %v6650_v40 = vld [vmem:[%s7408_s2 + $0x78] sm:$0xff]   ;;  %s5837_s2 = sshll.u32 %s6765_s23, 3  ;;  %s487_s23 = sadd.s32 1, %s6765_s23  }
 0x904   : >> { %v5179_v4 = vpop.f32.mrf.mxu1  ;;  %v5219_v45 = vpack.c.bf16 %v5200_v16, %v5198_v46  ;;  %v5217_v59 = vpack.c.bf16 %v5196_v0, %v5194_v55  ;;  %s5400_s3 = sshra.s32 %s5837_s2, 3  ;;  %p484_p13 = scmp.ge.s32.totalorder %s487_s23, 3  }
 0x905   : >> { %v5180_v20 = vadd.f32 %v5179_v4, %v10131_v39  ;;  %v5203_v50 = vmax.f32 %v5178_v31, 0.0  ;;  %v10139_v4 = vld [vmem:[#allocation60_spill] sm:$0xff]  ;;  %s6443_s27 = sshll.u32 %s5400_s3, 4  ;;  %s6444_s29 = sshll.u32 (%p484_p13), %s6846_s13, 8 }
 0x906   : >> { %v5181_v19 = vpop.f32.mrf.mxu1  ;;  %s5404_s16 = scalar_lea.vmem %s6942_s21, %s6443_s27 [#allocation3]  ;;  %s9378_s25 = scalar_lea.hbm (%p484_p13), %s9453_s8, %s6444_s29 }
 0x907   : >> { %v5182_v57 = vadd.f32 %v5181_v19, %v10131_v39  ;;  %v5204_v41 = vmax.f32 %v5180_v20, 0.0  ;;  %s5463_s14 = sshll.u32 (%p484_p13), %s6942_s21, 4  ;;  %s5445_s17 = scalar_lea.sflag (%p484_p13), [#allocation4], %s6935_s28  ;;  %s9381_s14 = int_to_ptr.vmem [resolvable:$true] %s5463_s14 }
 0x908   : >> { %v5185_v30 = vpop.f32.mrf.mxu1  ;;  %s6651_s23 = scalar_lea.vmem (%p484_p13), %s9381_s14, 768  ;;  %s6770_s0 = smov (%p484_p13), [#allocation3]  }
 0x909   : >> { %v5186_v32 = vadd.f32 %v5185_v30, %v10132_v60  ;;  %v5205_v15 = vmax.f32 %v5182_v57, 0.0  ;;  %v5221_v14 = vpack.c.bf16 %v5204_v41, %v5202_v11  ;;  %p6652_p0 = scmp.ne.s32.totalorder (%p484_p13), %s9381_s14, %s6651_s23  ;;  %s6655_s1 = sshll.u32 (%p484_p13), %s6770_s0, 4  ;;  %s6656_s1 = int_to_ptr.vmem [resolvable:$false] %s6655_s1 }
 0x90a   : >> { %v5187_v51 = vpop.f32.mrf.mxu1  ;;  %s6657_s2 = scalar_lea.vmem (%p484_p13), %s6656_s1, 1536  ;;  %p6658_p3 = scmp.lt.s32.totalorder (%p484_p13), %s9381_s14, %s6656_s1 }
 0x90b   : >> { %v5188_v23 = vadd.f32 %v5187_v51, %v10132_v60  ;;  %v5206_v49 = vmax.f32 %v5186_v32, 0.0  ;;  %v5222_v48 = vpack.c.bf16 %v5205_v15, %v5203_v50  ;;  %p6653_p1 = pnand (%p484_p13), %p6652_p0, %p6864_p6  ;;  %p6659_p4 = scmp.lt.s32.totalorder (%p484_p13), %s6657_s2, %s6651_s23 }
 0x90c   : >> { %v5189_v62 = vpop.f32.mrf.mxu1 }
 0x90d   : >> { %v5190_v18 = vadd.f32 %v5189_v62, %v10133_v56  ;;  %v5207_v38 = vmax.f32 %v5188_v23, 0.0  ;;  %p6654_p2 = pneg (%p484_p13), %p6653_p1  ;;  %p6660_p5 = por (%p484_p13), %p6659_p4, %p6658_p3 }
 0x90e   : >> { %v5191_v8 = vpop.f32.mrf.mxu1 }
 0x90f   : >> { %v5192_v63 = vadd.f32 %v5191_v8, %v10133_v56  ;;  %v5208_v52 = vmax.f32 %v5190_v18, 0.0  ;;  %v5346_v8 = vpop.permute.xlu1 %5345  ;;  %p6661_p7 = pnand (%p484_p13), %p6660_p5, %p6654_p2 }
 0x911   : >> { %v5209_v2 = vmax.f32 %v5192_v63, 0.0  ;;  %v5223_v10 = vpack.c.bf16 %v5208_v52, %v5206_v49 }
 0x913   : >> { %v5224_v26 = vpack.c.bf16 %v5209_v2, %v5207_v38  ;;  %v5351_v41 = vpop.permute.xlu1 %5350 }
 0x915   : >> { %5275 = vmatprep.subr.bf16.mxu0 %v5224_v26 }
 0x916   : >> { %5276 = vmatpush1.bf16.msra.mxu0 %v5223_v10 }
 0x917   : >> { %5277 = vmatprep.subr.bf16.mxu0 %v5222_v48 }
 0x91a   : >> { %5278 = vmatpush1.bf16.msra.mxu0 %v5221_v14 }
 0x91b   : >> { %5279 = vmatprep.subr.bf16.mxu0 %v5220_v34 }
 0x91e   : >> { %5280 = vmatpush1.bf16.msra.mxu0 %v5219_v45 }
 0x91f   : >> { %5281 = vmatprep.subr.bf16.mxu0 %v5218_v9 }
 0x922   : >> { %5282 = vmatpush1.bf16.msra.mxu0 %v5217_v59 }
 0x925   : >> { %6361 = vmatmul.mubr.msk.bf16.vlgmr.msra.gmra.mxu0 %vm831_vm0, %v6649_v5 }
 0x926   : >> { %5309 = vmatprep.mubr.bf16.mxu0 %v9718_v13  ;;  %v10140_v13 = vld [vmem:[#allocation65_spill] sm:$0xff] }
 0x92d   : >> { %6362 = vmatmul.mubr.msk.bf16.gmra.mxu0 %vm831_vm0, %v6650_v40 }
 0x9e5   : >> { %v5301_v12 = vpop.f32.mrf.mxu0 }
 0x9e6   : >> { %v5302_v19 = vadd.f32 %v5301_v12, %v10139_v4 }
 0x9e7   : >> { %v5303_v6 = vpop.f32.mrf.mxu0 }
 0x9e8   : >> { %v5304_v62 = vadd.f32 %v5303_v6, %v10139_v4  ;;  %v5320_v23 = vmax.f32 %v5302_v19, 0.0 }
 0x9e9   : >> { %v5305_v30 = vpop.f32.mrf.mxu0 }
 0x9ea   : >> { %v5306_v51 = vadd.f32 %v5305_v30, %v9120_v28  ;;  %v5321_v47 = vmax.f32 %v5304_v62, 0.0  ;;  %v5353_v35 = vmul.f32 %v10141_v44, %v5320_v23  ;;  %v10142_v62 = vld [vmem:[#allocation10_spill] sm:$0xff]  ;;  %v6769_v23 = vmov (%p484_p13), 1966171168  }
 0x9eb   : >> { %v5307_v39 = vpop.f32.mrf.mxu0 }
 0x9ec   : >> { %v5322_v57 = vmax.f32 %v5306_v51, 0.0  ;;  %v5308_v60 = vadd.f32 %v5307_v39, %v9120_v28  ;;  %v5354_v49 = vmul.f32 %v10141_v44, %v5321_v47 }
 0x9ed   : >> { %v5311_v56 = vpop.f32.mrf.mxu0 }
 0x9ee   : >> { %v5323_v18 = vmax.f32 %v5308_v60, 0.0  ;;  %v5312_v32 = vadd.f32 %v5311_v56, %v10140_v13  ;;  %v5355_v63 = vmul.f32 %v9312_v58, %v5322_v57  ;;  %v5425_v56 = vunpack.c.l.s4 (%p484_p13), %v6769_v23 }
 0x9ef   : >> { %v5313_v31 = vpop.f32.mrf.mxu0 }
 0x9f0   : >> { %v5324_v20 = vmax.f32 %v5312_v32, 0.0  ;;  %v5314_v52 = vadd.f32 %v5313_v31, %v10140_v13  ;;  %v5356_v38 = vmul.f32 %v9312_v58, %v5323_v18  ;;  %v5361_v33 = vadd.f32 %v5355_v63, %v5353_v35 }
 0x9f1   : >> { %v5315_v15 = vpop.f32.mrf.mxu0  ;;  %v5426_v13 = vunpack.c.0.s8 (%p484_p13), %v5425_v56 }
 0x9f2   : >> { %v5357_v2 = vmul.f32 %v5346_v8, %v5324_v20  ;;  %v5325_v28 = vmax.f32 %v5314_v52, 0.0  ;;  %v5316_v27 = vadd.f32 %v5315_v15, %v9307_v61  ;;  %v5370_v10 = vadd.f32 %v5356_v38, %v5354_v49 }
 0x9f3   : >> { %v5317_v36 = vpop.f32.mrf.mxu0 }
 0x9f4   : >> { %v5358_v50 = vmul.f32 %v5346_v8, %v5325_v28  ;;  %v5326_v26 = vmax.f32 %v5316_v27, 0.0  ;;  %v5318_v22 = vadd.f32 %v5317_v36, %v9307_v61  ;;  %v5362_v43 = vadd.f32 %v5361_v33, %v5357_v2 }
 0x9f6   : >> { %v5359_v3 = vmul.f32 %v5351_v41, %v5326_v26  ;;  %v5327_v1 = vmax.f32 %v5318_v22, 0.0  ;;  %v5371_v48 = vadd.f32 %v5370_v10, %v5358_v50 }
 0x9f8   : >> { %v5363_v58 = vadd.f32 %v5362_v43, %v5359_v3  ;;  %v5360_v37 = vmul.f32 %v5351_v41, %v5327_v1 }
 0x9fa   : >> { %v5364_v11 = vrot.slane %v5363_v58, 4  ;;  %v5372_v42 = vadd.f32 %v5371_v48, %v5360_v37 }
 0x9fc   : >> { %v5365_v29 = vadd.f32 %v5364_v11, %v5363_v58  ;;  %v5373_v54 = vrot.slane %v5372_v42, 4 }
 0x9fe   : >> { %v5366_v7 = vrot.slane %v5365_v29, 2  ;;  %v5374_v16 = vadd.f32 %v5373_v54, %v5372_v42 }
 0xa00   : >> { %v5367_v14 = vadd.f32 %v5366_v7, %v5365_v29  ;;  %v5375_v17 = vrot.slane %v5374_v16, 2 }
 0xa02   : >> { %v5368_v61 = vrot.slane %v5367_v14, 1  ;;  %v5376_v34 = vadd.f32 %v5375_v17, %v5374_v16 }
 0xa04   : >> { %v5369_v53 = vadd.f32 %v5368_v61, %v5367_v14  ;;  %v5377_v46 = vrot.slane %v5376_v34, 1 }
 0xa06   : >> { %v5398_v21 = vsel %vm5397_vm7, %v9322_v25, %v5369_v53  ;;  %v5378_v0 = vadd.f32 %v5377_v46, %v5376_v34  ;;  %v10143_v25 = vld [vmem:[#allocation9_spill] sm:$0xff] }
 0xa07   : >> { %5405 = vst [vmem:[%s5404_s16] sm:$0xff] %v5398_v21  ;;  %v5407_v45 = vrot.slane %v5398_v21, 4 }
 0xa08   : >> { %v5399_v9 = vsel %vm5397_vm7, %v9325_v24, %v5378_v0 }
 0xa09   : >> { %v5408_v55 = vadd.f32 %v5407_v45, %v5398_v21  ;;  %5406 = vst [vmem:[%s5404_s16 + $0x8] sm:$0xff] %v5399_v9  ;;  %v5413_v59 = vrot.slane %v5399_v9, 4 }
 0xa0b   : >> { %v5409_v5 = vrot.slane %v5408_v55, 2  ;;  %v5414_v40 = vadd.f32 %v5413_v59, %v5399_v9 }
 0xa0d   : >> { %v5410_v12 = vadd.f32 %v5409_v5, %v5408_v55  ;;  %v5415_v6 = vrot.slane %v5414_v40, 2 }
 0xa0f   : >> { %v5411_v4 = vrot.slane %v5410_v12, 1  ;;  %v5416_v19 = vadd.f32 %v5415_v6, %v5414_v40 }
 0xa11   : >> { %v5412_v30 = vadd.f32 %v5411_v4, %v5410_v12  ;;  %v5417_v51 = vrot.slane %v5416_v19, 1 }
 0xa13   : >> { %v5419_v39 = vadd.f32 %v10142_v62, %v5412_v30   ;;  %v5418_v57 = vadd.f32 %v5417_v51, %v5416_v19  ;;  %486 = sbr.rel (!%p484_p13) target bundleno = 64 (0x40), region = 222 }
 0xa15   : >> { %v5420_v60 = vadd.f32 %v10143_v25, %v5418_v57   ;;  %v10145_v25 = vmov %v5419_v39 }
 0xa17   : >> { %v10144_v24 = vmov %v5420_v60  ;;  %v5423_v18 = vcombine.low (%p484_p13), %v5419_v39, %v5420_v60 }
 0xa18   : > { %6664 = shalt.err (!%p6661_p7)
}
 0xa19   : > { %s6665_s21 = scalar_lea.hbm %s9378_s25, 768  ;;  %s6669_s16 = scalar_lea.hbm %s9453_s8, 1536 }
 0xa1a   : > { %p6666_p10 = scmp.ne.s32.totalorder %s9378_s25, %s6665_s21  ;;  %p6670_p13 = scmp.lt.s32.totalorder %s9378_s25, %s9453_s8 }
 0xa1b   : > { %p6671_p0 = scmp.lt.s32.totalorder %s6669_s16, %s6665_s21 }
 0xa1c   : > { %p6667_p11 = pnand %p6666_p10, %p6864_p6 }
 0xa1d   : > { %p6672_p1 = por %p6671_p0, %p6670_p13 }
 0xa1e   : > { %p6668_p12 = pneg %p6667_p11 }
 0xa20   : > { %p6673_p2 = pnand %p6672_p1, %p6668_p12 }
 0xa22   : > { %6676 = shalt.err (!%p6673_p2)
}
 0xa23   : > { %s6771_s26 = smov 256   ;;  %s6772_s23 = smov 512   ;;  %v10146_v24 = vld [vmem:[#allocation11_spill] sm:$0xff]  ;;  %v10147_v47 = vlaneseq }
 0xa24   : > { %s6773_s0 = smov 16   ;;  %v5429_v32 = vsub.s32 %v5426_v13, %v10146_v24  ;;  %s6445_s1 = sshll.u32 %s6846_s13, 5 }
 0xa25   : > { %6449 = dma.vmem_to_hbm [thread:$0]  (%p6864_p6), %s9381_s14, 768, %s9378_s25, %s5445_s17, %s6771_s26, %s6772_s23, %s6773_s0   ;;  %vm5441_vm8 = vcmp.lt.s32.totalorder %v10147_v47, 256 }
 0xa26   : > { %s5480_s2 = sshll.u32 %s6944_s22, 4  ;;  %v5430_v8 = vrot.slane %v5423_v18, %v5429_v32  ;;  %s5478_s27 = scalar_lea.hbm %s9454_s9, %s6445_s1  ;;  %s5481_s2 = int_to_ptr.vmem [resolvable:$true] %s5480_s2 }
 0xa27   : > { %s5450_s16 = scalar_lea.sflag [#allocation6], %s6935_s28  ;;  %s6677_s29 = scalar_lea.vmem %s5481_s2, 32 }
 0xa28   : > { %v5437_v31 = vrot.slane %v5430_v8, %v5429_v32  ;;  %p6678_p3 = scmp.ne.s32.totalorder %s5481_s2, %s6677_s29  ;;  %s6774_s25 = smov [#allocation5]  }
 0xa29   : > { %s6681_s14 = sshll.u32 %s6774_s25, 4  ;;  %s6682_s14 = int_to_ptr.vmem [resolvable:$false] %s6681_s14 }
 0xa2a   : > { %5443 = vst.msk [vmem:[%s6944_s22] sm:$0x3] %vm5441_vm8, %v5437_v31  ;;  %p6679_p4 = pnand %p6678_p3, %p6864_p6  ;;  %s6683_s13 = scalar_lea.vmem %s6682_s14, 64 }
 0xa2b   : > { %p6684_p7 = scmp.lt.s32.totalorder %s5481_s2, %s6682_s14  ;;  %p6685_p10 = scmp.lt.s32.totalorder %s6683_s13, %s6677_s29 }
 0xa2c   : > { %p6680_p5 = pneg %p6679_p4 }
 0xa2d   : > { %p6686_p11 = por %p6685_p10, %p6684_p7 }
 0xa2f   : > { %p6687_p12 = pnand %p6686_p11, %p6680_p5 }
 0xa31   : > { %6690 = shalt.err (!%p6687_p12)
}
 0xa32   : > { %s6691_s17 = scalar_lea.hbm %s5478_s27, 32  ;;  %s6695_s24 = scalar_lea.hbm %s9454_s9, 64 }
 0xa33   : > { %p6692_p13 = scmp.ne.s32.totalorder %s5478_s27, %s6691_s17  ;;  %p6696_p2 = scmp.lt.s32.totalorder %s5478_s27, %s9454_s9 }
 0xa34   : > { %p6697_p3 = scmp.lt.s32.totalorder %s6695_s24, %s6691_s17 }
 0xa35   : > { %p6693_p0 = pnand %p6692_p13, %p6864_p6 }
 0xa36   : > { %p6698_p4 = por %p6697_p3, %p6696_p2 }
 0xa37   : > { %p6694_p1 = pneg %p6693_p0 }
 0xa39   : > { %p6699_p9 = pnand %p6698_p4, %p6694_p1 }
 0xa3b   : > { %6702 = shalt.err (!%p6699_p9)
}
 0xa3c   : > { %6450 = dma.vmem_to_hbm [thread:$0]  (%p6864_p6), %s5481_s2, 32, %s5478_s27, %s5450_s16  }
 0xa3d PF: > { %s5492_s0 = sand.u32 1, %s6741_s30   ;;  %p10148_p5 = scmp.ge.s32.totalorder %s6753_s12, 2 }
 0xa3e   : > { %s5493_s1 = scalar_lea.sflag [#allocation4], %s5492_s0 }
 0xa3f   : > { %p6454_p7 = pnand %p10148_p5, %p6868_p8 }
 0xa41   : > { %p6455_p10 = pneg %p6454_p7 }
 0xa43   : > { %6732 = dma.done.wait (%p6455_p10), %s5493_s1, 768  }
 0xa44   : > { %6734 = vsyncadd (%p6455_p10), %s5493_s1, 4294966528  ;;  %s5502_s21 = scalar_lea.sflag [#allocation6], %s5492_s0 }
 0xa45   : > { %6736 = dma.done.wait (%p6455_p10), %s5502_s21, 32  }
 0xa46   : > { %6738 = vsyncadd (%p6455_p10), %s5502_s21, 4294967264  ;;  %p23_p6 = scmp.ge.s32.totalorder %s6850_s15, 4   ;;  %s10149_s30 = smov %s6745_s10 }
 0xa47   : > { %s10150_s10 = smov %s6749_s11  ;;  %s10151_s11 = smov %s6862_s18 }
 0xa48   : > { %s10152_s12 = smov %s6850_s15  ;;  %25 = sbr.rel (!%p23_p6) target bundleno = 10 (0xa), region = 233 }
 0xa4d   :  { %5507 = vsyncpa [#allocation4], 1 }
 0xa4e   :  { %5509 = vsyncpa [#allocation4 + $0x1], 1 }
 0xa4f   :  { %5510 = vsyncpa [#allocation6], 1 }
 0xa50   :  { %5512 = vsyncpa [#allocation6 + $0x1], 1 }

</bundles_post_ra>
